<compile_context>
chip_gen: v7x
topology: tpu7x:2x2x1
jax: 0.10.0
libtpu: 0.0.40
codegen_flags: <defaults>
</compile_context>

<pallas_src>
import functools

import jax
import jax.numpy as jnp
from jax import lax
from jax.experimental import pallas as pl
from jax.experimental.pallas import tpu as pltpu

SOS_token = 1
MAX_LENGTH = 10
OUT_W = 128   # lane-dense output width; wrapper slices [:, :MAX_LENGTH]


def greedy_kernel(emb_in_ref, emb_tbl_ref,
                  wih_fb_ref, bih_fb_ref,
                  whh_f_ref, bhh_f_ref, whh_b_ref, bhh_b_ref,
                  wih_d_ref, whh_d_ref, bih_d_ref, bhh_d_ref,
                  wc_ref, bc_ref, wo_ref, bo_ref,
                  tok_ref, score_ref,
                  *, seq_len, hidden, vocab, max_length):
    T, H, V = seq_len, hidden, vocab

    def gru_gates(gx, gh, h_prev):
        # gx, gh: (1, 3H) stacked gate pre-activations, PyTorch order [r, z, n]
        s = gx + gh
        r = jax.nn.sigmoid(s[:, 0:H])
        z = jax.nn.sigmoid(s[:, H:2 * H])
        n = jnp.tanh(gx[:, 2 * H:3 * H] + r * gh[:, 2 * H:3 * H])
        return (1.0 - z) * n + z * h_prev

    emb_in = emb_in_ref[...]                                             # (T, H)

    # ---------- encoder: fused input projection (one MXU push) ---------- #
    xproj = jnp.dot(emb_in, wih_fb_ref[...],
                    preferred_element_type=jnp.float32) + bih_fb_ref[...]  # (T, 6H)
    xproj_f = xproj[:, 0:3 * H]
    xproj_b = xproj[:, 3 * H:6 * H]

    whh_f = whh_f_ref[...]
    bhh_f = bhh_f_ref[...]
    whh_b = whh_b_ref[...]
    bhh_b = bhh_b_ref[...]

    # ---------- encoder: interleaved fwd/bwd recurrence ---------- #
    row_iota = lax.broadcasted_iota(jnp.int32, (T, 1), 0)
    h_f = jnp.zeros((1, H), jnp.float32)
    h_b = jnp.zeros((1, H), jnp.float32)
    enc = jnp.zeros((T, H), jnp.float32)       # summed bidirectional outputs
    for t in range(T):                         # static, unrolled
        tb = T - 1 - t
        # Two independent (1,H)@(H,3H) dots: MXU push/pop latencies overlap.
        gh_f = jnp.dot(h_f, whh_f, preferred_element_type=jnp.float32) + bhh_f
        gh_b = jnp.dot(h_b, whh_b, preferred_element_type=jnp.float32) + bhh_b
        h_f = gru_gates(xproj_f[t:t + 1, :], gh_f, h_f)
        h_b = gru_gates(xproj_b[tb:tb + 1, :], gh_b, h_b)
        # Additive in-register row accumulation (each row hit once per dir).
        enc = jnp.where(row_iota == t, enc + h_f, enc)
        enc = jnp.where(row_iota == tb, enc + h_b, enc)

    h = h_f   # decoder init hidden = encoder_hidden[:n_layers] (fwd final)

    # ---------- decoder: fused 10-step greedy loop ---------- #
    lane_iota = lax.broadcasted_iota(jnp.int32, (1, OUT_W), 1)
    iota_v = lax.broadcasted_iota(jnp.int32, (1, V), 1)
    toks = jnp.zeros((1, OUT_W), jnp.int32)
    scores = jnp.zeros((1, OUT_W), jnp.float32)

    x = emb_tbl_ref[SOS_token:SOS_token + 1, :]     # SOS embedding (static row)

    for step in range(max_length):                  # static, unrolled
        # GRU cell (stacked gates -> 2 MXU pushes). Weights re-loaded from
        # VMEM refs each step to bound vreg live ranges across the unroll.
        gx = jnp.dot(x, wih_d_ref[...],
                     preferred_element_type=jnp.float32) + bih_d_ref[...]
        gh = jnp.dot(h, whh_d_ref[...],
                     preferred_element_type=jnp.float32) + bhh_d_ref[...]
        h = gru_gates(gx, gh, h)

        # Luong "dot" attention, fully elementwise (no per-step RHS transpose
        # or MXU round trip): energies, softmax over T, context.
        e = jnp.sum(h * enc, axis=1, keepdims=True)                     # (T, 1)
        e = e - jnp.max(e, axis=0, keepdims=True)
        w = jnp.exp(e)
        attn = w * pl.reciprocal(jnp.sum(w, axis=0, keepdims=True), approx=True)
        ctx = jnp.sum(attn * enc, axis=0, keepdims=True)                # (1, H)

        # concat Linear + tanh: single (1,2H)@(2H,H) matmul.
        cat = jnp.concatenate([h, ctx], axis=1)                         # (1, 2H)
        co = jnp.tanh(jnp.dot(cat, wc_ref[...],
                              preferred_element_type=jnp.float32) + bc_ref[...])

        # Output projection; greedy pick directly on logits (argmax invariant
        # under softmax; score = max softmax prob = 1/sum(exp(logits - max))).
        logits = jnp.dot(co, wo_ref[...],
                         preferred_element_type=jnp.float32) + bo_ref[...]   # (1, V)
        m = jnp.max(logits, axis=1, keepdims=True)                           # (1, 1)
        denom = jnp.sum(jnp.exp(logits - m), axis=1, keepdims=True)          # (1, 1)
        score = pl.reciprocal(denom)                                         # exact
        tok = jnp.min(jnp.where(logits == m, iota_v, V), axis=1,
                      keepdims=True).astype(jnp.int32)                       # (1, 1)

        # Lane-packed in-register accumulation; stored once after the loop.
        toks = jnp.where(lane_iota == step, tok, toks)
        scores = jnp.where(lane_iota == step, score, scores)

        # Feed greedy token back via one-hot (1,V)@(V,H) MXU gather (in-kernel,
        # no host round trip).
        # TODO(synk): at realistic vocab sizes replace with a dynamic VMEM row
        # load (scalar argmax -> emb_tbl_ref[pl.ds(tok, 1), :]) and HBM-tiled
        # bf16 embedding/out weights instead of streaming the table through MXU.
        onehot = (iota_v == tok).astype(jnp.float32)                         # (1, V)
        x = jnp.dot(onehot, emb_tbl_ref[...],
                    preferred_element_type=jnp.float32)                      # (1, H)

    tok_ref[...] = toks       # two lane-dense output stores total
    score_ref[...] = scores


@jax.jit
def greedy_decode(input_seq, embedding, enc_p, dec_p):
    """input_seq: (T,) int32 token ids. Returns (all_tokens (10,), all_scores (10,))."""
    T = input_seq.shape[0]
    V, H = embedding.shape
    embedded = embedding[input_seq]                 # (T, H): one gather, before kernel

    # Fuse the two encoder input projections into one in-kernel matmul.
    wih_fb = jnp.concatenate([enc_p['wih_f'], enc_p['wih_b']], axis=1)   # (H, 6H)
    bih_fb = jnp.concatenate([enc_p['bih_f'], enc_p['bih_b']], axis=1)   # (1, 6H)

    vmem = pl.BlockSpec(memory_space=pltpu.MemorySpace.VMEM)
    kernel = functools.partial(greedy_kernel, seq_len=T, hidden=H, vocab=V,
                               max_length=MAX_LENGTH)
    toks, scores = pl.pallas_call(
        kernel,
        out_shape=(jax.ShapeDtypeStruct((1, OUT_W), jnp.int32),
                   jax.ShapeDtypeStruct((1, OUT_W), jnp.float32)),
        in_specs=[vmem] * 16,
        out_specs=(vmem, vmem),
    )(embedded, embedding,
      wih_fb, bih_fb,
      enc_p['whh_f'], enc_p['bhh_f'], enc_p['whh_b'], enc_p['bhh_b'],
      dec_p['wih'], dec_p['whh'], dec_p['bih'], dec_p['bhh'],
      dec_p['wc'], dec_p['bc'], dec_p['wo'], dec_p['bo'])
    return toks[0, :MAX_LENGTH], scores[0, :MAX_LENGTH]


def init_params(key, vocab, hidden):
    ks = jax.random.split(key, 17)

    def u(k, shape, fan_in):
        bound = 1.0 / float(fan_in) ** 0.5
        return jax.random.uniform(k, shape, jnp.float32, -bound, bound)

    embedding = jax.random.normal(ks[0], (vocab, hidden), jnp.float32) * 0.1
    # GRU weights stacked along the output dim: (H, 3H), gate order [r, z, n].
    enc = dict(
        wih_f=u(ks[1], (hidden, 3 * hidden), hidden),
        whh_f=u(ks[2], (hidden, 3 * hidden), hidden),
        bih_f=u(ks[3], (1, 3 * hidden), hidden),
        bhh_f=u(ks[4], (1, 3 * hidden), hidden),
        wih_b=u(ks[5], (hidden, 3 * hidden), hidden),
        whh_b=u(ks[6], (hidden, 3 * hidden), hidden),
        bih_b=u(ks[7], (1, 3 * hidden), hidden),
        bhh_b=u(ks[8], (1, 3 * hidden), hidden),
    )
    dec = dict(
        wih=u(ks[9], (hidden, 3 * hidden), hidden),
        whh=u(ks[10], (hidden, 3 * hidden), hidden),
        bih=u(ks[11], (1, 3 * hidden), hidden),
        bhh=u(ks[12], (1, 3 * hidden), hidden),
        wc=u(ks[13], (2 * hidden, hidden), 2 * hidden),  # concat Linear: [h | context]
        bc=u(ks[14], (1, hidden), 2 * hidden),
        wo=u(ks[15], (hidden, vocab), hidden),           # out Linear
        bo=u(ks[16], (1, vocab), hidden),
    )
    return embedding, enc, dec


if __name__ == "__main__":
    # TODO(synk): n_layers is fixed to 1 and pack_padded_sequence masking is not
    # modeled (single unpadded batch-1 sequence); tokens are int32 (TPU) vs int64.
    VOCAB, HIDDEN, SEQ = 64, 32, 8
    key = jax.random.PRNGKey(0)
    k_param, k_seq = jax.random.split(key)
    embedding, enc_p, dec_p = init_params(k_param, VOCAB, HIDDEN)
    input_seq = jax.random.randint(k_seq, (SEQ,), 2, VOCAB, dtype=jnp.int32)

    all_tokens, all_scores = greedy_decode(input_seq, embedding, enc_p, dec_p)
    jax.block_until_ready((all_tokens, all_scores))
    assert all_tokens.shape == (MAX_LENGTH,) and all_scores.shape == (MAX_LENGTH,)
    assert all_tokens.dtype == jnp.int32
    assert bool(jnp.all(all_scores > 0.0) & jnp.all(all_scores <= 1.0))
    assert bool(jnp.all(all_tokens >= 0) & jnp.all(all_tokens < VOCAB))
    print("KERNEL_OK")
</pallas_src>

<mosaic_0001>
module attributes {stable_mosaic.version = 11 : i64} {
  func.func @greedy_kernel(%arg0: memref<8x32xf32, #tpu.memory_space<vmem>>, %arg1: memref<64x32xf32, #tpu.memory_space<vmem>>, %arg2: memref<32x192xf32, #tpu.memory_space<vmem>>, %arg3: memref<1x192xf32, #tpu.memory_space<vmem>>, %arg4: memref<32x96xf32, #tpu.memory_space<vmem>>, %arg5: memref<1x96xf32, #tpu.memory_space<vmem>>, %arg6: memref<32x96xf32, #tpu.memory_space<vmem>>, %arg7: memref<1x96xf32, #tpu.memory_space<vmem>>, %arg8: memref<32x96xf32, #tpu.memory_space<vmem>>, %arg9: memref<32x96xf32, #tpu.memory_space<vmem>>, %arg10: memref<1x96xf32, #tpu.memory_space<vmem>>, %arg11: memref<1x96xf32, #tpu.memory_space<vmem>>, %arg12: memref<64x32xf32, #tpu.memory_space<vmem>>, %arg13: memref<1x32xf32, #tpu.memory_space<vmem>>, %arg14: memref<32x64xf32, #tpu.memory_space<vmem>>, %arg15: memref<1x64xf32, #tpu.memory_space<vmem>>, %arg16: memref<1x128xi32, #tpu.memory_space<vmem>>, %arg17: memref<1x128xf32, #tpu.memory_space<vmem>>) attributes {dimension_semantics = [], scalar_prefetch = 0 : i64, scratch_operands = 0 : i64, tpu.core_type = #tpu.core_type<tc>} {
    %c0 = arith.constant 0 : index
    %c0_0 = arith.constant 0 : index
    %0 = vector.load %arg0[%c0, %c0_0] : memref<8x32xf32, #tpu.memory_space<vmem>>, vector<8x32xf32>
    %c0_1 = arith.constant 0 : index
    %c0_2 = arith.constant 0 : index
    %1 = vector.load %arg2[%c0_1, %c0_2] : memref<32x192xf32, #tpu.memory_space<vmem>>, vector<32x192xf32>
    %cst = arith.constant dense<0.000000e+00> : vector<8x192xf32>
    %2 = tpu.matmul %0, %1, %cst {dimension_numbers = #tpu.dot_dimension_numbers<[1], [0], [0], [1], [0, 0, 1, 1], [], []>} : vector<8x32xf32>, vector<32x192xf32>, vector<8x192xf32> -> vector<8x192xf32>
    %c0_3 = arith.constant 0 : index
    %c0_4 = arith.constant 0 : index
    %3 = vector.load %arg3[%c0_3, %c0_4] : memref<1x192xf32, #tpu.memory_space<vmem>>, vector<1x192xf32>
    %4 = vector.broadcast %3 : vector<1x192xf32> to vector<8x192xf32>
    %5 = arith.addf %2, %4 : vector<8x192xf32>
    %6 = vector.extract_strided_slice %5 {offsets = [0, 0], sizes = [8, 96], strides = [1, 1]} : vector<8x192xf32> to vector<8x96xf32>
    %7 = vector.extract_strided_slice %5 {offsets = [0, 96], sizes = [8, 96], strides = [1, 1]} : vector<8x192xf32> to vector<8x96xf32>
    %c0_5 = arith.constant 0 : index
    %c0_6 = arith.constant 0 : index
    %8 = vector.load %arg4[%c0_5, %c0_6] : memref<32x96xf32, #tpu.memory_space<vmem>>, vector<32x96xf32>
    %c0_7 = arith.constant 0 : index
    %c0_8 = arith.constant 0 : index
    %9 = vector.load %arg5[%c0_7, %c0_8] : memref<1x96xf32, #tpu.memory_space<vmem>>, vector<1x96xf32>
    %c0_9 = arith.constant 0 : index
    %c0_10 = arith.constant 0 : index
    %10 = vector.load %arg6[%c0_9, %c0_10] : memref<32x96xf32, #tpu.memory_space<vmem>>, vector<32x96xf32>
    %c0_11 = arith.constant 0 : index
    %c0_12 = arith.constant 0 : index
    %11 = vector.load %arg7[%c0_11, %c0_12] : memref<1x96xf32, #tpu.memory_space<vmem>>, vector<1x96xf32>
    %12 = tpu.iota {dimensions = array<i32: 0>} : vector<8x1xi32>
    %cst_13 = arith.constant 0.000000e+00 : f32
    %13 = vector.broadcast %cst_13 : f32 to vector<1x32xf32>
    %cst_14 = arith.constant 0.000000e+00 : f32
    %14 = vector.broadcast %cst_14 : f32 to vector<1x32xf32>
    %cst_15 = arith.constant 0.000000e+00 : f32
    %15 = vector.broadcast %cst_15 : f32 to vector<8x32xf32>
    %cst_16 = arith.constant dense<0.000000e+00> : vector<1x96xf32>
    %16 = tpu.matmul %13, %8, %cst_16 {dimension_numbers = #tpu.dot_dimension_numbers<[1], [0], [0], [1], [0, 0, 1, 1], [], []>} : vector<1x32xf32>, vector<32x96xf32>, vector<1x96xf32> -> vector<1x96xf32>
    %17 = arith.addf %16, %9 : vector<1x96xf32>
    %cst_17 = arith.constant dense<0.000000e+00> : vector<1x96xf32>
    %18 = tpu.matmul %14, %10, %cst_17 {dimension_numbers = #tpu.dot_dimension_numbers<[1], [0], [0], [1], [0, 0, 1, 1], [], []>} : vector<1x32xf32>, vector<32x96xf32>, vector<1x96xf32> -> vector<1x96xf32>
    %19 = arith.addf %18, %11 : vector<1x96xf32>
    %20 = vector.extract_strided_slice %6 {offsets = [0, 0], sizes = [1, 96], strides = [1, 1]} : vector<8x96xf32> to vector<1x96xf32>
    %21 = arith.addf %20, %17 : vector<1x96xf32>
    %22 = vector.extract_strided_slice %21 {offsets = [0, 0], sizes = [1, 32], strides = [1, 1]} : vector<1x96xf32> to vector<1x32xf32>
    %23 = arith.negf %22 : vector<1x32xf32>
    %24 = math.exp %23 : vector<1x32xf32>
    %cst_18 = arith.constant 1.000000e+00 : f32
    %25 = vector.broadcast %cst_18 : f32 to vector<1x32xf32>
    %26 = arith.addf %25, %24 : vector<1x32xf32>
    %27 = arith.divf %25, %26 : vector<1x32xf32>
    %28 = vector.extract_strided_slice %21 {offsets = [0, 32], sizes = [1, 32], strides = [1, 1]} : vector<1x96xf32> to vector<1x32xf32>
    %29 = arith.negf %28 : vector<1x32xf32>
    %30 = math.exp %29 : vector<1x32xf32>
    %cst_19 = arith.constant 1.000000e+00 : f32
    %31 = vector.broadcast %cst_19 : f32 to vector<1x32xf32>
    %32 = arith.addf %31, %30 : vector<1x32xf32>
    %33 = arith.divf %31, %32 : vector<1x32xf32>
    %34 = vector.extract_strided_slice %20 {offsets = [0, 64], sizes = [1, 32], strides = [1, 1]} : vector<1x96xf32> to vector<1x32xf32>
    %35 = vector.extract_strided_slice %17 {offsets = [0, 64], sizes = [1, 32], strides = [1, 1]} : vector<1x96xf32> to vector<1x32xf32>
    %36 = arith.mulf %27, %35 : vector<1x32xf32>
    %37 = arith.addf %34, %36 : vector<1x32xf32>
    %38 = math.tanh %37 : vector<1x32xf32>
    %cst_20 = arith.constant 1.000000e+00 : f32
    %39 = vector.broadcast %cst_20 : f32 to vector<1x32xf32>
    %40 = arith.subf %39, %33 : vector<1x32xf32>
    %41 = arith.mulf %40, %38 : vector<1x32xf32>
    %42 = arith.mulf %33, %13 : vector<1x32xf32>
    %43 = arith.addf %41, %42 : vector<1x32xf32>
    %44 = vector.extract_strided_slice %7 {offsets = [7, 0], sizes = [1, 96], strides = [1, 1]} : vector<8x96xf32> to vector<1x96xf32>
    %45 = arith.addf %44, %19 : vector<1x96xf32>
    %46 = vector.extract_strided_slice %45 {offsets = [0, 0], sizes = [1, 32], strides = [1, 1]} : vector<1x96xf32> to vector<1x32xf32>
    %47 = arith.negf %46 : vector<1x32xf32>
    %48 = math.exp %47 : vector<1x32xf32>
    %cst_21 = arith.constant 1.000000e+00 : f32
    %49 = vector.broadcast %cst_21 : f32 to vector<1x32xf32>
    %50 = arith.addf %49, %48 : vector<1x32xf32>
    %51 = arith.divf %49, %50 : vector<1x32xf32>
    %52 = vector.extract_strided_slice %45 {offsets = [0, 32], sizes = [1, 32], strides = [1, 1]} : vector<1x96xf32> to vector<1x32xf32>
    %53 = arith.negf %52 : vector<1x32xf32>
    %54 = math.exp %53 : vector<1x32xf32>
    %cst_22 = arith.constant 1.000000e+00 : f32
    %55 = vector.broadcast %cst_22 : f32 to vector<1x32xf32>
    %56 = arith.addf %55, %54 : vector<1x32xf32>
    %57 = arith.divf %55, %56 : vector<1x32xf32>
    %58 = vector.extract_strided_slice %44 {offsets = [0, 64], sizes = [1, 32], strides = [1, 1]} : vector<1x96xf32> to vector<1x32xf32>
    %59 = vector.extract_strided_slice %19 {offsets = [0, 64], sizes = [1, 32], strides = [1, 1]} : vector<1x96xf32> to vector<1x32xf32>
    %60 = arith.mulf %51, %59 : vector<1x32xf32>
    %61 = arith.addf %58, %60 : vector<1x32xf32>
    %62 = math.tanh %61 : vector<1x32xf32>
    %cst_23 = arith.constant 1.000000e+00 : f32
    %63 = vector.broadcast %cst_23 : f32 to vector<1x32xf32>
    %64 = arith.subf %63, %57 : vector<1x32xf32>
    %65 = arith.mulf %64, %62 : vector<1x32xf32>
    %66 = arith.mulf %57, %14 : vector<1x32xf32>
    %67 = arith.addf %65, %66 : vector<1x32xf32>
    %c0_i32 = arith.constant 0 : i32
    %68 = vector.broadcast %c0_i32 : i32 to vector<8x1xi32>
    %69 = arith.cmpi eq, %12, %68 : vector<8x1xi32>
    %70 = vector.broadcast %43 : vector<1x32xf32> to vector<8x32xf32>
    %71 = arith.addf %15, %70 : vector<8x32xf32>
    %72 = vector.shape_cast %69 : vector<8x1xi1> to vector<8x1xi1>
    %73 = vector.broadcast %72 : vector<8x1xi1> to vector<8x32xi1>
    %74 = arith.select %73, %71, %15 : vector<8x32xi1>, vector<8x32xf32>
    %c7_i32 = arith.constant 7 : i32
    %75 = vector.broadcast %c7_i32 : i32 to vector<8x1xi32>
    %76 = arith.cmpi eq, %12, %75 : vector<8x1xi32>
    %77 = vector.broadcast %67 : vector<1x32xf32> to vector<8x32xf32>
    %78 = arith.addf %74, %77 : vector<8x32xf32>
    %79 = vector.shape_cast %76 : vector<8x1xi1> to vector<8x1xi1>
    %80 = vector.broadcast %79 : vector<8x1xi1> to vector<8x32xi1>
    %81 = arith.select %80, %78, %74 : vector<8x32xi1>, vector<8x32xf32>
    %cst_24 = arith.constant dense<0.000000e+00> : vector<1x96xf32>
    %82 = tpu.matmul %43, %8, %cst_24 {dimension_numbers = #tpu.dot_dimension_numbers<[1], [0], [0], [1], [0, 0, 1, 1], [], []>} : vector<1x32xf32>, vector<32x96xf32>, vector<1x96xf32> -> vector<1x96xf32>
    %83 = arith.addf %82, %9 : vector<1x96xf32>
    %cst_25 = arith.constant dense<0.000000e+00> : vector<1x96xf32>
    %84 = tpu.matmul %67, %10, %cst_25 {dimension_numbers = #tpu.dot_dimension_numbers<[1], [0], [0], [1], [0, 0, 1, 1], [], []>} : vector<1x32xf32>, vector<32x96xf32>, vector<1x96xf32> -> vector<1x96xf32>
    %85 = arith.addf %84, %11 : vector<1x96xf32>
    %86 = vector.extract_strided_slice %6 {offsets = [1, 0], sizes = [1, 96], strides = [1, 1]} : vector<8x96xf32> to vector<1x96xf32>
    %87 = arith.addf %86, %83 : vector<1x96xf32>
    %88 = vector.extract_strided_slice %87 {offsets = [0, 0], sizes = [1, 32], strides = [1, 1]} : vector<1x96xf32> to vector<1x32xf32>
    %89 = arith.negf %88 : vector<1x32xf32>
    %90 = math.exp %89 : vector<1x32xf32>
    %cst_26 = arith.constant 1.000000e+00 : f32
    %91 = vector.broadcast %cst_26 : f32 to vector<1x32xf32>
    %92 = arith.addf %91, %90 : vector<1x32xf32>
    %93 = arith.divf %91, %92 : vector<1x32xf32>
    %94 = vector.extract_strided_slice %87 {offsets = [0, 32], sizes = [1, 32], strides = [1, 1]} : vector<1x96xf32> to vector<1x32xf32>
    %95 = arith.negf %94 : vector<1x32xf32>
    %96 = math.exp %95 : vector<1x32xf32>
    %cst_27 = arith.constant 1.000000e+00 : f32
    %97 = vector.broadcast %cst_27 : f32 to vector<1x32xf32>
    %98 = arith.addf %97, %96 : vector<1x32xf32>
    %99 = arith.divf %97, %98 : vector<1x32xf32>
    %100 = vector.extract_strided_slice %86 {offsets = [0, 64], sizes = [1, 32], strides = [1, 1]} : vector<1x96xf32> to vector<1x32xf32>
    %101 = vector.extract_strided_slice %83 {offsets = [0, 64], sizes = [1, 32], strides = [1, 1]} : vector<1x96xf32> to vector<1x32xf32>
    %102 = arith.mulf %93, %101 : vector<1x32xf32>
    %103 = arith.addf %100, %102 : vector<1x32xf32>
    %104 = math.tanh %103 : vector<1x32xf32>
    %cst_28 = arith.constant 1.000000e+00 : f32
    %105 = vector.broadcast %cst_28 : f32 to vector<1x32xf32>
    %106 = arith.subf %105, %99 : vector<1x32xf32>
    %107 = arith.mulf %106, %104 : vector<1x32xf32>
    %108 = arith.mulf %99, %43 : vector<1x32xf32>
    %109 = arith.addf %107, %108 : vector<1x32xf32>
    %110 = vector.extract_strided_slice %7 {offsets = [6, 0], sizes = [1, 96], strides = [1, 1]} : vector<8x96xf32> to vector<1x96xf32>
    %111 = arith.addf %110, %85 : vector<1x96xf32>
    %112 = vector.extract_strided_slice %111 {offsets = [0, 0], sizes = [1, 32], strides = [1, 1]} : vector<1x96xf32> to vector<1x32xf32>
    %113 = arith.negf %112 : vector<1x32xf32>
    %114 = math.exp %113 : vector<1x32xf32>
    %cst_29 = arith.constant 1.000000e+00 : f32
    %115 = vector.broadcast %cst_29 : f32 to vector<1x32xf32>
    %116 = arith.addf %115, %114 : vector<1x32xf32>
    %117 = arith.divf %115, %116 : vector<1x32xf32>
    %118 = vector.extract_strided_slice %111 {offsets = [0, 32], sizes = [1, 32], strides = [1, 1]} : vector<1x96xf32> to vector<1x32xf32>
    %119 = arith.negf %118 : vector<1x32xf32>
    %120 = math.exp %119 : vector<1x32xf32>
    %cst_30 = arith.constant 1.000000e+00 : f32
    %121 = vector.broadcast %cst_30 : f32 to vector<1x32xf32>
    %122 = arith.addf %121, %120 : vector<1x32xf32>
    %123 = arith.divf %121, %122 : vector<1x32xf32>
    %124 = vector.extract_strided_slice %110 {offsets = [0, 64], sizes = [1, 32], strides = [1, 1]} : vector<1x96xf32> to vector<1x32xf32>
    %125 = vector.extract_strided_slice %85 {offsets = [0, 64], sizes = [1, 32], strides = [1, 1]} : vector<1x96xf32> to vector<1x32xf32>
    %126 = arith.mulf %117, %125 : vector<1x32xf32>
    %127 = arith.addf %124, %126 : vector<1x32xf32>
    %128 = math.tanh %127 : vector<1x32xf32>
    %cst_31 = arith.constant 1.000000e+00 : f32
    %129 = vector.broadcast %cst_31 : f32 to vector<1x32xf32>
    %130 = arith.subf %129, %123 : vector<1x32xf32>
    %131 = arith.mulf %130, %128 : vector<1x32xf32>
    %132 = arith.mulf %123, %67 : vector<1x32xf32>
    %133 = arith.addf %131, %132 : vector<1x32xf32>
    %c1_i32 = arith.constant 1 : i32
    %134 = vector.broadcast %c1_i32 : i32 to vector<8x1xi32>
    %135 = arith.cmpi eq, %12, %134 : vector<8x1xi32>
    %136 = vector.broadcast %109 : vector<1x32xf32> to vector<8x32xf32>
    %137 = arith.addf %81, %136 : vector<8x32xf32>
    %138 = vector.shape_cast %135 : vector<8x1xi1> to vector<8x1xi1>
    %139 = vector.broadcast %138 : vector<8x1xi1> to vector<8x32xi1>
    %140 = arith.select %139, %137, %81 : vector<8x32xi1>, vector<8x32xf32>
    %c6_i32 = arith.constant 6 : i32
    %141 = vector.broadcast %c6_i32 : i32 to vector<8x1xi32>
    %142 = arith.cmpi eq, %12, %141 : vector<8x1xi32>
    %143 = vector.broadcast %133 : vector<1x32xf32> to vector<8x32xf32>
    %144 = arith.addf %140, %143 : vector<8x32xf32>
    %145 = vector.shape_cast %142 : vector<8x1xi1> to vector<8x1xi1>
    %146 = vector.broadcast %145 : vector<8x1xi1> to vector<8x32xi1>
    %147 = arith.select %146, %144, %140 : vector<8x32xi1>, vector<8x32xf32>
    %cst_32 = arith.constant dense<0.000000e+00> : vector<1x96xf32>
    %148 = tpu.matmul %109, %8, %cst_32 {dimension_numbers = #tpu.dot_dimension_numbers<[1], [0], [0], [1], [0, 0, 1, 1], [], []>} : vector<1x32xf32>, vector<32x96xf32>, vector<1x96xf32> -> vector<1x96xf32>
    %149 = arith.addf %148, %9 : vector<1x96xf32>
    %cst_33 = arith.constant dense<0.000000e+00> : vector<1x96xf32>
    %150 = tpu.matmul %133, %10, %cst_33 {dimension_numbers = #tpu.dot_dimension_numbers<[1], [0], [0], [1], [0, 0, 1, 1], [], []>} : vector<1x32xf32>, vector<32x96xf32>, vector<1x96xf32> -> vector<1x96xf32>
    %151 = arith.addf %150, %11 : vector<1x96xf32>
    %152 = vector.extract_strided_slice %6 {offsets = [2, 0], sizes = [1, 96], strides = [1, 1]} : vector<8x96xf32> to vector<1x96xf32>
    %153 = arith.addf %152, %149 : vector<1x96xf32>
    %154 = vector.extract_strided_slice %153 {offsets = [0, 0], sizes = [1, 32], strides = [1, 1]} : vector<1x96xf32> to vector<1x32xf32>
    %155 = arith.negf %154 : vector<1x32xf32>
    %156 = math.exp %155 : vector<1x32xf32>
    %cst_34 = arith.constant 1.000000e+00 : f32
    %157 = vector.broadcast %cst_34 : f32 to vector<1x32xf32>
    %158 = arith.addf %157, %156 : vector<1x32xf32>
    %159 = arith.divf %157, %158 : vector<1x32xf32>
    %160 = vector.extract_strided_slice %153 {offsets = [0, 32], sizes = [1, 32], strides = [1, 1]} : vector<1x96xf32> to vector<1x32xf32>
    %161 = arith.negf %160 : vector<1x32xf32>
    %162 = math.exp %161 : vector<1x32xf32>
    %cst_35 = arith.constant 1.000000e+00 : f32
    %163 = vector.broadcast %cst_35 : f32 to vector<1x32xf32>
    %164 = arith.addf %163, %162 : vector<1x32xf32>
    %165 = arith.divf %163, %164 : vector<1x32xf32>
    %166 = vector.extract_strided_slice %152 {offsets = [0, 64], sizes = [1, 32], strides = [1, 1]} : vector<1x96xf32> to vector<1x32xf32>
    %167 = vector.extract_strided_slice %149 {offsets = [0, 64], sizes = [1, 32], strides = [1, 1]} : vector<1x96xf32> to vector<1x32xf32>
    %168 = arith.mulf %159, %167 : vector<1x32xf32>
    %169 = arith.addf %166, %168 : vector<1x32xf32>
    %170 = math.tanh %169 : vector<1x32xf32>
    %cst_36 = arith.constant 1.000000e+00 : f32
    %171 = vector.broadcast %cst_36 : f32 to vector<1x32xf32>
    %172 = arith.subf %171, %165 : vector<1x32xf32>
    %173 = arith.mulf %172, %170 : vector<1x32xf32>
    %174 = arith.mulf %165, %109 : vector<1x32xf32>
    %175 = arith.addf %173, %174 : vector<1x32xf32>
    %176 = vector.extract_strided_slice %7 {offsets = [5, 0], sizes = [1, 96], strides = [1, 1]} : vector<8x96xf32> to vector<1x96xf32>
    %177 = arith.addf %176, %151 : vector<1x96xf32>
    %178 = vector.extract_strided_slice %177 {offsets = [0, 0], sizes = [1, 32], strides = [1, 1]} : vector<1x96xf32> to vector<1x32xf32>
    %179 = arith.negf %178 : vector<1x32xf32>
    %180 = math.exp %179 : vector<1x32xf32>
    %cst_37 = arith.constant 1.000000e+00 : f32
    %181 = vector.broadcast %cst_37 : f32 to vector<1x32xf32>
    %182 = arith.addf %181, %180 : vector<1x32xf32>
    %183 = arith.divf %181, %182 : vector<1x32xf32>
    %184 = vector.extract_strided_slice %177 {offsets = [0, 32], sizes = [1, 32], strides = [1, 1]} : vector<1x96xf32> to vector<1x32xf32>
    %185 = arith.negf %184 : vector<1x32xf32>
    %186 = math.exp %185 : vector<1x32xf32>
    %cst_38 = arith.constant 1.000000e+00 : f32
    %187 = vector.broadcast %cst_38 : f32 to vector<1x32xf32>
    %188 = arith.addf %187, %186 : vector<1x32xf32>
    %189 = arith.divf %187, %188 : vector<1x32xf32>
    %190 = vector.extract_strided_slice %176 {offsets = [0, 64], sizes = [1, 32], strides = [1, 1]} : vector<1x96xf32> to vector<1x32xf32>
    %191 = vector.extract_strided_slice %151 {offsets = [0, 64], sizes = [1, 32], strides = [1, 1]} : vector<1x96xf32> to vector<1x32xf32>
    %192 = arith.mulf %183, %191 : vector<1x32xf32>
    %193 = arith.addf %190, %192 : vector<1x32xf32>
    %194 = math.tanh %193 : vector<1x32xf32>
    %cst_39 = arith.constant 1.000000e+00 : f32
    %195 = vector.broadcast %cst_39 : f32 to vector<1x32xf32>
    %196 = arith.subf %195, %189 : vector<1x32xf32>
    %197 = arith.mulf %196, %194 : vector<1x32xf32>
    %198 = arith.mulf %189, %133 : vector<1x32xf32>
    %199 = arith.addf %197, %198 : vector<1x32xf32>
    %c2_i32 = arith.constant 2 : i32
    %200 = vector.broadcast %c2_i32 : i32 to vector<8x1xi32>
    %201 = arith.cmpi eq, %12, %200 : vector<8x1xi32>
    %202 = vector.broadcast %175 : vector<1x32xf32> to vector<8x32xf32>
    %203 = arith.addf %147, %202 : vector<8x32xf32>
    %204 = vector.shape_cast %201 : vector<8x1xi1> to vector<8x1xi1>
    %205 = vector.broadcast %204 : vector<8x1xi1> to vector<8x32xi1>
    %206 = arith.select %205, %203, %147 : vector<8x32xi1>, vector<8x32xf32>
    %c5_i32 = arith.constant 5 : i32
    %207 = vector.broadcast %c5_i32 : i32 to vector<8x1xi32>
    %208 = arith.cmpi eq, %12, %207 : vector<8x1xi32>
    %209 = vector.broadcast %199 : vector<1x32xf32> to vector<8x32xf32>
    %210 = arith.addf %206, %209 : vector<8x32xf32>
    %211 = vector.shape_cast %208 : vector<8x1xi1> to vector<8x1xi1>
    %212 = vector.broadcast %211 : vector<8x1xi1> to vector<8x32xi1>
    %213 = arith.select %212, %210, %206 : vector<8x32xi1>, vector<8x32xf32>
    %cst_40 = arith.constant dense<0.000000e+00> : vector<1x96xf32>
    %214 = tpu.matmul %175, %8, %cst_40 {dimension_numbers = #tpu.dot_dimension_numbers<[1], [0], [0], [1], [0, 0, 1, 1], [], []>} : vector<1x32xf32>, vector<32x96xf32>, vector<1x96xf32> -> vector<1x96xf32>
    %215 = arith.addf %214, %9 : vector<1x96xf32>
    %cst_41 = arith.constant dense<0.000000e+00> : vector<1x96xf32>
    %216 = tpu.matmul %199, %10, %cst_41 {dimension_numbers = #tpu.dot_dimension_numbers<[1], [0], [0], [1], [0, 0, 1, 1], [], []>} : vector<1x32xf32>, vector<32x96xf32>, vector<1x96xf32> -> vector<1x96xf32>
    %217 = arith.addf %216, %11 : vector<1x96xf32>
    %218 = vector.extract_strided_slice %6 {offsets = [3, 0], sizes = [1, 96], strides = [1, 1]} : vector<8x96xf32> to vector<1x96xf32>
    %219 = arith.addf %218, %215 : vector<1x96xf32>
    %220 = vector.extract_strided_slice %219 {offsets = [0, 0], sizes = [1, 32], strides = [1, 1]} : vector<1x96xf32> to vector<1x32xf32>
    %221 = arith.negf %220 : vector<1x32xf32>
    %222 = math.exp %221 : vector<1x32xf32>
    %cst_42 = arith.constant 1.000000e+00 : f32
    %223 = vector.broadcast %cst_42 : f32 to vector<1x32xf32>
    %224 = arith.addf %223, %222 : vector<1x32xf32>
    %225 = arith.divf %223, %224 : vector<1x32xf32>
    %226 = vector.extract_strided_slice %219 {offsets = [0, 32], sizes = [1, 32], strides = [1, 1]} : vector<1x96xf32> to vector<1x32xf32>
    %227 = arith.negf %226 : vector<1x32xf32>
    %228 = math.exp %227 : vector<1x32xf32>
    %cst_43 = arith.constant 1.000000e+00 : f32
    %229 = vector.broadcast %cst_43 : f32 to vector<1x32xf32>
    %230 = arith.addf %229, %228 : vector<1x32xf32>
    %231 = arith.divf %229, %230 : vector<1x32xf32>
    %232 = vector.extract_strided_slice %218 {offsets = [0, 64], sizes = [1, 32], strides = [1, 1]} : vector<1x96xf32> to vector<1x32xf32>
    %233 = vector.extract_strided_slice %215 {offsets = [0, 64], sizes = [1, 32], strides = [1, 1]} : vector<1x96xf32> to vector<1x32xf32>
    %234 = arith.mulf %225, %233 : vector<1x32xf32>
    %235 = arith.addf %232, %234 : vector<1x32xf32>
    %236 = math.tanh %235 : vector<1x32xf32>
    %cst_44 = arith.constant 1.000000e+00 : f32
    %237 = vector.broadcast %cst_44 : f32 to vector<1x32xf32>
    %238 = arith.subf %237, %231 : vector<1x32xf32>
    %239 = arith.mulf %238, %236 : vector<1x32xf32>
    %240 = arith.mulf %231, %175 : vector<1x32xf32>
    %241 = arith.addf %239, %240 : vector<1x32xf32>
    %242 = vector.extract_strided_slice %7 {offsets = [4, 0], sizes = [1, 96], strides = [1, 1]} : vector<8x96xf32> to vector<1x96xf32>
    %243 = arith.addf %242, %217 : vector<1x96xf32>
    %244 = vector.extract_strided_slice %243 {offsets = [0, 0], sizes = [1, 32], strides = [1, 1]} : vector<1x96xf32> to vector<1x32xf32>
    %245 = arith.negf %244 : vector<1x32xf32>
    %246 = math.exp %245 : vector<1x32xf32>
    %cst_45 = arith.constant 1.000000e+00 : f32
    %247 = vector.broadcast %cst_45 : f32 to vector<1x32xf32>
    %248 = arith.addf %247, %246 : vector<1x32xf32>
    %249 = arith.divf %247, %248 : vector<1x32xf32>
    %250 = vector.extract_strided_slice %243 {offsets = [0, 32], sizes = [1, 32], strides = [1, 1]} : vector<1x96xf32> to vector<1x32xf32>
    %251 = arith.negf %250 : vector<1x32xf32>
    %252 = math.exp %251 : vector<1x32xf32>
    %cst_46 = arith.constant 1.000000e+00 : f32
    %253 = vector.broadcast %cst_46 : f32 to vector<1x32xf32>
    %254 = arith.addf %253, %252 : vector<1x32xf32>
    %255 = arith.divf %253, %254 : vector<1x32xf32>
    %256 = vector.extract_strided_slice %242 {offsets = [0, 64], sizes = [1, 32], strides = [1, 1]} : vector<1x96xf32> to vector<1x32xf32>
    %257 = vector.extract_strided_slice %217 {offsets = [0, 64], sizes = [1, 32], strides = [1, 1]} : vector<1x96xf32> to vector<1x32xf32>
    %258 = arith.mulf %249, %257 : vector<1x32xf32>
    %259 = arith.addf %256, %258 : vector<1x32xf32>
    %260 = math.tanh %259 : vector<1x32xf32>
    %cst_47 = arith.constant 1.000000e+00 : f32
    %261 = vector.broadcast %cst_47 : f32 to vector<1x32xf32>
    %262 = arith.subf %261, %255 : vector<1x32xf32>
    %263 = arith.mulf %262, %260 : vector<1x32xf32>
    %264 = arith.mulf %255, %199 : vector<1x32xf32>
    %265 = arith.addf %263, %264 : vector<1x32xf32>
    %c3_i32 = arith.constant 3 : i32
    %266 = vector.broadcast %c3_i32 : i32 to vector<8x1xi32>
    %267 = arith.cmpi eq, %12, %266 : vector<8x1xi32>
    %268 = vector.broadcast %241 : vector<1x32xf32> to vector<8x32xf32>
    %269 = arith.addf %213, %268 : vector<8x32xf32>
    %270 = vector.shape_cast %267 : vector<8x1xi1> to vector<8x1xi1>
    %271 = vector.broadcast %270 : vector<8x1xi1> to vector<8x32xi1>
    %272 = arith.select %271, %269, %213 : vector<8x32xi1>, vector<8x32xf32>
    %c4_i32 = arith.constant 4 : i32
    %273 = vector.broadcast %c4_i32 : i32 to vector<8x1xi32>
    %274 = arith.cmpi eq, %12, %273 : vector<8x1xi32>
    %275 = vector.broadcast %265 : vector<1x32xf32> to vector<8x32xf32>
    %276 = arith.addf %272, %275 : vector<8x32xf32>
    %277 = vector.shape_cast %274 : vector<8x1xi1> to vector<8x1xi1>
    %278 = vector.broadcast %277 : vector<8x1xi1> to vector<8x32xi1>
    %279 = arith.select %278, %276, %272 : vector<8x32xi1>, vector<8x32xf32>
    %cst_48 = arith.constant dense<0.000000e+00> : vector<1x96xf32>
    %280 = tpu.matmul %241, %8, %cst_48 {dimension_numbers = #tpu.dot_dimension_numbers<[1], [0], [0], [1], [0, 0, 1, 1], [], []>} : vector<1x32xf32>, vector<32x96xf32>, vector<1x96xf32> -> vector<1x96xf32>
    %281 = arith.addf %280, %9 : vector<1x96xf32>
    %cst_49 = arith.constant dense<0.000000e+00> : vector<1x96xf32>
    %282 = tpu.matmul %265, %10, %cst_49 {dimension_numbers = #tpu.dot_dimension_numbers<[1], [0], [0], [1], [0, 0, 1, 1], [], []>} : vector<1x32xf32>, vector<32x96xf32>, vector<1x96xf32> -> vector<1x96xf32>
    %283 = arith.addf %282, %11 : vector<1x96xf32>
    %284 = vector.extract_strided_slice %6 {offsets = [4, 0], sizes = [1, 96], strides = [1, 1]} : vector<8x96xf32> to vector<1x96xf32>
    %285 = arith.addf %284, %281 : vector<1x96xf32>
    %286 = vector.extract_strided_slice %285 {offsets = [0, 0], sizes = [1, 32], strides = [1, 1]} : vector<1x96xf32> to vector<1x32xf32>
    %287 = arith.negf %286 : vector<1x32xf32>
    %288 = math.exp %287 : vector<1x32xf32>
    %cst_50 = arith.constant 1.000000e+00 : f32
    %289 = vector.broadcast %cst_50 : f32 to vector<1x32xf32>
    %290 = arith.addf %289, %288 : vector<1x32xf32>
    %291 = arith.divf %289, %290 : vector<1x32xf32>
    %292 = vector.extract_strided_slice %285 {offsets = [0, 32], sizes = [1, 32], strides = [1, 1]} : vector<1x96xf32> to vector<1x32xf32>
    %293 = arith.negf %292 : vector<1x32xf32>
    %294 = math.exp %293 : vector<1x32xf32>
    %cst_51 = arith.constant 1.000000e+00 : f32
    %295 = vector.broadcast %cst_51 : f32 to vector<1x32xf32>
    %296 = arith.addf %295, %294 : vector<1x32xf32>
    %297 = arith.divf %295, %296 : vector<1x32xf32>
    %298 = vector.extract_strided_slice %284 {offsets = [0, 64], sizes = [1, 32], strides = [1, 1]} : vector<1x96xf32> to vector<1x32xf32>
    %299 = vector.extract_strided_slice %281 {offsets = [0, 64], sizes = [1, 32], strides = [1, 1]} : vector<1x96xf32> to vector<1x32xf32>
    %300 = arith.mulf %291, %299 : vector<1x32xf32>
    %301 = arith.addf %298, %300 : vector<1x32xf32>
    %302 = math.tanh %301 : vector<1x32xf32>
    %cst_52 = arith.constant 1.000000e+00 : f32
    %303 = vector.broadcast %cst_52 : f32 to vector<1x32xf32>
    %304 = arith.subf %303, %297 : vector<1x32xf32>
    %305 = arith.mulf %304, %302 : vector<1x32xf32>
    %306 = arith.mulf %297, %241 : vector<1x32xf32>
    %307 = arith.addf %305, %306 : vector<1x32xf32>
    %308 = vector.extract_strided_slice %7 {offsets = [3, 0], sizes = [1, 96], strides = [1, 1]} : vector<8x96xf32> to vector<1x96xf32>
    %309 = arith.addf %308, %283 : vector<1x96xf32>
    %310 = vector.extract_strided_slice %309 {offsets = [0, 0], sizes = [1, 32], strides = [1, 1]} : vector<1x96xf32> to vector<1x32xf32>
    %311 = arith.negf %310 : vector<1x32xf32>
    %312 = math.exp %311 : vector<1x32xf32>
    %cst_53 = arith.constant 1.000000e+00 : f32
    %313 = vector.broadcast %cst_53 : f32 to vector<1x32xf32>
    %314 = arith.addf %313, %312 : vector<1x32xf32>
    %315 = arith.divf %313, %314 : vector<1x32xf32>
    %316 = vector.extract_strided_slice %309 {offsets = [0, 32], sizes = [1, 32], strides = [1, 1]} : vector<1x96xf32> to vector<1x32xf32>
    %317 = arith.negf %316 : vector<1x32xf32>
    %318 = math.exp %317 : vector<1x32xf32>
    %cst_54 = arith.constant 1.000000e+00 : f32
    %319 = vector.broadcast %cst_54 : f32 to vector<1x32xf32>
    %320 = arith.addf %319, %318 : vector<1x32xf32>
    %321 = arith.divf %319, %320 : vector<1x32xf32>
    %322 = vector.extract_strided_slice %308 {offsets = [0, 64], sizes = [1, 32], strides = [1, 1]} : vector<1x96xf32> to vector<1x32xf32>
    %323 = vector.extract_strided_slice %283 {offsets = [0, 64], sizes = [1, 32], strides = [1, 1]} : vector<1x96xf32> to vector<1x32xf32>
    %324 = arith.mulf %315, %323 : vector<1x32xf32>
    %325 = arith.addf %322, %324 : vector<1x32xf32>
    %326 = math.tanh %325 : vector<1x32xf32>
    %cst_55 = arith.constant 1.000000e+00 : f32
    %327 = vector.broadcast %cst_55 : f32 to vector<1x32xf32>
    %328 = arith.subf %327, %321 : vector<1x32xf32>
    %329 = arith.mulf %328, %326 : vector<1x32xf32>
    %330 = arith.mulf %321, %265 : vector<1x32xf32>
    %331 = arith.addf %329, %330 : vector<1x32xf32>
    %c4_i32_56 = arith.constant 4 : i32
    %332 = vector.broadcast %c4_i32_56 : i32 to vector<8x1xi32>
    %333 = arith.cmpi eq, %12, %332 : vector<8x1xi32>
    %334 = vector.broadcast %307 : vector<1x32xf32> to vector<8x32xf32>
    %335 = arith.addf %279, %334 : vector<8x32xf32>
    %336 = vector.shape_cast %333 : vector<8x1xi1> to vector<8x1xi1>
    %337 = vector.broadcast %336 : vector<8x1xi1> to vector<8x32xi1>
    %338 = arith.select %337, %335, %279 : vector<8x32xi1>, vector<8x32xf32>
    %c3_i32_57 = arith.constant 3 : i32
    %339 = vector.broadcast %c3_i32_57 : i32 to vector<8x1xi32>
    %340 = arith.cmpi eq, %12, %339 : vector<8x1xi32>
    %341 = vector.broadcast %331 : vector<1x32xf32> to vector<8x32xf32>
    %342 = arith.addf %338, %341 : vector<8x32xf32>
    %343 = vector.shape_cast %340 : vector<8x1xi1> to vector<8x1xi1>
    %344 = vector.broadcast %343 : vector<8x1xi1> to vector<8x32xi1>
    %345 = arith.select %344, %342, %338 : vector<8x32xi1>, vector<8x32xf32>
    %cst_58 = arith.constant dense<0.000000e+00> : vector<1x96xf32>
    %346 = tpu.matmul %307, %8, %cst_58 {dimension_numbers = #tpu.dot_dimension_numbers<[1], [0], [0], [1], [0, 0, 1, 1], [], []>} : vector<1x32xf32>, vector<32x96xf32>, vector<1x96xf32> -> vector<1x96xf32>
    %347 = arith.addf %346, %9 : vector<1x96xf32>
    %cst_59 = arith.constant dense<0.000000e+00> : vector<1x96xf32>
    %348 = tpu.matmul %331, %10, %cst_59 {dimension_numbers = #tpu.dot_dimension_numbers<[1], [0], [0], [1], [0, 0, 1, 1], [], []>} : vector<1x32xf32>, vector<32x96xf32>, vector<1x96xf32> -> vector<1x96xf32>
    %349 = arith.addf %348, %11 : vector<1x96xf32>
    %350 = vector.extract_strided_slice %6 {offsets = [5, 0], sizes = [1, 96], strides = [1, 1]} : vector<8x96xf32> to vector<1x96xf32>
    %351 = arith.addf %350, %347 : vector<1x96xf32>
    %352 = vector.extract_strided_slice %351 {offsets = [0, 0], sizes = [1, 32], strides = [1, 1]} : vector<1x96xf32> to vector<1x32xf32>
    %353 = arith.negf %352 : vector<1x32xf32>
    %354 = math.exp %353 : vector<1x32xf32>
    %cst_60 = arith.constant 1.000000e+00 : f32
    %355 = vector.broadcast %cst_60 : f32 to vector<1x32xf32>
    %356 = arith.addf %355, %354 : vector<1x32xf32>
    %357 = arith.divf %355, %356 : vector<1x32xf32>
    %358 = vector.extract_strided_slice %351 {offsets = [0, 32], sizes = [1, 32], strides = [1, 1]} : vector<1x96xf32> to vector<1x32xf32>
    %359 = arith.negf %358 : vector<1x32xf32>
    %360 = math.exp %359 : vector<1x32xf32>
    %cst_61 = arith.constant 1.000000e+00 : f32
    %361 = vector.broadcast %cst_61 : f32 to vector<1x32xf32>
    %362 = arith.addf %361, %360 : vector<1x32xf32>
    %363 = arith.divf %361, %362 : vector<1x32xf32>
    %364 = vector.extract_strided_slice %350 {offsets = [0, 64], sizes = [1, 32], strides = [1, 1]} : vector<1x96xf32> to vector<1x32xf32>
    %365 = vector.extract_strided_slice %347 {offsets = [0, 64], sizes = [1, 32], strides = [1, 1]} : vector<1x96xf32> to vector<1x32xf32>
    %366 = arith.mulf %357, %365 : vector<1x32xf32>
    %367 = arith.addf %364, %366 : vector<1x32xf32>
    %368 = math.tanh %367 : vector<1x32xf32>
    %cst_62 = arith.constant 1.000000e+00 : f32
    %369 = vector.broadcast %cst_62 : f32 to vector<1x32xf32>
    %370 = arith.subf %369, %363 : vector<1x32xf32>
    %371 = arith.mulf %370, %368 : vector<1x32xf32>
    %372 = arith.mulf %363, %307 : vector<1x32xf32>
    %373 = arith.addf %371, %372 : vector<1x32xf32>
    %374 = vector.extract_strided_slice %7 {offsets = [2, 0], sizes = [1, 96], strides = [1, 1]} : vector<8x96xf32> to vector<1x96xf32>
    %375 = arith.addf %374, %349 : vector<1x96xf32>
    %376 = vector.extract_strided_slice %375 {offsets = [0, 0], sizes = [1, 32], strides = [1, 1]} : vector<1x96xf32> to vector<1x32xf32>
    %377 = arith.negf %376 : vector<1x32xf32>
    %378 = math.exp %377 : vector<1x32xf32>
    %cst_63 = arith.constant 1.000000e+00 : f32
    %379 = vector.broadcast %cst_63 : f32 to vector<1x32xf32>
    %380 = arith.addf %379, %378 : vector<1x32xf32>
    %381 = arith.divf %379, %380 : vector<1x32xf32>
    %382 = vector.extract_strided_slice %375 {offsets = [0, 32], sizes = [1, 32], strides = [1, 1]} : vector<1x96xf32> to vector<1x32xf32>
    %383 = arith.negf %382 : vector<1x32xf32>
    %384 = math.exp %383 : vector<1x32xf32>
    %cst_64 = arith.constant 1.000000e+00 : f32
    %385 = vector.broadcast %cst_64 : f32 to vector<1x32xf32>
    %386 = arith.addf %385, %384 : vector<1x32xf32>
    %387 = arith.divf %385, %386 : vector<1x32xf32>
    %388 = vector.extract_strided_slice %374 {offsets = [0, 64], sizes = [1, 32], strides = [1, 1]} : vector<1x96xf32> to vector<1x32xf32>
    %389 = vector.extract_strided_slice %349 {offsets = [0, 64], sizes = [1, 32], strides = [1, 1]} : vector<1x96xf32> to vector<1x32xf32>
    %390 = arith.mulf %381, %389 : vector<1x32xf32>
    %391 = arith.addf %388, %390 : vector<1x32xf32>
    %392 = math.tanh %391 : vector<1x32xf32>
    %cst_65 = arith.constant 1.000000e+00 : f32
    %393 = vector.broadcast %cst_65 : f32 to vector<1x32xf32>
    %394 = arith.subf %393, %387 : vector<1x32xf32>
    %395 = arith.mulf %394, %392 : vector<1x32xf32>
    %396 = arith.mulf %387, %331 : vector<1x32xf32>
    %397 = arith.addf %395, %396 : vector<1x32xf32>
    %c5_i32_66 = arith.constant 5 : i32
    %398 = vector.broadcast %c5_i32_66 : i32 to vector<8x1xi32>
    %399 = arith.cmpi eq, %12, %398 : vector<8x1xi32>
    %400 = vector.broadcast %373 : vector<1x32xf32> to vector<8x32xf32>
    %401 = arith.addf %345, %400 : vector<8x32xf32>
    %402 = vector.shape_cast %399 : vector<8x1xi1> to vector<8x1xi1>
    %403 = vector.broadcast %402 : vector<8x1xi1> to vector<8x32xi1>
    %404 = arith.select %403, %401, %345 : vector<8x32xi1>, vector<8x32xf32>
    %c2_i32_67 = arith.constant 2 : i32
    %405 = vector.broadcast %c2_i32_67 : i32 to vector<8x1xi32>
    %406 = arith.cmpi eq, %12, %405 : vector<8x1xi32>
    %407 = vector.broadcast %397 : vector<1x32xf32> to vector<8x32xf32>
    %408 = arith.addf %404, %407 : vector<8x32xf32>
    %409 = vector.shape_cast %406 : vector<8x1xi1> to vector<8x1xi1>
    %410 = vector.broadcast %409 : vector<8x1xi1> to vector<8x32xi1>
    %411 = arith.select %410, %408, %404 : vector<8x32xi1>, vector<8x32xf32>
    %cst_68 = arith.constant dense<0.000000e+00> : vector<1x96xf32>
    %412 = tpu.matmul %373, %8, %cst_68 {dimension_numbers = #tpu.dot_dimension_numbers<[1], [0], [0], [1], [0, 0, 1, 1], [], []>} : vector<1x32xf32>, vector<32x96xf32>, vector<1x96xf32> -> vector<1x96xf32>
    %413 = arith.addf %412, %9 : vector<1x96xf32>
    %cst_69 = arith.constant dense<0.000000e+00> : vector<1x96xf32>
    %414 = tpu.matmul %397, %10, %cst_69 {dimension_numbers = #tpu.dot_dimension_numbers<[1], [0], [0], [1], [0, 0, 1, 1], [], []>} : vector<1x32xf32>, vector<32x96xf32>, vector<1x96xf32> -> vector<1x96xf32>
    %415 = arith.addf %414, %11 : vector<1x96xf32>
    %416 = vector.extract_strided_slice %6 {offsets = [6, 0], sizes = [1, 96], strides = [1, 1]} : vector<8x96xf32> to vector<1x96xf32>
    %417 = arith.addf %416, %413 : vector<1x96xf32>
    %418 = vector.extract_strided_slice %417 {offsets = [0, 0], sizes = [1, 32], strides = [1, 1]} : vector<1x96xf32> to vector<1x32xf32>
    %419 = arith.negf %418 : vector<1x32xf32>
    %420 = math.exp %419 : vector<1x32xf32>
    %cst_70 = arith.constant 1.000000e+00 : f32
    %421 = vector.broadcast %cst_70 : f32 to vector<1x32xf32>
    %422 = arith.addf %421, %420 : vector<1x32xf32>
    %423 = arith.divf %421, %422 : vector<1x32xf32>
    %424 = vector.extract_strided_slice %417 {offsets = [0, 32], sizes = [1, 32], strides = [1, 1]} : vector<1x96xf32> to vector<1x32xf32>
    %425 = arith.negf %424 : vector<1x32xf32>
    %426 = math.exp %425 : vector<1x32xf32>
    %cst_71 = arith.constant 1.000000e+00 : f32
    %427 = vector.broadcast %cst_71 : f32 to vector<1x32xf32>
    %428 = arith.addf %427, %426 : vector<1x32xf32>
    %429 = arith.divf %427, %428 : vector<1x32xf32>
    %430 = vector.extract_strided_slice %416 {offsets = [0, 64], sizes = [1, 32], strides = [1, 1]} : vector<1x96xf32> to vector<1x32xf32>
    %431 = vector.extract_strided_slice %413 {offsets = [0, 64], sizes = [1, 32], strides = [1, 1]} : vector<1x96xf32> to vector<1x32xf32>
    %432 = arith.mulf %423, %431 : vector<1x32xf32>
    %433 = arith.addf %430, %432 : vector<1x32xf32>
    %434 = math.tanh %433 : vector<1x32xf32>
    %cst_72 = arith.constant 1.000000e+00 : f32
    %435 = vector.broadcast %cst_72 : f32 to vector<1x32xf32>
    %436 = arith.subf %435, %429 : vector<1x32xf32>
    %437 = arith.mulf %436, %434 : vector<1x32xf32>
    %438 = arith.mulf %429, %373 : vector<1x32xf32>
    %439 = arith.addf %437, %438 : vector<1x32xf32>
    %440 = vector.extract_strided_slice %7 {offsets = [1, 0], sizes = [1, 96], strides = [1, 1]} : vector<8x96xf32> to vector<1x96xf32>
    %441 = arith.addf %440, %415 : vector<1x96xf32>
    %442 = vector.extract_strided_slice %441 {offsets = [0, 0], sizes = [1, 32], strides = [1, 1]} : vector<1x96xf32> to vector<1x32xf32>
    %443 = arith.negf %442 : vector<1x32xf32>
    %444 = math.exp %443 : vector<1x32xf32>
    %cst_73 = arith.constant 1.000000e+00 : f32
    %445 = vector.broadcast %cst_73 : f32 to vector<1x32xf32>
    %446 = arith.addf %445, %444 : vector<1x32xf32>
    %447 = arith.divf %445, %446 : vector<1x32xf32>
    %448 = vector.extract_strided_slice %441 {offsets = [0, 32], sizes = [1, 32], strides = [1, 1]} : vector<1x96xf32> to vector<1x32xf32>
    %449 = arith.negf %448 : vector<1x32xf32>
    %450 = math.exp %449 : vector<1x32xf32>
    %cst_74 = arith.constant 1.000000e+00 : f32
    %451 = vector.broadcast %cst_74 : f32 to vector<1x32xf32>
    %452 = arith.addf %451, %450 : vector<1x32xf32>
    %453 = arith.divf %451, %452 : vector<1x32xf32>
    %454 = vector.extract_strided_slice %440 {offsets = [0, 64], sizes = [1, 32], strides = [1, 1]} : vector<1x96xf32> to vector<1x32xf32>
    %455 = vector.extract_strided_slice %415 {offsets = [0, 64], sizes = [1, 32], strides = [1, 1]} : vector<1x96xf32> to vector<1x32xf32>
    %456 = arith.mulf %447, %455 : vector<1x32xf32>
    %457 = arith.addf %454, %456 : vector<1x32xf32>
    %458 = math.tanh %457 : vector<1x32xf32>
    %cst_75 = arith.constant 1.000000e+00 : f32
    %459 = vector.broadcast %cst_75 : f32 to vector<1x32xf32>
    %460 = arith.subf %459, %453 : vector<1x32xf32>
    %461 = arith.mulf %460, %458 : vector<1x32xf32>
    %462 = arith.mulf %453, %397 : vector<1x32xf32>
    %463 = arith.addf %461, %462 : vector<1x32xf32>
    %c6_i32_76 = arith.constant 6 : i32
    %464 = vector.broadcast %c6_i32_76 : i32 to vector<8x1xi32>
    %465 = arith.cmpi eq, %12, %464 : vector<8x1xi32>
    %466 = vector.broadcast %439 : vector<1x32xf32> to vector<8x32xf32>
    %467 = arith.addf %411, %466 : vector<8x32xf32>
    %468 = vector.shape_cast %465 : vector<8x1xi1> to vector<8x1xi1>
    %469 = vector.broadcast %468 : vector<8x1xi1> to vector<8x32xi1>
    %470 = arith.select %469, %467, %411 : vector<8x32xi1>, vector<8x32xf32>
    %c1_i32_77 = arith.constant 1 : i32
    %471 = vector.broadcast %c1_i32_77 : i32 to vector<8x1xi32>
    %472 = arith.cmpi eq, %12, %471 : vector<8x1xi32>
    %473 = vector.broadcast %463 : vector<1x32xf32> to vector<8x32xf32>
    %474 = arith.addf %470, %473 : vector<8x32xf32>
    %475 = vector.shape_cast %472 : vector<8x1xi1> to vector<8x1xi1>
    %476 = vector.broadcast %475 : vector<8x1xi1> to vector<8x32xi1>
    %477 = arith.select %476, %474, %470 : vector<8x32xi1>, vector<8x32xf32>
    %cst_78 = arith.constant dense<0.000000e+00> : vector<1x96xf32>
    %478 = tpu.matmul %439, %8, %cst_78 {dimension_numbers = #tpu.dot_dimension_numbers<[1], [0], [0], [1], [0, 0, 1, 1], [], []>} : vector<1x32xf32>, vector<32x96xf32>, vector<1x96xf32> -> vector<1x96xf32>
    %479 = arith.addf %478, %9 : vector<1x96xf32>
    %cst_79 = arith.constant dense<0.000000e+00> : vector<1x96xf32>
    %480 = tpu.matmul %463, %10, %cst_79 {dimension_numbers = #tpu.dot_dimension_numbers<[1], [0], [0], [1], [0, 0, 1, 1], [], []>} : vector<1x32xf32>, vector<32x96xf32>, vector<1x96xf32> -> vector<1x96xf32>
    %481 = arith.addf %480, %11 : vector<1x96xf32>
    %482 = vector.extract_strided_slice %6 {offsets = [7, 0], sizes = [1, 96], strides = [1, 1]} : vector<8x96xf32> to vector<1x96xf32>
    %483 = arith.addf %482, %479 : vector<1x96xf32>
    %484 = vector.extract_strided_slice %483 {offsets = [0, 0], sizes = [1, 32], strides = [1, 1]} : vector<1x96xf32> to vector<1x32xf32>
    %485 = arith.negf %484 : vector<1x32xf32>
    %486 = math.exp %485 : vector<1x32xf32>
    %cst_80 = arith.constant 1.000000e+00 : f32
    %487 = vector.broadcast %cst_80 : f32 to vector<1x32xf32>
    %488 = arith.addf %487, %486 : vector<1x32xf32>
    %489 = arith.divf %487, %488 : vector<1x32xf32>
    %490 = vector.extract_strided_slice %483 {offsets = [0, 32], sizes = [1, 32], strides = [1, 1]} : vector<1x96xf32> to vector<1x32xf32>
    %491 = arith.negf %490 : vector<1x32xf32>
    %492 = math.exp %491 : vector<1x32xf32>
    %cst_81 = arith.constant 1.000000e+00 : f32
    %493 = vector.broadcast %cst_81 : f32 to vector<1x32xf32>
    %494 = arith.addf %493, %492 : vector<1x32xf32>
    %495 = arith.divf %493, %494 : vector<1x32xf32>
    %496 = vector.extract_strided_slice %482 {offsets = [0, 64], sizes = [1, 32], strides = [1, 1]} : vector<1x96xf32> to vector<1x32xf32>
    %497 = vector.extract_strided_slice %479 {offsets = [0, 64], sizes = [1, 32], strides = [1, 1]} : vector<1x96xf32> to vector<1x32xf32>
    %498 = arith.mulf %489, %497 : vector<1x32xf32>
    %499 = arith.addf %496, %498 : vector<1x32xf32>
    %500 = math.tanh %499 : vector<1x32xf32>
    %cst_82 = arith.constant 1.000000e+00 : f32
    %501 = vector.broadcast %cst_82 : f32 to vector<1x32xf32>
    %502 = arith.subf %501, %495 : vector<1x32xf32>
    %503 = arith.mulf %502, %500 : vector<1x32xf32>
    %504 = arith.mulf %495, %439 : vector<1x32xf32>
    %505 = arith.addf %503, %504 : vector<1x32xf32>
    %506 = vector.extract_strided_slice %7 {offsets = [0, 0], sizes = [1, 96], strides = [1, 1]} : vector<8x96xf32> to vector<1x96xf32>
    %507 = arith.addf %506, %481 : vector<1x96xf32>
    %508 = vector.extract_strided_slice %507 {offsets = [0, 0], sizes = [1, 32], strides = [1, 1]} : vector<1x96xf32> to vector<1x32xf32>
    %509 = arith.negf %508 : vector<1x32xf32>
    %510 = math.exp %509 : vector<1x32xf32>
    %cst_83 = arith.constant 1.000000e+00 : f32
    %511 = vector.broadcast %cst_83 : f32 to vector<1x32xf32>
    %512 = arith.addf %511, %510 : vector<1x32xf32>
    %513 = arith.divf %511, %512 : vector<1x32xf32>
    %514 = vector.extract_strided_slice %507 {offsets = [0, 32], sizes = [1, 32], strides = [1, 1]} : vector<1x96xf32> to vector<1x32xf32>
    %515 = arith.negf %514 : vector<1x32xf32>
    %516 = math.exp %515 : vector<1x32xf32>
    %cst_84 = arith.constant 1.000000e+00 : f32
    %517 = vector.broadcast %cst_84 : f32 to vector<1x32xf32>
    %518 = arith.addf %517, %516 : vector<1x32xf32>
    %519 = arith.divf %517, %518 : vector<1x32xf32>
    %520 = vector.extract_strided_slice %506 {offsets = [0, 64], sizes = [1, 32], strides = [1, 1]} : vector<1x96xf32> to vector<1x32xf32>
    %521 = vector.extract_strided_slice %481 {offsets = [0, 64], sizes = [1, 32], strides = [1, 1]} : vector<1x96xf32> to vector<1x32xf32>
    %522 = arith.mulf %513, %521 : vector<1x32xf32>
    %523 = arith.addf %520, %522 : vector<1x32xf32>
    %524 = math.tanh %523 : vector<1x32xf32>
    %cst_85 = arith.constant 1.000000e+00 : f32
    %525 = vector.broadcast %cst_85 : f32 to vector<1x32xf32>
    %526 = arith.subf %525, %519 : vector<1x32xf32>
    %527 = arith.mulf %526, %524 : vector<1x32xf32>
    %528 = arith.mulf %519, %463 : vector<1x32xf32>
    %529 = arith.addf %527, %528 : vector<1x32xf32>
    %c7_i32_86 = arith.constant 7 : i32
    %530 = vector.broadcast %c7_i32_86 : i32 to vector<8x1xi32>
    %531 = arith.cmpi eq, %12, %530 : vector<8x1xi32>
    %532 = vector.broadcast %505 : vector<1x32xf32> to vector<8x32xf32>
    %533 = arith.addf %477, %532 : vector<8x32xf32>
    %534 = vector.shape_cast %531 : vector<8x1xi1> to vector<8x1xi1>
    %535 = vector.broadcast %534 : vector<8x1xi1> to vector<8x32xi1>
    %536 = arith.select %535, %533, %477 : vector<8x32xi1>, vector<8x32xf32>
    %c0_i32_87 = arith.constant 0 : i32
    %537 = vector.broadcast %c0_i32_87 : i32 to vector<8x1xi32>
    %538 = arith.cmpi eq, %12, %537 : vector<8x1xi32>
    %539 = vector.broadcast %529 : vector<1x32xf32> to vector<8x32xf32>
    %540 = arith.addf %536, %539 : vector<8x32xf32>
    %541 = vector.shape_cast %538 : vector<8x1xi1> to vector<8x1xi1>
    %542 = vector.broadcast %541 : vector<8x1xi1> to vector<8x32xi1>
    %543 = arith.select %542, %540, %536 : vector<8x32xi1>, vector<8x32xf32>
    %544 = tpu.iota {dimensions = array<i32: 1>} : vector<1x128xi32>
    %545 = tpu.iota {dimensions = array<i32: 1>} : vector<1x64xi32>
    %c0_i32_88 = arith.constant 0 : i32
    %546 = vector.broadcast %c0_i32_88 : i32 to vector<1x128xi32>
    %cst_89 = arith.constant 0.000000e+00 : f32
    %547 = vector.broadcast %cst_89 : f32 to vector<1x128xf32>
    %c1 = arith.constant 1 : index
    %c0_90 = arith.constant 0 : index
    %548 = vector.load %arg1[%c1, %c0_90] : memref<64x32xf32, #tpu.memory_space<vmem>>, vector<1x32xf32>
    %c0_91 = arith.constant 0 : index
    %c0_92 = arith.constant 0 : index
    %549 = vector.load %arg8[%c0_91, %c0_92] : memref<32x96xf32, #tpu.memory_space<vmem>>, vector<32x96xf32>
    %cst_93 = arith.constant dense<0.000000e+00> : vector<1x96xf32>
    %550 = tpu.matmul %548, %549, %cst_93 {dimension_numbers = #tpu.dot_dimension_numbers<[1], [0], [0], [1], [0, 0, 1, 1], [], []>} : vector<1x32xf32>, vector<32x96xf32>, vector<1x96xf32> -> vector<1x96xf32>
    %c0_94 = arith.constant 0 : index
    %c0_95 = arith.constant 0 : index
    %551 = vector.load %arg10[%c0_94, %c0_95] : memref<1x96xf32, #tpu.memory_space<vmem>>, vector<1x96xf32>
    %552 = arith.addf %550, %551 : vector<1x96xf32>
    %c0_96 = arith.constant 0 : index
    %c0_97 = arith.constant 0 : index
    %553 = vector.load %arg9[%c0_96, %c0_97] : memref<32x96xf32, #tpu.memory_space<vmem>>, vector<32x96xf32>
    %cst_98 = arith.constant dense<0.000000e+00> : vector<1x96xf32>
    %554 = tpu.matmul %505, %553, %cst_98 {dimension_numbers = #tpu.dot_dimension_numbers<[1], [0], [0], [1], [0, 0, 1, 1], [], []>} : vector<1x32xf32>, vector<32x96xf32>, vector<1x96xf32> -> vector<1x96xf32>
    %c0_99 = arith.constant 0 : index
    %c0_100 = arith.constant 0 : index
    %555 = vector.load %arg11[%c0_99, %c0_100] : memref<1x96xf32, #tpu.memory_space<vmem>>, vector<1x96xf32>
    %556 = arith.addf %554, %555 : vector<1x96xf32>
    %557 = arith.addf %552, %556 : vector<1x96xf32>
    %558 = vector.extract_strided_slice %557 {offsets = [0, 0], sizes = [1, 32], strides = [1, 1]} : vector<1x96xf32> to vector<1x32xf32>
    %559 = arith.negf %558 : vector<1x32xf32>
    %560 = math.exp %559 : vector<1x32xf32>
    %cst_101 = arith.constant 1.000000e+00 : f32
    %561 = vector.broadcast %cst_101 : f32 to vector<1x32xf32>
    %562 = arith.addf %561, %560 : vector<1x32xf32>
    %563 = arith.divf %561, %562 : vector<1x32xf32>
    %564 = vector.extract_strided_slice %557 {offsets = [0, 32], sizes = [1, 32], strides = [1, 1]} : vector<1x96xf32> to vector<1x32xf32>
    %565 = arith.negf %564 : vector<1x32xf32>
    %566 = math.exp %565 : vector<1x32xf32>
    %cst_102 = arith.constant 1.000000e+00 : f32
    %567 = vector.broadcast %cst_102 : f32 to vector<1x32xf32>
    %568 = arith.addf %567, %566 : vector<1x32xf32>
    %569 = arith.divf %567, %568 : vector<1x32xf32>
    %570 = vector.extract_strided_slice %552 {offsets = [0, 64], sizes = [1, 32], strides = [1, 1]} : vector<1x96xf32> to vector<1x32xf32>
    %571 = vector.extract_strided_slice %556 {offsets = [0, 64], sizes = [1, 32], strides = [1, 1]} : vector<1x96xf32> to vector<1x32xf32>
    %572 = arith.mulf %563, %571 : vector<1x32xf32>
    %573 = arith.addf %570, %572 : vector<1x32xf32>
    %574 = math.tanh %573 : vector<1x32xf32>
    %cst_103 = arith.constant 1.000000e+00 : f32
    %575 = vector.broadcast %cst_103 : f32 to vector<1x32xf32>
    %576 = arith.subf %575, %569 : vector<1x32xf32>
    %577 = arith.mulf %576, %574 : vector<1x32xf32>
    %578 = arith.mulf %569, %505 : vector<1x32xf32>
    %579 = arith.addf %577, %578 : vector<1x32xf32>
    %580 = vector.broadcast %579 : vector<1x32xf32> to vector<8x32xf32>
    %581 = arith.mulf %580, %543 : vector<8x32xf32>
    %cst_104 = arith.constant dense<0.000000e+00> : vector<8xf32>
    %582 = vector.multi_reduction <add>, %581, %cst_104 [1] : vector<8x32xf32> to vector<8xf32>
    %583 = vector.shape_cast %582 : vector<8xf32> to vector<8x1xf32>
    %cst_105 = arith.constant dense<0xFF800000> : vector<1xf32>
    %584 = vector.multi_reduction <maximumf>, %583, %cst_105 [0] : vector<8x1xf32> to vector<1xf32>
    %585 = vector.shape_cast %584 : vector<1xf32> to vector<1x1xf32>
    %586 = vector.broadcast %585 : vector<1x1xf32> to vector<8x1xf32>
    %587 = arith.subf %583, %586 : vector<8x1xf32>
    %588 = math.exp %587 : vector<8x1xf32>
    %cst_106 = arith.constant dense<0.000000e+00> : vector<1xf32>
    %589 = vector.multi_reduction <add>, %588, %cst_106 [0] : vector<8x1xf32> to vector<1xf32>
    %590 = vector.shape_cast %589 : vector<1xf32> to vector<1x1xf32>
    %591 = tpu.reciprocal %590 {approx = true} : vector<1x1xf32> -> vector<1x1xf32>
    %592 = vector.broadcast %591 : vector<1x1xf32> to vector<8x1xf32>
    %593 = arith.mulf %588, %592 : vector<8x1xf32>
    %594 = vector.broadcast %593 : vector<8x1xf32> to vector<8x32xf32>
    %595 = arith.mulf %594, %543 : vector<8x32xf32>
    %cst_107 = arith.constant dense<0.000000e+00> : vector<32xf32>
    %596 = vector.multi_reduction <add>, %595, %cst_107 [0] : vector<8x32xf32> to vector<32xf32>
    %597 = vector.shape_cast %596 : vector<32xf32> to vector<1x32xf32>
    %598 = tpu.concatenate %579, %597 in 1 : vector<1x32xf32>, vector<1x32xf32> -> vector<1x64xf32>
    %c0_108 = arith.constant 0 : index
    %c0_109 = arith.constant 0 : index
    %599 = vector.load %arg12[%c0_108, %c0_109] : memref<64x32xf32, #tpu.memory_space<vmem>>, vector<64x32xf32>
    %cst_110 = arith.constant dense<0.000000e+00> : vector<1x32xf32>
    %600 = tpu.matmul %598, %599, %cst_110 {dimension_numbers = #tpu.dot_dimension_numbers<[1], [0], [0], [1], [0, 0, 1, 1], [], []>} : vector<1x64xf32>, vector<64x32xf32>, vector<1x32xf32> -> vector<1x32xf32>
    %c0_111 = arith.constant 0 : index
    %c0_112 = arith.constant 0 : index
    %601 = vector.load %arg13[%c0_111, %c0_112] : memref<1x32xf32, #tpu.memory_space<vmem>>, vector<1x32xf32>
    %602 = arith.addf %600, %601 : vector<1x32xf32>
    %603 = math.tanh %602 : vector<1x32xf32>
    %c0_113 = arith.constant 0 : index
    %c0_114 = arith.constant 0 : index
    %604 = vector.load %arg14[%c0_113, %c0_114] : memref<32x64xf32, #tpu.memory_space<vmem>>, vector<32x64xf32>
    %cst_115 = arith.constant dense<0.000000e+00> : vector<1x64xf32>
    %605 = tpu.matmul %603, %604, %cst_115 {dimension_numbers = #tpu.dot_dimension_numbers<[1], [0], [0], [1], [0, 0, 1, 1], [], []>} : vector<1x32xf32>, vector<32x64xf32>, vector<1x64xf32> -> vector<1x64xf32>
    %c0_116 = arith.constant 0 : index
    %c0_117 = arith.constant 0 : index
    %606 = vector.load %arg15[%c0_116, %c0_117] : memref<1x64xf32, #tpu.memory_space<vmem>>, vector<1x64xf32>
    %607 = arith.addf %605, %606 : vector<1x64xf32>
    %cst_118 = arith.constant dense<0xFF800000> : vector<1xf32>
    %608 = vector.multi_reduction <maximumf>, %607, %cst_118 [1] : vector<1x64xf32> to vector<1xf32>
    %609 = vector.shape_cast %608 : vector<1xf32> to vector<1x1xf32>
    %610 = vector.broadcast %609 : vector<1x1xf32> to vector<1x64xf32>
    %611 = arith.subf %607, %610 : vector<1x64xf32>
    %612 = math.exp %611 : vector<1x64xf32>
    %cst_119 = arith.constant dense<0.000000e+00> : vector<1xf32>
    %613 = vector.multi_reduction <add>, %612, %cst_119 [1] : vector<1x64xf32> to vector<1xf32>
    %614 = vector.shape_cast %613 : vector<1xf32> to vector<1x1xf32>
    %615 = tpu.reciprocal %614 : vector<1x1xf32> -> vector<1x1xf32>
    %616 = vector.broadcast %609 : vector<1x1xf32> to vector<1x64xf32>
    %617 = arith.cmpf oeq, %607, %616 : vector<1x64xf32>
    %c64_i32 = arith.constant 64 : i32
    %618 = vector.broadcast %c64_i32 : i32 to vector<1x64xi32>
    %619 = arith.select %617, %545, %618 : vector<1x64xi1>, vector<1x64xi32>
    %cst_120 = arith.constant dense<2147483647> : vector<1xi32>
    %620 = vector.multi_reduction <minsi>, %619, %cst_120 [1] : vector<1x64xi32> to vector<1xi32>
    %621 = vector.shape_cast %620 : vector<1xi32> to vector<1x1xi32>
    %c0_i32_121 = arith.constant 0 : i32
    %622 = vector.broadcast %c0_i32_121 : i32 to vector<1x128xi32>
    %623 = arith.cmpi eq, %544, %622 : vector<1x128xi32>
    %624 = vector.shape_cast %621 : vector<1x1xi32> to vector<1x1xi32>
    %625 = vector.broadcast %624 : vector<1x1xi32> to vector<1x128xi32>
    %626 = arith.select %623, %625, %546 : vector<1x128xi1>, vector<1x128xi32>
    %c0_i32_122 = arith.constant 0 : i32
    %627 = vector.broadcast %c0_i32_122 : i32 to vector<1x128xi32>
    %628 = arith.cmpi eq, %544, %627 : vector<1x128xi32>
    %629 = vector.shape_cast %615 : vector<1x1xf32> to vector<1x1xf32>
    %630 = vector.broadcast %629 : vector<1x1xf32> to vector<1x128xf32>
    %631 = arith.select %628, %630, %547 : vector<1x128xi1>, vector<1x128xf32>
    %632 = vector.broadcast %621 : vector<1x1xi32> to vector<1x64xi32>
    %633 = arith.cmpi eq, %545, %632 : vector<1x64xi32>
    %634 = arith.extui %633 : vector<1x64xi1> to vector<1x64xi32>
    %635 = arith.sitofp %634 : vector<1x64xi32> to vector<1x64xf32>
    %c0_123 = arith.constant 0 : index
    %c0_124 = arith.constant 0 : index
    %636 = vector.load %arg1[%c0_123, %c0_124] : memref<64x32xf32, #tpu.memory_space<vmem>>, vector<64x32xf32>
    %cst_125 = arith.constant dense<0.000000e+00> : vector<1x32xf32>
    %637 = tpu.matmul %635, %636, %cst_125 {dimension_numbers = #tpu.dot_dimension_numbers<[1], [0], [0], [1], [0, 0, 1, 1], [], []>} : vector<1x64xf32>, vector<64x32xf32>, vector<1x32xf32> -> vector<1x32xf32>
    %c0_126 = arith.constant 0 : index
    %c0_127 = arith.constant 0 : index
    %638 = vector.load %arg8[%c0_126, %c0_127] : memref<32x96xf32, #tpu.memory_space<vmem>>, vector<32x96xf32>
    %cst_128 = arith.constant dense<0.000000e+00> : vector<1x96xf32>
    %639 = tpu.matmul %637, %638, %cst_128 {dimension_numbers = #tpu.dot_dimension_numbers<[1], [0], [0], [1], [0, 0, 1, 1], [], []>} : vector<1x32xf32>, vector<32x96xf32>, vector<1x96xf32> -> vector<1x96xf32>
    %c0_129 = arith.constant 0 : index
    %c0_130 = arith.constant 0 : index
    %640 = vector.load %arg10[%c0_129, %c0_130] : memref<1x96xf32, #tpu.memory_space<vmem>>, vector<1x96xf32>
    %641 = arith.addf %639, %640 : vector<1x96xf32>
    %c0_131 = arith.constant 0 : index
    %c0_132 = arith.constant 0 : index
    %642 = vector.load %arg9[%c0_131, %c0_132] : memref<32x96xf32, #tpu.memory_space<vmem>>, vector<32x96xf32>
    %cst_133 = arith.constant dense<0.000000e+00> : vector<1x96xf32>
    %643 = tpu.matmul %579, %642, %cst_133 {dimension_numbers = #tpu.dot_dimension_numbers<[1], [0], [0], [1], [0, 0, 1, 1], [], []>} : vector<1x32xf32>, vector<32x96xf32>, vector<1x96xf32> -> vector<1x96xf32>
    %c0_134 = arith.constant 0 : index
    %c0_135 = arith.constant 0 : index
    %644 = vector.load %arg11[%c0_134, %c0_135] : memref<1x96xf32, #tpu.memory_space<vmem>>, vector<1x96xf32>
    %645 = arith.addf %643, %644 : vector<1x96xf32>
    %646 = arith.addf %641, %645 : vector<1x96xf32>
    %647 = vector.extract_strided_slice %646 {offsets = [0, 0], sizes = [1, 32], strides = [1, 1]} : vector<1x96xf32> to vector<1x32xf32>
    %648 = arith.negf %647 : vector<1x32xf32>
    %649 = math.exp %648 : vector<1x32xf32>
    %cst_136 = arith.constant 1.000000e+00 : f32
    %650 = vector.broadcast %cst_136 : f32 to vector<1x32xf32>
    %651 = arith.addf %650, %649 : vector<1x32xf32>
    %652 = arith.divf %650, %651 : vector<1x32xf32>
    %653 = vector.extract_strided_slice %646 {offsets = [0, 32], sizes = [1, 32], strides = [1, 1]} : vector<1x96xf32> to vector<1x32xf32>
    %654 = arith.negf %653 : vector<1x32xf32>
    %655 = math.exp %654 : vector<1x32xf32>
    %cst_137 = arith.constant 1.000000e+00 : f32
    %656 = vector.broadcast %cst_137 : f32 to vector<1x32xf32>
    %657 = arith.addf %656, %655 : vector<1x32xf32>
    %658 = arith.divf %656, %657 : vector<1x32xf32>
    %659 = vector.extract_strided_slice %641 {offsets = [0, 64], sizes = [1, 32], strides = [1, 1]} : vector<1x96xf32> to vector<1x32xf32>
    %660 = vector.extract_strided_slice %645 {offsets = [0, 64], sizes = [1, 32], strides = [1, 1]} : vector<1x96xf32> to vector<1x32xf32>
    %661 = arith.mulf %652, %660 : vector<1x32xf32>
    %662 = arith.addf %659, %661 : vector<1x32xf32>
    %663 = math.tanh %662 : vector<1x32xf32>
    %cst_138 = arith.constant 1.000000e+00 : f32
    %664 = vector.broadcast %cst_138 : f32 to vector<1x32xf32>
    %665 = arith.subf %664, %658 : vector<1x32xf32>
    %666 = arith.mulf %665, %663 : vector<1x32xf32>
    %667 = arith.mulf %658, %579 : vector<1x32xf32>
    %668 = arith.addf %666, %667 : vector<1x32xf32>
    %669 = vector.broadcast %668 : vector<1x32xf32> to vector<8x32xf32>
    %670 = arith.mulf %669, %543 : vector<8x32xf32>
    %cst_139 = arith.constant dense<0.000000e+00> : vector<8xf32>
    %671 = vector.multi_reduction <add>, %670, %cst_139 [1] : vector<8x32xf32> to vector<8xf32>
    %672 = vector.shape_cast %671 : vector<8xf32> to vector<8x1xf32>
    %cst_140 = arith.constant dense<0xFF800000> : vector<1xf32>
    %673 = vector.multi_reduction <maximumf>, %672, %cst_140 [0] : vector<8x1xf32> to vector<1xf32>
    %674 = vector.shape_cast %673 : vector<1xf32> to vector<1x1xf32>
    %675 = vector.broadcast %674 : vector<1x1xf32> to vector<8x1xf32>
    %676 = arith.subf %672, %675 : vector<8x1xf32>
    %677 = math.exp %676 : vector<8x1xf32>
    %cst_141 = arith.constant dense<0.000000e+00> : vector<1xf32>
    %678 = vector.multi_reduction <add>, %677, %cst_141 [0] : vector<8x1xf32> to vector<1xf32>
    %679 = vector.shape_cast %678 : vector<1xf32> to vector<1x1xf32>
    %680 = tpu.reciprocal %679 {approx = true} : vector<1x1xf32> -> vector<1x1xf32>
    %681 = vector.broadcast %680 : vector<1x1xf32> to vector<8x1xf32>
    %682 = arith.mulf %677, %681 : vector<8x1xf32>
    %683 = vector.broadcast %682 : vector<8x1xf32> to vector<8x32xf32>
    %684 = arith.mulf %683, %543 : vector<8x32xf32>
    %cst_142 = arith.constant dense<0.000000e+00> : vector<32xf32>
    %685 = vector.multi_reduction <add>, %684, %cst_142 [0] : vector<8x32xf32> to vector<32xf32>
    %686 = vector.shape_cast %685 : vector<32xf32> to vector<1x32xf32>
    %687 = tpu.concatenate %668, %686 in 1 : vector<1x32xf32>, vector<1x32xf32> -> vector<1x64xf32>
    %c0_143 = arith.constant 0 : index
    %c0_144 = arith.constant 0 : index
    %688 = vector.load %arg12[%c0_143, %c0_144] : memref<64x32xf32, #tpu.memory_space<vmem>>, vector<64x32xf32>
    %cst_145 = arith.constant dense<0.000000e+00> : vector<1x32xf32>
    %689 = tpu.matmul %687, %688, %cst_145 {dimension_numbers = #tpu.dot_dimension_numbers<[1], [0], [0], [1], [0, 0, 1, 1], [], []>} : vector<1x64xf32>, vector<64x32xf32>, vector<1x32xf32> -> vector<1x32xf32>
    %c0_146 = arith.constant 0 : index
    %c0_147 = arith.constant 0 : index
    %690 = vector.load %arg13[%c0_146, %c0_147] : memref<1x32xf32, #tpu.memory_space<vmem>>, vector<1x32xf32>
    %691 = arith.addf %689, %690 : vector<1x32xf32>
    %692 = math.tanh %691 : vector<1x32xf32>
    %c0_148 = arith.constant 0 : index
    %c0_149 = arith.constant 0 : index
    %693 = vector.load %arg14[%c0_148, %c0_149] : memref<32x64xf32, #tpu.memory_space<vmem>>, vector<32x64xf32>
    %cst_150 = arith.constant dense<0.000000e+00> : vector<1x64xf32>
    %694 = tpu.matmul %692, %693, %cst_150 {dimension_numbers = #tpu.dot_dimension_numbers<[1], [0], [0], [1], [0, 0, 1, 1], [], []>} : vector<1x32xf32>, vector<32x64xf32>, vector<1x64xf32> -> vector<1x64xf32>
    %c0_151 = arith.constant 0 : index
    %c0_152 = arith.constant 0 : index
    %695 = vector.load %arg15[%c0_151, %c0_152] : memref<1x64xf32, #tpu.memory_space<vmem>>, vector<1x64xf32>
    %696 = arith.addf %694, %695 : vector<1x64xf32>
    %cst_153 = arith.constant dense<0xFF800000> : vector<1xf32>
    %697 = vector.multi_reduction <maximumf>, %696, %cst_153 [1] : vector<1x64xf32> to vector<1xf32>
    %698 = vector.shape_cast %697 : vector<1xf32> to vector<1x1xf32>
    %699 = vector.broadcast %698 : vector<1x1xf32> to vector<1x64xf32>
    %700 = arith.subf %696, %699 : vector<1x64xf32>
    %701 = math.exp %700 : vector<1x64xf32>
    %cst_154 = arith.constant dense<0.000000e+00> : vector<1xf32>
    %702 = vector.multi_reduction <add>, %701, %cst_154 [1] : vector<1x64xf32> to vector<1xf32>
    %703 = vector.shape_cast %702 : vector<1xf32> to vector<1x1xf32>
    %704 = tpu.reciprocal %703 : vector<1x1xf32> -> vector<1x1xf32>
    %705 = vector.broadcast %698 : vector<1x1xf32> to vector<1x64xf32>
    %706 = arith.cmpf oeq, %696, %705 : vector<1x64xf32>
    %c64_i32_155 = arith.constant 64 : i32
    %707 = vector.broadcast %c64_i32_155 : i32 to vector<1x64xi32>
    %708 = arith.select %706, %545, %707 : vector<1x64xi1>, vector<1x64xi32>
    %cst_156 = arith.constant dense<2147483647> : vector<1xi32>
    %709 = vector.multi_reduction <minsi>, %708, %cst_156 [1] : vector<1x64xi32> to vector<1xi32>
    %710 = vector.shape_cast %709 : vector<1xi32> to vector<1x1xi32>
    %c1_i32_157 = arith.constant 1 : i32
    %711 = vector.broadcast %c1_i32_157 : i32 to vector<1x128xi32>
    %712 = arith.cmpi eq, %544, %711 : vector<1x128xi32>
    %713 = vector.shape_cast %710 : vector<1x1xi32> to vector<1x1xi32>
    %714 = vector.broadcast %713 : vector<1x1xi32> to vector<1x128xi32>
    %715 = arith.select %712, %714, %626 : vector<1x128xi1>, vector<1x128xi32>
    %c1_i32_158 = arith.constant 1 : i32
    %716 = vector.broadcast %c1_i32_158 : i32 to vector<1x128xi32>
    %717 = arith.cmpi eq, %544, %716 : vector<1x128xi32>
    %718 = vector.shape_cast %704 : vector<1x1xf32> to vector<1x1xf32>
    %719 = vector.broadcast %718 : vector<1x1xf32> to vector<1x128xf32>
    %720 = arith.select %717, %719, %631 : vector<1x128xi1>, vector<1x128xf32>
    %721 = vector.broadcast %710 : vector<1x1xi32> to vector<1x64xi32>
    %722 = arith.cmpi eq, %545, %721 : vector<1x64xi32>
    %723 = arith.extui %722 : vector<1x64xi1> to vector<1x64xi32>
    %724 = arith.sitofp %723 : vector<1x64xi32> to vector<1x64xf32>
    %c0_159 = arith.constant 0 : index
    %c0_160 = arith.constant 0 : index
    %725 = vector.load %arg1[%c0_159, %c0_160] : memref<64x32xf32, #tpu.memory_space<vmem>>, vector<64x32xf32>
    %cst_161 = arith.constant dense<0.000000e+00> : vector<1x32xf32>
    %726 = tpu.matmul %724, %725, %cst_161 {dimension_numbers = #tpu.dot_dimension_numbers<[1], [0], [0], [1], [0, 0, 1, 1], [], []>} : vector<1x64xf32>, vector<64x32xf32>, vector<1x32xf32> -> vector<1x32xf32>
    %c0_162 = arith.constant 0 : index
    %c0_163 = arith.constant 0 : index
    %727 = vector.load %arg8[%c0_162, %c0_163] : memref<32x96xf32, #tpu.memory_space<vmem>>, vector<32x96xf32>
    %cst_164 = arith.constant dense<0.000000e+00> : vector<1x96xf32>
    %728 = tpu.matmul %726, %727, %cst_164 {dimension_numbers = #tpu.dot_dimension_numbers<[1], [0], [0], [1], [0, 0, 1, 1], [], []>} : vector<1x32xf32>, vector<32x96xf32>, vector<1x96xf32> -> vector<1x96xf32>
    %c0_165 = arith.constant 0 : index
    %c0_166 = arith.constant 0 : index
    %729 = vector.load %arg10[%c0_165, %c0_166] : memref<1x96xf32, #tpu.memory_space<vmem>>, vector<1x96xf32>
    %730 = arith.addf %728, %729 : vector<1x96xf32>
    %c0_167 = arith.constant 0 : index
    %c0_168 = arith.constant 0 : index
    %731 = vector.load %arg9[%c0_167, %c0_168] : memref<32x96xf32, #tpu.memory_space<vmem>>, vector<32x96xf32>
    %cst_169 = arith.constant dense<0.000000e+00> : vector<1x96xf32>
    %732 = tpu.matmul %668, %731, %cst_169 {dimension_numbers = #tpu.dot_dimension_numbers<[1], [0], [0], [1], [0, 0, 1, 1], [], []>} : vector<1x32xf32>, vector<32x96xf32>, vector<1x96xf32> -> vector<1x96xf32>
    %c0_170 = arith.constant 0 : index
    %c0_171 = arith.constant 0 : index
    %733 = vector.load %arg11[%c0_170, %c0_171] : memref<1x96xf32, #tpu.memory_space<vmem>>, vector<1x96xf32>
    %734 = arith.addf %732, %733 : vector<1x96xf32>
    %735 = arith.addf %730, %734 : vector<1x96xf32>
    %736 = vector.extract_strided_slice %735 {offsets = [0, 0], sizes = [1, 32], strides = [1, 1]} : vector<1x96xf32> to vector<1x32xf32>
    %737 = arith.negf %736 : vector<1x32xf32>
    %738 = math.exp %737 : vector<1x32xf32>
    %cst_172 = arith.constant 1.000000e+00 : f32
    %739 = vector.broadcast %cst_172 : f32 to vector<1x32xf32>
    %740 = arith.addf %739, %738 : vector<1x32xf32>
    %741 = arith.divf %739, %740 : vector<1x32xf32>
    %742 = vector.extract_strided_slice %735 {offsets = [0, 32], sizes = [1, 32], strides = [1, 1]} : vector<1x96xf32> to vector<1x32xf32>
    %743 = arith.negf %742 : vector<1x32xf32>
    %744 = math.exp %743 : vector<1x32xf32>
    %cst_173 = arith.constant 1.000000e+00 : f32
    %745 = vector.broadcast %cst_173 : f32 to vector<1x32xf32>
    %746 = arith.addf %745, %744 : vector<1x32xf32>
    %747 = arith.divf %745, %746 : vector<1x32xf32>
    %748 = vector.extract_strided_slice %730 {offsets = [0, 64], sizes = [1, 32], strides = [1, 1]} : vector<1x96xf32> to vector<1x32xf32>
    %749 = vector.extract_strided_slice %734 {offsets = [0, 64], sizes = [1, 32], strides = [1, 1]} : vector<1x96xf32> to vector<1x32xf32>
    %750 = arith.mulf %741, %749 : vector<1x32xf32>
    %751 = arith.addf %748, %750 : vector<1x32xf32>
    %752 = math.tanh %751 : vector<1x32xf32>
    %cst_174 = arith.constant 1.000000e+00 : f32
    %753 = vector.broadcast %cst_174 : f32 to vector<1x32xf32>
    %754 = arith.subf %753, %747 : vector<1x32xf32>
    %755 = arith.mulf %754, %752 : vector<1x32xf32>
    %756 = arith.mulf %747, %668 : vector<1x32xf32>
    %757 = arith.addf %755, %756 : vector<1x32xf32>
    %758 = vector.broadcast %757 : vector<1x32xf32> to vector<8x32xf32>
    %759 = arith.mulf %758, %543 : vector<8x32xf32>
    %cst_175 = arith.constant dense<0.000000e+00> : vector<8xf32>
    %760 = vector.multi_reduction <add>, %759, %cst_175 [1] : vector<8x32xf32> to vector<8xf32>
    %761 = vector.shape_cast %760 : vector<8xf32> to vector<8x1xf32>
    %cst_176 = arith.constant dense<0xFF800000> : vector<1xf32>
    %762 = vector.multi_reduction <maximumf>, %761, %cst_176 [0] : vector<8x1xf32> to vector<1xf32>
    %763 = vector.shape_cast %762 : vector<1xf32> to vector<1x1xf32>
    %764 = vector.broadcast %763 : vector<1x1xf32> to vector<8x1xf32>
    %765 = arith.subf %761, %764 : vector<8x1xf32>
    %766 = math.exp %765 : vector<8x1xf32>
    %cst_177 = arith.constant dense<0.000000e+00> : vector<1xf32>
    %767 = vector.multi_reduction <add>, %766, %cst_177 [0] : vector<8x1xf32> to vector<1xf32>
    %768 = vector.shape_cast %767 : vector<1xf32> to vector<1x1xf32>
    %769 = tpu.reciprocal %768 {approx = true} : vector<1x1xf32> -> vector<1x1xf32>
    %770 = vector.broadcast %769 : vector<1x1xf32> to vector<8x1xf32>
    %771 = arith.mulf %766, %770 : vector<8x1xf32>
    %772 = vector.broadcast %771 : vector<8x1xf32> to vector<8x32xf32>
    %773 = arith.mulf %772, %543 : vector<8x32xf32>
    %cst_178 = arith.constant dense<0.000000e+00> : vector<32xf32>
    %774 = vector.multi_reduction <add>, %773, %cst_178 [0] : vector<8x32xf32> to vector<32xf32>
    %775 = vector.shape_cast %774 : vector<32xf32> to vector<1x32xf32>
    %776 = tpu.concatenate %757, %775 in 1 : vector<1x32xf32>, vector<1x32xf32> -> vector<1x64xf32>
    %c0_179 = arith.constant 0 : index
    %c0_180 = arith.constant 0 : index
    %777 = vector.load %arg12[%c0_179, %c0_180] : memref<64x32xf32, #tpu.memory_space<vmem>>, vector<64x32xf32>
    %cst_181 = arith.constant dense<0.000000e+00> : vector<1x32xf32>
    %778 = tpu.matmul %776, %777, %cst_181 {dimension_numbers = #tpu.dot_dimension_numbers<[1], [0], [0], [1], [0, 0, 1, 1], [], []>} : vector<1x64xf32>, vector<64x32xf32>, vector<1x32xf32> -> vector<1x32xf32>
    %c0_182 = arith.constant 0 : index
    %c0_183 = arith.constant 0 : index
    %779 = vector.load %arg13[%c0_182, %c0_183] : memref<1x32xf32, #tpu.memory_space<vmem>>, vector<1x32xf32>
    %780 = arith.addf %778, %779 : vector<1x32xf32>
    %781 = math.tanh %780 : vector<1x32xf32>
    %c0_184 = arith.constant 0 : index
    %c0_185 = arith.constant 0 : index
    %782 = vector.load %arg14[%c0_184, %c0_185] : memref<32x64xf32, #tpu.memory_space<vmem>>, vector<32x64xf32>
    %cst_186 = arith.constant dense<0.000000e+00> : vector<1x64xf32>
    %783 = tpu.matmul %781, %782, %cst_186 {dimension_numbers = #tpu.dot_dimension_numbers<[1], [0], [0], [1], [0, 0, 1, 1], [], []>} : vector<1x32xf32>, vector<32x64xf32>, vector<1x64xf32> -> vector<1x64xf32>
    %c0_187 = arith.constant 0 : index
    %c0_188 = arith.constant 0 : index
    %784 = vector.load %arg15[%c0_187, %c0_188] : memref<1x64xf32, #tpu.memory_space<vmem>>, vector<1x64xf32>
    %785 = arith.addf %783, %784 : vector<1x64xf32>
    %cst_189 = arith.constant dense<0xFF800000> : vector<1xf32>
    %786 = vector.multi_reduction <maximumf>, %785, %cst_189 [1] : vector<1x64xf32> to vector<1xf32>
    %787 = vector.shape_cast %786 : vector<1xf32> to vector<1x1xf32>
    %788 = vector.broadcast %787 : vector<1x1xf32> to vector<1x64xf32>
    %789 = arith.subf %785, %788 : vector<1x64xf32>
    %790 = math.exp %789 : vector<1x64xf32>
    %cst_190 = arith.constant dense<0.000000e+00> : vector<1xf32>
    %791 = vector.multi_reduction <add>, %790, %cst_190 [1] : vector<1x64xf32> to vector<1xf32>
    %792 = vector.shape_cast %791 : vector<1xf32> to vector<1x1xf32>
    %793 = tpu.reciprocal %792 : vector<1x1xf32> -> vector<1x1xf32>
    %794 = vector.broadcast %787 : vector<1x1xf32> to vector<1x64xf32>
    %795 = arith.cmpf oeq, %785, %794 : vector<1x64xf32>
    %c64_i32_191 = arith.constant 64 : i32
    %796 = vector.broadcast %c64_i32_191 : i32 to vector<1x64xi32>
    %797 = arith.select %795, %545, %796 : vector<1x64xi1>, vector<1x64xi32>
    %cst_192 = arith.constant dense<2147483647> : vector<1xi32>
    %798 = vector.multi_reduction <minsi>, %797, %cst_192 [1] : vector<1x64xi32> to vector<1xi32>
    %799 = vector.shape_cast %798 : vector<1xi32> to vector<1x1xi32>
    %c2_i32_193 = arith.constant 2 : i32
    %800 = vector.broadcast %c2_i32_193 : i32 to vector<1x128xi32>
    %801 = arith.cmpi eq, %544, %800 : vector<1x128xi32>
    %802 = vector.shape_cast %799 : vector<1x1xi32> to vector<1x1xi32>
    %803 = vector.broadcast %802 : vector<1x1xi32> to vector<1x128xi32>
    %804 = arith.select %801, %803, %715 : vector<1x128xi1>, vector<1x128xi32>
    %c2_i32_194 = arith.constant 2 : i32
    %805 = vector.broadcast %c2_i32_194 : i32 to vector<1x128xi32>
    %806 = arith.cmpi eq, %544, %805 : vector<1x128xi32>
    %807 = vector.shape_cast %793 : vector<1x1xf32> to vector<1x1xf32>
    %808 = vector.broadcast %807 : vector<1x1xf32> to vector<1x128xf32>
    %809 = arith.select %806, %808, %720 : vector<1x128xi1>, vector<1x128xf32>
    %810 = vector.broadcast %799 : vector<1x1xi32> to vector<1x64xi32>
    %811 = arith.cmpi eq, %545, %810 : vector<1x64xi32>
    %812 = arith.extui %811 : vector<1x64xi1> to vector<1x64xi32>
    %813 = arith.sitofp %812 : vector<1x64xi32> to vector<1x64xf32>
    %c0_195 = arith.constant 0 : index
    %c0_196 = arith.constant 0 : index
    %814 = vector.load %arg1[%c0_195, %c0_196] : memref<64x32xf32, #tpu.memory_space<vmem>>, vector<64x32xf32>
    %cst_197 = arith.constant dense<0.000000e+00> : vector<1x32xf32>
    %815 = tpu.matmul %813, %814, %cst_197 {dimension_numbers = #tpu.dot_dimension_numbers<[1], [0], [0], [1], [0, 0, 1, 1], [], []>} : vector<1x64xf32>, vector<64x32xf32>, vector<1x32xf32> -> vector<1x32xf32>
    %c0_198 = arith.constant 0 : index
    %c0_199 = arith.constant 0 : index
    %816 = vector.load %arg8[%c0_198, %c0_199] : memref<32x96xf32, #tpu.memory_space<vmem>>, vector<32x96xf32>
    %cst_200 = arith.constant dense<0.000000e+00> : vector<1x96xf32>
    %817 = tpu.matmul %815, %816, %cst_200 {dimension_numbers = #tpu.dot_dimension_numbers<[1], [0], [0], [1], [0, 0, 1, 1], [], []>} : vector<1x32xf32>, vector<32x96xf32>, vector<1x96xf32> -> vector<1x96xf32>
    %c0_201 = arith.constant 0 : index
    %c0_202 = arith.constant 0 : index
    %818 = vector.load %arg10[%c0_201, %c0_202] : memref<1x96xf32, #tpu.memory_space<vmem>>, vector<1x96xf32>
    %819 = arith.addf %817, %818 : vector<1x96xf32>
    %c0_203 = arith.constant 0 : index
    %c0_204 = arith.constant 0 : index
    %820 = vector.load %arg9[%c0_203, %c0_204] : memref<32x96xf32, #tpu.memory_space<vmem>>, vector<32x96xf32>
    %cst_205 = arith.constant dense<0.000000e+00> : vector<1x96xf32>
    %821 = tpu.matmul %757, %820, %cst_205 {dimension_numbers = #tpu.dot_dimension_numbers<[1], [0], [0], [1], [0, 0, 1, 1], [], []>} : vector<1x32xf32>, vector<32x96xf32>, vector<1x96xf32> -> vector<1x96xf32>
    %c0_206 = arith.constant 0 : index
    %c0_207 = arith.constant 0 : index
    %822 = vector.load %arg11[%c0_206, %c0_207] : memref<1x96xf32, #tpu.memory_space<vmem>>, vector<1x96xf32>
    %823 = arith.addf %821, %822 : vector<1x96xf32>
    %824 = arith.addf %819, %823 : vector<1x96xf32>
    %825 = vector.extract_strided_slice %824 {offsets = [0, 0], sizes = [1, 32], strides = [1, 1]} : vector<1x96xf32> to vector<1x32xf32>
    %826 = arith.negf %825 : vector<1x32xf32>
    %827 = math.exp %826 : vector<1x32xf32>
    %cst_208 = arith.constant 1.000000e+00 : f32
    %828 = vector.broadcast %cst_208 : f32 to vector<1x32xf32>
    %829 = arith.addf %828, %827 : vector<1x32xf32>
    %830 = arith.divf %828, %829 : vector<1x32xf32>
    %831 = vector.extract_strided_slice %824 {offsets = [0, 32], sizes = [1, 32], strides = [1, 1]} : vector<1x96xf32> to vector<1x32xf32>
    %832 = arith.negf %831 : vector<1x32xf32>
    %833 = math.exp %832 : vector<1x32xf32>
    %cst_209 = arith.constant 1.000000e+00 : f32
    %834 = vector.broadcast %cst_209 : f32 to vector<1x32xf32>
    %835 = arith.addf %834, %833 : vector<1x32xf32>
    %836 = arith.divf %834, %835 : vector<1x32xf32>
    %837 = vector.extract_strided_slice %819 {offsets = [0, 64], sizes = [1, 32], strides = [1, 1]} : vector<1x96xf32> to vector<1x32xf32>
    %838 = vector.extract_strided_slice %823 {offsets = [0, 64], sizes = [1, 32], strides = [1, 1]} : vector<1x96xf32> to vector<1x32xf32>
    %839 = arith.mulf %830, %838 : vector<1x32xf32>
    %840 = arith.addf %837, %839 : vector<1x32xf32>
    %841 = math.tanh %840 : vector<1x32xf32>
    %cst_210 = arith.constant 1.000000e+00 : f32
    %842 = vector.broadcast %cst_210 : f32 to vector<1x32xf32>
    %843 = arith.subf %842, %836 : vector<1x32xf32>
    %844 = arith.mulf %843, %841 : vector<1x32xf32>
    %845 = arith.mulf %836, %757 : vector<1x32xf32>
    %846 = arith.addf %844, %845 : vector<1x32xf32>
    %847 = vector.broadcast %846 : vector<1x32xf32> to vector<8x32xf32>
    %848 = arith.mulf %847, %543 : vector<8x32xf32>
    %cst_211 = arith.constant dense<0.000000e+00> : vector<8xf32>
    %849 = vector.multi_reduction <add>, %848, %cst_211 [1] : vector<8x32xf32> to vector<8xf32>
    %850 = vector.shape_cast %849 : vector<8xf32> to vector<8x1xf32>
    %cst_212 = arith.constant dense<0xFF800000> : vector<1xf32>
    %851 = vector.multi_reduction <maximumf>, %850, %cst_212 [0] : vector<8x1xf32> to vector<1xf32>
    %852 = vector.shape_cast %851 : vector<1xf32> to vector<1x1xf32>
    %853 = vector.broadcast %852 : vector<1x1xf32> to vector<8x1xf32>
    %854 = arith.subf %850, %853 : vector<8x1xf32>
    %855 = math.exp %854 : vector<8x1xf32>
    %cst_213 = arith.constant dense<0.000000e+00> : vector<1xf32>
    %856 = vector.multi_reduction <add>, %855, %cst_213 [0] : vector<8x1xf32> to vector<1xf32>
    %857 = vector.shape_cast %856 : vector<1xf32> to vector<1x1xf32>
    %858 = tpu.reciprocal %857 {approx = true} : vector<1x1xf32> -> vector<1x1xf32>
    %859 = vector.broadcast %858 : vector<1x1xf32> to vector<8x1xf32>
    %860 = arith.mulf %855, %859 : vector<8x1xf32>
    %861 = vector.broadcast %860 : vector<8x1xf32> to vector<8x32xf32>
    %862 = arith.mulf %861, %543 : vector<8x32xf32>
    %cst_214 = arith.constant dense<0.000000e+00> : vector<32xf32>
    %863 = vector.multi_reduction <add>, %862, %cst_214 [0] : vector<8x32xf32> to vector<32xf32>
    %864 = vector.shape_cast %863 : vector<32xf32> to vector<1x32xf32>
    %865 = tpu.concatenate %846, %864 in 1 : vector<1x32xf32>, vector<1x32xf32> -> vector<1x64xf32>
    %c0_215 = arith.constant 0 : index
    %c0_216 = arith.constant 0 : index
    %866 = vector.load %arg12[%c0_215, %c0_216] : memref<64x32xf32, #tpu.memory_space<vmem>>, vector<64x32xf32>
    %cst_217 = arith.constant dense<0.000000e+00> : vector<1x32xf32>
    %867 = tpu.matmul %865, %866, %cst_217 {dimension_numbers = #tpu.dot_dimension_numbers<[1], [0], [0], [1], [0, 0, 1, 1], [], []>} : vector<1x64xf32>, vector<64x32xf32>, vector<1x32xf32> -> vector<1x32xf32>
    %c0_218 = arith.constant 0 : index
    %c0_219 = arith.constant 0 : index
    %868 = vector.load %arg13[%c0_218, %c0_219] : memref<1x32xf32, #tpu.memory_space<vmem>>, vector<1x32xf32>
    %869 = arith.addf %867, %868 : vector<1x32xf32>
    %870 = math.tanh %869 : vector<1x32xf32>
    %c0_220 = arith.constant 0 : index
    %c0_221 = arith.constant 0 : index
    %871 = vector.load %arg14[%c0_220, %c0_221] : memref<32x64xf32, #tpu.memory_space<vmem>>, vector<32x64xf32>
    %cst_222 = arith.constant dense<0.000000e+00> : vector<1x64xf32>
    %872 = tpu.matmul %870, %871, %cst_222 {dimension_numbers = #tpu.dot_dimension_numbers<[1], [0], [0], [1], [0, 0, 1, 1], [], []>} : vector<1x32xf32>, vector<32x64xf32>, vector<1x64xf32> -> vector<1x64xf32>
    %c0_223 = arith.constant 0 : index
    %c0_224 = arith.constant 0 : index
    %873 = vector.load %arg15[%c0_223, %c0_224] : memref<1x64xf32, #tpu.memory_space<vmem>>, vector<1x64xf32>
    %874 = arith.addf %872, %873 : vector<1x64xf32>
    %cst_225 = arith.constant dense<0xFF800000> : vector<1xf32>
    %875 = vector.multi_reduction <maximumf>, %874, %cst_225 [1] : vector<1x64xf32> to vector<1xf32>
    %876 = vector.shape_cast %875 : vector<1xf32> to vector<1x1xf32>
    %877 = vector.broadcast %876 : vector<1x1xf32> to vector<1x64xf32>
    %878 = arith.subf %874, %877 : vector<1x64xf32>
    %879 = math.exp %878 : vector<1x64xf32>
    %cst_226 = arith.constant dense<0.000000e+00> : vector<1xf32>
    %880 = vector.multi_reduction <add>, %879, %cst_226 [1] : vector<1x64xf32> to vector<1xf32>
    %881 = vector.shape_cast %880 : vector<1xf32> to vector<1x1xf32>
    %882 = tpu.reciprocal %881 : vector<1x1xf32> -> vector<1x1xf32>
    %883 = vector.broadcast %876 : vector<1x1xf32> to vector<1x64xf32>
    %884 = arith.cmpf oeq, %874, %883 : vector<1x64xf32>
    %c64_i32_227 = arith.constant 64 : i32
    %885 = vector.broadcast %c64_i32_227 : i32 to vector<1x64xi32>
    %886 = arith.select %884, %545, %885 : vector<1x64xi1>, vector<1x64xi32>
    %cst_228 = arith.constant dense<2147483647> : vector<1xi32>
    %887 = vector.multi_reduction <minsi>, %886, %cst_228 [1] : vector<1x64xi32> to vector<1xi32>
    %888 = vector.shape_cast %887 : vector<1xi32> to vector<1x1xi32>
    %c3_i32_229 = arith.constant 3 : i32
    %889 = vector.broadcast %c3_i32_229 : i32 to vector<1x128xi32>
    %890 = arith.cmpi eq, %544, %889 : vector<1x128xi32>
    %891 = vector.shape_cast %888 : vector<1x1xi32> to vector<1x1xi32>
    %892 = vector.broadcast %891 : vector<1x1xi32> to vector<1x128xi32>
    %893 = arith.select %890, %892, %804 : vector<1x128xi1>, vector<1x128xi32>
    %c3_i32_230 = arith.constant 3 : i32
    %894 = vector.broadcast %c3_i32_230 : i32 to vector<1x128xi32>
    %895 = arith.cmpi eq, %544, %894 : vector<1x128xi32>
    %896 = vector.shape_cast %882 : vector<1x1xf32> to vector<1x1xf32>
    %897 = vector.broadcast %896 : vector<1x1xf32> to vector<1x128xf32>
    %898 = arith.select %895, %897, %809 : vector<1x128xi1>, vector<1x128xf32>
    %899 = vector.broadcast %888 : vector<1x1xi32> to vector<1x64xi32>
    %900 = arith.cmpi eq, %545, %899 : vector<1x64xi32>
    %901 = arith.extui %900 : vector<1x64xi1> to vector<1x64xi32>
    %902 = arith.sitofp %901 : vector<1x64xi32> to vector<1x64xf32>
    %c0_231 = arith.constant 0 : index
    %c0_232 = arith.constant 0 : index
    %903 = vector.load %arg1[%c0_231, %c0_232] : memref<64x32xf32, #tpu.memory_space<vmem>>, vector<64x32xf32>
    %cst_233 = arith.constant dense<0.000000e+00> : vector<1x32xf32>
    %904 = tpu.matmul %902, %903, %cst_233 {dimension_numbers = #tpu.dot_dimension_numbers<[1], [0], [0], [1], [0, 0, 1, 1], [], []>} : vector<1x64xf32>, vector<64x32xf32>, vector<1x32xf32> -> vector<1x32xf32>
    %c0_234 = arith.constant 0 : index
    %c0_235 = arith.constant 0 : index
    %905 = vector.load %arg8[%c0_234, %c0_235] : memref<32x96xf32, #tpu.memory_space<vmem>>, vector<32x96xf32>
    %cst_236 = arith.constant dense<0.000000e+00> : vector<1x96xf32>
    %906 = tpu.matmul %904, %905, %cst_236 {dimension_numbers = #tpu.dot_dimension_numbers<[1], [0], [0], [1], [0, 0, 1, 1], [], []>} : vector<1x32xf32>, vector<32x96xf32>, vector<1x96xf32> -> vector<1x96xf32>
    %c0_237 = arith.constant 0 : index
    %c0_238 = arith.constant 0 : index
    %907 = vector.load %arg10[%c0_237, %c0_238] : memref<1x96xf32, #tpu.memory_space<vmem>>, vector<1x96xf32>
    %908 = arith.addf %906, %907 : vector<1x96xf32>
    %c0_239 = arith.constant 0 : index
    %c0_240 = arith.constant 0 : index
    %909 = vector.load %arg9[%c0_239, %c0_240] : memref<32x96xf32, #tpu.memory_space<vmem>>, vector<32x96xf32>
    %cst_241 = arith.constant dense<0.000000e+00> : vector<1x96xf32>
    %910 = tpu.matmul %846, %909, %cst_241 {dimension_numbers = #tpu.dot_dimension_numbers<[1], [0], [0], [1], [0, 0, 1, 1], [], []>} : vector<1x32xf32>, vector<32x96xf32>, vector<1x96xf32> -> vector<1x96xf32>
    %c0_242 = arith.constant 0 : index
    %c0_243 = arith.constant 0 : index
    %911 = vector.load %arg11[%c0_242, %c0_243] : memref<1x96xf32, #tpu.memory_space<vmem>>, vector<1x96xf32>
    %912 = arith.addf %910, %911 : vector<1x96xf32>
    %913 = arith.addf %908, %912 : vector<1x96xf32>
    %914 = vector.extract_strided_slice %913 {offsets = [0, 0], sizes = [1, 32], strides = [1, 1]} : vector<1x96xf32> to vector<1x32xf32>
    %915 = arith.negf %914 : vector<1x32xf32>
    %916 = math.exp %915 : vector<1x32xf32>
    %cst_244 = arith.constant 1.000000e+00 : f32
    %917 = vector.broadcast %cst_244 : f32 to vector<1x32xf32>
    %918 = arith.addf %917, %916 : vector<1x32xf32>
    %919 = arith.divf %917, %918 : vector<1x32xf32>
    %920 = vector.extract_strided_slice %913 {offsets = [0, 32], sizes = [1, 32], strides = [1, 1]} : vector<1x96xf32> to vector<1x32xf32>
    %921 = arith.negf %920 : vector<1x32xf32>
    %922 = math.exp %921 : vector<1x32xf32>
    %cst_245 = arith.constant 1.000000e+00 : f32
    %923 = vector.broadcast %cst_245 : f32 to vector<1x32xf32>
    %924 = arith.addf %923, %922 : vector<1x32xf32>
    %925 = arith.divf %923, %924 : vector<1x32xf32>
    %926 = vector.extract_strided_slice %908 {offsets = [0, 64], sizes = [1, 32], strides = [1, 1]} : vector<1x96xf32> to vector<1x32xf32>
    %927 = vector.extract_strided_slice %912 {offsets = [0, 64], sizes = [1, 32], strides = [1, 1]} : vector<1x96xf32> to vector<1x32xf32>
    %928 = arith.mulf %919, %927 : vector<1x32xf32>
    %929 = arith.addf %926, %928 : vector<1x32xf32>
    %930 = math.tanh %929 : vector<1x32xf32>
    %cst_246 = arith.constant 1.000000e+00 : f32
    %931 = vector.broadcast %cst_246 : f32 to vector<1x32xf32>
    %932 = arith.subf %931, %925 : vector<1x32xf32>
    %933 = arith.mulf %932, %930 : vector<1x32xf32>
    %934 = arith.mulf %925, %846 : vector<1x32xf32>
    %935 = arith.addf %933, %934 : vector<1x32xf32>
    %936 = vector.broadcast %935 : vector<1x32xf32> to vector<8x32xf32>
    %937 = arith.mulf %936, %543 : vector<8x32xf32>
    %cst_247 = arith.constant dense<0.000000e+00> : vector<8xf32>
    %938 = vector.multi_reduction <add>, %937, %cst_247 [1] : vector<8x32xf32> to vector<8xf32>
    %939 = vector.shape_cast %938 : vector<8xf32> to vector<8x1xf32>
    %cst_248 = arith.constant dense<0xFF800000> : vector<1xf32>
    %940 = vector.multi_reduction <maximumf>, %939, %cst_248 [0] : vector<8x1xf32> to vector<1xf32>
    %941 = vector.shape_cast %940 : vector<1xf32> to vector<1x1xf32>
    %942 = vector.broadcast %941 : vector<1x1xf32> to vector<8x1xf32>
    %943 = arith.subf %939, %942 : vector<8x1xf32>
    %944 = math.exp %943 : vector<8x1xf32>
    %cst_249 = arith.constant dense<0.000000e+00> : vector<1xf32>
    %945 = vector.multi_reduction <add>, %944, %cst_249 [0] : vector<8x1xf32> to vector<1xf32>
    %946 = vector.shape_cast %945 : vector<1xf32> to vector<1x1xf32>
    %947 = tpu.reciprocal %946 {approx = true} : vector<1x1xf32> -> vector<1x1xf32>
    %948 = vector.broadcast %947 : vector<1x1xf32> to vector<8x1xf32>
    %949 = arith.mulf %944, %948 : vector<8x1xf32>
    %950 = vector.broadcast %949 : vector<8x1xf32> to vector<8x32xf32>
    %951 = arith.mulf %950, %543 : vector<8x32xf32>
    %cst_250 = arith.constant dense<0.000000e+00> : vector<32xf32>
    %952 = vector.multi_reduction <add>, %951, %cst_250 [0] : vector<8x32xf32> to vector<32xf32>
    %953 = vector.shape_cast %952 : vector<32xf32> to vector<1x32xf32>
    %954 = tpu.concatenate %935, %953 in 1 : vector<1x32xf32>, vector<1x32xf32> -> vector<1x64xf32>
    %c0_251 = arith.constant 0 : index
    %c0_252 = arith.constant 0 : index
    %955 = vector.load %arg12[%c0_251, %c0_252] : memref<64x32xf32, #tpu.memory_space<vmem>>, vector<64x32xf32>
    %cst_253 = arith.constant dense<0.000000e+00> : vector<1x32xf32>
    %956 = tpu.matmul %954, %955, %cst_253 {dimension_numbers = #tpu.dot_dimension_numbers<[1], [0], [0], [1], [0, 0, 1, 1], [], []>} : vector<1x64xf32>, vector<64x32xf32>, vector<1x32xf32> -> vector<1x32xf32>
    %c0_254 = arith.constant 0 : index
    %c0_255 = arith.constant 0 : index
    %957 = vector.load %arg13[%c0_254, %c0_255] : memref<1x32xf32, #tpu.memory_space<vmem>>, vector<1x32xf32>
    %958 = arith.addf %956, %957 : vector<1x32xf32>
    %959 = math.tanh %958 : vector<1x32xf32>
    %c0_256 = arith.constant 0 : index
    %c0_257 = arith.constant 0 : index
    %960 = vector.load %arg14[%c0_256, %c0_257] : memref<32x64xf32, #tpu.memory_space<vmem>>, vector<32x64xf32>
    %cst_258 = arith.constant dense<0.000000e+00> : vector<1x64xf32>
    %961 = tpu.matmul %959, %960, %cst_258 {dimension_numbers = #tpu.dot_dimension_numbers<[1], [0], [0], [1], [0, 0, 1, 1], [], []>} : vector<1x32xf32>, vector<32x64xf32>, vector<1x64xf32> -> vector<1x64xf32>
    %c0_259 = arith.constant 0 : index
    %c0_260 = arith.constant 0 : index
    %962 = vector.load %arg15[%c0_259, %c0_260] : memref<1x64xf32, #tpu.memory_space<vmem>>, vector<1x64xf32>
    %963 = arith.addf %961, %962 : vector<1x64xf32>
    %cst_261 = arith.constant dense<0xFF800000> : vector<1xf32>
    %964 = vector.multi_reduction <maximumf>, %963, %cst_261 [1] : vector<1x64xf32> to vector<1xf32>
    %965 = vector.shape_cast %964 : vector<1xf32> to vector<1x1xf32>
    %966 = vector.broadcast %965 : vector<1x1xf32> to vector<1x64xf32>
    %967 = arith.subf %963, %966 : vector<1x64xf32>
    %968 = math.exp %967 : vector<1x64xf32>
    %cst_262 = arith.constant dense<0.000000e+00> : vector<1xf32>
    %969 = vector.multi_reduction <add>, %968, %cst_262 [1] : vector<1x64xf32> to vector<1xf32>
    %970 = vector.shape_cast %969 : vector<1xf32> to vector<1x1xf32>
    %971 = tpu.reciprocal %970 : vector<1x1xf32> -> vector<1x1xf32>
    %972 = vector.broadcast %965 : vector<1x1xf32> to vector<1x64xf32>
    %973 = arith.cmpf oeq, %963, %972 : vector<1x64xf32>
    %c64_i32_263 = arith.constant 64 : i32
    %974 = vector.broadcast %c64_i32_263 : i32 to vector<1x64xi32>
    %975 = arith.select %973, %545, %974 : vector<1x64xi1>, vector<1x64xi32>
    %cst_264 = arith.constant dense<2147483647> : vector<1xi32>
    %976 = vector.multi_reduction <minsi>, %975, %cst_264 [1] : vector<1x64xi32> to vector<1xi32>
    %977 = vector.shape_cast %976 : vector<1xi32> to vector<1x1xi32>
    %c4_i32_265 = arith.constant 4 : i32
    %978 = vector.broadcast %c4_i32_265 : i32 to vector<1x128xi32>
    %979 = arith.cmpi eq, %544, %978 : vector<1x128xi32>
    %980 = vector.shape_cast %977 : vector<1x1xi32> to vector<1x1xi32>
    %981 = vector.broadcast %980 : vector<1x1xi32> to vector<1x128xi32>
    %982 = arith.select %979, %981, %893 : vector<1x128xi1>, vector<1x128xi32>
    %c4_i32_266 = arith.constant 4 : i32
    %983 = vector.broadcast %c4_i32_266 : i32 to vector<1x128xi32>
    %984 = arith.cmpi eq, %544, %983 : vector<1x128xi32>
    %985 = vector.shape_cast %971 : vector<1x1xf32> to vector<1x1xf32>
    %986 = vector.broadcast %985 : vector<1x1xf32> to vector<1x128xf32>
    %987 = arith.select %984, %986, %898 : vector<1x128xi1>, vector<1x128xf32>
    %988 = vector.broadcast %977 : vector<1x1xi32> to vector<1x64xi32>
    %989 = arith.cmpi eq, %545, %988 : vector<1x64xi32>
    %990 = arith.extui %989 : vector<1x64xi1> to vector<1x64xi32>
    %991 = arith.sitofp %990 : vector<1x64xi32> to vector<1x64xf32>
    %c0_267 = arith.constant 0 : index
    %c0_268 = arith.constant 0 : index
    %992 = vector.load %arg1[%c0_267, %c0_268] : memref<64x32xf32, #tpu.memory_space<vmem>>, vector<64x32xf32>
    %cst_269 = arith.constant dense<0.000000e+00> : vector<1x32xf32>
    %993 = tpu.matmul %991, %992, %cst_269 {dimension_numbers = #tpu.dot_dimension_numbers<[1], [0], [0], [1], [0, 0, 1, 1], [], []>} : vector<1x64xf32>, vector<64x32xf32>, vector<1x32xf32> -> vector<1x32xf32>
    %c0_270 = arith.constant 0 : index
    %c0_271 = arith.constant 0 : index
    %994 = vector.load %arg8[%c0_270, %c0_271] : memref<32x96xf32, #tpu.memory_space<vmem>>, vector<32x96xf32>
    %cst_272 = arith.constant dense<0.000000e+00> : vector<1x96xf32>
    %995 = tpu.matmul %993, %994, %cst_272 {dimension_numbers = #tpu.dot_dimension_numbers<[1], [0], [0], [1], [0, 0, 1, 1], [], []>} : vector<1x32xf32>, vector<32x96xf32>, vector<1x96xf32> -> vector<1x96xf32>
    %c0_273 = arith.constant 0 : index
    %c0_274 = arith.constant 0 : index
    %996 = vector.load %arg10[%c0_273, %c0_274] : memref<1x96xf32, #tpu.memory_space<vmem>>, vector<1x96xf32>
    %997 = arith.addf %995, %996 : vector<1x96xf32>
    %c0_275 = arith.constant 0 : index
    %c0_276 = arith.constant 0 : index
    %998 = vector.load %arg9[%c0_275, %c0_276] : memref<32x96xf32, #tpu.memory_space<vmem>>, vector<32x96xf32>
    %cst_277 = arith.constant dense<0.000000e+00> : vector<1x96xf32>
    %999 = tpu.matmul %935, %998, %cst_277 {dimension_numbers = #tpu.dot_dimension_numbers<[1], [0], [0], [1], [0, 0, 1, 1], [], []>} : vector<1x32xf32>, vector<32x96xf32>, vector<1x96xf32> -> vector<1x96xf32>
    %c0_278 = arith.constant 0 : index
    %c0_279 = arith.constant 0 : index
    %1000 = vector.load %arg11[%c0_278, %c0_279] : memref<1x96xf32, #tpu.memory_space<vmem>>, vector<1x96xf32>
    %1001 = arith.addf %999, %1000 : vector<1x96xf32>
    %1002 = arith.addf %997, %1001 : vector<1x96xf32>
    %1003 = vector.extract_strided_slice %1002 {offsets = [0, 0], sizes = [1, 32], strides = [1, 1]} : vector<1x96xf32> to vector<1x32xf32>
    %1004 = arith.negf %1003 : vector<1x32xf32>
    %1005 = math.exp %1004 : vector<1x32xf32>
    %cst_280 = arith.constant 1.000000e+00 : f32
    %1006 = vector.broadcast %cst_280 : f32 to vector<1x32xf32>
    %1007 = arith.addf %1006, %1005 : vector<1x32xf32>
    %1008 = arith.divf %1006, %1007 : vector<1x32xf32>
    %1009 = vector.extract_strided_slice %1002 {offsets = [0, 32], sizes = [1, 32], strides = [1, 1]} : vector<1x96xf32> to vector<1x32xf32>
    %1010 = arith.negf %1009 : vector<1x32xf32>
    %1011 = math.exp %1010 : vector<1x32xf32>
    %cst_281 = arith.constant 1.000000e+00 : f32
    %1012 = vector.broadcast %cst_281 : f32 to vector<1x32xf32>
    %1013 = arith.addf %1012, %1011 : vector<1x32xf32>
    %1014 = arith.divf %1012, %1013 : vector<1x32xf32>
    %1015 = vector.extract_strided_slice %997 {offsets = [0, 64], sizes = [1, 32], strides = [1, 1]} : vector<1x96xf32> to vector<1x32xf32>
    %1016 = vector.extract_strided_slice %1001 {offsets = [0, 64], sizes = [1, 32], strides = [1, 1]} : vector<1x96xf32> to vector<1x32xf32>
    %1017 = arith.mulf %1008, %1016 : vector<1x32xf32>
    %1018 = arith.addf %1015, %1017 : vector<1x32xf32>
    %1019 = math.tanh %1018 : vector<1x32xf32>
    %cst_282 = arith.constant 1.000000e+00 : f32
    %1020 = vector.broadcast %cst_282 : f32 to vector<1x32xf32>
    %1021 = arith.subf %1020, %1014 : vector<1x32xf32>
    %1022 = arith.mulf %1021, %1019 : vector<1x32xf32>
    %1023 = arith.mulf %1014, %935 : vector<1x32xf32>
    %1024 = arith.addf %1022, %1023 : vector<1x32xf32>
    %1025 = vector.broadcast %1024 : vector<1x32xf32> to vector<8x32xf32>
    %1026 = arith.mulf %1025, %543 : vector<8x32xf32>
    %cst_283 = arith.constant dense<0.000000e+00> : vector<8xf32>
    %1027 = vector.multi_reduction <add>, %1026, %cst_283 [1] : vector<8x32xf32> to vector<8xf32>
    %1028 = vector.shape_cast %1027 : vector<8xf32> to vector<8x1xf32>
    %cst_284 = arith.constant dense<0xFF800000> : vector<1xf32>
    %1029 = vector.multi_reduction <maximumf>, %1028, %cst_284 [0] : vector<8x1xf32> to vector<1xf32>
    %1030 = vector.shape_cast %1029 : vector<1xf32> to vector<1x1xf32>
    %1031 = vector.broadcast %1030 : vector<1x1xf32> to vector<8x1xf32>
    %1032 = arith.subf %1028, %1031 : vector<8x1xf32>
    %1033 = math.exp %1032 : vector<8x1xf32>
    %cst_285 = arith.constant dense<0.000000e+00> : vector<1xf32>
    %1034 = vector.multi_reduction <add>, %1033, %cst_285 [0] : vector<8x1xf32> to vector<1xf32>
    %1035 = vector.shape_cast %1034 : vector<1xf32> to vector<1x1xf32>
    %1036 = tpu.reciprocal %1035 {approx = true} : vector<1x1xf32> -> vector<1x1xf32>
    %1037 = vector.broadcast %1036 : vector<1x1xf32> to vector<8x1xf32>
    %1038 = arith.mulf %1033, %1037 : vector<8x1xf32>
    %1039 = vector.broadcast %1038 : vector<8x1xf32> to vector<8x32xf32>
    %1040 = arith.mulf %1039, %543 : vector<8x32xf32>
    %cst_286 = arith.constant dense<0.000000e+00> : vector<32xf32>
    %1041 = vector.multi_reduction <add>, %1040, %cst_286 [0] : vector<8x32xf32> to vector<32xf32>
    %1042 = vector.shape_cast %1041 : vector<32xf32> to vector<1x32xf32>
    %1043 = tpu.concatenate %1024, %1042 in 1 : vector<1x32xf32>, vector<1x32xf32> -> vector<1x64xf32>
    %c0_287 = arith.constant 0 : index
    %c0_288 = arith.constant 0 : index
    %1044 = vector.load %arg12[%c0_287, %c0_288] : memref<64x32xf32, #tpu.memory_space<vmem>>, vector<64x32xf32>
    %cst_289 = arith.constant dense<0.000000e+00> : vector<1x32xf32>
    %1045 = tpu.matmul %1043, %1044, %cst_289 {dimension_numbers = #tpu.dot_dimension_numbers<[1], [0], [0], [1], [0, 0, 1, 1], [], []>} : vector<1x64xf32>, vector<64x32xf32>, vector<1x32xf32> -> vector<1x32xf32>
    %c0_290 = arith.constant 0 : index
    %c0_291 = arith.constant 0 : index
    %1046 = vector.load %arg13[%c0_290, %c0_291] : memref<1x32xf32, #tpu.memory_space<vmem>>, vector<1x32xf32>
    %1047 = arith.addf %1045, %1046 : vector<1x32xf32>
    %1048 = math.tanh %1047 : vector<1x32xf32>
    %c0_292 = arith.constant 0 : index
    %c0_293 = arith.constant 0 : index
    %1049 = vector.load %arg14[%c0_292, %c0_293] : memref<32x64xf32, #tpu.memory_space<vmem>>, vector<32x64xf32>
    %cst_294 = arith.constant dense<0.000000e+00> : vector<1x64xf32>
    %1050 = tpu.matmul %1048, %1049, %cst_294 {dimension_numbers = #tpu.dot_dimension_numbers<[1], [0], [0], [1], [0, 0, 1, 1], [], []>} : vector<1x32xf32>, vector<32x64xf32>, vector<1x64xf32> -> vector<1x64xf32>
    %c0_295 = arith.constant 0 : index
    %c0_296 = arith.constant 0 : index
    %1051 = vector.load %arg15[%c0_295, %c0_296] : memref<1x64xf32, #tpu.memory_space<vmem>>, vector<1x64xf32>
    %1052 = arith.addf %1050, %1051 : vector<1x64xf32>
    %cst_297 = arith.constant dense<0xFF800000> : vector<1xf32>
    %1053 = vector.multi_reduction <maximumf>, %1052, %cst_297 [1] : vector<1x64xf32> to vector<1xf32>
    %1054 = vector.shape_cast %1053 : vector<1xf32> to vector<1x1xf32>
    %1055 = vector.broadcast %1054 : vector<1x1xf32> to vector<1x64xf32>
    %1056 = arith.subf %1052, %1055 : vector<1x64xf32>
    %1057 = math.exp %1056 : vector<1x64xf32>
    %cst_298 = arith.constant dense<0.000000e+00> : vector<1xf32>
    %1058 = vector.multi_reduction <add>, %1057, %cst_298 [1] : vector<1x64xf32> to vector<1xf32>
    %1059 = vector.shape_cast %1058 : vector<1xf32> to vector<1x1xf32>
    %1060 = tpu.reciprocal %1059 : vector<1x1xf32> -> vector<1x1xf32>
    %1061 = vector.broadcast %1054 : vector<1x1xf32> to vector<1x64xf32>
    %1062 = arith.cmpf oeq, %1052, %1061 : vector<1x64xf32>
    %c64_i32_299 = arith.constant 64 : i32
    %1063 = vector.broadcast %c64_i32_299 : i32 to vector<1x64xi32>
    %1064 = arith.select %1062, %545, %1063 : vector<1x64xi1>, vector<1x64xi32>
    %cst_300 = arith.constant dense<2147483647> : vector<1xi32>
    %1065 = vector.multi_reduction <minsi>, %1064, %cst_300 [1] : vector<1x64xi32> to vector<1xi32>
    %1066 = vector.shape_cast %1065 : vector<1xi32> to vector<1x1xi32>
    %c5_i32_301 = arith.constant 5 : i32
    %1067 = vector.broadcast %c5_i32_301 : i32 to vector<1x128xi32>
    %1068 = arith.cmpi eq, %544, %1067 : vector<1x128xi32>
    %1069 = vector.shape_cast %1066 : vector<1x1xi32> to vector<1x1xi32>
    %1070 = vector.broadcast %1069 : vector<1x1xi32> to vector<1x128xi32>
    %1071 = arith.select %1068, %1070, %982 : vector<1x128xi1>, vector<1x128xi32>
    %c5_i32_302 = arith.constant 5 : i32
    %1072 = vector.broadcast %c5_i32_302 : i32 to vector<1x128xi32>
    %1073 = arith.cmpi eq, %544, %1072 : vector<1x128xi32>
    %1074 = vector.shape_cast %1060 : vector<1x1xf32> to vector<1x1xf32>
    %1075 = vector.broadcast %1074 : vector<1x1xf32> to vector<1x128xf32>
    %1076 = arith.select %1073, %1075, %987 : vector<1x128xi1>, vector<1x128xf32>
    %1077 = vector.broadcast %1066 : vector<1x1xi32> to vector<1x64xi32>
    %1078 = arith.cmpi eq, %545, %1077 : vector<1x64xi32>
    %1079 = arith.extui %1078 : vector<1x64xi1> to vector<1x64xi32>
    %1080 = arith.sitofp %1079 : vector<1x64xi32> to vector<1x64xf32>
    %c0_303 = arith.constant 0 : index
    %c0_304 = arith.constant 0 : index
    %1081 = vector.load %arg1[%c0_303, %c0_304] : memref<64x32xf32, #tpu.memory_space<vmem>>, vector<64x32xf32>
    %cst_305 = arith.constant dense<0.000000e+00> : vector<1x32xf32>
    %1082 = tpu.matmul %1080, %1081, %cst_305 {dimension_numbers = #tpu.dot_dimension_numbers<[1], [0], [0], [1], [0, 0, 1, 1], [], []>} : vector<1x64xf32>, vector<64x32xf32>, vector<1x32xf32> -> vector<1x32xf32>
    %c0_306 = arith.constant 0 : index
    %c0_307 = arith.constant 0 : index
    %1083 = vector.load %arg8[%c0_306, %c0_307] : memref<32x96xf32, #tpu.memory_space<vmem>>, vector<32x96xf32>
    %cst_308 = arith.constant dense<0.000000e+00> : vector<1x96xf32>
    %1084 = tpu.matmul %1082, %1083, %cst_308 {dimension_numbers = #tpu.dot_dimension_numbers<[1], [0], [0], [1], [0, 0, 1, 1], [], []>} : vector<1x32xf32>, vector<32x96xf32>, vector<1x96xf32> -> vector<1x96xf32>
    %c0_309 = arith.constant 0 : index
    %c0_310 = arith.constant 0 : index
    %1085 = vector.load %arg10[%c0_309, %c0_310] : memref<1x96xf32, #tpu.memory_space<vmem>>, vector<1x96xf32>
    %1086 = arith.addf %1084, %1085 : vector<1x96xf32>
    %c0_311 = arith.constant 0 : index
    %c0_312 = arith.constant 0 : index
    %1087 = vector.load %arg9[%c0_311, %c0_312] : memref<32x96xf32, #tpu.memory_space<vmem>>, vector<32x96xf32>
    %cst_313 = arith.constant dense<0.000000e+00> : vector<1x96xf32>
    %1088 = tpu.matmul %1024, %1087, %cst_313 {dimension_numbers = #tpu.dot_dimension_numbers<[1], [0], [0], [1], [0, 0, 1, 1], [], []>} : vector<1x32xf32>, vector<32x96xf32>, vector<1x96xf32> -> vector<1x96xf32>
    %c0_314 = arith.constant 0 : index
    %c0_315 = arith.constant 0 : index
    %1089 = vector.load %arg11[%c0_314, %c0_315] : memref<1x96xf32, #tpu.memory_space<vmem>>, vector<1x96xf32>
    %1090 = arith.addf %1088, %1089 : vector<1x96xf32>
    %1091 = arith.addf %1086, %1090 : vector<1x96xf32>
    %1092 = vector.extract_strided_slice %1091 {offsets = [0, 0], sizes = [1, 32], strides = [1, 1]} : vector<1x96xf32> to vector<1x32xf32>
    %1093 = arith.negf %1092 : vector<1x32xf32>
    %1094 = math.exp %1093 : vector<1x32xf32>
    %cst_316 = arith.constant 1.000000e+00 : f32
    %1095 = vector.broadcast %cst_316 : f32 to vector<1x32xf32>
    %1096 = arith.addf %1095, %1094 : vector<1x32xf32>
    %1097 = arith.divf %1095, %1096 : vector<1x32xf32>
    %1098 = vector.extract_strided_slice %1091 {offsets = [0, 32], sizes = [1, 32], strides = [1, 1]} : vector<1x96xf32> to vector<1x32xf32>
    %1099 = arith.negf %1098 : vector<1x32xf32>
    %1100 = math.exp %1099 : vector<1x32xf32>
    %cst_317 = arith.constant 1.000000e+00 : f32
    %1101 = vector.broadcast %cst_317 : f32 to vector<1x32xf32>
    %1102 = arith.addf %1101, %1100 : vector<1x32xf32>
    %1103 = arith.divf %1101, %1102 : vector<1x32xf32>
    %1104 = vector.extract_strided_slice %1086 {offsets = [0, 64], sizes = [1, 32], strides = [1, 1]} : vector<1x96xf32> to vector<1x32xf32>
    %1105 = vector.extract_strided_slice %1090 {offsets = [0, 64], sizes = [1, 32], strides = [1, 1]} : vector<1x96xf32> to vector<1x32xf32>
    %1106 = arith.mulf %1097, %1105 : vector<1x32xf32>
    %1107 = arith.addf %1104, %1106 : vector<1x32xf32>
    %1108 = math.tanh %1107 : vector<1x32xf32>
    %cst_318 = arith.constant 1.000000e+00 : f32
    %1109 = vector.broadcast %cst_318 : f32 to vector<1x32xf32>
    %1110 = arith.subf %1109, %1103 : vector<1x32xf32>
    %1111 = arith.mulf %1110, %1108 : vector<1x32xf32>
    %1112 = arith.mulf %1103, %1024 : vector<1x32xf32>
    %1113 = arith.addf %1111, %1112 : vector<1x32xf32>
    %1114 = vector.broadcast %1113 : vector<1x32xf32> to vector<8x32xf32>
    %1115 = arith.mulf %1114, %543 : vector<8x32xf32>
    %cst_319 = arith.constant dense<0.000000e+00> : vector<8xf32>
    %1116 = vector.multi_reduction <add>, %1115, %cst_319 [1] : vector<8x32xf32> to vector<8xf32>
    %1117 = vector.shape_cast %1116 : vector<8xf32> to vector<8x1xf32>
    %cst_320 = arith.constant dense<0xFF800000> : vector<1xf32>
    %1118 = vector.multi_reduction <maximumf>, %1117, %cst_320 [0] : vector<8x1xf32> to vector<1xf32>
    %1119 = vector.shape_cast %1118 : vector<1xf32> to vector<1x1xf32>
    %1120 = vector.broadcast %1119 : vector<1x1xf32> to vector<8x1xf32>
    %1121 = arith.subf %1117, %1120 : vector<8x1xf32>
    %1122 = math.exp %1121 : vector<8x1xf32>
    %cst_321 = arith.constant dense<0.000000e+00> : vector<1xf32>
    %1123 = vector.multi_reduction <add>, %1122, %cst_321 [0] : vector<8x1xf32> to vector<1xf32>
    %1124 = vector.shape_cast %1123 : vector<1xf32> to vector<1x1xf32>
    %1125 = tpu.reciprocal %1124 {approx = true} : vector<1x1xf32> -> vector<1x1xf32>
    %1126 = vector.broadcast %1125 : vector<1x1xf32> to vector<8x1xf32>
    %1127 = arith.mulf %1122, %1126 : vector<8x1xf32>
    %1128 = vector.broadcast %1127 : vector<8x1xf32> to vector<8x32xf32>
    %1129 = arith.mulf %1128, %543 : vector<8x32xf32>
    %cst_322 = arith.constant dense<0.000000e+00> : vector<32xf32>
    %1130 = vector.multi_reduction <add>, %1129, %cst_322 [0] : vector<8x32xf32> to vector<32xf32>
    %1131 = vector.shape_cast %1130 : vector<32xf32> to vector<1x32xf32>
    %1132 = tpu.concatenate %1113, %1131 in 1 : vector<1x32xf32>, vector<1x32xf32> -> vector<1x64xf32>
    %c0_323 = arith.constant 0 : index
    %c0_324 = arith.constant 0 : index
    %1133 = vector.load %arg12[%c0_323, %c0_324] : memref<64x32xf32, #tpu.memory_space<vmem>>, vector<64x32xf32>
    %cst_325 = arith.constant dense<0.000000e+00> : vector<1x32xf32>
    %1134 = tpu.matmul %1132, %1133, %cst_325 {dimension_numbers = #tpu.dot_dimension_numbers<[1], [0], [0], [1], [0, 0, 1, 1], [], []>} : vector<1x64xf32>, vector<64x32xf32>, vector<1x32xf32> -> vector<1x32xf32>
    %c0_326 = arith.constant 0 : index
    %c0_327 = arith.constant 0 : index
    %1135 = vector.load %arg13[%c0_326, %c0_327] : memref<1x32xf32, #tpu.memory_space<vmem>>, vector<1x32xf32>
    %1136 = arith.addf %1134, %1135 : vector<1x32xf32>
    %1137 = math.tanh %1136 : vector<1x32xf32>
    %c0_328 = arith.constant 0 : index
    %c0_329 = arith.constant 0 : index
    %1138 = vector.load %arg14[%c0_328, %c0_329] : memref<32x64xf32, #tpu.memory_space<vmem>>, vector<32x64xf32>
    %cst_330 = arith.constant dense<0.000000e+00> : vector<1x64xf32>
    %1139 = tpu.matmul %1137, %1138, %cst_330 {dimension_numbers = #tpu.dot_dimension_numbers<[1], [0], [0], [1], [0, 0, 1, 1], [], []>} : vector<1x32xf32>, vector<32x64xf32>, vector<1x64xf32> -> vector<1x64xf32>
    %c0_331 = arith.constant 0 : index
    %c0_332 = arith.constant 0 : index
    %1140 = vector.load %arg15[%c0_331, %c0_332] : memref<1x64xf32, #tpu.memory_space<vmem>>, vector<1x64xf32>
    %1141 = arith.addf %1139, %1140 : vector<1x64xf32>
    %cst_333 = arith.constant dense<0xFF800000> : vector<1xf32>
    %1142 = vector.multi_reduction <maximumf>, %1141, %cst_333 [1] : vector<1x64xf32> to vector<1xf32>
    %1143 = vector.shape_cast %1142 : vector<1xf32> to vector<1x1xf32>
    %1144 = vector.broadcast %1143 : vector<1x1xf32> to vector<1x64xf32>
    %1145 = arith.subf %1141, %1144 : vector<1x64xf32>
    %1146 = math.exp %1145 : vector<1x64xf32>
    %cst_334 = arith.constant dense<0.000000e+00> : vector<1xf32>
    %1147 = vector.multi_reduction <add>, %1146, %cst_334 [1] : vector<1x64xf32> to vector<1xf32>
    %1148 = vector.shape_cast %1147 : vector<1xf32> to vector<1x1xf32>
    %1149 = tpu.reciprocal %1148 : vector<1x1xf32> -> vector<1x1xf32>
    %1150 = vector.broadcast %1143 : vector<1x1xf32> to vector<1x64xf32>
    %1151 = arith.cmpf oeq, %1141, %1150 : vector<1x64xf32>
    %c64_i32_335 = arith.constant 64 : i32
    %1152 = vector.broadcast %c64_i32_335 : i32 to vector<1x64xi32>
    %1153 = arith.select %1151, %545, %1152 : vector<1x64xi1>, vector<1x64xi32>
    %cst_336 = arith.constant dense<2147483647> : vector<1xi32>
    %1154 = vector.multi_reduction <minsi>, %1153, %cst_336 [1] : vector<1x64xi32> to vector<1xi32>
    %1155 = vector.shape_cast %1154 : vector<1xi32> to vector<1x1xi32>
    %c6_i32_337 = arith.constant 6 : i32
    %1156 = vector.broadcast %c6_i32_337 : i32 to vector<1x128xi32>
    %1157 = arith.cmpi eq, %544, %1156 : vector<1x128xi32>
    %1158 = vector.shape_cast %1155 : vector<1x1xi32> to vector<1x1xi32>
    %1159 = vector.broadcast %1158 : vector<1x1xi32> to vector<1x128xi32>
    %1160 = arith.select %1157, %1159, %1071 : vector<1x128xi1>, vector<1x128xi32>
    %c6_i32_338 = arith.constant 6 : i32
    %1161 = vector.broadcast %c6_i32_338 : i32 to vector<1x128xi32>
    %1162 = arith.cmpi eq, %544, %1161 : vector<1x128xi32>
    %1163 = vector.shape_cast %1149 : vector<1x1xf32> to vector<1x1xf32>
    %1164 = vector.broadcast %1163 : vector<1x1xf32> to vector<1x128xf32>
    %1165 = arith.select %1162, %1164, %1076 : vector<1x128xi1>, vector<1x128xf32>
    %1166 = vector.broadcast %1155 : vector<1x1xi32> to vector<1x64xi32>
    %1167 = arith.cmpi eq, %545, %1166 : vector<1x64xi32>
    %1168 = arith.extui %1167 : vector<1x64xi1> to vector<1x64xi32>
    %1169 = arith.sitofp %1168 : vector<1x64xi32> to vector<1x64xf32>
    %c0_339 = arith.constant 0 : index
    %c0_340 = arith.constant 0 : index
    %1170 = vector.load %arg1[%c0_339, %c0_340] : memref<64x32xf32, #tpu.memory_space<vmem>>, vector<64x32xf32>
    %cst_341 = arith.constant dense<0.000000e+00> : vector<1x32xf32>
    %1171 = tpu.matmul %1169, %1170, %cst_341 {dimension_numbers = #tpu.dot_dimension_numbers<[1], [0], [0], [1], [0, 0, 1, 1], [], []>} : vector<1x64xf32>, vector<64x32xf32>, vector<1x32xf32> -> vector<1x32xf32>
    %c0_342 = arith.constant 0 : index
    %c0_343 = arith.constant 0 : index
    %1172 = vector.load %arg8[%c0_342, %c0_343] : memref<32x96xf32, #tpu.memory_space<vmem>>, vector<32x96xf32>
    %cst_344 = arith.constant dense<0.000000e+00> : vector<1x96xf32>
    %1173 = tpu.matmul %1171, %1172, %cst_344 {dimension_numbers = #tpu.dot_dimension_numbers<[1], [0], [0], [1], [0, 0, 1, 1], [], []>} : vector<1x32xf32>, vector<32x96xf32>, vector<1x96xf32> -> vector<1x96xf32>
    %c0_345 = arith.constant 0 : index
    %c0_346 = arith.constant 0 : index
    %1174 = vector.load %arg10[%c0_345, %c0_346] : memref<1x96xf32, #tpu.memory_space<vmem>>, vector<1x96xf32>
    %1175 = arith.addf %1173, %1174 : vector<1x96xf32>
    %c0_347 = arith.constant 0 : index
    %c0_348 = arith.constant 0 : index
    %1176 = vector.load %arg9[%c0_347, %c0_348] : memref<32x96xf32, #tpu.memory_space<vmem>>, vector<32x96xf32>
    %cst_349 = arith.constant dense<0.000000e+00> : vector<1x96xf32>
    %1177 = tpu.matmul %1113, %1176, %cst_349 {dimension_numbers = #tpu.dot_dimension_numbers<[1], [0], [0], [1], [0, 0, 1, 1], [], []>} : vector<1x32xf32>, vector<32x96xf32>, vector<1x96xf32> -> vector<1x96xf32>
    %c0_350 = arith.constant 0 : index
    %c0_351 = arith.constant 0 : index
    %1178 = vector.load %arg11[%c0_350, %c0_351] : memref<1x96xf32, #tpu.memory_space<vmem>>, vector<1x96xf32>
    %1179 = arith.addf %1177, %1178 : vector<1x96xf32>
    %1180 = arith.addf %1175, %1179 : vector<1x96xf32>
    %1181 = vector.extract_strided_slice %1180 {offsets = [0, 0], sizes = [1, 32], strides = [1, 1]} : vector<1x96xf32> to vector<1x32xf32>
    %1182 = arith.negf %1181 : vector<1x32xf32>
    %1183 = math.exp %1182 : vector<1x32xf32>
    %cst_352 = arith.constant 1.000000e+00 : f32
    %1184 = vector.broadcast %cst_352 : f32 to vector<1x32xf32>
    %1185 = arith.addf %1184, %1183 : vector<1x32xf32>
    %1186 = arith.divf %1184, %1185 : vector<1x32xf32>
    %1187 = vector.extract_strided_slice %1180 {offsets = [0, 32], sizes = [1, 32], strides = [1, 1]} : vector<1x96xf32> to vector<1x32xf32>
    %1188 = arith.negf %1187 : vector<1x32xf32>
    %1189 = math.exp %1188 : vector<1x32xf32>
    %cst_353 = arith.constant 1.000000e+00 : f32
    %1190 = vector.broadcast %cst_353 : f32 to vector<1x32xf32>
    %1191 = arith.addf %1190, %1189 : vector<1x32xf32>
    %1192 = arith.divf %1190, %1191 : vector<1x32xf32>
    %1193 = vector.extract_strided_slice %1175 {offsets = [0, 64], sizes = [1, 32], strides = [1, 1]} : vector<1x96xf32> to vector<1x32xf32>
    %1194 = vector.extract_strided_slice %1179 {offsets = [0, 64], sizes = [1, 32], strides = [1, 1]} : vector<1x96xf32> to vector<1x32xf32>
    %1195 = arith.mulf %1186, %1194 : vector<1x32xf32>
    %1196 = arith.addf %1193, %1195 : vector<1x32xf32>
    %1197 = math.tanh %1196 : vector<1x32xf32>
    %cst_354 = arith.constant 1.000000e+00 : f32
    %1198 = vector.broadcast %cst_354 : f32 to vector<1x32xf32>
    %1199 = arith.subf %1198, %1192 : vector<1x32xf32>
    %1200 = arith.mulf %1199, %1197 : vector<1x32xf32>
    %1201 = arith.mulf %1192, %1113 : vector<1x32xf32>
    %1202 = arith.addf %1200, %1201 : vector<1x32xf32>
    %1203 = vector.broadcast %1202 : vector<1x32xf32> to vector<8x32xf32>
    %1204 = arith.mulf %1203, %543 : vector<8x32xf32>
    %cst_355 = arith.constant dense<0.000000e+00> : vector<8xf32>
    %1205 = vector.multi_reduction <add>, %1204, %cst_355 [1] : vector<8x32xf32> to vector<8xf32>
    %1206 = vector.shape_cast %1205 : vector<8xf32> to vector<8x1xf32>
    %cst_356 = arith.constant dense<0xFF800000> : vector<1xf32>
    %1207 = vector.multi_reduction <maximumf>, %1206, %cst_356 [0] : vector<8x1xf32> to vector<1xf32>
    %1208 = vector.shape_cast %1207 : vector<1xf32> to vector<1x1xf32>
    %1209 = vector.broadcast %1208 : vector<1x1xf32> to vector<8x1xf32>
    %1210 = arith.subf %1206, %1209 : vector<8x1xf32>
    %1211 = math.exp %1210 : vector<8x1xf32>
    %cst_357 = arith.constant dense<0.000000e+00> : vector<1xf32>
    %1212 = vector.multi_reduction <add>, %1211, %cst_357 [0] : vector<8x1xf32> to vector<1xf32>
    %1213 = vector.shape_cast %1212 : vector<1xf32> to vector<1x1xf32>
    %1214 = tpu.reciprocal %1213 {approx = true} : vector<1x1xf32> -> vector<1x1xf32>
    %1215 = vector.broadcast %1214 : vector<1x1xf32> to vector<8x1xf32>
    %1216 = arith.mulf %1211, %1215 : vector<8x1xf32>
    %1217 = vector.broadcast %1216 : vector<8x1xf32> to vector<8x32xf32>
    %1218 = arith.mulf %1217, %543 : vector<8x32xf32>
    %cst_358 = arith.constant dense<0.000000e+00> : vector<32xf32>
    %1219 = vector.multi_reduction <add>, %1218, %cst_358 [0] : vector<8x32xf32> to vector<32xf32>
    %1220 = vector.shape_cast %1219 : vector<32xf32> to vector<1x32xf32>
    %1221 = tpu.concatenate %1202, %1220 in 1 : vector<1x32xf32>, vector<1x32xf32> -> vector<1x64xf32>
    %c0_359 = arith.constant 0 : index
    %c0_360 = arith.constant 0 : index
    %1222 = vector.load %arg12[%c0_359, %c0_360] : memref<64x32xf32, #tpu.memory_space<vmem>>, vector<64x32xf32>
    %cst_361 = arith.constant dense<0.000000e+00> : vector<1x32xf32>
    %1223 = tpu.matmul %1221, %1222, %cst_361 {dimension_numbers = #tpu.dot_dimension_numbers<[1], [0], [0], [1], [0, 0, 1, 1], [], []>} : vector<1x64xf32>, vector<64x32xf32>, vector<1x32xf32> -> vector<1x32xf32>
    %c0_362 = arith.constant 0 : index
    %c0_363 = arith.constant 0 : index
    %1224 = vector.load %arg13[%c0_362, %c0_363] : memref<1x32xf32, #tpu.memory_space<vmem>>, vector<1x32xf32>
    %1225 = arith.addf %1223, %1224 : vector<1x32xf32>
    %1226 = math.tanh %1225 : vector<1x32xf32>
    %c0_364 = arith.constant 0 : index
    %c0_365 = arith.constant 0 : index
    %1227 = vector.load %arg14[%c0_364, %c0_365] : memref<32x64xf32, #tpu.memory_space<vmem>>, vector<32x64xf32>
    %cst_366 = arith.constant dense<0.000000e+00> : vector<1x64xf32>
    %1228 = tpu.matmul %1226, %1227, %cst_366 {dimension_numbers = #tpu.dot_dimension_numbers<[1], [0], [0], [1], [0, 0, 1, 1], [], []>} : vector<1x32xf32>, vector<32x64xf32>, vector<1x64xf32> -> vector<1x64xf32>
    %c0_367 = arith.constant 0 : index
    %c0_368 = arith.constant 0 : index
    %1229 = vector.load %arg15[%c0_367, %c0_368] : memref<1x64xf32, #tpu.memory_space<vmem>>, vector<1x64xf32>
    %1230 = arith.addf %1228, %1229 : vector<1x64xf32>
    %cst_369 = arith.constant dense<0xFF800000> : vector<1xf32>
    %1231 = vector.multi_reduction <maximumf>, %1230, %cst_369 [1] : vector<1x64xf32> to vector<1xf32>
    %1232 = vector.shape_cast %1231 : vector<1xf32> to vector<1x1xf32>
    %1233 = vector.broadcast %1232 : vector<1x1xf32> to vector<1x64xf32>
    %1234 = arith.subf %1230, %1233 : vector<1x64xf32>
    %1235 = math.exp %1234 : vector<1x64xf32>
    %cst_370 = arith.constant dense<0.000000e+00> : vector<1xf32>
    %1236 = vector.multi_reduction <add>, %1235, %cst_370 [1] : vector<1x64xf32> to vector<1xf32>
    %1237 = vector.shape_cast %1236 : vector<1xf32> to vector<1x1xf32>
    %1238 = tpu.reciprocal %1237 : vector<1x1xf32> -> vector<1x1xf32>
    %1239 = vector.broadcast %1232 : vector<1x1xf32> to vector<1x64xf32>
    %1240 = arith.cmpf oeq, %1230, %1239 : vector<1x64xf32>
    %c64_i32_371 = arith.constant 64 : i32
    %1241 = vector.broadcast %c64_i32_371 : i32 to vector<1x64xi32>
    %1242 = arith.select %1240, %545, %1241 : vector<1x64xi1>, vector<1x64xi32>
    %cst_372 = arith.constant dense<2147483647> : vector<1xi32>
    %1243 = vector.multi_reduction <minsi>, %1242, %cst_372 [1] : vector<1x64xi32> to vector<1xi32>
    %1244 = vector.shape_cast %1243 : vector<1xi32> to vector<1x1xi32>
    %c7_i32_373 = arith.constant 7 : i32
    %1245 = vector.broadcast %c7_i32_373 : i32 to vector<1x128xi32>
    %1246 = arith.cmpi eq, %544, %1245 : vector<1x128xi32>
    %1247 = vector.shape_cast %1244 : vector<1x1xi32> to vector<1x1xi32>
    %1248 = vector.broadcast %1247 : vector<1x1xi32> to vector<1x128xi32>
    %1249 = arith.select %1246, %1248, %1160 : vector<1x128xi1>, vector<1x128xi32>
    %c7_i32_374 = arith.constant 7 : i32
    %1250 = vector.broadcast %c7_i32_374 : i32 to vector<1x128xi32>
    %1251 = arith.cmpi eq, %544, %1250 : vector<1x128xi32>
    %1252 = vector.shape_cast %1238 : vector<1x1xf32> to vector<1x1xf32>
    %1253 = vector.broadcast %1252 : vector<1x1xf32> to vector<1x128xf32>
    %1254 = arith.select %1251, %1253, %1165 : vector<1x128xi1>, vector<1x128xf32>
    %1255 = vector.broadcast %1244 : vector<1x1xi32> to vector<1x64xi32>
    %1256 = arith.cmpi eq, %545, %1255 : vector<1x64xi32>
    %1257 = arith.extui %1256 : vector<1x64xi1> to vector<1x64xi32>
    %1258 = arith.sitofp %1257 : vector<1x64xi32> to vector<1x64xf32>
    %c0_375 = arith.constant 0 : index
    %c0_376 = arith.constant 0 : index
    %1259 = vector.load %arg1[%c0_375, %c0_376] : memref<64x32xf32, #tpu.memory_space<vmem>>, vector<64x32xf32>
    %cst_377 = arith.constant dense<0.000000e+00> : vector<1x32xf32>
    %1260 = tpu.matmul %1258, %1259, %cst_377 {dimension_numbers = #tpu.dot_dimension_numbers<[1], [0], [0], [1], [0, 0, 1, 1], [], []>} : vector<1x64xf32>, vector<64x32xf32>, vector<1x32xf32> -> vector<1x32xf32>
    %c0_378 = arith.constant 0 : index
    %c0_379 = arith.constant 0 : index
    %1261 = vector.load %arg8[%c0_378, %c0_379] : memref<32x96xf32, #tpu.memory_space<vmem>>, vector<32x96xf32>
    %cst_380 = arith.constant dense<0.000000e+00> : vector<1x96xf32>
    %1262 = tpu.matmul %1260, %1261, %cst_380 {dimension_numbers = #tpu.dot_dimension_numbers<[1], [0], [0], [1], [0, 0, 1, 1], [], []>} : vector<1x32xf32>, vector<32x96xf32>, vector<1x96xf32> -> vector<1x96xf32>
    %c0_381 = arith.constant 0 : index
    %c0_382 = arith.constant 0 : index
    %1263 = vector.load %arg10[%c0_381, %c0_382] : memref<1x96xf32, #tpu.memory_space<vmem>>, vector<1x96xf32>
    %1264 = arith.addf %1262, %1263 : vector<1x96xf32>
    %c0_383 = arith.constant 0 : index
    %c0_384 = arith.constant 0 : index
    %1265 = vector.load %arg9[%c0_383, %c0_384] : memref<32x96xf32, #tpu.memory_space<vmem>>, vector<32x96xf32>
    %cst_385 = arith.constant dense<0.000000e+00> : vector<1x96xf32>
    %1266 = tpu.matmul %1202, %1265, %cst_385 {dimension_numbers = #tpu.dot_dimension_numbers<[1], [0], [0], [1], [0, 0, 1, 1], [], []>} : vector<1x32xf32>, vector<32x96xf32>, vector<1x96xf32> -> vector<1x96xf32>
    %c0_386 = arith.constant 0 : index
    %c0_387 = arith.constant 0 : index
    %1267 = vector.load %arg11[%c0_386, %c0_387] : memref<1x96xf32, #tpu.memory_space<vmem>>, vector<1x96xf32>
    %1268 = arith.addf %1266, %1267 : vector<1x96xf32>
    %1269 = arith.addf %1264, %1268 : vector<1x96xf32>
    %1270 = vector.extract_strided_slice %1269 {offsets = [0, 0], sizes = [1, 32], strides = [1, 1]} : vector<1x96xf32> to vector<1x32xf32>
    %1271 = arith.negf %1270 : vector<1x32xf32>
    %1272 = math.exp %1271 : vector<1x32xf32>
    %cst_388 = arith.constant 1.000000e+00 : f32
    %1273 = vector.broadcast %cst_388 : f32 to vector<1x32xf32>
    %1274 = arith.addf %1273, %1272 : vector<1x32xf32>
    %1275 = arith.divf %1273, %1274 : vector<1x32xf32>
    %1276 = vector.extract_strided_slice %1269 {offsets = [0, 32], sizes = [1, 32], strides = [1, 1]} : vector<1x96xf32> to vector<1x32xf32>
    %1277 = arith.negf %1276 : vector<1x32xf32>
    %1278 = math.exp %1277 : vector<1x32xf32>
    %cst_389 = arith.constant 1.000000e+00 : f32
    %1279 = vector.broadcast %cst_389 : f32 to vector<1x32xf32>
    %1280 = arith.addf %1279, %1278 : vector<1x32xf32>
    %1281 = arith.divf %1279, %1280 : vector<1x32xf32>
    %1282 = vector.extract_strided_slice %1264 {offsets = [0, 64], sizes = [1, 32], strides = [1, 1]} : vector<1x96xf32> to vector<1x32xf32>
    %1283 = vector.extract_strided_slice %1268 {offsets = [0, 64], sizes = [1, 32], strides = [1, 1]} : vector<1x96xf32> to vector<1x32xf32>
    %1284 = arith.mulf %1275, %1283 : vector<1x32xf32>
    %1285 = arith.addf %1282, %1284 : vector<1x32xf32>
    %1286 = math.tanh %1285 : vector<1x32xf32>
    %cst_390 = arith.constant 1.000000e+00 : f32
    %1287 = vector.broadcast %cst_390 : f32 to vector<1x32xf32>
    %1288 = arith.subf %1287, %1281 : vector<1x32xf32>
    %1289 = arith.mulf %1288, %1286 : vector<1x32xf32>
    %1290 = arith.mulf %1281, %1202 : vector<1x32xf32>
    %1291 = arith.addf %1289, %1290 : vector<1x32xf32>
    %1292 = vector.broadcast %1291 : vector<1x32xf32> to vector<8x32xf32>
    %1293 = arith.mulf %1292, %543 : vector<8x32xf32>
    %cst_391 = arith.constant dense<0.000000e+00> : vector<8xf32>
    %1294 = vector.multi_reduction <add>, %1293, %cst_391 [1] : vector<8x32xf32> to vector<8xf32>
    %1295 = vector.shape_cast %1294 : vector<8xf32> to vector<8x1xf32>
    %cst_392 = arith.constant dense<0xFF800000> : vector<1xf32>
    %1296 = vector.multi_reduction <maximumf>, %1295, %cst_392 [0] : vector<8x1xf32> to vector<1xf32>
    %1297 = vector.shape_cast %1296 : vector<1xf32> to vector<1x1xf32>
    %1298 = vector.broadcast %1297 : vector<1x1xf32> to vector<8x1xf32>
    %1299 = arith.subf %1295, %1298 : vector<8x1xf32>
    %1300 = math.exp %1299 : vector<8x1xf32>
    %cst_393 = arith.constant dense<0.000000e+00> : vector<1xf32>
    %1301 = vector.multi_reduction <add>, %1300, %cst_393 [0] : vector<8x1xf32> to vector<1xf32>
    %1302 = vector.shape_cast %1301 : vector<1xf32> to vector<1x1xf32>
    %1303 = tpu.reciprocal %1302 {approx = true} : vector<1x1xf32> -> vector<1x1xf32>
    %1304 = vector.broadcast %1303 : vector<1x1xf32> to vector<8x1xf32>
    %1305 = arith.mulf %1300, %1304 : vector<8x1xf32>
    %1306 = vector.broadcast %1305 : vector<8x1xf32> to vector<8x32xf32>
    %1307 = arith.mulf %1306, %543 : vector<8x32xf32>
    %cst_394 = arith.constant dense<0.000000e+00> : vector<32xf32>
    %1308 = vector.multi_reduction <add>, %1307, %cst_394 [0] : vector<8x32xf32> to vector<32xf32>
    %1309 = vector.shape_cast %1308 : vector<32xf32> to vector<1x32xf32>
    %1310 = tpu.concatenate %1291, %1309 in 1 : vector<1x32xf32>, vector<1x32xf32> -> vector<1x64xf32>
    %c0_395 = arith.constant 0 : index
    %c0_396 = arith.constant 0 : index
    %1311 = vector.load %arg12[%c0_395, %c0_396] : memref<64x32xf32, #tpu.memory_space<vmem>>, vector<64x32xf32>
    %cst_397 = arith.constant dense<0.000000e+00> : vector<1x32xf32>
    %1312 = tpu.matmul %1310, %1311, %cst_397 {dimension_numbers = #tpu.dot_dimension_numbers<[1], [0], [0], [1], [0, 0, 1, 1], [], []>} : vector<1x64xf32>, vector<64x32xf32>, vector<1x32xf32> -> vector<1x32xf32>
    %c0_398 = arith.constant 0 : index
    %c0_399 = arith.constant 0 : index
    %1313 = vector.load %arg13[%c0_398, %c0_399] : memref<1x32xf32, #tpu.memory_space<vmem>>, vector<1x32xf32>
    %1314 = arith.addf %1312, %1313 : vector<1x32xf32>
    %1315 = math.tanh %1314 : vector<1x32xf32>
    %c0_400 = arith.constant 0 : index
    %c0_401 = arith.constant 0 : index
    %1316 = vector.load %arg14[%c0_400, %c0_401] : memref<32x64xf32, #tpu.memory_space<vmem>>, vector<32x64xf32>
    %cst_402 = arith.constant dense<0.000000e+00> : vector<1x64xf32>
    %1317 = tpu.matmul %1315, %1316, %cst_402 {dimension_numbers = #tpu.dot_dimension_numbers<[1], [0], [0], [1], [0, 0, 1, 1], [], []>} : vector<1x32xf32>, vector<32x64xf32>, vector<1x64xf32> -> vector<1x64xf32>
    %c0_403 = arith.constant 0 : index
    %c0_404 = arith.constant 0 : index
    %1318 = vector.load %arg15[%c0_403, %c0_404] : memref<1x64xf32, #tpu.memory_space<vmem>>, vector<1x64xf32>
    %1319 = arith.addf %1317, %1318 : vector<1x64xf32>
    %cst_405 = arith.constant dense<0xFF800000> : vector<1xf32>
    %1320 = vector.multi_reduction <maximumf>, %1319, %cst_405 [1] : vector<1x64xf32> to vector<1xf32>
    %1321 = vector.shape_cast %1320 : vector<1xf32> to vector<1x1xf32>
    %1322 = vector.broadcast %1321 : vector<1x1xf32> to vector<1x64xf32>
    %1323 = arith.subf %1319, %1322 : vector<1x64xf32>
    %1324 = math.exp %1323 : vector<1x64xf32>
    %cst_406 = arith.constant dense<0.000000e+00> : vector<1xf32>
    %1325 = vector.multi_reduction <add>, %1324, %cst_406 [1] : vector<1x64xf32> to vector<1xf32>
    %1326 = vector.shape_cast %1325 : vector<1xf32> to vector<1x1xf32>
    %1327 = tpu.reciprocal %1326 : vector<1x1xf32> -> vector<1x1xf32>
    %1328 = vector.broadcast %1321 : vector<1x1xf32> to vector<1x64xf32>
    %1329 = arith.cmpf oeq, %1319, %1328 : vector<1x64xf32>
    %c64_i32_407 = arith.constant 64 : i32
    %1330 = vector.broadcast %c64_i32_407 : i32 to vector<1x64xi32>
    %1331 = arith.select %1329, %545, %1330 : vector<1x64xi1>, vector<1x64xi32>
    %cst_408 = arith.constant dense<2147483647> : vector<1xi32>
    %1332 = vector.multi_reduction <minsi>, %1331, %cst_408 [1] : vector<1x64xi32> to vector<1xi32>
    %1333 = vector.shape_cast %1332 : vector<1xi32> to vector<1x1xi32>
    %c8_i32 = arith.constant 8 : i32
    %1334 = vector.broadcast %c8_i32 : i32 to vector<1x128xi32>
    %1335 = arith.cmpi eq, %544, %1334 : vector<1x128xi32>
    %1336 = vector.shape_cast %1333 : vector<1x1xi32> to vector<1x1xi32>
    %1337 = vector.broadcast %1336 : vector<1x1xi32> to vector<1x128xi32>
    %1338 = arith.select %1335, %1337, %1249 : vector<1x128xi1>, vector<1x128xi32>
    %c8_i32_409 = arith.constant 8 : i32
    %1339 = vector.broadcast %c8_i32_409 : i32 to vector<1x128xi32>
    %1340 = arith.cmpi eq, %544, %1339 : vector<1x128xi32>
    %1341 = vector.shape_cast %1327 : vector<1x1xf32> to vector<1x1xf32>
    %1342 = vector.broadcast %1341 : vector<1x1xf32> to vector<1x128xf32>
    %1343 = arith.select %1340, %1342, %1254 : vector<1x128xi1>, vector<1x128xf32>
    %1344 = vector.broadcast %1333 : vector<1x1xi32> to vector<1x64xi32>
    %1345 = arith.cmpi eq, %545, %1344 : vector<1x64xi32>
    %1346 = arith.extui %1345 : vector<1x64xi1> to vector<1x64xi32>
    %1347 = arith.sitofp %1346 : vector<1x64xi32> to vector<1x64xf32>
    %c0_410 = arith.constant 0 : index
    %c0_411 = arith.constant 0 : index
    %1348 = vector.load %arg1[%c0_410, %c0_411] : memref<64x32xf32, #tpu.memory_space<vmem>>, vector<64x32xf32>
    %cst_412 = arith.constant dense<0.000000e+00> : vector<1x32xf32>
    %1349 = tpu.matmul %1347, %1348, %cst_412 {dimension_numbers = #tpu.dot_dimension_numbers<[1], [0], [0], [1], [0, 0, 1, 1], [], []>} : vector<1x64xf32>, vector<64x32xf32>, vector<1x32xf32> -> vector<1x32xf32>
    %c0_413 = arith.constant 0 : index
    %c0_414 = arith.constant 0 : index
    %1350 = vector.load %arg8[%c0_413, %c0_414] : memref<32x96xf32, #tpu.memory_space<vmem>>, vector<32x96xf32>
    %cst_415 = arith.constant dense<0.000000e+00> : vector<1x96xf32>
    %1351 = tpu.matmul %1349, %1350, %cst_415 {dimension_numbers = #tpu.dot_dimension_numbers<[1], [0], [0], [1], [0, 0, 1, 1], [], []>} : vector<1x32xf32>, vector<32x96xf32>, vector<1x96xf32> -> vector<1x96xf32>
    %c0_416 = arith.constant 0 : index
    %c0_417 = arith.constant 0 : index
    %1352 = vector.load %arg10[%c0_416, %c0_417] : memref<1x96xf32, #tpu.memory_space<vmem>>, vector<1x96xf32>
    %1353 = arith.addf %1351, %1352 : vector<1x96xf32>
    %c0_418 = arith.constant 0 : index
    %c0_419 = arith.constant 0 : index
    %1354 = vector.load %arg9[%c0_418, %c0_419] : memref<32x96xf32, #tpu.memory_space<vmem>>, vector<32x96xf32>
    %cst_420 = arith.constant dense<0.000000e+00> : vector<1x96xf32>
    %1355 = tpu.matmul %1291, %1354, %cst_420 {dimension_numbers = #tpu.dot_dimension_numbers<[1], [0], [0], [1], [0, 0, 1, 1], [], []>} : vector<1x32xf32>, vector<32x96xf32>, vector<1x96xf32> -> vector<1x96xf32>
    %c0_421 = arith.constant 0 : index
    %c0_422 = arith.constant 0 : index
    %1356 = vector.load %arg11[%c0_421, %c0_422] : memref<1x96xf32, #tpu.memory_space<vmem>>, vector<1x96xf32>
    %1357 = arith.addf %1355, %1356 : vector<1x96xf32>
    %1358 = arith.addf %1353, %1357 : vector<1x96xf32>
    %1359 = vector.extract_strided_slice %1358 {offsets = [0, 0], sizes = [1, 32], strides = [1, 1]} : vector<1x96xf32> to vector<1x32xf32>
    %1360 = arith.negf %1359 : vector<1x32xf32>
    %1361 = math.exp %1360 : vector<1x32xf32>
    %cst_423 = arith.constant 1.000000e+00 : f32
    %1362 = vector.broadcast %cst_423 : f32 to vector<1x32xf32>
    %1363 = arith.addf %1362, %1361 : vector<1x32xf32>
    %1364 = arith.divf %1362, %1363 : vector<1x32xf32>
    %1365 = vector.extract_strided_slice %1358 {offsets = [0, 32], sizes = [1, 32], strides = [1, 1]} : vector<1x96xf32> to vector<1x32xf32>
    %1366 = arith.negf %1365 : vector<1x32xf32>
    %1367 = math.exp %1366 : vector<1x32xf32>
    %cst_424 = arith.constant 1.000000e+00 : f32
    %1368 = vector.broadcast %cst_424 : f32 to vector<1x32xf32>
    %1369 = arith.addf %1368, %1367 : vector<1x32xf32>
    %1370 = arith.divf %1368, %1369 : vector<1x32xf32>
    %1371 = vector.extract_strided_slice %1353 {offsets = [0, 64], sizes = [1, 32], strides = [1, 1]} : vector<1x96xf32> to vector<1x32xf32>
    %1372 = vector.extract_strided_slice %1357 {offsets = [0, 64], sizes = [1, 32], strides = [1, 1]} : vector<1x96xf32> to vector<1x32xf32>
    %1373 = arith.mulf %1364, %1372 : vector<1x32xf32>
    %1374 = arith.addf %1371, %1373 : vector<1x32xf32>
    %1375 = math.tanh %1374 : vector<1x32xf32>
    %cst_425 = arith.constant 1.000000e+00 : f32
    %1376 = vector.broadcast %cst_425 : f32 to vector<1x32xf32>
    %1377 = arith.subf %1376, %1370 : vector<1x32xf32>
    %1378 = arith.mulf %1377, %1375 : vector<1x32xf32>
    %1379 = arith.mulf %1370, %1291 : vector<1x32xf32>
    %1380 = arith.addf %1378, %1379 : vector<1x32xf32>
    %1381 = vector.broadcast %1380 : vector<1x32xf32> to vector<8x32xf32>
    %1382 = arith.mulf %1381, %543 : vector<8x32xf32>
    %cst_426 = arith.constant dense<0.000000e+00> : vector<8xf32>
    %1383 = vector.multi_reduction <add>, %1382, %cst_426 [1] : vector<8x32xf32> to vector<8xf32>
    %1384 = vector.shape_cast %1383 : vector<8xf32> to vector<8x1xf32>
    %cst_427 = arith.constant dense<0xFF800000> : vector<1xf32>
    %1385 = vector.multi_reduction <maximumf>, %1384, %cst_427 [0] : vector<8x1xf32> to vector<1xf32>
    %1386 = vector.shape_cast %1385 : vector<1xf32> to vector<1x1xf32>
    %1387 = vector.broadcast %1386 : vector<1x1xf32> to vector<8x1xf32>
    %1388 = arith.subf %1384, %1387 : vector<8x1xf32>
    %1389 = math.exp %1388 : vector<8x1xf32>
    %cst_428 = arith.constant dense<0.000000e+00> : vector<1xf32>
    %1390 = vector.multi_reduction <add>, %1389, %cst_428 [0] : vector<8x1xf32> to vector<1xf32>
    %1391 = vector.shape_cast %1390 : vector<1xf32> to vector<1x1xf32>
    %1392 = tpu.reciprocal %1391 {approx = true} : vector<1x1xf32> -> vector<1x1xf32>
    %1393 = vector.broadcast %1392 : vector<1x1xf32> to vector<8x1xf32>
    %1394 = arith.mulf %1389, %1393 : vector<8x1xf32>
    %1395 = vector.broadcast %1394 : vector<8x1xf32> to vector<8x32xf32>
    %1396 = arith.mulf %1395, %543 : vector<8x32xf32>
    %cst_429 = arith.constant dense<0.000000e+00> : vector<32xf32>
    %1397 = vector.multi_reduction <add>, %1396, %cst_429 [0] : vector<8x32xf32> to vector<32xf32>
    %1398 = vector.shape_cast %1397 : vector<32xf32> to vector<1x32xf32>
    %1399 = tpu.concatenate %1380, %1398 in 1 : vector<1x32xf32>, vector<1x32xf32> -> vector<1x64xf32>
    %c0_430 = arith.constant 0 : index
    %c0_431 = arith.constant 0 : index
    %1400 = vector.load %arg12[%c0_430, %c0_431] : memref<64x32xf32, #tpu.memory_space<vmem>>, vector<64x32xf32>
    %cst_432 = arith.constant dense<0.000000e+00> : vector<1x32xf32>
    %1401 = tpu.matmul %1399, %1400, %cst_432 {dimension_numbers = #tpu.dot_dimension_numbers<[1], [0], [0], [1], [0, 0, 1, 1], [], []>} : vector<1x64xf32>, vector<64x32xf32>, vector<1x32xf32> -> vector<1x32xf32>
    %c0_433 = arith.constant 0 : index
    %c0_434 = arith.constant 0 : index
    %1402 = vector.load %arg13[%c0_433, %c0_434] : memref<1x32xf32, #tpu.memory_space<vmem>>, vector<1x32xf32>
    %1403 = arith.addf %1401, %1402 : vector<1x32xf32>
    %1404 = math.tanh %1403 : vector<1x32xf32>
    %c0_435 = arith.constant 0 : index
    %c0_436 = arith.constant 0 : index
    %1405 = vector.load %arg14[%c0_435, %c0_436] : memref<32x64xf32, #tpu.memory_space<vmem>>, vector<32x64xf32>
    %cst_437 = arith.constant dense<0.000000e+00> : vector<1x64xf32>
    %1406 = tpu.matmul %1404, %1405, %cst_437 {dimension_numbers = #tpu.dot_dimension_numbers<[1], [0], [0], [1], [0, 0, 1, 1], [], []>} : vector<1x32xf32>, vector<32x64xf32>, vector<1x64xf32> -> vector<1x64xf32>
    %c0_438 = arith.constant 0 : index
    %c0_439 = arith.constant 0 : index
    %1407 = vector.load %arg15[%c0_438, %c0_439] : memref<1x64xf32, #tpu.memory_space<vmem>>, vector<1x64xf32>
    %1408 = arith.addf %1406, %1407 : vector<1x64xf32>
    %cst_440 = arith.constant dense<0xFF800000> : vector<1xf32>
    %1409 = vector.multi_reduction <maximumf>, %1408, %cst_440 [1] : vector<1x64xf32> to vector<1xf32>
    %1410 = vector.shape_cast %1409 : vector<1xf32> to vector<1x1xf32>
    %1411 = vector.broadcast %1410 : vector<1x1xf32> to vector<1x64xf32>
    %1412 = arith.subf %1408, %1411 : vector<1x64xf32>
    %1413 = math.exp %1412 : vector<1x64xf32>
    %cst_441 = arith.constant dense<0.000000e+00> : vector<1xf32>
    %1414 = vector.multi_reduction <add>, %1413, %cst_441 [1] : vector<1x64xf32> to vector<1xf32>
    %1415 = vector.shape_cast %1414 : vector<1xf32> to vector<1x1xf32>
    %1416 = tpu.reciprocal %1415 : vector<1x1xf32> -> vector<1x1xf32>
    %1417 = vector.broadcast %1410 : vector<1x1xf32> to vector<1x64xf32>
    %1418 = arith.cmpf oeq, %1408, %1417 : vector<1x64xf32>
    %c64_i32_442 = arith.constant 64 : i32
    %1419 = vector.broadcast %c64_i32_442 : i32 to vector<1x64xi32>
    %1420 = arith.select %1418, %545, %1419 : vector<1x64xi1>, vector<1x64xi32>
    %cst_443 = arith.constant dense<2147483647> : vector<1xi32>
    %1421 = vector.multi_reduction <minsi>, %1420, %cst_443 [1] : vector<1x64xi32> to vector<1xi32>
    %1422 = vector.shape_cast %1421 : vector<1xi32> to vector<1x1xi32>
    %c9_i32 = arith.constant 9 : i32
    %1423 = vector.broadcast %c9_i32 : i32 to vector<1x128xi32>
    %1424 = arith.cmpi eq, %544, %1423 : vector<1x128xi32>
    %1425 = vector.shape_cast %1422 : vector<1x1xi32> to vector<1x1xi32>
    %1426 = vector.broadcast %1425 : vector<1x1xi32> to vector<1x128xi32>
    %1427 = arith.select %1424, %1426, %1338 : vector<1x128xi1>, vector<1x128xi32>
    %c9_i32_444 = arith.constant 9 : i32
    %1428 = vector.broadcast %c9_i32_444 : i32 to vector<1x128xi32>
    %1429 = arith.cmpi eq, %544, %1428 : vector<1x128xi32>
    %1430 = vector.shape_cast %1416 : vector<1x1xf32> to vector<1x1xf32>
    %1431 = vector.broadcast %1430 : vector<1x1xf32> to vector<1x128xf32>
    %1432 = arith.select %1429, %1431, %1343 : vector<1x128xi1>, vector<1x128xf32>
    %c0_445 = arith.constant 0 : index
    %c0_446 = arith.constant 0 : index
    %1433 = vector.load %arg16[%c0_445, %c0_446] : memref<1x128xi32, #tpu.memory_space<vmem>>, vector<1x128xi32>
    tpu.vector_store %arg16[%c0_445, %c0_446], %1427 {strides = array<i32>} : memref<1x128xi32, #tpu.memory_space<vmem>>, vector<1x128xi32>,
    %c0_447 = arith.constant 0 : index
    %c0_448 = arith.constant 0 : index
    %1434 = vector.load %arg17[%c0_447, %c0_448] : memref<1x128xf32, #tpu.memory_space<vmem>>, vector<1x128xf32>
    tpu.vector_store %arg17[%c0_447, %c0_448], %1432 {strides = array<i32>} : memref<1x128xf32, #tpu.memory_space<vmem>>, vector<1x128xf32>,
    return
  }
}

</mosaic_0001>

<bundles_post_ra>
// kernel: greedy_decode.1
= control target key start
LH: loop header
LB: loop body
LE: loop exit
PB: predicated region body
PF: predicated region fallthrough
CT: control target
= control target key end

     0   :  { %v8879_v0 = vmov 0.0|0.0   ;;  %vm8880_vm0 = vmmov 0   ;;  %v8881_v4 = vmov 0.0   ;;  %vm76_vm1 = vcmask 261120   ;;  %s8882_s25 = smov 64   ;;  %s10500_s2 = inlined_call_operand.vmem [shape: f32[32,192], index: 2, kind: input, shape index: {}]   ;;  %s10501_s4 = inlined_call_operand.vmem [shape: f32[32,96], index: 4, kind: input, shape index: {}]   ;;  %s10502_s0 = inlined_call_operand.vmem [shape: f32[8,32], index: 0, kind: input, shape index: {}]   ;;  %s10503_s3 = inlined_call_operand.vmem [shape: f32[1,192], index: 3, kind: input, shape index: {}]   ;;  %s10504_s5 = inlined_call_operand.vmem [shape: f32[1,96], index: 5, kind: input, shape index: {}]   ;;  %s10505_s6 = inlined_call_operand.vmem [shape: f32[32,96], index: 6, kind: input, shape index: {}]   ;;  %s10506_s7 = inlined_call_operand.vmem [shape: f32[1,96], index: 7, kind: input, shape index: {}]   ;;  %s10507_s8 = inlined_call_operand.vmem [shape: f32[32,96], index: 8, kind: input, shape index: {}]   ;;  %s10508_s9 = inlined_call_operand.vmem [shape: f32[32,96], index: 9, kind: input, shape index: {}]   ;;  %s10509_s1 = inlined_call_operand.vmem [shape: f32[64,32], index: 1, kind: input, shape index: {}]   ;;  %s10510_s11 = inlined_call_operand.vmem [shape: f32[1,96], index: 11, kind: input, shape index: {}]   ;;  %s10511_s10 = inlined_call_operand.vmem [shape: f32[1,96], index: 10, kind: input, shape index: {}]   ;;  %s10512_s12 = inlined_call_operand.vmem [shape: f32[64,32], index: 12, kind: input, shape index: {}]   ;;  %s10513_s14 = inlined_call_operand.vmem [shape: f32[32,64], index: 14, kind: input, shape index: {}]   ;;  %s10514_s13 = inlined_call_operand.vmem [shape: f32[1,32], index: 13, kind: input, shape index: {}]   ;;  %s10515_s15 = inlined_call_operand.vmem [shape: f32[1,64], index: 15, kind: input, shape index: {}]   ;;  %s10516_s17 = inlined_call_operand.vmem [shape: f32[1,128], index: 17, kind: output, shape index: {1}]   ;;  %s10517_s16 = inlined_call_operand.vmem [shape: s32[1,128], index: 16, kind: output, shape index: {0}]  }
   0x1   :  { %10520 = sst [smem:[#allocation2_spill]] %s10500_s2  ;;  %8071 = vmatprep.subr.bf16.mxu1 %v8879_v0  ;;  %7204 = vmatprep.mubr.msk.f32.mxu1 %vm8880_vm0, %v8881_v4  ;;  %v55_v20 = vld [vmem:[%s10502_s0] sm:$0xff]  ;;  %v66_v21 = vlaneseq  ;;  %v157_v46 = vld [vmem:[%s10505_s6 + $0x8] sm:$0xff]  ;;  %s8883_s2 = smov 96   ;;  %v158_v49 = vld [vmem:[%s10505_s6 + $0x10] sm:$0xff]  ;;  %vm2270_vm10 = vcmask 523520  }
   0x2   :  { %10521 = sst [smem:[#allocation3_spill]] %s10501_s4  ;;  %s10522_s26 = sld [smem:[#allocation2_spill]]  ;;  %144 = vmatprep.mubr.f32.mxu0 %v8881_v4  ;;  %v64_v24 = vld [vmem:[%s10503_s3] sm:$0x3]  ;;  %v159_v50 = vld [vmem:[%s10505_s6 + $0x18] sm:$0xff]  ;;  %vm2292_vm11 = vcmask 523264  }
   0x3   :  { %s10523_s30 = sld [smem:[#allocation3_spill]]  ;;  %v9038_v22 = vshrl.u32 %v66_v21, 7  ;;  %v9049_v25 = vld [vmem:[%s10504_s5] sm:$0x1]  ;;  %v9082_v51 = vpack.c.bf16 %v159_v50, %v158_v49  ;;  %vm2445_vm12 = vcmask 516096  }
   0x4   :  { %v156_v45 = vld [vmem:[%s10505_s6] sm:$0xff] }
   0x5   :  { %v9041_v23 = vsub.s32 1, %v9038_v22  ;;  %v9057_v33 = vsub.s32 0, %v9038_v22  ;;  %v9071_v47 = vpack.c.bf16 %v157_v46, %v156_v45  ;;  %v9107_v60 = vld [vmem:[%s10506_s7] sm:$0x1]  ;;  %vm369_vm2 = vcmp.eq.s32.totalorder %v9038_v22, 0 }
   0x6   :  { %vm378_vm3 = vcmp.eq.s32.totalorder %v9038_v22, 7  ;;  %vm609_vm4 = vcmp.eq.s32.totalorder %v9038_v22, 1  ;;  %vm618_vm5 = vcmp.eq.s32.totalorder %v9038_v22, 6  ;;  %vm850_vm6 = vcmp.eq.s32.totalorder %v9038_v22, 2 }
   0x7   :  { %v73_v26 = vrot.slane %v64_v24, %v9041_v23  ;;  %v69_v34 = vrot.slane %v64_v24, %v9057_v33  ;;  %vm859_vm7 = vcmp.eq.s32.totalorder %v9038_v22, 5  ;;  %vm1091_vm8 = vcmp.eq.s32.totalorder %v9038_v22, 3 }
   0x8   :  { %v57_v1 = vld [vmem:[%s10522_s26 + $0x8] sm:$0xff]  ;;  %v59_v2 = vld [vmem:[%s10522_s26 + $0x18] sm:$0xff]  ;;  %v56_v7 = vld [vmem:[%s10522_s26] sm:$0xff]  ;;  %vm1100_vm9 = vcmp.eq.s32.totalorder %v9038_v22, 4 }
   0x9   :  { %v151_v3 = vld [vmem:[%s10523_s30] sm:$0xff]  ;;  %v8063_v5 = vpack.c.bf16 %v59_v2, %v57_v1  ;;  %v152_v6 = vld [vmem:[%s10523_s30 + $0x8] sm:$0xff]  ;;  %v58_v8 = vld [vmem:[%s10522_s26 + $0x10] sm:$0xff] }
   0xa   :  { %v8997_v9 = vpack.c.bf16 %v152_v6, %v151_v3  ;;  %v8065_v10 = vpack.c.bf16 %v58_v8, %v56_v7  ;;  %v61_v11 = vld [vmem:[%s10522_s26 + $0x28] sm:$0xff]  ;;  %v63_v12 = vld [vmem:[%s10522_s26 + $0x38] sm:$0xff]  ;;  %v153_v13 = vld [vmem:[%s10523_s30 + $0x10] sm:$0xff] }
   0xb   :  { %8064 = vmatprep.subr.bf16.mxu0 %v8063_v5  ;;  %v8067_v14 = vpack.c.bf16 %v63_v12, %v61_v11  ;;  %v154_v15 = vld [vmem:[%s10523_s30 + $0x18] sm:$0xff]  ;;  %v60_v16 = vld [vmem:[%s10522_s26 + $0x20] sm:$0xff]  ;;  %v62_v17 = vld [vmem:[%s10522_s26 + $0x30] sm:$0xff]  ;;  %s8884_s30 = smov 32  }
   0xc   :  { %8073 = vmatpush3.bf16.msra.mxu1 %v8997_v9  ;;  %8066 = vmatpush1.bf16.msra.mxu0 %v8065_v10  ;;  %v9018_v18 = vpack.c.bf16 %v154_v15, %v153_v13  ;;  %v8069_v19 = vpack.c.bf16 %v62_v17, %v60_v16 }
   0xd   :  { %8074 = vmatprep.subr.bf16.mxu1 %v8879_v0  ;;  %8068 = vmatprep.subr.bf16.mxu0 %v8067_v14 }
  0x10   :  { %8076 = vmatpush3.bf16.msra.mxu1 %v9018_v18  ;;  %8070 = vmatpush1.bf16.msra.mxu0 %v8069_v19 }
  0x11   :  { %8083 = vmatprep.subr.bf16.mxu1 %v8879_v0  ;;  %8077 = vmatprep.subr.bf16.mxu0 %v8879_v0 }
  0x13   :  { %7205 = vmatmul.mubr.f32.vlgmr.msra.gmra.mrb[0].mxu1 %v8881_v4  ;;  %6688 = vmatmul.mubr.msk.f32.vlgmr.msra.gmra.mrb[0].mxu0 %vm76_vm1, %v55_v20 }
  0x14   :  { %8085 = vmatpush3.bf16.msra.mxu1 %v8997_v9  ;;  %7226 = vmatprep.mubr.msk.f32.mxu1 %vm8880_vm0, %v8881_v4 }
  0x15   :  { %8086 = vmatprep.subr.bf16.mxu1 %v8879_v0  ;;  %7215 = vmatprep.mubr.msk.f32.mxu0 %vm8880_vm0, %v8881_v4 }
  0x16   :  { %8079 = vmatpush3.bf16.msra.mxu0 %v9071_v47 }
  0x17   :  { %8080 = vmatprep.subr.bf16.mxu0 %v8879_v0 }
  0x18   :  { %8088 = vmatpush3.bf16.msra.mxu1 %v9018_v18 }
  0x19   :  { %8095 = vmatprep.subr.bf16.mxu1 %v8879_v0 }
  0x1a   :  { %8082 = vmatpush3.bf16.msra.mxu0 %v9082_v51 }
  0x1b   :  { %8089 = vmatprep.subr.bf16.mxu0 %v8879_v0 }
  0x1d   :  { %7216 = vmatmul.mubr.f32.vlgmr.msra.gmra.mrb[2].mxu0 %v8881_v4 }
  0x1e   :  { %8091 = vmatpush3.bf16.msra.mxu0 %v9071_v47  ;;  %7237 = vmatprep.mubr.msk.f32.mxu0 %vm8880_vm0, %v8881_v4 }
  0x1f   :  { %8092 = vmatprep.subr.bf16.mxu0 %v8879_v0 }
  0x22   :  { %8094 = vmatpush3.bf16.msra.mxu0 %v9082_v51 }
  0x23   :  { %8101 = vmatprep.subr.bf16.mxu0 %v8879_v0 }
  0xe6   :  { %v232_v27 = vpop.f32.mrb[0].mxu1  ;;  %v146_v28 = vpop.f32.mrb[0].mxu0 }
  0xe7   :  { %v233_v29 = vadd.f32 %v232_v27, %v9049_v25  ;;  %v7206_v30 = vpop.f32.mrb[1].mxu1  ;;  %v148_v31 = vpop.f32.mrb[1].mxu0  ;;  %v9060_v35 = vadd.f32 %v146_v28, %v69_v34 }
  0xe8   :  { %v9053_v32 = vadd.f32 %v148_v31, %v73_v26 }
  0xe9   :  { %314 = vrot.lane.b32.xlu0 %v233_v29, %s8882_s25  ;;  %v306_v36 = vadd.f32 %v233_v29, %v9060_v35 }
  0xeb   :  { %v6689_v37 = vmul.f32 -1.442695, %v306_v36 }
  0xed   :  { %8581 = vpow2.f32 %v6689_v37 }
  0xf0   :  { %v302_v58 = vpop.f32.mrb[2].mxu0 }
  0xf1   :  { %v7217_v59 = vpop.f32.mrb[3].mxu0  ;;  %v303_v1 = vadd.f32 %v302_v58, %v9107_v60 }
  0xf3   :  { %v333_v3 = vrot.slane %v303_v1, 1 }
  0xf7   :  { %v8582_v38 = vpop.eup %8581 }
  0xf8   :  { %v310_v39 = vadd.f32 1.0, %v8582_v38 }
  0xfa   :  { %8583 = vrcp.f32 %v310_v39 }
 0x104   :  { %v8584_v40 = vpop.eup %8583 }
 0x105   :  { %v324_v52 = vsub.f32 1.0, %v8584_v40  ;;  %v330_v54 = vmul.f32 0.0, %v8584_v40 }
 0x15b   :  { %v315_v41 = vpop.permute.xlu0 %314 }
 0x15c   :  { %v317_v42 = vmul.f32 %v8584_v40, %v315_v41 }
 0x15e   :  { %319 = vrot.lane.b32.xlu0 %v317_v42, %s8882_s25 }
 0x1d0   :  { %v320_v43 = vpop.permute.xlu0 %319 }
 0x1d1   :  { %v322_v44 = vadd.f32 %v320_v43, %v9060_v35 }
 0x1d3   :  { %8585 = vtanh.f32 %v322_v44 }
 0x1dd   :  { %v8586_v48 = vpop.eup %8585 }
 0x1de   :  { %326 = vrot.lane.b32.xlu1 %v8586_v48, %s8883_s2 }
 0x250   :  { %v327_v53 = vpop.permute.xlu1 %326 }
 0x251   :  { %v329_v55 = vmul.f32 %v327_v53, %v324_v52 }
 0x253   :  { %v9093_v56 = vadd.f32 %v330_v54, %v329_v55 }
 0x255   :  { %392 = vrot.lane.b32.xlu1 %v9093_v56, %s8883_s2  ;;  %v566_v34 = vrot.slane %v9093_v56, 7 }
 0x2c7   :  { %v393_v57 = vpop.permute.xlu1 %392 }
 0x2c8   :  { %7227 = vmatmul.mubr.msk.f32.vlgmr.msra.gmra.mrb[2].mxu1 %vm76_vm1, %v393_v57 }
 0x2c9   :  { %8097 = vmatpush3.bf16.msra.mxu1 %v8997_v9  ;;  %7248 = vmatprep.mubr.msk.f32.mxu1 %vm8880_vm0, %v8881_v4 }
 0x2ca   :  { %8098 = vmatprep.subr.bf16.mxu1 %v8879_v0 }
 0x2cd   :  { %8100 = vmatpush3.bf16.msra.mxu1 %v9018_v18 }
 0x2ce   :  { %8107 = vmatprep.subr.bf16.mxu1 %v8879_v0 }
 0x39b   :  { %v462_v61 = vpop.f32.mrb[2].mxu1 }
 0x39c   :  { %v463_v62 = vadd.f32 %v462_v61, %v9049_v25  ;;  %v7228_v63 = vpop.f32.mrb[3].mxu1 }
 0x39e   :  { %v541_v2 = vrot.slane %v463_v62, 7 }
 0x3a0   :  { %550 = vrot.lane.b32.xlu0 %v541_v2, %s8882_s25  ;;  %v543_v5 = vadd.f32 %v541_v2, %v9060_v35 }
 0x3a2   :  { %v6694_v6 = vmul.f32 -1.442695, %v543_v5 }
 0x3a4   :  { %334 = vrot.lane.b32.xlu0 %v333_v3, %s8883_s2  ;;  %8587 = vpow2.f32 %v6694_v6 }
 0x3a8   :  { %351 = vrot.lane.b32.xlu0 %v333_v3, %s8884_s30 }
 0x3ae   :  { %v8588_v7 = vpop.eup %8587 }
 0x3af   :  { %v547_v8 = vadd.f32 1.0, %v8588_v7 }
 0x3b1   :  { %8589 = vrcp.f32 %v547_v8 }
 0x3bb   :  { %v8590_v10 = vpop.eup %8589 }
 0x3bc   :  { %v560_v31 = vsub.f32 1.0, %v8590_v10  ;;  %v568_v38 = vmul.f32 %v8590_v10, %v566_v34 }
 0x412   :  { %v551_v11 = vpop.permute.xlu0 %550 }
 0x413   :  { %v553_v12 = vmul.f32 %v8590_v10, %v551_v11 }
 0x415   :  { %555 = vrot.lane.b32.xlu1 %v553_v12, %s8882_s25 }
 0x416   :  { %v335_v13 = vpop.permute.xlu0 %334 }
 0x417   :  { %v337_v14 = vadd.f32 %v335_v13, %v9060_v35  ;;  %v338_v42 = vadd.f32 %v335_v13, %v9053_v32 }
 0x419   :  { %v6690_v15 = vmul.f32 -1.442695, %v337_v14  ;;  %v6691_v43 = vmul.f32 -1.442695, %v338_v42 }
 0x41a   :  { %v352_v19 = vpop.permute.xlu0 %351 }
 0x41b   :  { %8591 = vpow2.f32 %v6690_v15 }
 0x425   :  { %v8592_v16 = vpop.eup %8591 }
 0x426   :  { %v342_v17 = vadd.f32 1.0, %v8592_v16 }
 0x428   :  { %8593 = vrcp.f32 %v342_v17 }
 0x432   :  { %v8594_v20 = vpop.eup %8593 }
 0x433   :  { %v354_v24 = vmul.f32 %v8594_v20, %v352_v19 }
 0x435   :  { %356 = vrot.lane.b32.xlu0 %v354_v24, %s8882_s25 }
 0x487   :  { %v556_v26 = vpop.permute.xlu1 %555 }
 0x488   :  { %v558_v27 = vadd.f32 %v556_v26, %v9060_v35 }
 0x48a   :  { %8595 = vtanh.f32 %v558_v27 }
 0x494   :  { %v8596_v28 = vpop.eup %8595 }
 0x495   :  { %562 = vrot.lane.b32.xlu1 %v8596_v28, %s8883_s2 }
 0x4a7   :  { %v357_v29 = vpop.permute.xlu0 %356 }
 0x4a8   :  { %v359_v30 = vadd.f32 %v357_v29, %v9053_v32 }
 0x4aa   :  { %8597 = vtanh.f32 %v359_v30 }
 0x4ab   :  { %8599 = vpow2.f32 %v6691_v43 }
 0x4b4   :  { %v8598_v41 = vpop.eup %8597 }
 0x4b5   :  { %v8600_v44 = vpop.eup %8599 }
 0x4b6   :  { %v348_v45 = vadd.f32 1.0, %v8600_v44 }
 0x4b8   :  { %8601 = vrcp.f32 %v348_v45 }
 0x4c2   :  { %v8602_v46 = vpop.eup %8601 }
 0x4c3   :  { %v361_v49 = vsub.f32 1.0, %v8602_v46  ;;  %v367_v52 = vmul.f32 0.0, %v8602_v46 }
 0x507   :  { %v563_v36 = vpop.permute.xlu1 %562 }
 0x508   :  { %v565_v37 = vmul.f32 %v563_v36, %v560_v31 }
 0x50a   :  { %v9122_v39 = vadd.f32 %v568_v38, %v565_v37 }
 0x50c   :  { %v632_v40 = vrot.slane %v9122_v39, 1  ;;  %v807_v31 = vrot.slane %v9122_v39, 7 }
 0x50e   :  { %633 = vrot.lane.b32.xlu1 %v632_v40, %s8883_s2 }
 0x512   :  { %363 = vrot.lane.b32.xlu1 %v8598_v41, %s8883_s2 }
 0x580   :  { %v634_v48 = vpop.permute.xlu1 %633 }
 0x581   :  { %7249 = vmatmul.mubr.msk.f32.vlgmr.msra.gmra.mrb[4].mxu1 %vm76_vm1, %v634_v48 }
 0x582   :  { %8109 = vmatpush3.bf16.msra.mxu1 %v8997_v9  ;;  %7270 = vmatprep.mubr.msk.f32.mxu1 %vm8880_vm0, %v8881_v4 }
 0x583   :  { %8110 = vmatprep.subr.bf16.mxu1 %v8879_v0 }
 0x584   :  { %v364_v50 = vpop.permute.xlu1 %363 }
 0x585   :  { %v366_v53 = vmul.f32 %v364_v50, %v361_v49 }
 0x586   :  { %8112 = vmatpush3.bf16.msra.mxu1 %v9018_v18 }
 0x587   :  { %v9134_v54 = vadd.f32 %v367_v52, %v366_v53  ;;  %8119 = vmatprep.subr.bf16.mxu1 %v8879_v0 }
 0x589   :  { %v467_v55 = vrot.slane %v9134_v54, 7  ;;  %v605_v49 = vrot.slane %v9134_v54, 1 }
 0x58b   :  { %7238 = vmatmul.mubr.msk.f32.vlgmr.msra.gmra.mrb[4].mxu0 %vm76_vm1, %v467_v55 }
 0x58c   :  { %8103 = vmatpush3.bf16.msra.mxu0 %v9071_v47  ;;  %7259 = vmatprep.mubr.msk.f32.mxu0 %vm8880_vm0, %v8881_v4 }
 0x58d   :  { %8104 = vmatprep.subr.bf16.mxu0 %v8879_v0 }
 0x590   :  { %8106 = vmatpush3.bf16.msra.mxu0 %v9082_v51 }
 0x591   :  { %8113 = vmatprep.subr.bf16.mxu0 %v8879_v0 }
 0x654   :  { %v703_v57 = vpop.f32.mrb[4].mxu1 }
 0x655   :  { %v704_v58 = vadd.f32 %v703_v57, %v9049_v25  ;;  %v7250_v59 = vpop.f32.mrb[5].mxu1 }
 0x657   :  { %v782_v61 = vrot.slane %v704_v58, 6 }
 0x659   :  { %791 = vrot.lane.b32.xlu0 %v782_v61, %s8882_s25  ;;  %v784_v3 = vadd.f32 %v782_v61, %v9060_v35 }
 0x65b   :  { %v6699_v5 = vmul.f32 -1.442695, %v784_v3 }
 0x65d   :  { %8603 = vpow2.f32 %v6699_v5 }
 0x65e   :  { %v536_v62 = vpop.f32.mrb[4].mxu0 }
 0x65f   :  { %v537_v63 = vadd.f32 %v536_v62, %v9107_v60  ;;  %v7239_v1 = vpop.f32.mrb[5].mxu0 }
 0x661   :  { %v571_v2 = vrot.slane %v537_v63, 2 }
 0x663   :  { %572 = vrot.lane.b32.xlu0 %v571_v2, %s8883_s2 }
 0x667   :  { %v8604_v6 = vpop.eup %8603 }
 0x668   :  { %v788_v7 = vadd.f32 1.0, %v8604_v6 }
 0x66a   :  { %8605 = vrcp.f32 %v788_v7 }
 0x674   :  { %v8606_v8 = vpop.eup %8605 }
 0x675   :  { %v801_v30 = vsub.f32 1.0, %v8606_v8  ;;  %v809_v36 = vmul.f32 %v8606_v8, %v807_v31 }
 0x6cb   :  { %v792_v10 = vpop.permute.xlu0 %791 }
 0x6cc   :  { %v794_v11 = vmul.f32 %v8606_v8, %v792_v10 }
 0x6ce   :  { %796 = vrot.lane.b32.xlu1 %v794_v11, %s8882_s25 }
 0x6d2   :  { %589 = vrot.lane.b32.xlu1 %v571_v2, %s8884_s30 }
 0x6d5   :  { %v573_v12 = vpop.permute.xlu0 %572 }
 0x6d6   :  { %v575_v13 = vadd.f32 %v573_v12, %v9060_v35  ;;  %v576_v42 = vadd.f32 %v573_v12, %v9053_v32 }
 0x6d8   :  { %v6695_v14 = vmul.f32 -1.442695, %v575_v13  ;;  %v6696_v43 = vmul.f32 -1.442695, %v576_v42 }
 0x6da   :  { %8607 = vpow2.f32 %v6695_v14 }
 0x6e4   :  { %v8608_v15 = vpop.eup %8607 }
 0x6e5   :  { %v580_v16 = vadd.f32 1.0, %v8608_v15 }
 0x6e7   :  { %8609 = vrcp.f32 %v580_v16 }
 0x6f1   :  { %v8610_v20 = vpop.eup %8609 }
 0x740   :  { %v797_v17 = vpop.permute.xlu1 %796 }
 0x741   :  { %v799_v19 = vadd.f32 %v797_v17, %v9060_v35 }
 0x743   :  { %8611 = vtanh.f32 %v799_v19 }
 0x744   :  { %v590_v24 = vpop.permute.xlu1 %589 }
 0x745   :  { %v592_v26 = vmul.f32 %v8610_v20, %v590_v24 }
 0x747   :  { %594 = vrot.lane.b32.xlu1 %v592_v26, %s8882_s25 }
 0x74d   :  { %v8612_v27 = vpop.eup %8611 }
 0x74e   :  { %803 = vrot.lane.b32.xlu0 %v8612_v27, %s8883_s2 }
 0x7b9   :  { %v595_v28 = vpop.permute.xlu1 %594 }
 0x7ba   :  { %v597_v29 = vadd.f32 %v595_v28, %v9053_v32 }
 0x7bc   :  { %8613 = vtanh.f32 %v597_v29 }
 0x7bd   :  { %8615 = vpow2.f32 %v6696_v43 }
 0x7c0   :  { %v804_v34 = vpop.permute.xlu0 %803 }
 0x7c1   :  { %v806_v37 = vmul.f32 %v804_v34, %v801_v30 }
 0x7c3   :  { %v9158_v38 = vadd.f32 %v809_v36, %v806_v37 }
 0x7c5   :  { %v873_v40 = vrot.slane %v9158_v38, 2  ;;  %v1048_v36 = vrot.slane %v9158_v38, 7 }
 0x7c6   :  { %v8614_v41 = vpop.eup %8613 }
 0x7c7   :  { %874 = vrot.lane.b32.xlu0 %v873_v40, %s8883_s2  ;;  %601 = vrot.lane.b32.xlu1 %v8614_v41, %s8883_s2  ;;  %v8616_v44 = vpop.eup %8615 }
 0x7c8   :  { %v586_v45 = vadd.f32 1.0, %v8616_v44 }
 0x7ca   :  { %8617 = vrcp.f32 %v586_v45 }
 0x7d4   :  { %v8618_v46 = vpop.eup %8617 }
 0x7d5   :  { %v599_v48 = vsub.f32 1.0, %v8618_v46  ;;  %v607_v53 = vmul.f32 %v8618_v46, %v605_v49 }
 0x839   :  { %v875_v50 = vpop.permute.xlu0 %874  ;;  %v602_v52 = vpop.permute.xlu1 %601 }
 0x83a   :  { %v604_v55 = vmul.f32 %v602_v52, %v599_v48  ;;  %7271 = vmatmul.mubr.msk.f32.vlgmr.msra.gmra.mrb[6].mxu1 %vm76_vm1, %v875_v50 }
 0x83b   :  { %8121 = vmatpush3.bf16.msra.mxu1 %v8997_v9  ;;  %7292 = vmatprep.mubr.msk.f32.mxu1 %vm8880_vm0, %v8881_v4 }
 0x83c   :  { %v9169_v57 = vadd.f32 %v607_v53, %v604_v55  ;;  %8122 = vmatprep.subr.bf16.mxu1 %v8879_v0 }
 0x83e   :  { %v708_v58 = vrot.slane %v9169_v57, 6  ;;  %v846_v53 = vrot.slane %v9169_v57, 1 }
 0x83f   :  { %8124 = vmatpush3.bf16.msra.mxu1 %v9018_v18 }
 0x840   :  { %7260 = vmatmul.mubr.msk.f32.vlgmr.msra.gmra.mrb[6].mxu0 %vm76_vm1, %v708_v58  ;;  %8131 = vmatprep.subr.bf16.mxu1 %v8879_v0 }
 0x841   :  { %8115 = vmatpush3.bf16.msra.mxu0 %v9071_v47  ;;  %7281 = vmatprep.mubr.msk.f32.mxu0 %vm8880_vm0, %v8881_v4 }
 0x842   :  { %8116 = vmatprep.subr.bf16.mxu0 %v8879_v0 }
 0x845   :  { %8118 = vmatpush3.bf16.msra.mxu0 %v9082_v51 }
 0x846   :  { %8125 = vmatprep.subr.bf16.mxu0 %v8879_v0 }
 0x90d   :  { %v944_v59 = vpop.f32.mrb[6].mxu1 }
 0x90e   :  { %v945_v61 = vadd.f32 %v944_v59, %v9049_v25  ;;  %v7272_v62 = vpop.f32.mrb[7].mxu1 }
 0x910   :  { %v1023_v63 = vrot.slane %v945_v61, 5 }
 0x912   :  { %1032 = vrot.lane.b32.xlu0 %v1023_v63, %s8882_s25  ;;  %v1025_v6 = vadd.f32 %v1023_v63, %v9060_v35 }
 0x913   :  { %v777_v1 = vpop.f32.mrb[6].mxu0 }
 0x914   :  { %v778_v2 = vadd.f32 %v777_v1, %v9107_v60  ;;  %v7261_v3 = vpop.f32.mrb[7].mxu0  ;;  %v6704_v7 = vmul.f32 -1.442695, %v1025_v6 }
 0x916   :  { %v812_v5 = vrot.slane %v778_v2, 3  ;;  %8619 = vpow2.f32 %v6704_v7 }
 0x918   :  { %813 = vrot.lane.b32.xlu0 %v812_v5, %s8883_s2 }
 0x920   :  { %v8620_v8 = vpop.eup %8619 }
 0x921   :  { %v1029_v10 = vadd.f32 1.0, %v8620_v8 }
 0x923   :  { %8621 = vrcp.f32 %v1029_v10 }
 0x92d   :  { %v8622_v11 = vpop.eup %8621 }
 0x92e   :  { %v1042_v34 = vsub.f32 1.0, %v8622_v11  ;;  %v1050_v40 = vmul.f32 %v8622_v11, %v1048_v36 }
 0x984   :  { %v1033_v12 = vpop.permute.xlu0 %1032 }
 0x985   :  { %v1035_v13 = vmul.f32 %v8622_v11, %v1033_v12 }
 0x987   :  { %1037 = vrot.lane.b32.xlu1 %v1035_v13, %s8882_s25 }
 0x98a   :  { %v814_v14 = vpop.permute.xlu0 %813 }
 0x98b   :  { %830 = vrot.lane.b32.xlu1 %v812_v5, %s8884_s30  ;;  %v816_v15 = vadd.f32 %v814_v14, %v9060_v35  ;;  %v817_v45 = vadd.f32 %v814_v14, %v9053_v32 }
 0x98d   :  { %v6700_v16 = vmul.f32 -1.442695, %v816_v15  ;;  %v6701_v46 = vmul.f32 -1.442695, %v817_v45 }
 0x98f   :  { %8623 = vpow2.f32 %v6700_v16 }
 0x999   :  { %v8624_v17 = vpop.eup %8623 }
 0x99a   :  { %v821_v19 = vadd.f32 1.0, %v8624_v17 }
 0x99c   :  { %8625 = vrcp.f32 %v821_v19 }
 0x9a6   :  { %v8626_v26 = vpop.eup %8625 }
 0x9f9   :  { %v1038_v20 = vpop.permute.xlu1 %1037 }
 0x9fa   :  { %v1040_v24 = vadd.f32 %v1038_v20, %v9060_v35 }
 0x9fc   :  { %8627 = vtanh.f32 %v1040_v24 }
 0x9fd   :  { %v831_v27 = vpop.permute.xlu1 %830 }
 0x9fe   :  { %v833_v28 = vmul.f32 %v8626_v26, %v831_v27 }
 0xa00   :  { %835 = vrot.lane.b32.xlu1 %v833_v28, %s8882_s25 }
 0xa06   :  { %v8628_v29 = vpop.eup %8627 }
 0xa07   :  { %1044 = vrot.lane.b32.xlu0 %v8628_v29, %s8883_s2 }
 0xa72   :  { %v836_v30 = vpop.permute.xlu1 %835 }
 0xa73   :  { %v838_v31 = vadd.f32 %v836_v30, %v9053_v32 }
 0xa75   :  { %8629 = vtanh.f32 %v838_v31 }
 0xa76   :  { %8631 = vpow2.f32 %v6701_v46 }
 0xa79   :  { %v1045_v37 = vpop.permute.xlu0 %1044 }
 0xa7a   :  { %v1047_v41 = vmul.f32 %v1045_v37, %v1042_v34 }
 0xa7c   :  { %v9195_v42 = vadd.f32 %v1050_v40, %v1047_v41 }
 0xa7e   :  { %v1114_v43 = vrot.slane %v9195_v42, 3  ;;  %v1289_v46 = vrot.slane %v9195_v42, 7 }
 0xa7f   :  { %v8630_v44 = vpop.eup %8629 }
 0xa80   :  { %1115 = vrot.lane.b32.xlu0 %v1114_v43, %s8883_s2  ;;  %842 = vrot.lane.b32.xlu1 %v8630_v44, %s8883_s2  ;;  %v8632_v48 = vpop.eup %8631 }
 0xa81   :  { %v827_v49 = vadd.f32 1.0, %v8632_v48 }
 0xa83   :  { %8633 = vrcp.f32 %v827_v49 }
 0xa8d   :  { %v8634_v50 = vpop.eup %8633 }
 0xa8e   :  { %v840_v52 = vsub.f32 1.0, %v8634_v50  ;;  %v848_v59 = vmul.f32 %v8634_v50, %v846_v53 }
 0xaf2   :  { %v1116_v55 = vpop.permute.xlu0 %1115  ;;  %v843_v58 = vpop.permute.xlu1 %842 }
 0xaf3   :  { %v845_v61 = vmul.f32 %v843_v58, %v840_v52  ;;  %7293 = vmatmul.mubr.msk.f32.vlgmr.msra.gmra.mrb[8].mxu1 %vm76_vm1, %v1116_v55  ;;  %v1103_v52 = vsub.s32 4, %v9038_v22 }
 0xaf4   :  { %8133 = vmatpush3.bf16.msra.mxu1 %v8997_v9  ;;  %7314 = vmatprep.mubr.msk.f32.mxu1 %vm8880_vm0, %v8881_v4 }
 0xaf5   :  { %v9206_v62 = vadd.f32 %v848_v59, %v845_v61  ;;  %8134 = vmatprep.subr.bf16.mxu1 %v8879_v0 }
 0xaf7   :  { %v949_v63 = vrot.slane %v9206_v62, 5 }
 0xaf8   :  { %8136 = vmatpush3.bf16.msra.mxu1 %v9018_v18 }
 0xaf9   :  { %7282 = vmatmul.mubr.msk.f32.vlgmr.msra.gmra.mrb[8].mxu0 %vm76_vm1, %v949_v63  ;;  %8143 = vmatprep.subr.bf16.mxu1 %v8879_v0 }
 0xafa   :  { %8127 = vmatpush3.bf16.msra.mxu0 %v9071_v47  ;;  %7303 = vmatprep.mubr.msk.f32.mxu0 %vm8880_vm0, %v8881_v4 }
 0xafb   :  { %8128 = vmatprep.subr.bf16.mxu0 %v8879_v0 }
 0xafe   :  { %8130 = vmatpush3.bf16.msra.mxu0 %v9082_v51 }
 0xaff   :  { %8137 = vmatprep.subr.bf16.mxu0 %v8879_v0 }
 0xbc6   :  { %v1185_v1 = vpop.f32.mrb[8].mxu1 }
 0xbc7   :  { %v1186_v2 = vadd.f32 %v1185_v1, %v9049_v25  ;;  %v7294_v3 = vpop.f32.mrb[9].mxu1 }
 0xbc9   :  { %v1264_v5 = vrot.slane %v1186_v2, 4  ;;  %v1087_v2 = vrot.slane %v9206_v62, 1 }
 0xbcb   :  { %1273 = vrot.lane.b32.xlu0 %v1264_v5, %s8882_s25  ;;  %v1266_v11 = vadd.f32 %v1264_v5, %v9060_v35 }
 0xbcc   :  { %v1018_v6 = vpop.f32.mrb[8].mxu0 }
 0xbcd   :  { %v1019_v7 = vadd.f32 %v1018_v6, %v9107_v60  ;;  %v7283_v8 = vpop.f32.mrb[9].mxu0  ;;  %v6709_v12 = vmul.f32 -1.442695, %v1266_v11 }
 0xbcf   :  { %v1053_v10 = vrot.slane %v1019_v7, 4  ;;  %8635 = vpow2.f32 %v6709_v12 }
 0xbd1   :  { %1071 = vrot.lane.b32.xlu0 %v1053_v10, %s8884_s30  ;;  %1054 = vrot.lane.b32.xlu1 %v1053_v10, %s8883_s2 }
 0xbd9   :  { %v8636_v13 = vpop.eup %8635 }
 0xbda   :  { %v1270_v14 = vadd.f32 1.0, %v8636_v13 }
 0xbdc   :  { %8637 = vrcp.f32 %v1270_v14 }
 0xbe6   :  { %v8638_v15 = vpop.eup %8637 }
 0xbe7   :  { %v1283_v45 = vsub.f32 1.0, %v8638_v15  ;;  %v1291_v49 = vmul.f32 %v8638_v15, %v1289_v46 }
 0xc3d   :  { %v1274_v16 = vpop.permute.xlu0 %1273 }
 0xc3e   :  { %v1276_v17 = vmul.f32 %v8638_v15, %v1274_v16 }
 0xc40   :  { %1278 = vrot.lane.b32.xlu1 %v1276_v17, %s8882_s25 }
 0xc43   :  { %v1055_v19 = vpop.permute.xlu1 %1054  ;;  %v1072_v29 = vpop.permute.xlu0 %1071 }
 0xc44   :  { %v1057_v20 = vadd.f32 %v1055_v19, %v9060_v35  ;;  %v1058_v43 = vadd.f32 %v1055_v19, %v9053_v32 }
 0xc46   :  { %v6705_v24 = vmul.f32 -1.442695, %v1057_v20  ;;  %v6706_v44 = vmul.f32 -1.442695, %v1058_v43 }
 0xc48   :  { %8639 = vpow2.f32 %v6705_v24 }
 0xc52   :  { %v8640_v26 = vpop.eup %8639 }
 0xc53   :  { %v1062_v27 = vadd.f32 1.0, %v8640_v26 }
 0xc55   :  { %8641 = vrcp.f32 %v1062_v27 }
 0xc5f   :  { %v8642_v28 = vpop.eup %8641 }
 0xc60   :  { %v1074_v30 = vmul.f32 %v8642_v28, %v1072_v29 }
 0xc62   :  { %1076 = vrot.lane.b32.xlu0 %v1074_v30, %s8882_s25 }
 0xcb2   :  { %v1279_v31 = vpop.permute.xlu1 %1278 }
 0xcb3   :  { %v1281_v34 = vadd.f32 %v1279_v31, %v9060_v35 }
 0xcb5   :  { %8643 = vtanh.f32 %v1281_v34 }
 0xcbf   :  { %v8644_v36 = vpop.eup %8643 }
 0xcc0   :  { %1285 = vrot.lane.b32.xlu1 %v8644_v36, %s8883_s2 }
 0xcd4   :  { %v1077_v37 = vpop.permute.xlu0 %1076 }
 0xcd5   :  { %v1079_v40 = vadd.f32 %v1077_v37, %v9053_v32 }
 0xcd7   :  { %8645 = vtanh.f32 %v1079_v40 }
 0xcd8   :  { %8647 = vpow2.f32 %v6706_v44 }
 0xce1   :  { %v8646_v41 = vpop.eup %8645 }
 0xce2   :  { %1083 = vrot.lane.b32.xlu0 %v8646_v41, %s8883_s2  ;;  %v8648_v59 = vpop.eup %8647 }
 0xce3   :  { %v1068_v61 = vadd.f32 1.0, %v8648_v59 }
 0xce5   :  { %8649 = vrcp.f32 %v1068_v61 }
 0xcef   :  { %v8650_v63 = vpop.eup %8649 }
 0xcf0   :  { %v1081_v1 = vsub.f32 1.0, %v8650_v63  ;;  %v1089_v5 = vmul.f32 %v8650_v63, %v1087_v2 }
 0xd32   :  { %v1286_v48 = vpop.permute.xlu1 %1285 }
 0xd33   :  { %v1288_v50 = vmul.f32 %v1286_v48, %v1283_v45 }
 0xd35   :  { %v9235_v53 = vadd.f32 %v1291_v49, %v1288_v50 }
 0xd37   :  { %v1349_v55 = vrot.slane %v9235_v53, 4  ;;  %v9241_v58 = vrot.slane %v9235_v53, %v1103_v52 }
 0xd39   :  { %1350 = vrot.lane.b32.xlu1 %v1349_v55, %s8883_s2 }
 0xd54   :  { %v1084_v3 = vpop.permute.xlu0 %1083 }
 0xd55   :  { %v1086_v6 = vmul.f32 %v1084_v3, %v1081_v1  ;;  %v1524_v3 = vrot.slane %v9235_v53, 7 }
 0xd57   :  { %v9245_v7 = vadd.f32 %v1089_v5, %v1086_v6 }
 0xd59   :  { %v1190_v8 = vrot.slane %v9245_v7, 4 }
 0xd5b   :  { %7304 = vmatmul.mubr.msk.f32.vlgmr.msra.gmra.mrb[10].mxu0 %vm76_vm1, %v1190_v8 }
 0xd5c   :  { %8139 = vmatpush3.bf16.msra.mxu0 %v9071_v47  ;;  %7325 = vmatprep.mubr.msk.f32.mxu0 %vm8880_vm0, %v8881_v4 }
 0xd5d   :  { %8140 = vmatprep.subr.bf16.mxu0 %v8879_v0 }
 0xd60   :  { %8142 = vmatpush3.bf16.msra.mxu0 %v9082_v51 }
 0xd61   :  { %8149 = vmatprep.subr.bf16.mxu0 %v8879_v0 }
 0xdab   :  { %v1351_v10 = vpop.permute.xlu1 %1350 }
 0xdac   :  { %7315 = vmatmul.mubr.msk.f32.vlgmr.msra.gmra.mrb[10].mxu1 %vm76_vm1, %v1351_v10 }
 0xdad   :  { %8145 = vmatpush3.bf16.msra.mxu1 %v8997_v9  ;;  %7336 = vmatprep.mubr.msk.f32.mxu1 %vm8880_vm0, %v8881_v4 }
 0xdae   :  { %8146 = vmatprep.subr.bf16.mxu1 %v8879_v0 }
 0xdb1   :  { %8148 = vmatpush3.bf16.msra.mxu1 %v9018_v18 }
 0xdb2   :  { %8155 = vmatprep.subr.bf16.mxu1 %v8879_v0 }
 0xe2e   :  { %v1259_v11 = vpop.f32.mrb[10].mxu0 }
 0xe2f   :  { %v1260_v12 = vadd.f32 %v1259_v11, %v9107_v60  ;;  %v7305_v13 = vpop.f32.mrb[11].mxu0 }
 0xe30   :  { %v1328_v13 = vrot.slane %v9245_v7, 1 }
 0xe31   :  { %v1294_v14 = vrot.slane %v1260_v12, 5 }
 0xe33   :  { %1295 = vrot.lane.b32.xlu1 %v1294_v14, %s8883_s2 }
 0xe7f   :  { %v1420_v15 = vpop.f32.mrb[10].mxu1 }
 0xe80   :  { %v1421_v16 = vadd.f32 %v1420_v15, %v9049_v25  ;;  %v7316_v17 = vpop.f32.mrb[11].mxu1 }
 0xe82   :  { %v1499_v19 = vrot.slane %v1421_v16, 3 }
 0xe84   :  { %1508 = vrot.lane.b32.xlu0 %v1499_v19, %s8882_s25  ;;  %v1501_v20 = vadd.f32 %v1499_v19, %v9060_v35 }
 0xe86   :  { %v6714_v26 = vmul.f32 -1.442695, %v1501_v20 }
 0xe88   :  { %1312 = vrot.lane.b32.xlu0 %v1294_v14, %s8884_s30  ;;  %8651 = vpow2.f32 %v6714_v26 }
 0xe92   :  { %v8652_v29 = vpop.eup %8651 }
 0xe93   :  { %v1505_v30 = vadd.f32 1.0, %v8652_v29 }
 0xea5   :  { %v1296_v24 = vpop.permute.xlu1 %1295 }
 0xea6   :  { %v1298_v27 = vadd.f32 %v1296_v24, %v9060_v35  ;;  %v1299_v59 = vadd.f32 %v1296_v24, %v9053_v32 }
 0xea8   :  { %v6710_v28 = vmul.f32 -1.442695, %v1298_v27  ;;  %v6711_v61 = vmul.f32 -1.442695, %v1299_v59 }
 0xeaa   :  { %8653 = vpow2.f32 %v6710_v28 }
 0xeab   :  { %8655 = vrcp.f32 %v1505_v30 }
 0xeb4   :  { %v8654_v31 = vpop.eup %8653 }
 0xeb5   :  { %v1303_v34 = vadd.f32 1.0, %v8654_v31  ;;  %v8656_v36 = vpop.eup %8655 }
 0xeb6   :  { %v1518_v2 = vsub.f32 1.0, %v8656_v36  ;;  %v1526_v8 = vmul.f32 %v8656_v36, %v1524_v3 }
 0xeb7   :  { %8657 = vrcp.f32 %v1303_v34 }
 0xec1   :  { %v8658_v41 = vpop.eup %8657 }
 0xef6   :  { %v1509_v37 = vpop.permute.xlu0 %1508 }
 0xef7   :  { %v1511_v40 = vmul.f32 %v8656_v36, %v1509_v37 }
 0xef9   :  { %1513 = vrot.lane.b32.xlu1 %v1511_v40, %s8882_s25 }
 0xefa   :  { %v1313_v43 = vpop.permute.xlu0 %1312 }
 0xefb   :  { %v1315_v44 = vmul.f32 %v8658_v41, %v1313_v43 }
 0xefd   :  { %1317 = vrot.lane.b32.xlu0 %v1315_v44, %s8882_s25 }
 0xf6b   :  { %v1514_v45 = vpop.permute.xlu1 %1513 }
 0xf6c   :  { %v1516_v46 = vadd.f32 %v1514_v45, %v9060_v35 }
 0xf6e   :  { %8659 = vtanh.f32 %v1516_v46 }
 0xf6f   :  { %v1318_v48 = vpop.permute.xlu0 %1317 }
 0xf70   :  { %v1320_v49 = vadd.f32 %v1318_v48, %v9053_v32 }
 0xf72   :  { %8661 = vtanh.f32 %v1320_v49 }
 0xf73   :  { %8663 = vpow2.f32 %v6711_v61 }
 0xf78   :  { %v8660_v50 = vpop.eup %8659 }
 0xf79   :  { %1520 = vrot.lane.b32.xlu1 %v8660_v50, %s8883_s2 }
 0xf7c   :  { %v8662_v55 = vpop.eup %8661 }
 0xf7d   :  { %1324 = vrot.lane.b32.xlu0 %v8662_v55, %s8883_s2  ;;  %v8664_v63 = vpop.eup %8663 }
 0xf7e   :  { %v1309_v1 = vadd.f32 1.0, %v8664_v63 }
 0xf80   :  { %8665 = vrcp.f32 %v1309_v1 }
 0xf8a   :  { %v8666_v5 = vpop.eup %8665 }
 0xf8b   :  { %v1322_v12 = vsub.f32 1.0, %v8666_v5  ;;  %v1330_v15 = vmul.f32 %v8666_v5, %v1328_v13 }
 0xfeb   :  { %v1521_v6 = vpop.permute.xlu1 %1520 }
 0xfec   :  { %v1523_v10 = vmul.f32 %v1521_v6, %v1518_v2 }
 0xfee   :  { %v9277_v11 = vadd.f32 %v1526_v8, %v1523_v10 }
 0xfef   :  { %v1325_v14 = vpop.permute.xlu0 %1324 }
 0xff0   :  { %v1327_v16 = vmul.f32 %v1325_v14, %v1322_v12  ;;  %v1584_v17 = vrot.slane %v9277_v11, 5 }
 0xff2   :  { %v9281_v19 = vadd.f32 %v1330_v15, %v1327_v16  ;;  %1585 = vrot.lane.b32.xlu1 %v1584_v17, %s8883_s2 }
 0xff4   :  { %v1425_v53 = vrot.slane %v9281_v19, 3  ;;  %v1563_v14 = vrot.slane %v9281_v19, 1 }
 0xff6   :  { %7326 = vmatmul.mubr.msk.f32.vlgmr.msra.gmra.mrb[12].mxu0 %vm76_vm1, %v1425_v53 }
 0xff7   :  { %8151 = vmatpush3.bf16.msra.mxu0 %v9071_v47  ;;  %7347 = vmatprep.mubr.msk.f32.mxu0 %vm8880_vm0, %v8881_v4 }
 0xff8   :  { %8152 = vmatprep.subr.bf16.mxu0 %v8879_v0 }
 0xffb   :  { %8154 = vmatpush3.bf16.msra.mxu0 %v9082_v51 }
 0xffc   :  { %8161 = vmatprep.subr.bf16.mxu0 %v8879_v0 }
0x1064   :  { %v1586_v20 = vpop.permute.xlu1 %1585 }
0x1065   :  { %7337 = vmatmul.mubr.msk.f32.vlgmr.msra.gmra.mrb[12].mxu1 %vm76_vm1, %v1586_v20 }
0x1066   :  { %8157 = vmatpush3.bf16.msra.mxu1 %v8997_v9  ;;  %7358 = vmatprep.mubr.msk.f32.mxu1 %vm8880_vm0, %v8881_v4 }
0x1067   :  { %8158 = vmatprep.subr.bf16.mxu1 %v8879_v0 }
0x106a   :  { %8160 = vmatpush3.bf16.msra.mxu1 %v9018_v18 }
0x106b   :  { %8167 = vmatprep.subr.bf16.mxu1 %v8879_v0 }
0x10c9   :  { %v1494_v24 = vpop.f32.mrb[12].mxu0 }
0x10ca   :  { %v1495_v26 = vadd.f32 %v1494_v24, %v9107_v60  ;;  %v7327_v27 = vpop.f32.mrb[13].mxu0 }
0x10cc   :  { %v1529_v28 = vrot.slane %v1495_v26, 6  ;;  %v1759_v26 = vrot.slane %v9277_v11, 7 }
0x10ce   :  { %1547 = vrot.lane.b32.xlu1 %v1529_v28, %s8884_s30  ;;  %1530 = vrot.lane.b32.xlu0 %v1529_v28, %s8883_s2 }
0x1138   :  { %v1655_v29 = vpop.f32.mrb[12].mxu1 }
0x1139   :  { %v1656_v9 = vadd.f32 %v1655_v29, %v9049_v25  ;;  %v7338_v30 = vpop.f32.mrb[13].mxu1 }
0x113b   :  { %v1734_v31 = vrot.slane %v1656_v9, 2 }
0x113d   :  { %1743 = vrot.lane.b32.xlu0 %v1734_v31, %s8882_s25  ;;  %v1736_v45 = vadd.f32 %v1734_v31, %v9060_v35 }
0x113f   :  { %v6719_v25 = vmul.f32 -1.442695, %v1736_v45 }
0x1140   :  { %v1531_v34 = vpop.permute.xlu0 %1530  ;;  %v1548_v43 = vpop.permute.xlu1 %1547 }
0x1141   :  { %v1533_v18 = vadd.f32 %v1531_v34, %v9060_v35  ;;  %v1534_v3 = vadd.f32 %v1531_v34, %v9053_v32 }
0x1143   :  { %v6715_v36 = vmul.f32 -1.442695, %v1533_v18  ;;  %v6716_v5 = vmul.f32 -1.442695, %v1534_v3 }
0x1145   :  { %8667 = vpow2.f32 %v6715_v36 }
0x114f   :  { %v8668_v37 = vpop.eup %8667 }
0x1150   :  { %v1538_v40 = vadd.f32 1.0, %v8668_v37 }
0x1152   :  { %8669 = vrcp.f32 %v1538_v40 }
0x1153   :  { %8671 = vpow2.f32 %v6719_v25 }
0x115c   :  { %v8670_v41 = vpop.eup %8669 }
0x115d   :  { %v1550_v44 = vmul.f32 %v8670_v41, %v1548_v43  ;;  %v8672_v46 = vpop.eup %8671 }
0x115e   :  { %v1740_v48 = vadd.f32 1.0, %v8672_v46  ;;  %v8869_v46 = vld [vmem:[%s10504_s5] sm:$0x1] }
0x115f   :  { %1552 = vrot.lane.b32.xlu1 %v1550_v44, %s8882_s25 }
0x1160   :  { %8673 = vrcp.f32 %v1740_v48 }
0x116a   :  { %v8674_v49 = vpop.eup %8673 }
0x116b   :  { %v1753_v24 = vsub.f32 1.0, %v8674_v49  ;;  %v1761_v28 = vmul.f32 %v8674_v49, %v1759_v26 }
0x11af   :  { %v1744_v50 = vpop.permute.xlu0 %1743 }
0x11b0   :  { %v1746_v55 = vmul.f32 %v8674_v49, %v1744_v50 }
0x11b2   :  { %1748 = vrot.lane.b32.xlu0 %v1746_v55, %s8882_s25 }
0x11d1   :  { %v1553_v59 = vpop.permute.xlu1 %1552 }
0x11d2   :  { %v1555_v61 = vadd.f32 %v1553_v59, %v9053_v32 }
0x11d4   :  { %8675 = vtanh.f32 %v1555_v61 }
0x11de   :  { %v8676_v63 = vpop.eup %8675 }
0x11df   :  { %1559 = vrot.lane.b32.xlu1 %v8676_v63, %s8883_s2 }
0x1224   :  { %v1749_v1 = vpop.permute.xlu0 %1748 }
0x1225   :  { %v1751_v2 = vadd.f32 %v1749_v1, %v9060_v35 }
0x1227   :  { %8677 = vtanh.f32 %v1751_v2 }
0x1228   :  { %8679 = vpow2.f32 %v6716_v5 }
0x1231   :  { %v8678_v6 = vpop.eup %8677 }
0x1232   :  { %1755 = vrot.lane.b32.xlu0 %v8678_v6, %s8883_s2  ;;  %v8680_v8 = vpop.eup %8679 }
0x1233   :  { %v1544_v10 = vadd.f32 1.0, %v8680_v8 }
0x1235   :  { %8681 = vrcp.f32 %v1544_v10 }
0x123f   :  { %v8682_v12 = vpop.eup %8681 }
0x1240   :  { %v1557_v13 = vsub.f32 1.0, %v8682_v12  ;;  %v1565_v16 = vmul.f32 %v8682_v12, %v1563_v14 }
0x1251   :  { %v1560_v15 = vpop.permute.xlu1 %1559 }
0x1252   :  { %v1562_v17 = vmul.f32 %v1560_v15, %v1557_v13 }
0x1254   :  { %v9314_v53 = vadd.f32 %v1565_v16, %v1562_v17 }
0x1256   :  { %v1660_v20 = vrot.slane %v9314_v53, 2  ;;  %v1798_v17 = vrot.slane %v9314_v53, 1 }
0x1258   :  { %7348 = vmatmul.mubr.msk.f32.vlgmr.msra.gmra.mrb[14].mxu0 %vm76_vm1, %v1660_v20 }
0x1259   :  { %8163 = vmatpush3.bf16.msra.mxu0 %v9071_v47  ;;  %7369 = vmatprep.mubr.msk.f32.mxu0 %vm8880_vm0, %v8881_v4 }
0x125a   :  { %8164 = vmatprep.subr.bf16.mxu0 %v8879_v0 }
0x125d   :  { %8166 = vmatpush3.bf16.msra.mxu0 %v9082_v51 }
0x125e   :  { %8173 = vmatprep.subr.bf16.mxu0 %v8879_v0 }
0x12a4   :  { %v1756_v27 = vpop.permute.xlu0 %1755 }
0x12a5   :  { %v1758_v29 = vmul.f32 %v1756_v27, %v1753_v24 }
0x12a7   :  { %v9325_v9 = vadd.f32 %v1761_v28, %v1758_v29 }
0x12a9   :  { %v1819_v30 = vrot.slane %v9325_v9, 6 }
0x12ab   :  { %1820 = vrot.lane.b32.xlu1 %v1819_v30, %s8883_s2 }
0x131d   :  { %v1821_v47 = vpop.permute.xlu1 %1820 }
0x131e   :  { %7359 = vmatmul.mubr.msk.f32.vlgmr.msra.gmra.mrb[14].mxu1 %vm76_vm1, %v1821_v47 }
0x131f   :  { %7380 = vmatprep.mubr.msk.f32.mxu1 %vm8880_vm0, %v8881_v4 }
0x132b   :  { %v1729_v51 = vpop.f32.mrb[14].mxu0 }
0x132c   :  { %v1730_v31 = vadd.f32 %v1729_v51, %v9107_v60  ;;  %v7349_v34 = vpop.f32.mrb[15].mxu0  ;;  %v2054_v51 = vld [vmem:[%s10507_s8] sm:$0xff] }
0x132d   :  { %v2132_v34 = vld [vmem:[%s10508_s9] sm:$0xff] }
0x132e   :  { %v1764_v18 = vrot.slane %v1730_v31, 7  ;;  %v2055_v31 = vld [vmem:[%s10507_s8 + $0x8] sm:$0xff] }
0x1330   :  { %1782 = vrot.lane.b32.xlu1 %v1764_v18, %s8884_s30  ;;  %1765 = vrot.lane.b32.xlu0 %v1764_v18, %s8883_s2  ;;  %v9366_v18 = vpack.c.bf16 %v2055_v31, %v2054_v51  ;;  %v621_v51 = vsub.s32 6, %v9038_v22 }
0x1332   :  { %8169 = vmatpush3.bf16.msra.mxu1 %v9366_v18 }
0x1333   :  { %8170 = vmatprep.subr.bf16.mxu1 %v8879_v0 }
0x13a2   :  { %v1766_v36 = vpop.permute.xlu0 %1765  ;;  %v1783_v45 = vpop.permute.xlu1 %1782 }
0x13a3   :  { %v1768_v37 = vadd.f32 %v1766_v36, %v9060_v35  ;;  %v1769_v10 = vadd.f32 %v1766_v36, %v9053_v32  ;;  %v2133_v36 = vld [vmem:[%s10508_s9 + $0x8] sm:$0xff] }
0x13a5   :  { %v6720_v40 = vmul.f32 -1.442695, %v1768_v37  ;;  %v6721_v12 = vmul.f32 -1.442695, %v1769_v10  ;;  %v2056_v37 = vld [vmem:[%s10507_s8 + $0x10] sm:$0xff] }
0x13a7   :  { %8683 = vpow2.f32 %v6720_v40  ;;  %v2057_v40 = vld [vmem:[%s10507_s8 + $0x18] sm:$0xff] }
0x13b1   :  { %v8684_v41 = vpop.eup %8683 }
0x13b2   :  { %v1773_v43 = vadd.f32 1.0, %v8684_v41  ;;  %v9377_v41 = vpack.c.bf16 %v2133_v36, %v2132_v34  ;;  %v622_v34 = vrot.slane %v9169_v57, %v621_v51  ;;  %v1104_v36 = vrot.slane %v9245_v7, %v1103_v52 }
0x13b4   :  { %8685 = vrcp.f32 %v1773_v43  ;;  %v2134_v43 = vld [vmem:[%s10508_s9 + $0x10] sm:$0xff] }
0x13be   :  { %v8686_v44 = vpop.eup %8685 }
0x13bf   :  { %v1785_v25 = vmul.f32 %v8686_v44, %v1783_v45  ;;  %v2135_v44 = vld [vmem:[%s10508_s9 + $0x18] sm:$0xff]  ;;  %v9386_v45 = vpack.c.bf16 %v2057_v40, %v2056_v37  ;;  %v853_v37 = vsub.s32 2, %v9038_v22 }
0x13c1   :  { %1787 = vrot.lane.b32.xlu1 %v1785_v25, %s8882_s25  ;;  %v9390_v25 = vpack.c.bf16 %v2135_v44, %v2134_v43  ;;  %8172 = vmatpush3.bf16.msra.mxu1 %v9386_v45  ;;  %v1576_v40 = vrot.slane %v9314_v53, %v853_v37  ;;  %v9444_v43 = vld [vmem:[%s10511_s10] sm:$0x1] }
0x13c2   :  { %8179 = vmatprep.subr.bf16.mxu1 %v8879_v0 }
0x13f1   :  { %v1890_v60 = vpop.f32.mrb[14].mxu1 }
0x13f2   :  { %v1891_v48 = vadd.f32 %v8869_v46, %v1890_v60  ;;  %v7360_v49 = vpop.f32.mrb[15].mxu1  ;;  %v2053_v60 = vld [vmem:[%s10509_s1 + $0x1] sm:$0x1] }
0x13f3   :  { %7381 = vmatmul.mubr.msk.f32.vlgmr.msra.gmra.mrb[16].mxu1 %vm76_vm1, %v2053_v60 }
0x13f4   :  { %v1969_v50 = vrot.slane %v1891_v48, 1  ;;  %7410 = vmatprep.mubr.msk.f32.mxu1 %vm8880_vm0, %v8881_v4  ;;  %v1994_v48 = vrot.slane %v9325_v9, 7 }
0x13f6   :  { %1978 = vrot.lane.b32.xlu0 %v1969_v50, %s8882_s25  ;;  %v1971_v63 = vadd.f32 %v1969_v50, %v9060_v35 }
0x13f8   :  { %v6724_v1 = vmul.f32 -1.442695, %v1971_v63 }
0x1433   :  { %v1788_v55 = vpop.permute.xlu1 %1787 }
0x1434   :  { %v1790_v59 = vadd.f32 %v1788_v55, %v9053_v32 }
0x1436   :  { %8687 = vtanh.f32 %v1790_v59 }
0x1437   :  { %8689 = vpow2.f32 %v6724_v1  ;;  %v8870_v1 = vld [vmem:[%s10506_s7] sm:$0x1] }
0x1440   :  { %v8688_v61 = vpop.eup %8687 }
0x1441   :  { %1794 = vrot.lane.b32.xlu1 %v8688_v61, %s8883_s2  ;;  %v8690_v2 = vpop.eup %8689 }
0x1442   :  { %v1975_v3 = vadd.f32 1.0, %v8690_v2 }
0x1444   :  { %8691 = vrcp.f32 %v1975_v3 }
0x1445   :  { %8693 = vpow2.f32 %v6721_v12 }
0x144e   :  { %v8692_v5 = vpop.eup %8691 }
0x144f   :  { %v8694_v13 = vpop.eup %8693  ;;  %v1988_v46 = vsub.f32 1.0, %v8692_v5  ;;  %v1996_v50 = vmul.f32 %v8692_v5, %v1994_v48 }
0x1450   :  { %v1779_v14 = vadd.f32 1.0, %v8694_v13 }
0x1452   :  { %8695 = vrcp.f32 %v1779_v14 }
0x145c   :  { %v8696_v15 = vpop.eup %8695 }
0x145d   :  { %v1792_v16 = vsub.f32 1.0, %v8696_v15  ;;  %v1800_v24 = vmul.f32 %v8696_v15, %v1798_v17 }
0x1468   :  { %v1979_v6 = vpop.permute.xlu0 %1978 }
0x1469   :  { %v1981_v8 = vmul.f32 %v8692_v5, %v1979_v6 }
0x146b   :  { %1983 = vrot.lane.b32.xlu0 %v1981_v8, %s8882_s25 }
0x14b3   :  { %v1795_v20 = vpop.permute.xlu1 %1794 }
0x14b4   :  { %v1797_v26 = vmul.f32 %v1795_v20, %v1792_v16 }
0x14b6   :  { %v9347_v27 = vadd.f32 %v1800_v24, %v1797_v26 }
0x14b8   :  { %v1895_v28 = vrot.slane %v9347_v27, 1 }
0x14ba   :  { %7370 = vmatmul.mubr.msk.f32.vlgmr.msra.gmra.mrb[16].mxu0 %vm76_vm1, %v1895_v28 }
0x14bb   :  { %7391 = vmatprep.mubr.msk.f32.mxu0 %vm8880_vm0, %v8881_v4  ;;  %8175 = vmatpush3.bf16.msra.mxu0 %v9377_v41 }
0x14bc   :  { %8176 = vmatprep.subr.bf16.mxu0 %v8879_v0 }
0x14bf   :  { %8178 = vmatpush3.bf16.msra.mxu0 %v9390_v25 }
0x14c0   :  { %8191 = vmatprep.subr.bf16.mxu0 %v8879_v0 }
0x14c6   :  { %v2128_v17 = vpop.f32.mrb[16].mxu1 }
0x14c7   :  { %v7382_v20 = vpop.f32.mrb[17].mxu1  ;;  %v2129_v57 = vadd.f32 %v2128_v17, %v9444_v43  ;;  %v373_v17 = vrot.slane %v9093_v56, %v9057_v33 }
0x14dd   :  { %v1984_v29 = vpop.permute.xlu0 %1983 }
0x14de   :  { %v1986_v30 = vadd.f32 %v1984_v29, %v9060_v35 }
0x14e0   :  { %8697 = vtanh.f32 %v1986_v30 }
0x14ea   :  { %v8698_v47 = vpop.eup %8697 }
0x14eb   :  { %1990 = vrot.lane.b32.xlu0 %v8698_v47, %s8883_s2 }
0x155d   :  { %v1991_v49 = vpop.permute.xlu0 %1990 }
0x155e   :  { %v1993_v55 = vmul.f32 %v1991_v49, %v1988_v46 }
0x1560   :  { %v9404_v59 = vadd.f32 %v1996_v50, %v1993_v55 }
0x1562   :  { %v2138_v61 = vrot.slane %v9404_v59, 7 }
0x1564   :  { %2139 = vrot.lane.b32.xlu1 %v2138_v61, %s8883_s2 }
0x158d   :  { %v1964_v63 = vpop.f32.mrb[16].mxu0 }
0x158e   :  { %v1965_v2 = vadd.f32 %v8870_v1, %v1964_v63  ;;  %v7371_v3 = vpop.f32.mrb[17].mxu0  ;;  %v381_v63 = vsub.s32 7, %v9038_v22 }
0x1590   :  { %2016 = vrot.lane.b32.xlu1 %v1965_v2, %s8884_s30  ;;  %1999 = vrot.lane.b32.xlu0 %v1965_v2, %s8883_s2  ;;  %v862_v2 = vsub.s32 5, %v9038_v22 }
0x15d6   :  { %v2140_v5 = vpop.permute.xlu1 %2139 }
0x15d7   :  { %7392 = vmatmul.mubr.msk.f32.vlgmr.msra.gmra.mrb[18].mxu0 %vm76_vm1, %v2140_v5  ;;  %v863_v5 = vrot.slane %v9206_v62, %v862_v2 }
0x15d8   :  { %7421 = vmatprep.mubr.msk.f32.mxu0 %vm8880_vm0, %v8881_v4 }
0x1602   :  { %v2000_v6 = vpop.permute.xlu0 %1999  ;;  %v2017_v15 = vpop.permute.xlu1 %2016 }
0x1603   :  { %v2002_v8 = vadd.f32 %v2000_v6, %v9060_v35  ;;  %v9424_v35 = vld [vmem:[%s10510_s11] sm:$0x1]  ;;  %v2003_v46 = vadd.f32 %v2000_v6, %v9053_v32 }
0x1605   :  { %v6725_v10 = vmul.f32 -1.442695, %v2002_v8  ;;  %v6726_v52 = vmul.f32 -1.442695, %v2003_v46 }
0x1607   :  { %8699 = vpow2.f32 %v6725_v10  ;;  %v1094_v10 = vsub.s32 3, %v9038_v22  ;;  %v2284_v22 = vld [vmem:[%s10512_s12 + $0x8] sm:$0xff] }
0x1611   :  { %v8700_v12 = vpop.eup %8699 }
0x1612   :  { %v2007_v13 = vadd.f32 1.0, %v8700_v12 }
0x1614   :  { %8701 = vrcp.f32 %v2007_v13  ;;  %v1341_v13 = vrot.slane %v9281_v19, %v1094_v10 }
0x161e   :  { %v8702_v14 = vpop.eup %8701 }
0x161f   :  { %v2019_v16 = vmul.f32 %v8702_v14, %v2017_v15  ;;  %v1811_v15 = vrot.slane %v9347_v27, %v9041_v23  ;;  %v377_v27 = vsel %vm369_vm2, %v373_v17, 0.0 }
0x1621   :  { %2021 = vrot.lane.b32.xlu0 %v2019_v16, %s8882_s25 }
0x1693   :  { %v2022_v24 = vpop.permute.xlu0 %2021 }
0x1694   :  { %v2024_v26 = vadd.f32 %v2022_v24, %v9053_v32  ;;  %v382_v32 = vrot.slane %v9134_v54, %v381_v63  ;;  %v613_v24 = vrot.slane %v9122_v39, %v9041_v23 }
0x1696   :  { %8703 = vtanh.f32 %v2024_v26 }
0x16a0   :  { %v8704_v31 = vpop.eup %8703 }
0x16aa   :  { %v2209_v29 = vpop.f32.mrb[18].mxu0 }
0x16ab   :  { %v2210_v30 = vadd.f32 %v2209_v29, %v9424_v35  ;;  %v7393_v47 = vpop.f32.mrb[19].mxu0 }
0x16ad   :  { %2221 = vrot.lane.b32.xlu1 %v2210_v30, %s8882_s25  ;;  %v2213_v44 = vadd.f32 %v2210_v30, %v2129_v57 }
0x16af   :  { %v6729_v60 = vmul.f32 -1.442695, %v2213_v44  ;;  %v1095_v44 = vrot.slane %v9195_v42, %v1094_v10 }
0x16b1   :  { %2028 = vrot.lane.b32.xlu1 %v8704_v31, %s8883_s2  ;;  %8705 = vpow2.f32 %v6729_v60  ;;  %v854_v31 = vrot.slane %v9158_v38, %v853_v37 }
0x16b2   :  { %8707 = vpow2.f32 %v6726_v52 }
0x16b5   :  { %624 = vrot.lane.b32.xlu1 %v622_v34, %s8884_s30 }
0x16b9   :  { %1106 = vrot.lane.b32.xlu1 %v1104_v36, %s8884_s30 }
0x16bb   :  { %v8706_v7 = vpop.eup %8705 }
0x16bc   :  { %v2217_v48 = vadd.f32 1.0, %v8706_v7  ;;  %v8708_v53 = vpop.eup %8707 }
0x16bd   :  { %1578 = vrot.lane.b32.xlu1 %v1576_v40, %s8884_s30  ;;  %v2013_v49 = vadd.f32 1.0, %v8708_v53 }
0x16be   :  { %8709 = vrcp.f32 %v2217_v48 }
0x16bf   :  { %8711 = vrcp.f32 %v2013_v49 }
0x16c8   :  { %v9448_v50 = vpop.eup %8709 }
0x16c9   :  { %v8712_v3 = vpop.eup %8711 }
0x16ca   :  { %v2026_v8 = vsub.f32 1.0, %v8712_v3  ;;  %v2033_v14 = vmul.f32 %v8712_v3, %v1895_v28 }
0x171f   :  { %v2222_v55 = vpop.permute.xlu1 %2221 }
0x1720   :  { %v2224_v1 = vmul.f32 %v9448_v50, %v2222_v55 }
0x1722   :  { %2226 = vrot.lane.b32.xlu0 %v2224_v1, %s8882_s25  ;;  %v1570_v1 = vrot.slane %v9277_v11, %v862_v2  ;;  %v2038_v2 = vrot.slane %v9404_v59, %v381_v63 }
0x1723   :  { %v2029_v6 = vpop.permute.xlu1 %2028 }
0x1724   :  { %v2031_v12 = vmul.f32 %v2029_v6, %v2026_v8  ;;  %v1805_v8 = vrot.slane %v9325_v9, %v621_v51  ;;  %v2231_v51 = vsub.f32 1.0, %v9448_v50 }
0x1726   :  { %384 = vrot.lane.b32.xlu0 %v382_v32, %s8884_s30  ;;  %v2034_v54 = vadd.f32 %v2033_v14, %v2031_v12 }
0x1727   :  { %v625_v29 = vpop.permute.xlu1 %624 }
0x1728   :  { %v2044_v62 = vrot.slane %v2034_v54, %v9057_v33 }
0x172a   :  { %865 = vrot.lane.b32.xlu0 %v863_v5, %s8884_s30 }
0x172b   :  { %v1107_v60 = vpop.permute.xlu1 %1106 }
0x172e   :  { %1343 = vrot.lane.b32.xlu0 %v1341_v13, %s8884_s30 }
0x172f   :  { %v1579_v3 = vpop.permute.xlu1 %1578 }
0x1732   :  { %1813 = vrot.lane.b32.xlu0 %v1811_v15, %s8884_s30 }
0x1736   :  { %2046 = vrot.lane.b32.xlu0 %v2044_v62, %s8884_s30 }
0x1794   :  { %v2227_v16 = vpop.permute.xlu0 %2226 }
0x1795   :  { %v2229_v19 = vadd.f32 %v2227_v16, %v2129_v57  ;;  %v2238_v16 = vmul.f32 %v9448_v50, %v2138_v61  ;;  %v2283_v50 = vld [vmem:[%s10512_s12] sm:$0xff] }
0x1797   :  { %8713 = vtanh.f32 %v2229_v19 }
0x1798   :  { %v385_v28 = vpop.permute.xlu0 %384 }
0x1799   :  { %v387_v20 = vadd.f32 %v385_v28, %v377_v27 }
0x179b   :  { %v390_v26 = vsel %vm378_vm3, %v387_v20, %v377_v27 }
0x179c   :  { %v614_v56 = vadd.f32 %v613_v24, %v390_v26  ;;  %v866_v36 = vpop.permute.xlu0 %865  ;;  %v2285_v24 = vld [vmem:[%s10512_s12 + $0x10] sm:$0xff] }
0x179e   :  { %v617_v30 = vsel %vm609_vm4, %v614_v56, %v390_v26  ;;  %v9541_v26 = vpack.c.bf16 %v2284_v22, %v2283_v50  ;;  %v2286_v56 = vld [vmem:[%s10512_s12 + $0x18] sm:$0xff] }
0x179f   :  { %v627_v47 = vadd.f32 %v625_v29, %v617_v30  ;;  %v9547_v29 = vpack.c.bf16 %v2286_v56, %v2285_v24 }
0x17a0   :  { %v1344_v53 = vpop.permute.xlu0 %1343  ;;  %8181 = vmatpush3.bf16.msra.mxu1 %v9541_v26 }
0x17a1   :  { %v8714_v34 = vpop.eup %8713  ;;  %v630_v23 = vsel %vm618_vm5, %v627_v47, %v617_v30  ;;  %8182 = vmatprep.subr.bf16.mxu1 %v8879_v0  ;;  %v2287_v30 = vld [vmem:[%s10512_s12 + $0x20] sm:$0xff]  ;;  %v2288_v47 = vld [vmem:[%s10512_s12 + $0x28] sm:$0xff] }
0x17a2   :  { %v855_v39 = vadd.f32 %v854_v31, %v630_v23  ;;  %2233 = vrot.lane.b32.xlu1 %v8714_v34, %s8883_s2  ;;  %v9557_v31 = vpack.c.bf16 %v2288_v47, %v2287_v30  ;;  %v2289_v34 = vld [vmem:[%s10512_s12 + $0x30] sm:$0xff]  ;;  %v9625_v30 = vand.u32 127, %v66_v21  ;;  %v2480_v21 = vld [vmem:[%s10509_s1 + $0x8] sm:$0xff] }
0x17a4   :  { %v858_v40 = vsel %vm850_vm6, %v855_v39, %v630_v23  ;;  %v1814_v12 = vpop.permute.xlu0 %1813  ;;  %8184 = vmatpush3.bf16.msra.mxu1 %v9547_v29  ;;  %v2290_v23 = vld [vmem:[%s10512_s12 + $0x38] sm:$0xff] }
0x17a5   :  { %v868_v57 = vadd.f32 %v866_v36, %v858_v40  ;;  %8185 = vmatprep.subr.bf16.mxu1 %v8879_v0  ;;  %v9567_v39 = vpack.c.bf16 %v2290_v23, %v2289_v34 }
0x17a7   :  { %v871_v38 = vsel %vm859_vm7, %v868_v57, %v858_v40 }
0x17a8   :  { %v1096_v37 = vadd.f32 %v1095_v44, %v871_v38  ;;  %v2047_v62 = vpop.permute.xlu0 %2046  ;;  %8187 = vmatpush3.bf16.msra.mxu1 %v9557_v31 }
0x17a9   :  { %8188 = vmatprep.subr.bf16.mxu1 %v8879_v0 }
0x17aa   :  { %v1099_v46 = vsel %vm1091_vm8, %v1096_v37, %v871_v38 }
0x17ab   :  { %v1109_v52 = vadd.f32 %v1107_v60, %v1099_v46 }
0x17ac   :  { %8190 = vmatpush3.bf16.msra.mxu1 %v9567_v39 }
0x17ad   :  { %v1112_v7 = vsel %vm1100_vm9, %v1109_v52, %v1099_v46  ;;  %8209 = vmatprep.subr.bf16.mxu1 %v8879_v0 }
0x17ae   :  { %v1336_v48 = vadd.f32 %v9241_v58, %v1112_v7 }
0x17b0   :  { %v1337_v49 = vsel %vm1100_vm9, %v1336_v48, %v1099_v46  ;;  %vm3413_vm9 = vcmp.eq.s32.totalorder %v9625_v30, 2 }
0x17b1   :  { %v1346_v55 = vadd.f32 %v1344_v53, %v1337_v49 }
0x17b3   :  { %v1347_v42 = vsel %vm1091_vm8, %v1346_v55, %v1337_v49 }
0x17b4   :  { %v1571_v32 = vadd.f32 %v1570_v1, %v1347_v42 }
0x17b6   :  { %v1572_v5 = vsel %vm859_vm7, %v1571_v32, %v1347_v42 }
0x17b7   :  { %v1581_v6 = vadd.f32 %v1579_v3, %v1572_v5 }
0x17b9   :  { %v1582_v10 = vsel %vm850_vm6, %v1581_v6, %v1572_v5 }
0x17ba   :  { %v1806_v58 = vadd.f32 %v1805_v8, %v1582_v10 }
0x17bc   :  { %v1807_v13 = vsel %vm618_vm5, %v1806_v58, %v1582_v10  ;;  %vm2947_vm5 = vcmp.eq.s32.totalorder %v9625_v30, 1 }
0x17bd   :  { %v1816_v11 = vadd.f32 %v1814_v12, %v1807_v13 }
0x17bf   :  { %v1817_v14 = vsel %vm609_vm4, %v1816_v11, %v1807_v13  ;;  %vm2473_vm4 = vcmp.eq.s32.totalorder %v9625_v30, 0 }
0x17c0   :  { %v2039_v54 = vadd.f32 %v2038_v2, %v1817_v14 }
0x17c2   :  { %v2040_v9 = vsel %vm378_vm3, %v2039_v54, %v1817_v14  ;;  %v2367_v54 = vld [vmem:[%s10513_s14] sm:$0xff] }
0x17c3   :  { %v2049_v19 = vadd.f32 %v2047_v62, %v2040_v9  ;;  %v2370_v62 = vld [vmem:[%s10513_s14 + $0x18] sm:$0xff] }
0x17c5   :  { %v9525_v27 = vsel %vm369_vm2, %v2049_v19, %v2040_v9  ;;  %v2368_v9 = vld [vmem:[%s10513_s14 + $0x8] sm:$0xff] }
0x1814   :  { %v2234_v15 = vpop.permute.xlu1 %2233 }
0x1815   :  { %v2236_v17 = vmul.f32 %v2234_v15, %v2231_v51  ;;  %v2369_v51 = vld [vmem:[%s10513_s14 + $0x10] sm:$0xff]  ;;  %v9594_v15 = vpack.c.bf16 %v2368_v9, %v2367_v54 }
0x1817   :  { %v9519_v28 = vadd.f32 %v2238_v16, %v2236_v17  ;;  %8193 = vmatpush3.bf16.msra.mxu0 %v9594_v15  ;;  %v9600_v16 = vpack.c.bf16 %v2370_v62, %v2369_v51  ;;  %v9608_v17 = vld [vmem:[%s10514_s13] sm:$0x1] }
0x1818   :  { %8194 = vmatprep.subr.bf16.mxu0 %v8879_v0 }
0x1819   :  { %v2243_v63 = vrot.slane %v9519_v28, %v9057_v33 }
0x181b   :  { %v2244_v20 = vmul.f32 %v2243_v63, %v9525_v27  ;;  %8196 = vmatpush3.bf16.msra.mxu0 %v9600_v16 }
0x181c   :  { %8197 = vmatprep.subr.bf16.mxu0 %v8879_v0 }
0x181d   :  { %2246 = vrot.lane.b32.xlu1 %v2244_v20, %s8883_s2 }
0x1821   :  { %2279 = vrot.lane.b32.xlu1 %v9519_v28, %s8883_s2 }
0x188f   :  { %v2247_v59 = vpop.permute.xlu1 %2246 }
0x1890   :  { %v2249_v61 = vsel %vm76_vm1, %v2247_v59, 0.0 }
0x1891   :  { %2250 = vadd.xlane.f32.xlu0 %v2249_v61  ;;  %v9617_v61 = vld [vmem:[%s10515_s15] sm:$0x1] }
0x1893   :  { %v9574_v2 = vpop.permute.xlu1 %2279 }
0x191e   :  { %v2251_v36 = vpop.xlane.xlu0 %2250 }
0x191f   :  { %v2252_v40 = vrot.slane %v2251_v36, 4 }
0x1921   :  { %v2253_v57 = vmax.f32 %v2251_v36, %v2252_v40 }
0x1923   :  { %v2254_v44 = vrot.slane %v2253_v57, 2 }
0x1925   :  { %v2255_v38 = vmax.f32 %v2253_v57, %v2254_v44  ;;  %v2479_v57 = vld [vmem:[%s10509_s1] sm:$0xff]  ;;  %v2481_v44 = vld [vmem:[%s10509_s1 + $0x10] sm:$0xff] }
0x1927   :  { %v2256_v37 = vrot.slane %v2255_v38, 1 }
0x1929   :  { %v2257_v60 = vmax.f32 %v2255_v38, %v2256_v37  ;;  %v9642_v38 = vpack.c.bf16 %v2480_v21, %v2479_v57  ;;  %v2482_v37 = vld [vmem:[%s10509_s1 + $0x18] sm:$0xff] }
0x192b   :  { %v2258_v46 = vsub.f32 %v2251_v36, %v2257_v60  ;;  %v9648_v60 = vpack.c.bf16 %v2482_v37, %v2481_v44 }
0x192d   :  { %v2259_v52 = vmul.f32 1.442695, %v2258_v46  ;;  %v2483_v46 = vld [vmem:[%s10509_s1 + $0x20] sm:$0xff] }
0x192f   :  { %8715 = vpow2.f32 %v2259_v52  ;;  %v2484_v52 = vld [vmem:[%s10509_s1 + $0x28] sm:$0xff] }
0x1939   :  { %v8716_v7 = vpop.eup %8715 }
0x193a   :  { %v2261_v48 = vrot.slane %v8716_v7, 4 }
0x193c   :  { %v2262_v53 = vadd.f32 %v8716_v7, %v2261_v48 }
0x193e   :  { %v2263_v49 = vrot.slane %v2262_v53, 2 }
0x1940   :  { %v2264_v55 = vadd.f32 %v2263_v49, %v2262_v53 }
0x1942   :  { %v2265_v1 = vrot.slane %v2264_v55, 1 }
0x1944   :  { %v2266_v42 = vadd.f32 %v2265_v1, %v2264_v55  ;;  %v2485_v1 = vld [vmem:[%s10509_s1 + $0x30] sm:$0xff] }
0x1946   :  { %8717 = vrcp.f32 %v2266_v42  ;;  %v2486_v42 = vld [vmem:[%s10509_s1 + $0x38] sm:$0xff] }
0x1950   :  { %v8718_v32 = vpop.eup %8717 }
0x1951   :  { %v2268_v3 = vmul.f32 %v8718_v32, %v8716_v7  ;;  %v9658_v7 = vpack.c.bf16 %v2484_v52, %v2483_v46  ;;  %v9669_v32 = vpack.c.bf16 %v2486_v42, %v2485_v1 }
0x1953   :  { %v2269_v5 = vmul.f32 %v2268_v3, %v9525_v27 }
0x1955   :  { %v2271_v6 = vsel %vm2270_vm10, %v2269_v5, 0.0 }
0x1956   :  { %v2272_v8 = vrot.slane %v2271_v6, 4 }
0x1958   :  { %v2273_v10 = vadd.f32 %v2272_v8, %v2271_v6 }
0x195a   :  { %v2274_v58 = vrot.slane %v2273_v10, 2 }
0x195c   :  { %v2275_v12 = vadd.f32 %v2274_v58, %v2273_v10 }
0x195e   :  { %v2276_v13 = vrot.slane %v2275_v12, 1 }
0x1960   :  { %v2277_v11 = vadd.f32 %v2276_v13, %v2275_v12 }
0x1962   :  { %v2282_v14 = vsel %vm76_vm1, %v9574_v2, %v2277_v11 }
0x1963   :  { %7411 = vmatmul.mubr.msk.f32.vlgmr.msra.gmra.mrb[18].mxu1 %vm2292_vm11, %v2282_v14 }
0x1964   :  { %8211 = vmatpush3.bf16.msra.mxu1 %v9366_v18  ;;  %7451 = vmatprep.mubr.msk.f32.mxu1 %vm8880_vm0, %v8881_v4 }
0x1965   :  { %8212 = vmatprep.subr.bf16.mxu1 %v8879_v0 }
0x1968   :  { %8214 = vmatpush3.bf16.msra.mxu1 %v9386_v45 }
0x1969   :  { %8215 = vmatprep.subr.bf16.mxu1 %v8879_v0 }
0x1a36   :  { %v2362_v19 = vpop.f32.mrb[18].mxu1 }
0x1a37   :  { %v2363_v63 = vadd.f32 %v2362_v19, %v9608_v17  ;;  %v7412_v20 = vpop.f32.mrb[19].mxu1 }
0x1a39   :  { %8719 = vtanh.f32 %v2363_v63 }
0x1a43   :  { %v8720_v59 = vpop.eup %8719 }
0x1a44   :  { %7422 = vmatmul.mubr.msk.f32.vlgmr.msra.gmra.mrb[20].mxu0 %vm76_vm1, %v8720_v59 }
0x1a45   :  { %7440 = vmatprep.mubr.msk.f32.mxu0 %vm8880_vm0, %v8881_v4  ;;  %8199 = vmatpush3.bf16.msra.mxu0 %v9642_v38 }
0x1a46   :  { %8200 = vmatprep.subr.bf16.mxu0 %v8879_v0 }
0x1a49   :  { %8202 = vmatpush3.bf16.msra.mxu0 %v9648_v60 }
0x1a4a   :  { %8203 = vmatprep.subr.bf16.mxu0 %v8879_v0 }
0x1a4d   :  { %8205 = vmatpush3.bf16.msra.mxu0 %v9658_v7 }
0x1a4e   :  { %8206 = vmatprep.subr.bf16.mxu0 %v8879_v0 }
0x1a51   :  { %8208 = vmatpush3.bf16.msra.mxu0 %v9669_v32 }
0x1a52   :  { %8221 = vmatprep.subr.bf16.mxu0 %v8879_v0 }
0x1b17   :  { %v2441_v50 = vpop.f32.mrb[20].mxu0 }
0x1b18   :  { %v9620_v22 = vadd.f32 %v2441_v50, %v9617_v61  ;;  %v7423_v24 = vpop.f32.mrb[21].mxu0 }
0x1b1a   :  { %v2446_v56 = vsel %vm2445_vm12, %v9620_v22, -inf }
0x1b1b   :  { %2447 = vmax.xlane.f32.xlu1 %v2446_v56 }
0x1ba8   :  { %v9627_v47 = vpop.xlane.xlu1 %2447 }
0x1ba9   :  { %vm2456_vm13 = vcmp.eq.f32.partialorder %v9620_v22, %v9627_v47 }
0x1baa   :  { %v2457_v34 = vsel %vm2456_vm13, %v9625_v30, 64 }
0x1bab   :  { %v2458_v23 = vsel %vm2445_vm12, %v2457_v34, 2147483647 }
0x1bac   :  { %v2460_v36 = vshra.s32 %v2458_v23, 16  ;;  %v2459_v48 = vand.u32 65535, %v2458_v23 }
0x1bae   :  { %v2462_v40 = vcvt.s32.f32 %v2460_v36  ;;  %v2461_v49 = vcvt.s32.f32 %v2459_v48 }
0x1bb0   :  { %2463 = vmin.xlane.f32.xlu0 %v2462_v40 }
0x1c3d   :  { %v2464_v53 = vpop.xlane.xlu0 %2463 }
0x1c3e   :  { %vm2465_vm14 = vcmp.eq.f32.partialorder %v2462_v40, %v2464_v53  ;;  %v2470_v3 = vcvt.f32.s32 %v2464_v53 }
0x1c3f   :  { %v2466_v55 = vsel %vm2465_vm14, %v2461_v49, inf }
0x1c40   :  { %2467 = vmin.xlane.f32.xlu0 %v2466_v55  ;;  %v2471_v6 = vshll.u32 %v2470_v3, 16 }
0x1ccd   :  { %v2468_v5 = vpop.xlane.xlu0 %2467 }
0x1cce   :  { %v2469_v8 = vcvt.f32.s32 %v2468_v5 }
0x1cd0   :  { %v9673_v10 = vadd.s32 %v2471_v6, %v2469_v8 }
0x1cd2   :  { %vm2476_vm15 = vcmp.eq.s32.totalorder %v9625_v30, %v9673_v10 }
0x1cd3   :  { %v6732_v58 = vsel %vm2476_vm15, 1.0, %v8881_v4 }
0x1cd4   :  { %7441 = vmatmul.mubr.msk.f32.vlgmr.msra.gmra.mrb[22].mxu0 %vm2292_vm11, %v6732_v58 }
0x1cd5   :  { %8223 = vmatpush3.bf16.msra.mxu0 %v9541_v26  ;;  %7481 = vmatprep.mubr.msk.f32.mxu0 %vm8880_vm0, %v8881_v4 }
0x1cd6   :  { %8224 = vmatprep.subr.bf16.mxu0 %v8879_v0 }
0x1cd9   :  { %8226 = vmatpush3.bf16.msra.mxu0 %v9547_v29 }
0x1cda   :  { %8227 = vmatprep.subr.bf16.mxu0 %v8879_v0 }
0x1cdd   :  { %8229 = vmatpush3.bf16.msra.mxu0 %v9557_v31 }
0x1cde   :  { %8230 = vmatprep.subr.bf16.mxu0 %v8879_v0 }
0x1ce1   :  { %8232 = vmatpush3.bf16.msra.mxu0 %v9567_v39 }
0x1ce2   :  { %8251 = vmatprep.subr.bf16.mxu0 %v8879_v0 }
0x1da7   :  { %v2556_v12 = vpop.f32.mrb[22].mxu0 }
0x1da8   :  { %v7442_v13 = vpop.f32.mrb[23].mxu0  ;;  %7452 = vmatmul.mubr.msk.f32.vlgmr.msra.gmra.mrb[20].mxu1 %vm76_vm1, %v2556_v12 }
0x1da9   :  { %8217 = vmatpush3.bf16.msra.mxu1 %v9377_v41  ;;  %7462 = vmatprep.mubr.msk.f32.mxu1 %vm8880_vm0, %v8881_v4 }
0x1daa   :  { %8218 = vmatprep.subr.bf16.mxu1 %v8879_v0 }
0x1dad   :  { %8220 = vmatpush3.bf16.msra.mxu1 %v9390_v25 }
0x1dae   :  { %8233 = vmatprep.subr.bf16.mxu1 %v8879_v0 }
0x1db0   :  { %7463 = vmatmul.mubr.msk.f32.vlgmr.msra.gmra.mrb[22].mxu1 %vm76_vm1, %v9574_v2 }
0x1db1   :  { %8235 = vmatpush3.bf16.msra.mxu1 %v9594_v15  ;;  %7492 = vmatprep.mubr.msk.f32.mxu1 %vm8880_vm0, %v8881_v4 }
0x1db2   :  { %8236 = vmatprep.subr.bf16.mxu1 %v8879_v0 }
0x1db5   :  { %8238 = vmatpush3.bf16.msra.mxu1 %v9600_v16 }
0x1db6   :  { %8239 = vmatprep.subr.bf16.mxu1 %v8879_v0 }
0x1e7b   :  { %v2629_v11 = vpop.f32.mrb[20].mxu1 }
0x1e7c   :  { %v7453_v14 = vpop.f32.mrb[21].mxu1  ;;  %v2630_v2 = vadd.f32 %v2629_v11, %v9444_v43 }
0x1e83   :  { %v2701_v54 = vpop.f32.mrb[22].mxu1 }
0x1e84   :  { %v2702_v9 = vadd.f32 %v2701_v54, %v9424_v35  ;;  %v7464_v51 = vpop.f32.mrb[23].mxu1 }
0x1e86   :  { %2713 = vrot.lane.b32.xlu0 %v2702_v9, %s8882_s25  ;;  %v2705_v62 = vadd.f32 %v2702_v9, %v2630_v2 }
0x1e88   :  { %v6736_v19 = vmul.f32 -1.442695, %v2705_v62 }
0x1e8a   :  { %8721 = vpow2.f32 %v6736_v19 }
0x1e94   :  { %v8722_v63 = vpop.eup %8721 }
0x1e95   :  { %v2709_v20 = vadd.f32 1.0, %v8722_v63 }
0x1e97   :  { %8723 = vrcp.f32 %v2709_v20 }
0x1ea1   :  { %v8724_v59 = vpop.eup %8723 }
0x1ea2   :  { %v2723_v36 = vsub.f32 1.0, %v8724_v59  ;;  %v2729_v57 = vmul.f32 %v8724_v59, %v9519_v28 }
0x1ef8   :  { %v2714_v50 = vpop.permute.xlu0 %2713 }
0x1ef9   :  { %v2716_v24 = vmul.f32 %v8724_v59, %v2714_v50 }
0x1efb   :  { %2718 = vrot.lane.b32.xlu1 %v2716_v24, %s8882_s25 }
0x1f6d   :  { %v2719_v56 = vpop.permute.xlu1 %2718 }
0x1f6e   :  { %v2721_v34 = vadd.f32 %v2719_v56, %v2630_v2 }
0x1f70   :  { %8725 = vtanh.f32 %v2721_v34 }
0x1f7a   :  { %v8726_v23 = vpop.eup %8725 }
0x1f7b   :  { %2725 = vrot.lane.b32.xlu1 %v8726_v23, %s8883_s2 }
0x1fed   :  { %v2726_v40 = vpop.permute.xlu1 %2725 }
0x1fee   :  { %v2728_v21 = vmul.f32 %v2726_v40, %v2723_v36 }
0x1ff0   :  { %v9710_v44 = vadd.f32 %v2729_v57, %v2728_v21 }
0x1ff2   :  { %v2734_v37 = vrot.slane %v9710_v44, %v9057_v33 }
0x1ff4   :  { %v2735_v46 = vmul.f32 %v2734_v37, %v9525_v27 }
0x1ff6   :  { %2737 = vrot.lane.b32.xlu0 %v2735_v46, %s8883_s2 }
0x1ffa   :  { %2769 = vrot.lane.b32.xlu0 %v9710_v44, %s8883_s2 }
0x2068   :  { %v2738_v52 = vpop.permute.xlu0 %2737 }
0x2069   :  { %v2740_v48 = vsel %vm76_vm1, %v2738_v52, 0.0 }
0x206a   :  { %2741 = vadd.xlane.f32.xlu1 %v2740_v48 }
0x206c   :  { %v9721_v56 = vpop.permute.xlu0 %2769 }
0x20f7   :  { %v2742_v53 = vpop.xlane.xlu1 %2741 }
0x20f8   :  { %v2743_v49 = vrot.slane %v2742_v53, 4 }
0x20fa   :  { %v2744_v28 = vmax.f32 %v2742_v53, %v2743_v49 }
0x20fc   :  { %v2745_v55 = vrot.slane %v2744_v28, 2 }
0x20fe   :  { %v2746_v1 = vmax.f32 %v2744_v28, %v2745_v55 }
0x2100   :  { %v2747_v42 = vrot.slane %v2746_v1, 1 }
0x2102   :  { %v2748_v3 = vmax.f32 %v2746_v1, %v2747_v42 }
0x2104   :  { %v2749_v5 = vsub.f32 %v2742_v53, %v2748_v3 }
0x2106   :  { %v2750_v6 = vmul.f32 1.442695, %v2749_v5 }
0x2108   :  { %8727 = vpow2.f32 %v2750_v6 }
0x2112   :  { %v8728_v8 = vpop.eup %8727 }
0x2113   :  { %v2752_v58 = vrot.slane %v8728_v8, 4 }
0x2115   :  { %v2753_v12 = vadd.f32 %v8728_v8, %v2752_v58 }
0x2117   :  { %v2754_v13 = vrot.slane %v2753_v12, 2 }
0x2119   :  { %v2755_v11 = vadd.f32 %v2754_v13, %v2753_v12 }
0x211b   :  { %v2756_v14 = vrot.slane %v2755_v11, 1 }
0x211d   :  { %v2757_v54 = vadd.f32 %v2756_v14, %v2755_v11  ;;  %v2474_v11 = vsel %vm2473_vm4, %v9673_v10, 0 }
0x211f   :  { %8729 = vrcp.f32 %v2757_v54 }
0x2129   :  { %v8730_v9 = vpop.eup %8729 }
0x212a   :  { %v2759_v51 = vmul.f32 %v8730_v9, %v8728_v8 }
0x212c   :  { %v2760_v2 = vmul.f32 %v2759_v51, %v9525_v27 }
0x212e   :  { %v2761_v62 = vsel %vm2270_vm10, %v2760_v2, 0.0 }
0x212f   :  { %v2762_v19 = vrot.slane %v2761_v62, 4 }
0x2131   :  { %v2763_v63 = vadd.f32 %v2762_v19, %v2761_v62 }
0x2133   :  { %v2764_v20 = vrot.slane %v2763_v63, 2 }
0x2135   :  { %v2765_v59 = vadd.f32 %v2764_v20, %v2763_v63 }
0x2137   :  { %v2766_v50 = vrot.slane %v2765_v59, 1 }
0x2139   :  { %v2767_v24 = vadd.f32 %v2766_v50, %v2765_v59 }
0x213b   :  { %v2772_v34 = vsel %vm76_vm1, %v9721_v56, %v2767_v24 }
0x213c   :  { %7482 = vmatmul.mubr.msk.f32.vlgmr.msra.gmra.mrb[24].mxu0 %vm2292_vm11, %v2772_v34 }
0x213d   :  { %8253 = vmatpush3.bf16.msra.mxu0 %v9366_v18  ;;  %7522 = vmatprep.mubr.msk.f32.mxu0 %vm8880_vm0, %v8881_v4 }
0x213e   :  { %8254 = vmatprep.subr.bf16.mxu0 %v8879_v0 }
0x2141   :  { %8256 = vmatpush3.bf16.msra.mxu0 %v9386_v45 }
0x2142   :  { %8257 = vmatprep.subr.bf16.mxu0 %v8879_v0 }
0x220f   :  { %v2842_v23 = vpop.f32.mrb[24].mxu0 }
0x2210   :  { %v2843_v36 = vadd.f32 %v2842_v23, %v9608_v17  ;;  %v7483_v40 = vpop.f32.mrb[25].mxu0 }
0x2212   :  { %8731 = vtanh.f32 %v2843_v36 }
0x221c   :  { %v8732_v57 = vpop.eup %8731 }
0x221d   :  { %7493 = vmatmul.mubr.msk.f32.vlgmr.msra.gmra.mrb[24].mxu1 %vm76_vm1, %v8732_v57 }
0x221e   :  { %8241 = vmatpush3.bf16.msra.mxu1 %v9642_v38  ;;  %7511 = vmatprep.mubr.msk.f32.mxu1 %vm8880_vm0, %v8881_v4 }
0x221f   :  { %8242 = vmatprep.subr.bf16.mxu1 %v8879_v0 }
0x2222   :  { %8244 = vmatpush3.bf16.msra.mxu1 %v9648_v60 }
0x2223   :  { %8245 = vmatprep.subr.bf16.mxu1 %v8879_v0 }
0x2226   :  { %8247 = vmatpush3.bf16.msra.mxu1 %v9658_v7 }
0x2227   :  { %8248 = vmatprep.subr.bf16.mxu1 %v8879_v0 }
0x222a   :  { %8250 = vmatpush3.bf16.msra.mxu1 %v9669_v32 }
0x222b   :  { %8263 = vmatprep.subr.bf16.mxu1 %v8879_v0 }
0x22f0   :  { %v2916_v21 = vpop.f32.mrb[24].mxu1 }
0x22f1   :  { %v9745_v37 = vadd.f32 %v2916_v21, %v9617_v61  ;;  %v7494_v46 = vpop.f32.mrb[25].mxu1 }
0x22f3   :  { %v2920_v52 = vsel %vm2445_vm12, %v9745_v37, -inf }
0x22f4   :  { %2921 = vmax.xlane.f32.xlu0 %v2920_v52 }
0x2381   :  { %v9749_v48 = vpop.xlane.xlu0 %2921 }
0x2382   :  { %vm2930_vm2 = vcmp.eq.f32.partialorder %v9745_v37, %v9749_v48 }
0x2383   :  { %v2931_v53 = vsel %vm2930_vm2, %v9625_v30, 64  ;;  %vm3879_vm2 = vcmp.eq.s32.totalorder %v9625_v30, 3 }
0x2384   :  { %v2932_v49 = vsel %vm2445_vm12, %v2931_v53, 2147483647 }
0x2385   :  { %v2934_v28 = vshra.s32 %v2932_v49, 16  ;;  %v2933_v1 = vand.u32 65535, %v2932_v49 }
0x2387   :  { %v2936_v55 = vcvt.s32.f32 %v2934_v28  ;;  %v2935_v3 = vcvt.s32.f32 %v2933_v1 }
0x2389   :  { %2937 = vmin.xlane.f32.xlu1 %v2936_v55 }
0x2416   :  { %v2938_v42 = vpop.xlane.xlu1 %2937 }
0x2417   :  { %vm2939_vm3 = vcmp.eq.f32.partialorder %v2936_v55, %v2938_v42  ;;  %v2944_v6 = vcvt.f32.s32 %v2938_v42 }
0x2418   :  { %v2940_v5 = vsel %vm2939_vm3, %v2935_v3, inf }
0x2419   :  { %2941 = vmin.xlane.f32.xlu0 %v2940_v5  ;;  %v2945_v58 = vshll.u32 %v2944_v6, 16 }
0x24a6   :  { %v2942_v8 = vpop.xlane.xlu0 %2941 }
0x24a7   :  { %v2943_v12 = vcvt.f32.s32 %v2942_v8 }
0x24a9   :  { %v2946_v13 = vadd.s32 %v2945_v58, %v2943_v12 }
0x24ab   :  { %v9762_v14 = vsel %vm2947_vm5, %v2946_v13, %v2474_v11  ;;  %vm2950_vm6 = vcmp.eq.s32.totalorder %v9625_v30, %v2946_v13 }
0x24ac   :  { %v6739_v54 = vsel %vm2950_vm6, 1.0, %v8881_v4 }
0x24ad   :  { %7512 = vmatmul.mubr.msk.f32.vlgmr.msra.gmra.mrb[26].mxu1 %vm2292_vm11, %v6739_v54 }
0x24ae   :  { %8265 = vmatpush3.bf16.msra.mxu1 %v9541_v26  ;;  %7552 = vmatprep.mubr.msk.f32.mxu1 %vm8880_vm0, %v8881_v4 }
0x24af   :  { %8266 = vmatprep.subr.bf16.mxu1 %v8879_v0 }
0x24b2   :  { %8268 = vmatpush3.bf16.msra.mxu1 %v9547_v29 }
0x24b3   :  { %8269 = vmatprep.subr.bf16.mxu1 %v8879_v0 }
0x24b6   :  { %8271 = vmatpush3.bf16.msra.mxu1 %v9557_v31 }
0x24b7   :  { %8272 = vmatprep.subr.bf16.mxu1 %v8879_v0 }
0x24ba   :  { %8274 = vmatpush3.bf16.msra.mxu1 %v9567_v39 }
0x24bb   :  { %8293 = vmatprep.subr.bf16.mxu1 %v8879_v0 }
0x2580   :  { %v3022_v10 = vpop.f32.mrb[26].mxu1 }
0x2581   :  { %v7513_v9 = vpop.f32.mrb[27].mxu1  ;;  %7523 = vmatmul.mubr.msk.f32.vlgmr.msra.gmra.mrb[26].mxu0 %vm76_vm1, %v3022_v10 }
0x2582   :  { %8259 = vmatpush3.bf16.msra.mxu0 %v9377_v41  ;;  %7533 = vmatprep.mubr.msk.f32.mxu0 %vm8880_vm0, %v8881_v4 }
0x2583   :  { %8260 = vmatprep.subr.bf16.mxu0 %v8879_v0 }
0x2586   :  { %8262 = vmatpush3.bf16.msra.mxu0 %v9390_v25 }
0x2587   :  { %8275 = vmatprep.subr.bf16.mxu0 %v8879_v0 }
0x2589   :  { %7534 = vmatmul.mubr.msk.f32.vlgmr.msra.gmra.mrb[28].mxu0 %vm76_vm1, %v9721_v56 }
0x258a   :  { %8277 = vmatpush3.bf16.msra.mxu0 %v9594_v15  ;;  %7563 = vmatprep.mubr.msk.f32.mxu0 %vm8880_vm0, %v8881_v4 }
0x258b   :  { %8278 = vmatprep.subr.bf16.mxu0 %v8879_v0 }
0x258e   :  { %8280 = vmatpush3.bf16.msra.mxu0 %v9600_v16 }
0x258f   :  { %8281 = vmatprep.subr.bf16.mxu0 %v8879_v0 }
0x2654   :  { %v3095_v51 = vpop.f32.mrb[26].mxu0 }
0x2655   :  { %v7524_v2 = vpop.f32.mrb[27].mxu0  ;;  %v3096_v20 = vadd.f32 %v3095_v51, %v9444_v43 }
0x265c   :  { %v3167_v62 = vpop.f32.mrb[28].mxu0 }
0x265d   :  { %v3168_v19 = vadd.f32 %v3167_v62, %v9424_v35  ;;  %v7535_v63 = vpop.f32.mrb[29].mxu0 }
0x265f   :  { %3179 = vrot.lane.b32.xlu1 %v3168_v19, %s8882_s25  ;;  %v3171_v59 = vadd.f32 %v3168_v19, %v3096_v20 }
0x2661   :  { %v6743_v50 = vmul.f32 -1.442695, %v3171_v59 }
0x2663   :  { %8733 = vpow2.f32 %v6743_v50 }
0x266d   :  { %v8734_v24 = vpop.eup %8733 }
0x266e   :  { %v3175_v56 = vadd.f32 1.0, %v8734_v24 }
0x2670   :  { %8735 = vrcp.f32 %v3175_v56 }
0x267a   :  { %v8736_v34 = vpop.eup %8735 }
0x267b   :  { %v3189_v21 = vsub.f32 1.0, %v8736_v34  ;;  %v3195_v43 = vmul.f32 %v8736_v34, %v9710_v44 }
0x26d1   :  { %v3180_v23 = vpop.permute.xlu1 %3179 }
0x26d2   :  { %v3182_v36 = vmul.f32 %v8736_v34, %v3180_v23 }
0x26d4   :  { %3184 = vrot.lane.b32.xlu0 %v3182_v36, %s8882_s25 }
0x2746   :  { %v3185_v40 = vpop.permute.xlu0 %3184 }
0x2747   :  { %v3187_v57 = vadd.f32 %v3185_v40, %v3096_v20 }
0x2749   :  { %8737 = vtanh.f32 %v3187_v57 }
0x2753   :  { %v8738_v35 = vpop.eup %8737 }
0x2754   :  { %3191 = vrot.lane.b32.xlu1 %v8738_v35, %s8883_s2 }
0x27c6   :  { %v3192_v46 = vpop.permute.xlu1 %3191 }
0x27c7   :  { %v3194_v52 = vmul.f32 %v3192_v46, %v3189_v21 }
0x27c9   :  { %v9798_v53 = vadd.f32 %v3195_v43, %v3194_v52 }
0x27cb   :  { %v3200_v49 = vrot.slane %v9798_v53, %v9057_v33 }
0x27cd   :  { %v3201_v28 = vmul.f32 %v3200_v49, %v9525_v27 }
0x27cf   :  { %3203 = vrot.lane.b32.xlu1 %v3201_v28, %s8883_s2 }
0x27d3   :  { %3235 = vrot.lane.b32.xlu1 %v9798_v53, %s8883_s2 }
0x2841   :  { %v3204_v55 = vpop.permute.xlu1 %3203 }
0x2842   :  { %v3206_v1 = vsel %vm76_vm1, %v3204_v55, 0.0 }
0x2843   :  { %3207 = vadd.xlane.f32.xlu0 %v3206_v1 }
0x2845   :  { %v9809_v40 = vpop.permute.xlu1 %3235 }
0x28d0   :  { %v3208_v42 = vpop.xlane.xlu0 %3207 }
0x28d1   :  { %v3209_v3 = vrot.slane %v3208_v42, 4 }
0x28d3   :  { %v3210_v44 = vmax.f32 %v3208_v42, %v3209_v3 }
0x28d5   :  { %v3211_v5 = vrot.slane %v3210_v44, 2 }
0x28d7   :  { %v3212_v6 = vmax.f32 %v3210_v44, %v3211_v5 }
0x28d9   :  { %v3213_v8 = vrot.slane %v3212_v6, 1 }
0x28db   :  { %v3214_v58 = vmax.f32 %v3212_v6, %v3213_v8 }
0x28dd   :  { %v3215_v12 = vsub.f32 %v3208_v42, %v3214_v58 }
0x28df   :  { %v3216_v13 = vmul.f32 1.442695, %v3215_v12 }
0x28e1   :  { %8739 = vpow2.f32 %v3216_v13 }
0x28eb   :  { %v8740_v11 = vpop.eup %8739 }
0x28ec   :  { %v3218_v54 = vrot.slane %v8740_v11, 4 }
0x28ee   :  { %v3219_v10 = vadd.f32 %v8740_v11, %v3218_v54 }
0x28f0   :  { %v3220_v9 = vrot.slane %v3219_v10, 2 }
0x28f2   :  { %v3221_v51 = vadd.f32 %v3220_v9, %v3219_v10 }
0x28f4   :  { %v3222_v2 = vrot.slane %v3221_v51, 1 }
0x28f6   :  { %v3223_v62 = vadd.f32 %v3222_v2, %v3221_v51 }
0x28f8   :  { %8741 = vrcp.f32 %v3223_v62 }
0x2902   :  { %v8742_v19 = vpop.eup %8741 }
0x2903   :  { %v3225_v63 = vmul.f32 %v8742_v19, %v8740_v11 }
0x2905   :  { %v3226_v20 = vmul.f32 %v3225_v63, %v9525_v27 }
0x2907   :  { %v3227_v59 = vsel %vm2270_vm10, %v3226_v20, 0.0 }
0x2908   :  { %v3228_v50 = vrot.slane %v3227_v59, 4 }
0x290a   :  { %v3229_v24 = vadd.f32 %v3228_v50, %v3227_v59  ;;  %v9880_v59 = vld [vmem:[%s10510_s11] sm:$0x1] }
0x290c   :  { %v3230_v56 = vrot.slane %v3229_v24, 2 }
0x290e   :  { %v3231_v34 = vadd.f32 %v3230_v56, %v3229_v24  ;;  %v9887_v56 = vld [vmem:[%s10511_s10] sm:$0x1] }
0x2910   :  { %v3232_v23 = vrot.slane %v3231_v34, 1 }
0x2912   :  { %v3233_v36 = vadd.f32 %v3232_v23, %v3231_v34 }
0x2914   :  { %v3238_v57 = vsel %vm76_vm1, %v9809_v40, %v3233_v36 }
0x2915   :  { %7553 = vmatmul.mubr.msk.f32.vlgmr.msra.gmra.mrb[28].mxu1 %vm2292_vm11, %v3238_v57 }
0x2916   :  { %8295 = vmatpush3.bf16.msra.mxu1 %v9366_v18  ;;  %7593 = vmatprep.mubr.msk.f32.mxu1 %vm8880_vm0, %v8881_v4 }
0x2917   :  { %8296 = vmatprep.subr.bf16.mxu1 %v8879_v0 }
0x291a   :  { %8298 = vmatpush3.bf16.msra.mxu1 %v9386_v45 }
0x291b   :  { %8299 = vmatprep.subr.bf16.mxu1 %v8879_v0 }
0x29e8   :  { %v3308_v35 = vpop.f32.mrb[28].mxu1 }
0x29e9   :  { %v3309_v21 = vadd.f32 %v3308_v35, %v9608_v17  ;;  %v7554_v46 = vpop.f32.mrb[29].mxu1 }
0x29eb   :  { %8743 = vtanh.f32 %v3309_v21 }
0x29f5   :  { %v8744_v43 = vpop.eup %8743 }
0x29f6   :  { %7564 = vmatmul.mubr.msk.f32.vlgmr.msra.gmra.mrb[30].mxu0 %vm76_vm1, %v8744_v43 }
0x29f7   :  { %8283 = vmatpush3.bf16.msra.mxu0 %v9642_v38  ;;  %7582 = vmatprep.mubr.msk.f32.mxu0 %vm8880_vm0, %v8881_v4 }
0x29f8   :  { %8284 = vmatprep.subr.bf16.mxu0 %v8879_v0 }
0x29fb   :  { %8286 = vmatpush3.bf16.msra.mxu0 %v9648_v60 }
0x29fc   :  { %8287 = vmatprep.subr.bf16.mxu0 %v8879_v0 }
0x29ff   :  { %8289 = vmatpush3.bf16.msra.mxu0 %v9658_v7 }
0x2a00   :  { %8290 = vmatprep.subr.bf16.mxu0 %v8879_v0 }
0x2a03   :  { %8292 = vmatpush3.bf16.msra.mxu0 %v9669_v32 }
0x2a04   :  { %8305 = vmatprep.subr.bf16.mxu0 %v8879_v0 }
0x2ac9   :  { %v3382_v52 = vpop.f32.mrb[30].mxu0 }
0x2aca   :  { %v9833_v49 = vadd.f32 %v3382_v52, %v9617_v61  ;;  %v7565_v28 = vpop.f32.mrb[31].mxu0 }
0x2acc   :  { %v3386_v55 = vsel %vm2445_vm12, %v9833_v49, -inf }
0x2acd   :  { %3387 = vmax.xlane.f32.xlu1 %v3386_v55 }
0x2b5a   :  { %v9837_v1 = vpop.xlane.xlu1 %3387 }
0x2b5b   :  { %vm3396_vm7 = vcmp.eq.f32.partialorder %v9833_v49, %v9837_v1 }
0x2b5c   :  { %v3397_v42 = vsel %vm3396_vm7, %v9625_v30, 64 }
0x2b5d   :  { %v3398_v3 = vsel %vm2445_vm12, %v3397_v42, 2147483647 }
0x2b5e   :  { %v3400_v44 = vshra.s32 %v3398_v3, 16  ;;  %v3399_v6 = vand.u32 65535, %v3398_v3 }
0x2b60   :  { %v3402_v5 = vcvt.s32.f32 %v3400_v44  ;;  %v3401_v58 = vcvt.s32.f32 %v3399_v6 }
0x2b62   :  { %3403 = vmin.xlane.f32.xlu0 %v3402_v5 }
0x2bef   :  { %v3404_v8 = vpop.xlane.xlu0 %3403 }
0x2bf0   :  { %vm3405_vm8 = vcmp.eq.f32.partialorder %v3402_v5, %v3404_v8  ;;  %v3410_v13 = vcvt.f32.s32 %v3404_v8 }
0x2bf1   :  { %v3406_v12 = vsel %vm3405_vm8, %v3401_v58, inf  ;;  %vm4345_vm8 = vcmp.eq.s32.totalorder %v9625_v30, 4 }
0x2bf2   :  { %3407 = vmin.xlane.f32.xlu0 %v3406_v12  ;;  %v3411_v54 = vshll.u32 %v3410_v13, 16 }
0x2c7f   :  { %v3408_v11 = vpop.xlane.xlu0 %3407 }
0x2c80   :  { %v3409_v10 = vcvt.f32.s32 %v3408_v11 }
0x2c82   :  { %v3412_v9 = vadd.s32 %v3411_v54, %v3409_v10 }
0x2c84   :  { %v9847_v51 = vsel %vm3413_vm9, %v3412_v9, %v9762_v14  ;;  %vm3416_vm13 = vcmp.eq.s32.totalorder %v9625_v30, %v3412_v9 }
0x2c85   :  { %v6746_v2 = vsel %vm3416_vm13, 1.0, %v8881_v4 }
0x2c86   :  { %7583 = vmatmul.mubr.msk.f32.vlgmr.msra.gmra.mrb[32].mxu0 %vm2292_vm11, %v6746_v2 }
0x2c87   :  { %8307 = vmatpush3.bf16.msra.mxu0 %v9541_v26  ;;  %7623 = vmatprep.mubr.msk.f32.mxu0 %vm8880_vm0, %v8881_v4 }
0x2c88   :  { %8308 = vmatprep.subr.bf16.mxu0 %v8879_v0 }
0x2c8b   :  { %8310 = vmatpush3.bf16.msra.mxu0 %v9547_v29 }
0x2c8c   :  { %8311 = vmatprep.subr.bf16.mxu0 %v8879_v0 }
0x2c8f   :  { %8313 = vmatpush3.bf16.msra.mxu0 %v9557_v31 }
0x2c90   :  { %8314 = vmatprep.subr.bf16.mxu0 %v8879_v0 }
0x2c93   :  { %8316 = vmatpush3.bf16.msra.mxu0 %v9567_v39 }
0x2c94   :  { %8335 = vmatprep.subr.bf16.mxu0 %v8879_v0 }
0x2d59   :  { %v3488_v14 = vpop.f32.mrb[32].mxu0 }
0x2d5a   :  { %v7584_v62 = vpop.f32.mrb[33].mxu0  ;;  %7594 = vmatmul.mubr.msk.f32.vlgmr.msra.gmra.mrb[30].mxu1 %vm76_vm1, %v3488_v14 }
0x2d5b   :  { %8301 = vmatpush3.bf16.msra.mxu1 %v9377_v41  ;;  %7604 = vmatprep.mubr.msk.f32.mxu1 %vm8880_vm0, %v8881_v4 }
0x2d5c   :  { %8302 = vmatprep.subr.bf16.mxu1 %v8879_v0 }
0x2d5f   :  { %8304 = vmatpush3.bf16.msra.mxu1 %v9390_v25 }
0x2d60   :  { %8317 = vmatprep.subr.bf16.mxu1 %v8879_v0 }
0x2d62   :  { %7605 = vmatmul.mubr.msk.f32.vlgmr.msra.gmra.mrb[32].mxu1 %vm76_vm1, %v9809_v40 }
0x2d63   :  { %8319 = vmatpush3.bf16.msra.mxu1 %v9594_v15  ;;  %7634 = vmatprep.mubr.msk.f32.mxu1 %vm8880_vm0, %v8881_v4 }
0x2d64   :  { %8320 = vmatprep.subr.bf16.mxu1 %v8879_v0 }
0x2d67   :  { %8322 = vmatpush3.bf16.msra.mxu1 %v9600_v16 }
0x2d68   :  { %8323 = vmatprep.subr.bf16.mxu1 %v8879_v0 }
0x2e2d   :  { %v3561_v19 = vpop.f32.mrb[30].mxu1 }
0x2e2e   :  { %v7595_v63 = vpop.f32.mrb[31].mxu1  ;;  %v3562_v34 = vadd.f32 %v9887_v56, %v3561_v19 }
0x2e35   :  { %v3633_v20 = vpop.f32.mrb[32].mxu1 }
0x2e36   :  { %v3634_v50 = vadd.f32 %v9880_v59, %v3633_v20  ;;  %v7606_v24 = vpop.f32.mrb[33].mxu1 }
0x2e38   :  { %3645 = vrot.lane.b32.xlu0 %v3634_v50, %s8882_s25  ;;  %v3637_v23 = vadd.f32 %v3634_v50, %v3562_v34 }
0x2e3a   :  { %v6750_v36 = vmul.f32 -1.442695, %v3637_v23 }
0x2e3c   :  { %8745 = vpow2.f32 %v6750_v36 }
0x2e46   :  { %v8746_v40 = vpop.eup %8745 }
0x2e47   :  { %v3641_v57 = vadd.f32 1.0, %v8746_v40 }
0x2e49   :  { %8747 = vrcp.f32 %v3641_v57 }
0x2e53   :  { %v8748_v35 = vpop.eup %8747 }
0x2e54   :  { %v3655_v55 = vsub.f32 1.0, %v8748_v35  ;;  %v3661_v3 = vmul.f32 %v8748_v35, %v9798_v53 }
0x2eaa   :  { %v3646_v21 = vpop.permute.xlu0 %3645 }
0x2eab   :  { %v3648_v46 = vmul.f32 %v8748_v35, %v3646_v21 }
0x2ead   :  { %3650 = vrot.lane.b32.xlu1 %v3648_v46, %s8882_s25 }
0x2f1f   :  { %v3651_v43 = vpop.permute.xlu1 %3650 }
0x2f20   :  { %v3653_v52 = vadd.f32 %v3651_v43, %v3562_v34 }
0x2f22   :  { %8749 = vtanh.f32 %v3653_v52 }
0x2f2c   :  { %v8750_v28 = vpop.eup %8749 }
0x2f2d   :  { %3657 = vrot.lane.b32.xlu1 %v8750_v28, %s8883_s2 }
0x2f9f   :  { %v3658_v42 = vpop.permute.xlu1 %3657 }
0x2fa0   :  { %v3660_v44 = vmul.f32 %v3658_v42, %v3655_v55 }
0x2fa2   :  { %v9893_v5 = vadd.f32 %v3661_v3, %v3660_v44 }
0x2fa4   :  { %v3666_v6 = vrot.slane %v9893_v5, %v9057_v33 }
0x2fa6   :  { %v3667_v8 = vmul.f32 %v3666_v6, %v9525_v27 }
0x2fa8   :  { %3669 = vrot.lane.b32.xlu0 %v3667_v8, %s8883_s2 }
0x2fac   :  { %3701 = vrot.lane.b32.xlu0 %v9893_v5, %s8883_s2 }
0x301a   :  { %v3670_v58 = vpop.permute.xlu0 %3669 }
0x301b   :  { %v3672_v12 = vsel %vm76_vm1, %v3670_v58, 0.0 }
0x301c   :  { %3673 = vadd.xlane.f32.xlu1 %v3672_v12 }
0x301e   :  { %v9904_v42 = vpop.permute.xlu0 %3701 }
0x30a9   :  { %v3674_v13 = vpop.xlane.xlu1 %3673 }
0x30aa   :  { %v3675_v11 = vrot.slane %v3674_v13, 4 }
0x30ac   :  { %v3676_v53 = vmax.f32 %v3674_v13, %v3675_v11 }
0x30ae   :  { %v3677_v54 = vrot.slane %v3676_v53, 2 }
0x30b0   :  { %v3678_v10 = vmax.f32 %v3676_v53, %v3677_v54 }
0x30b2   :  { %v3679_v9 = vrot.slane %v3678_v10, 1 }
0x30b4   :  { %v3680_v2 = vmax.f32 %v3678_v10, %v3679_v9 }
0x30b6   :  { %v3681_v14 = vsub.f32 %v3674_v13, %v3680_v2 }
0x30b8   :  { %v3682_v62 = vmul.f32 1.442695, %v3681_v14 }
0x30ba   :  { %8751 = vpow2.f32 %v3682_v62 }
0x30c4   :  { %v8752_v19 = vpop.eup %8751 }
0x30c5   :  { %v3684_v63 = vrot.slane %v8752_v19, 4 }
0x30c7   :  { %v3685_v20 = vadd.f32 %v8752_v19, %v3684_v63 }
0x30c9   :  { %v3686_v50 = vrot.slane %v3685_v20, 2 }
0x30cb   :  { %v3687_v24 = vadd.f32 %v3686_v50, %v3685_v20 }
0x30cd   :  { %v3688_v34 = vrot.slane %v3687_v24, 1 }
0x30cf   :  { %v3689_v23 = vadd.f32 %v3688_v34, %v3687_v24 }
0x30d1   :  { %8753 = vrcp.f32 %v3689_v23 }
0x30db   :  { %v8754_v36 = vpop.eup %8753 }
0x30dc   :  { %v3691_v40 = vmul.f32 %v8754_v36, %v8752_v19 }
0x30de   :  { %v3692_v57 = vmul.f32 %v3691_v40, %v9525_v27 }
0x30e0   :  { %v3693_v35 = vsel %vm2270_vm10, %v3692_v57, 0.0 }
0x30e1   :  { %v3694_v21 = vrot.slane %v3693_v35, 4 }
0x30e3   :  { %v3695_v46 = vadd.f32 %v3694_v21, %v3693_v35 }
0x30e5   :  { %v3696_v43 = vrot.slane %v3695_v46, 2 }
0x30e7   :  { %v3697_v52 = vadd.f32 %v3696_v43, %v3695_v46 }
0x30e9   :  { %v3698_v28 = vrot.slane %v3697_v52, 1 }
0x30eb   :  { %v3699_v55 = vadd.f32 %v3698_v28, %v3697_v52 }
0x30ed   :  { %v3704_v3 = vsel %vm76_vm1, %v9904_v42, %v3699_v55 }
0x30ee   :  { %7624 = vmatmul.mubr.msk.f32.vlgmr.msra.gmra.mrb[34].mxu0 %vm2292_vm11, %v3704_v3 }
0x30ef   :  { %8337 = vmatpush3.bf16.msra.mxu0 %v9366_v18  ;;  %7664 = vmatprep.mubr.msk.f32.mxu0 %vm8880_vm0, %v8881_v4 }
0x30f0   :  { %8338 = vmatprep.subr.bf16.mxu0 %v8879_v0 }
0x30f3   :  { %8340 = vmatpush3.bf16.msra.mxu0 %v9386_v45 }
0x30f4   :  { %8341 = vmatprep.subr.bf16.mxu0 %v8879_v0 }
0x31c1   :  { %v3774_v44 = vpop.f32.mrb[34].mxu0 }
0x31c2   :  { %v3775_v6 = vadd.f32 %v3774_v44, %v9608_v17  ;;  %v7625_v8 = vpop.f32.mrb[35].mxu0 }
0x31c4   :  { %8755 = vtanh.f32 %v3775_v6 }
0x31ce   :  { %v8756_v58 = vpop.eup %8755 }
0x31cf   :  { %7635 = vmatmul.mubr.msk.f32.vlgmr.msra.gmra.mrb[34].mxu1 %vm76_vm1, %v8756_v58 }
0x31d0   :  { %8325 = vmatpush3.bf16.msra.mxu1 %v9642_v38  ;;  %7653 = vmatprep.mubr.msk.f32.mxu1 %vm8880_vm0, %v8881_v4 }
0x31d1   :  { %8326 = vmatprep.subr.bf16.mxu1 %v8879_v0 }
0x31d4   :  { %8328 = vmatpush3.bf16.msra.mxu1 %v9648_v60 }
0x31d5   :  { %8329 = vmatprep.subr.bf16.mxu1 %v8879_v0 }
0x31d8   :  { %8331 = vmatpush3.bf16.msra.mxu1 %v9658_v7 }
0x31d9   :  { %8332 = vmatprep.subr.bf16.mxu1 %v8879_v0 }
0x31dc   :  { %8334 = vmatpush3.bf16.msra.mxu1 %v9669_v32 }
0x31dd   :  { %8347 = vmatprep.subr.bf16.mxu1 %v8879_v0 }
0x32a2   :  { %v3848_v17 = vpop.f32.mrb[34].mxu1 }
0x32a3   :  { %v9928_v12 = vadd.f32 %v3848_v17, %v9617_v61  ;;  %v7636_v13 = vpop.f32.mrb[35].mxu1 }
0x32a5   :  { %v3852_v11 = vsel %vm2445_vm12, %v9928_v12, -inf }
0x32a6   :  { %3853 = vmax.xlane.f32.xlu0 %v3852_v11 }
0x3333   :  { %v9932_v53 = vpop.xlane.xlu0 %3853 }
0x3334   :  { %vm3862_vm14 = vcmp.eq.f32.partialorder %v9928_v12, %v9932_v53 }
0x3335   :  { %v3863_v54 = vsel %vm3862_vm14, %v9625_v30, 64 }
0x3336   :  { %v3864_v10 = vsel %vm2445_vm12, %v3863_v54, 2147483647 }
0x3337   :  { %v3866_v9 = vshra.s32 %v3864_v10, 16  ;;  %v3865_v14 = vand.u32 65535, %v3864_v10 }
0x3339   :  { %v3868_v2 = vcvt.s32.f32 %v3866_v9  ;;  %v3867_v62 = vcvt.s32.f32 %v3865_v14 }
0x333b   :  { %3869 = vmin.xlane.f32.xlu1 %v3868_v2 }
0x33c8   :  { %v3870_v61 = vpop.xlane.xlu1 %3869 }
0x33c9   :  { %vm3871_vm15 = vcmp.eq.f32.partialorder %v3868_v2, %v3870_v61  ;;  %v3876_v63 = vcvt.f32.s32 %v3870_v61 }
0x33ca   :  { %v3872_v19 = vsel %vm3871_vm15, %v3867_v62, inf }
0x33cb   :  { %3873 = vmin.xlane.f32.xlu0 %v3872_v19  ;;  %v3877_v50 = vshll.u32 %v3876_v63, 16 }
0x3458   :  { %v3874_v20 = vpop.xlane.xlu0 %3873 }
0x3459   :  { %v3875_v24 = vcvt.f32.s32 %v3874_v20 }
0x345b   :  { %v3878_v34 = vadd.s32 %v3877_v50, %v3875_v24 }
0x345d   :  { %v9942_v23 = vsel %vm3879_vm2, %v3878_v34, %v9847_v51  ;;  %vm3882_vm3 = vcmp.eq.s32.totalorder %v9625_v30, %v3878_v34 }
0x345e   :  { %v6753_v36 = vsel %vm3882_vm3, 1.0, %v8881_v4  ;;  %vm4811_vm3 = vcmp.eq.s32.totalorder %v9625_v30, 5 }
0x345f   :  { %7654 = vmatmul.mubr.msk.f32.vlgmr.msra.gmra.mrb[36].mxu1 %vm2292_vm11, %v6753_v36 }
0x3460   :  { %8349 = vmatpush3.bf16.msra.mxu1 %v9541_v26  ;;  %7694 = vmatprep.mubr.msk.f32.mxu1 %vm8880_vm0, %v8881_v4 }
0x3461   :  { %8350 = vmatprep.subr.bf16.mxu1 %v8879_v0 }
0x3464   :  { %8352 = vmatpush3.bf16.msra.mxu1 %v9547_v29 }
0x3465   :  { %8353 = vmatprep.subr.bf16.mxu1 %v8879_v0 }
0x3468   :  { %8355 = vmatpush3.bf16.msra.mxu1 %v9557_v31 }
0x3469   :  { %8356 = vmatprep.subr.bf16.mxu1 %v8879_v0 }
0x346c   :  { %8358 = vmatpush3.bf16.msra.mxu1 %v9567_v39 }
0x346d   :  { %8377 = vmatprep.subr.bf16.mxu1 %v8879_v0 }
0x3532   :  { %v3954_v51 = vpop.f32.mrb[36].mxu1 }
0x3533   :  { %v7655_v40 = vpop.f32.mrb[37].mxu1  ;;  %7665 = vmatmul.mubr.msk.f32.vlgmr.msra.gmra.mrb[36].mxu0 %vm76_vm1, %v3954_v51 }
0x3534   :  { %8343 = vmatpush3.bf16.msra.mxu0 %v9377_v41  ;;  %7675 = vmatprep.mubr.msk.f32.mxu0 %vm8880_vm0, %v8881_v4 }
0x3535   :  { %8344 = vmatprep.subr.bf16.mxu0 %v8879_v0 }
0x3538   :  { %8346 = vmatpush3.bf16.msra.mxu0 %v9390_v25 }
0x3539   :  { %8359 = vmatprep.subr.bf16.mxu0 %v8879_v0 }
0x353b   :  { %7676 = vmatmul.mubr.msk.f32.vlgmr.msra.gmra.mrb[38].mxu0 %vm76_vm1, %v9904_v42 }
0x353c   :  { %8361 = vmatpush3.bf16.msra.mxu0 %v9594_v15  ;;  %7705 = vmatprep.mubr.msk.f32.mxu0 %vm8880_vm0, %v8881_v4 }
0x353d   :  { %8362 = vmatprep.subr.bf16.mxu0 %v8879_v0 }
0x3540   :  { %8364 = vmatpush3.bf16.msra.mxu0 %v9600_v16 }
0x3541   :  { %8365 = vmatprep.subr.bf16.mxu0 %v8879_v0 }
0x3606   :  { %v4027_v57 = vpop.f32.mrb[36].mxu0 }
0x3607   :  { %v7666_v35 = vpop.f32.mrb[37].mxu0  ;;  %v4028_v52 = vadd.f32 %v9887_v56, %v4027_v57 }
0x360e   :  { %v4099_v21 = vpop.f32.mrb[38].mxu0 }
0x360f   :  { %v4100_v46 = vadd.f32 %v9880_v59, %v4099_v21  ;;  %v7677_v43 = vpop.f32.mrb[39].mxu0 }
0x3611   :  { %4111 = vrot.lane.b32.xlu1 %v4100_v46, %s8882_s25  ;;  %v4103_v28 = vadd.f32 %v4100_v46, %v4028_v52 }
0x3613   :  { %v6757_v55 = vmul.f32 -1.442695, %v4103_v28 }
0x3615   :  { %8757 = vpow2.f32 %v6757_v55 }
0x361f   :  { %v8758_v42 = vpop.eup %8757 }
0x3620   :  { %v4107_v3 = vadd.f32 1.0, %v8758_v42 }
0x3622   :  { %8759 = vrcp.f32 %v4107_v3 }
0x362c   :  { %v8760_v44 = vpop.eup %8759 }
0x362d   :  { %v4121_v11 = vsub.f32 1.0, %v8760_v44  ;;  %v4127_v10 = vmul.f32 %v8760_v44, %v9893_v5 }
0x3683   :  { %v4112_v6 = vpop.permute.xlu1 %4111 }
0x3684   :  { %v4114_v8 = vmul.f32 %v8760_v44, %v4112_v6 }
0x3686   :  { %4116 = vrot.lane.b32.xlu0 %v4114_v8, %s8882_s25 }
0x36f8   :  { %v4117_v58 = vpop.permute.xlu0 %4116 }
0x36f9   :  { %v4119_v17 = vadd.f32 %v4117_v58, %v4028_v52 }
0x36fb   :  { %8761 = vtanh.f32 %v4119_v17 }
0x3705   :  { %v8762_v13 = vpop.eup %8761 }
0x3706   :  { %4123 = vrot.lane.b32.xlu1 %v8762_v13, %s8883_s2 }
0x3778   :  { %v4124_v54 = vpop.permute.xlu1 %4123 }
0x3779   :  { %v4126_v9 = vmul.f32 %v4124_v54, %v4121_v11 }
0x377b   :  { %v9978_v2 = vadd.f32 %v4127_v10, %v4126_v9 }
0x377d   :  { %v4132_v14 = vrot.slane %v9978_v2, %v9057_v33 }
0x377f   :  { %v4133_v61 = vmul.f32 %v4132_v14, %v9525_v27  ;;  %v10003_v14 = vld [vmem:[%s10514_s13] sm:$0x1] }
0x3781   :  { %4135 = vrot.lane.b32.xlu1 %v4133_v61, %s8883_s2 }
0x3785   :  { %4167 = vrot.lane.b32.xlu1 %v9978_v2, %s8883_s2 }
0x37f3   :  { %v4136_v62 = vpop.permute.xlu1 %4135 }
0x37f4   :  { %v4138_v19 = vsel %vm76_vm1, %v4136_v62, 0.0 }
0x37f5   :  { %4139 = vadd.xlane.f32.xlu0 %v4138_v19 }
0x37f7   :  { %v9989_v54 = vpop.permute.xlu1 %4167 }
0x3882   :  { %v4140_v63 = vpop.xlane.xlu0 %4139 }
0x3883   :  { %v4141_v20 = vrot.slane %v4140_v63, 4 }
0x3885   :  { %v4142_v5 = vmax.f32 %v4140_v63, %v4141_v20  ;;  %v10020_v20 = vld [vmem:[%s10515_s15] sm:$0x1] }
0x3887   :  { %v4143_v50 = vrot.slane %v4142_v5, 2 }
0x3889   :  { %v4144_v24 = vmax.f32 %v4142_v5, %v4143_v50 }
0x388b   :  { %v4145_v34 = vrot.slane %v4144_v24, 1 }
0x388d   :  { %v4146_v36 = vmax.f32 %v4144_v24, %v4145_v34 }
0x388f   :  { %v4147_v51 = vsub.f32 %v4140_v63, %v4146_v36 }
0x3891   :  { %v4148_v40 = vmul.f32 1.442695, %v4147_v51 }
0x3893   :  { %8763 = vpow2.f32 %v4148_v40 }
0x389d   :  { %v8764_v57 = vpop.eup %8763 }
0x389e   :  { %v4150_v35 = vrot.slane %v8764_v57, 4 }
0x38a0   :  { %v4151_v21 = vadd.f32 %v8764_v57, %v4150_v35 }
0x38a2   :  { %v4152_v46 = vrot.slane %v4151_v21, 2 }
0x38a4   :  { %v4153_v43 = vadd.f32 %v4152_v46, %v4151_v21 }
0x38a6   :  { %v4154_v52 = vrot.slane %v4153_v43, 1 }
0x38a8   :  { %v4155_v28 = vadd.f32 %v4154_v52, %v4153_v43 }
0x38aa   :  { %8765 = vrcp.f32 %v4155_v28 }
0x38b4   :  { %v8766_v55 = vpop.eup %8765 }
0x38b5   :  { %v4157_v42 = vmul.f32 %v8766_v55, %v8764_v57 }
0x38b7   :  { %v4158_v3 = vmul.f32 %v4157_v42, %v9525_v27 }
0x38b9   :  { %v4159_v44 = vsel %vm2270_vm10, %v4158_v3, 0.0 }
0x38ba   :  { %v4160_v6 = vrot.slane %v4159_v44, 4 }
0x38bc   :  { %v4161_v8 = vadd.f32 %v4160_v6, %v4159_v44 }
0x38be   :  { %v4162_v58 = vrot.slane %v4161_v8, 2 }
0x38c0   :  { %v4163_v17 = vadd.f32 %v4162_v58, %v4161_v8 }
0x38c2   :  { %v4164_v13 = vrot.slane %v4163_v17, 1 }
0x38c4   :  { %v4165_v11 = vadd.f32 %v4164_v13, %v4163_v17 }
0x38c6   :  { %v4170_v10 = vsel %vm76_vm1, %v9989_v54, %v4165_v11 }
0x38c7   :  { %7695 = vmatmul.mubr.msk.f32.vlgmr.msra.gmra.mrb[38].mxu1 %vm2292_vm11, %v4170_v10 }
0x38c8   :  { %8379 = vmatpush3.bf16.msra.mxu1 %v9366_v18  ;;  %7735 = vmatprep.mubr.msk.f32.mxu1 %vm8880_vm0, %v8881_v4 }
0x38c9   :  { %8380 = vmatprep.subr.bf16.mxu1 %v8879_v0 }
0x38cc   :  { %8382 = vmatpush3.bf16.msra.mxu1 %v9386_v45 }
0x38cd   :  { %8383 = vmatprep.subr.bf16.mxu1 %v8879_v0 }
0x399a   :  { %v4240_v9 = vpop.f32.mrb[38].mxu1 }
0x399b   :  { %v4241_v61 = vadd.f32 %v10003_v14, %v4240_v9  ;;  %v7696_v62 = vpop.f32.mrb[39].mxu1 }
0x399d   :  { %8767 = vtanh.f32 %v4241_v61 }
0x39a7   :  { %v8768_v19 = vpop.eup %8767 }
0x39a8   :  { %7706 = vmatmul.mubr.msk.f32.vlgmr.msra.gmra.mrb[40].mxu0 %vm76_vm1, %v8768_v19 }
0x39a9   :  { %8367 = vmatpush3.bf16.msra.mxu0 %v9642_v38  ;;  %7724 = vmatprep.mubr.msk.f32.mxu0 %vm8880_vm0, %v8881_v4 }
0x39aa   :  { %8368 = vmatprep.subr.bf16.mxu0 %v8879_v0 }
0x39ad   :  { %8370 = vmatpush3.bf16.msra.mxu0 %v9648_v60 }
0x39ae   :  { %8371 = vmatprep.subr.bf16.mxu0 %v8879_v0 }
0x39b1   :  { %8373 = vmatpush3.bf16.msra.mxu0 %v9658_v7 }
0x39b2   :  { %8374 = vmatprep.subr.bf16.mxu0 %v8879_v0 }
0x39b5   :  { %8376 = vmatpush3.bf16.msra.mxu0 %v9669_v32 }
0x39b6   :  { %8389 = vmatprep.subr.bf16.mxu0 %v8879_v0 }
0x3a7b   :  { %v4314_v63 = vpop.f32.mrb[40].mxu0 }
0x3a7c   :  { %v10023_v5 = vadd.f32 %v10020_v20, %v4314_v63  ;;  %v7707_v50 = vpop.f32.mrb[41].mxu0 }
0x3a7e   :  { %v4318_v24 = vsel %vm2445_vm12, %v10023_v5, -inf }
0x3a7f   :  { %4319 = vmax.xlane.f32.xlu1 %v4318_v24 }
0x3b0c   :  { %v10027_v34 = vpop.xlane.xlu1 %4319 }
0x3b0d   :  { %vm4328_vm6 = vcmp.eq.f32.partialorder %v10023_v5, %v10027_v34 }
0x3b0e   :  { %v4329_v36 = vsel %vm4328_vm6, %v9625_v30, 64 }
0x3b0f   :  { %v4330_v51 = vsel %vm2445_vm12, %v4329_v36, 2147483647 }
0x3b10   :  { %v4332_v40 = vshra.s32 %v4330_v51, 16  ;;  %v4331_v35 = vand.u32 65535, %v4330_v51 }
0x3b12   :  { %v4334_v57 = vcvt.s32.f32 %v4332_v40  ;;  %v4333_v46 = vcvt.s32.f32 %v4331_v35 }
0x3b14   :  { %4335 = vmin.xlane.f32.xlu0 %v4334_v57 }
0x3ba1   :  { %v4336_v21 = vpop.xlane.xlu0 %4335 }
0x3ba2   :  { %vm4337_vm7 = vcmp.eq.f32.partialorder %v4334_v57, %v4336_v21  ;;  %v4342_v52 = vcvt.f32.s32 %v4336_v21 }
0x3ba3   :  { %v4338_v43 = vsel %vm4337_vm7, %v4333_v46, inf }
0x3ba4   :  { %4339 = vmin.xlane.f32.xlu0 %v4338_v43  ;;  %v4343_v55 = vshll.u32 %v4342_v52, 16 }
0x3c31   :  { %v4340_v28 = vpop.xlane.xlu0 %4339 }
0x3c32   :  { %v4341_v42 = vcvt.f32.s32 %v4340_v28 }
0x3c34   :  { %v4344_v3 = vadd.s32 %v4343_v55, %v4341_v42 }
0x3c36   :  { %v10037_v44 = vsel %vm4345_vm8, %v4344_v3, %v9942_v23  ;;  %vm4348_vm13 = vcmp.eq.s32.totalorder %v9625_v30, %v4344_v3 }
0x3c37   :  { %v6760_v6 = vsel %vm4348_vm13, 1.0, %v8881_v4 }
0x3c38   :  { %7725 = vmatmul.mubr.msk.f32.vlgmr.msra.gmra.mrb[42].mxu0 %vm2292_vm11, %v6760_v6 }
0x3c39   :  { %8391 = vmatpush3.bf16.msra.mxu0 %v9541_v26  ;;  %7765 = vmatprep.mubr.msk.f32.mxu0 %vm8880_vm0, %v8881_v4 }
0x3c3a   :  { %8392 = vmatprep.subr.bf16.mxu0 %v8879_v0 }
0x3c3d   :  { %8394 = vmatpush3.bf16.msra.mxu0 %v9547_v29 }
0x3c3e   :  { %8395 = vmatprep.subr.bf16.mxu0 %v8879_v0 }
0x3c41   :  { %8397 = vmatpush3.bf16.msra.mxu0 %v9557_v31 }
0x3c42   :  { %8398 = vmatprep.subr.bf16.mxu0 %v8879_v0 }
0x3c45   :  { %8400 = vmatpush3.bf16.msra.mxu0 %v9567_v39 }
0x3c46   :  { %8419 = vmatprep.subr.bf16.mxu0 %v8879_v0 }
0x3d0b   :  { %v4420_v23 = vpop.f32.mrb[42].mxu0 }
0x3d0c   :  { %v7726_v8 = vpop.f32.mrb[43].mxu0  ;;  %7736 = vmatmul.mubr.msk.f32.vlgmr.msra.gmra.mrb[40].mxu1 %vm76_vm1, %v4420_v23 }
0x3d0d   :  { %8385 = vmatpush3.bf16.msra.mxu1 %v9377_v41  ;;  %7746 = vmatprep.mubr.msk.f32.mxu1 %vm8880_vm0, %v8881_v4 }
0x3d0e   :  { %8386 = vmatprep.subr.bf16.mxu1 %v8879_v0 }
0x3d11   :  { %8388 = vmatpush3.bf16.msra.mxu1 %v9390_v25 }
0x3d12   :  { %8401 = vmatprep.subr.bf16.mxu1 %v8879_v0 }
0x3d14   :  { %7747 = vmatmul.mubr.msk.f32.vlgmr.msra.gmra.mrb[42].mxu1 %vm76_vm1, %v9989_v54 }
0x3d15   :  { %8403 = vmatpush3.bf16.msra.mxu1 %v9594_v15  ;;  %7776 = vmatprep.mubr.msk.f32.mxu1 %vm8880_vm0, %v8881_v4 }
0x3d16   :  { %8404 = vmatprep.subr.bf16.mxu1 %v8879_v0 }
0x3d19   :  { %8406 = vmatpush3.bf16.msra.mxu1 %v9600_v16 }
0x3d1a   :  { %8407 = vmatprep.subr.bf16.mxu1 %v8879_v0 }
0x3ddf   :  { %v4493_v58 = vpop.f32.mrb[40].mxu1 }
0x3de0   :  { %v7737_v17 = vpop.f32.mrb[41].mxu1  ;;  %v4494_v54 = vadd.f32 %v9887_v56, %v4493_v58 }
0x3de7   :  { %v4565_v13 = vpop.f32.mrb[42].mxu1 }
0x3de8   :  { %v4566_v11 = vadd.f32 %v9880_v59, %v4565_v13  ;;  %v7748_v10 = vpop.f32.mrb[43].mxu1 }
0x3dea   :  { %4577 = vrot.lane.b32.xlu0 %v4566_v11, %s8882_s25  ;;  %v4569_v9 = vadd.f32 %v4566_v11, %v4494_v54 }
0x3dec   :  { %v6764_v61 = vmul.f32 -1.442695, %v4569_v9 }
0x3dee   :  { %8769 = vpow2.f32 %v6764_v61 }
0x3df8   :  { %v8770_v62 = vpop.eup %8769 }
0x3df9   :  { %v4573_v19 = vadd.f32 1.0, %v8770_v62 }
0x3dfb   :  { %8771 = vrcp.f32 %v4573_v19 }
0x3e05   :  { %v8772_v63 = vpop.eup %8771 }
0x3e06   :  { %v4587_v57 = vsub.f32 1.0, %v8772_v63  ;;  %v4593_v21 = vmul.f32 %v8772_v63, %v9978_v2 }
0x3e5c   :  { %v4578_v50 = vpop.permute.xlu0 %4577 }
0x3e5d   :  { %v4580_v24 = vmul.f32 %v8772_v63, %v4578_v50 }
0x3e5f   :  { %4582 = vrot.lane.b32.xlu1 %v4580_v24, %s8882_s25 }
0x3ed1   :  { %v4583_v36 = vpop.permute.xlu1 %4582 }
0x3ed2   :  { %v4585_v51 = vadd.f32 %v4583_v36, %v4494_v54 }
0x3ed4   :  { %8773 = vtanh.f32 %v4585_v51 }
0x3ede   :  { %v8774_v40 = vpop.eup %8773 }
0x3edf   :  { %4589 = vrot.lane.b32.xlu1 %v8774_v40, %s8883_s2 }
0x3f51   :  { %v4590_v35 = vpop.permute.xlu1 %4589 }
0x3f52   :  { %v4592_v46 = vmul.f32 %v4590_v35, %v4587_v57 }
0x3f54   :  { %v10073_v43 = vadd.f32 %v4593_v21, %v4592_v46 }
0x3f56   :  { %v4598_v52 = vrot.slane %v10073_v43, %v9057_v33 }
0x3f58   :  { %v4599_v28 = vmul.f32 %v4598_v52, %v9525_v27 }
0x3f5a   :  { %4601 = vrot.lane.b32.xlu0 %v4599_v28, %s8883_s2 }
0x3f5e   :  { %4633 = vrot.lane.b32.xlu0 %v10073_v43, %s8883_s2 }
0x3fcc   :  { %v4602_v55 = vpop.permute.xlu0 %4601 }
0x3fcd   :  { %v4604_v42 = vsel %vm76_vm1, %v4602_v55, 0.0 }
0x3fce   :  { %4605 = vadd.xlane.f32.xlu1 %v4604_v42 }
0x3fd0   :  { %v10084_v28 = vpop.permute.xlu0 %4633 }
0x405b   :  { %v4606_v3 = vpop.xlane.xlu1 %4605 }
0x405c   :  { %v4607_v6 = vrot.slane %v4606_v3, 4 }
0x405e   :  { %v4608_v2 = vmax.f32 %v4606_v3, %v4607_v6 }
0x4060   :  { %v4609_v23 = vrot.slane %v4608_v2, 2 }
0x4062   :  { %v4610_v8 = vmax.f32 %v4608_v2, %v4609_v23 }
0x4064   :  { %v4611_v58 = vrot.slane %v4610_v8, 1 }
0x4066   :  { %v4612_v17 = vmax.f32 %v4610_v8, %v4611_v58 }
0x4068   :  { %v4613_v13 = vsub.f32 %v4606_v3, %v4612_v17 }
0x406a   :  { %v4614_v11 = vmul.f32 1.442695, %v4613_v13 }
0x406c   :  { %8775 = vpow2.f32 %v4614_v11 }
0x4076   :  { %v8776_v10 = vpop.eup %8775 }
0x4077   :  { %v4616_v54 = vrot.slane %v8776_v10, 4 }
0x4079   :  { %v4617_v9 = vadd.f32 %v8776_v10, %v4616_v54 }
0x407b   :  { %v4618_v61 = vrot.slane %v4617_v9, 2 }
0x407d   :  { %v4619_v62 = vadd.f32 %v4618_v61, %v4617_v9 }
0x407f   :  { %v4620_v19 = vrot.slane %v4619_v62, 1 }
0x4081   :  { %v4621_v63 = vadd.f32 %v4620_v19, %v4619_v62 }
0x4083   :  { %8777 = vrcp.f32 %v4621_v63 }
0x408d   :  { %v8778_v50 = vpop.eup %8777 }
0x408e   :  { %v4623_v24 = vmul.f32 %v8778_v50, %v8776_v10 }
0x4090   :  { %v4624_v36 = vmul.f32 %v4623_v24, %v9525_v27 }
0x4092   :  { %v4625_v51 = vsel %vm2270_vm10, %v4624_v36, 0.0 }
0x4093   :  { %v4626_v40 = vrot.slane %v4625_v51, 4 }
0x4095   :  { %v4627_v57 = vadd.f32 %v4626_v40, %v4625_v51 }
0x4097   :  { %v4628_v35 = vrot.slane %v4627_v57, 2 }
0x4099   :  { %v4629_v21 = vadd.f32 %v4628_v35, %v4627_v57 }
0x409b   :  { %v4630_v46 = vrot.slane %v4629_v21, 1 }
0x409d   :  { %v4631_v52 = vadd.f32 %v4630_v46, %v4629_v21 }
0x409f   :  { %v4636_v55 = vsel %vm76_vm1, %v10084_v28, %v4631_v52 }
0x40a0   :  { %7766 = vmatmul.mubr.msk.f32.vlgmr.msra.gmra.mrb[44].mxu0 %vm2292_vm11, %v4636_v55 }
0x40a1   :  { %8421 = vmatpush3.bf16.msra.mxu0 %v9366_v18  ;;  %7806 = vmatprep.mubr.msk.f32.mxu0 %vm8880_vm0, %v8881_v4 }
0x40a2   :  { %8422 = vmatprep.subr.bf16.mxu0 %v8879_v0 }
0x40a5   :  { %8424 = vmatpush3.bf16.msra.mxu0 %v9386_v45 }
0x40a6   :  { %8425 = vmatprep.subr.bf16.mxu0 %v8879_v0 }
0x4173   :  { %v4706_v42 = vpop.f32.mrb[44].mxu0 }
0x4174   :  { %v4707_v3 = vadd.f32 %v10003_v14, %v4706_v42  ;;  %v7767_v6 = vpop.f32.mrb[45].mxu0 }
0x4176   :  { %8779 = vtanh.f32 %v4707_v3 }
0x4180   :  { %v8780_v2 = vpop.eup %8779 }
0x4181   :  { %7777 = vmatmul.mubr.msk.f32.vlgmr.msra.gmra.mrb[44].mxu1 %vm76_vm1, %v8780_v2 }
0x4182   :  { %8409 = vmatpush3.bf16.msra.mxu1 %v9642_v38  ;;  %7795 = vmatprep.mubr.msk.f32.mxu1 %vm8880_vm0, %v8881_v4 }
0x4183   :  { %8410 = vmatprep.subr.bf16.mxu1 %v8879_v0 }
0x4186   :  { %8412 = vmatpush3.bf16.msra.mxu1 %v9648_v60 }
0x4187   :  { %8413 = vmatprep.subr.bf16.mxu1 %v8879_v0 }
0x418a   :  { %8415 = vmatpush3.bf16.msra.mxu1 %v9658_v7 }
0x418b   :  { %8416 = vmatprep.subr.bf16.mxu1 %v8879_v0 }
0x418e   :  { %8418 = vmatpush3.bf16.msra.mxu1 %v9669_v32 }
0x418f   :  { %8431 = vmatprep.subr.bf16.mxu1 %v8879_v0 }
0x4254   :  { %v4780_v23 = vpop.f32.mrb[44].mxu1 }
0x4255   :  { %v10108_v8 = vadd.f32 %v10020_v20, %v4780_v23  ;;  %v7778_v58 = vpop.f32.mrb[45].mxu1 }
0x4257   :  { %v4784_v17 = vsel %vm2445_vm12, %v10108_v8, -inf }
0x4258   :  { %4785 = vmax.xlane.f32.xlu0 %v4784_v17 }
0x42e5   :  { %v10112_v13 = vpop.xlane.xlu0 %4785 }
0x42e6   :  { %vm4794_vm14 = vcmp.eq.f32.partialorder %v10108_v8, %v10112_v13 }
0x42e7   :  { %v4795_v11 = vsel %vm4794_vm14, %v9625_v30, 64  ;;  %vm5277_vm14 = vcmp.eq.s32.totalorder %v9625_v30, 6 }
0x42e8   :  { %v4796_v10 = vsel %vm2445_vm12, %v4795_v11, 2147483647 }
0x42e9   :  { %v4798_v54 = vshra.s32 %v4796_v10, 16  ;;  %v4797_v61 = vand.u32 65535, %v4796_v10 }
0x42eb   :  { %v4800_v9 = vcvt.s32.f32 %v4798_v54  ;;  %v4799_v19 = vcvt.s32.f32 %v4797_v61 }
0x42ed   :  { %4801 = vmin.xlane.f32.xlu1 %v4800_v9 }
0x437a   :  { %v4802_v62 = vpop.xlane.xlu1 %4801 }
0x437b   :  { %vm4803_vm15 = vcmp.eq.f32.partialorder %v4800_v9, %v4802_v62  ;;  %v4808_v50 = vcvt.f32.s32 %v4802_v62 }
0x437c   :  { %v4804_v63 = vsel %vm4803_vm15, %v4799_v19, inf }
0x437d   :  { %4805 = vmin.xlane.f32.xlu0 %v4804_v63  ;;  %v4809_v36 = vshll.u32 %v4808_v50, 16 }
0x440a   :  { %v4806_v24 = vpop.xlane.xlu0 %4805 }
0x440b   :  { %v4807_v51 = vcvt.f32.s32 %v4806_v24 }
0x440d   :  { %v4810_v40 = vadd.s32 %v4809_v36, %v4807_v51 }
0x440f   :  { %v10122_v57 = vsel %vm4811_vm3, %v4810_v40, %v10037_v44  ;;  %vm4814_vm6 = vcmp.eq.s32.totalorder %v9625_v30, %v4810_v40 }
0x4410   :  { %v6767_v35 = vsel %vm4814_vm6, 1.0, %v8881_v4 }
0x4411   :  { %7796 = vmatmul.mubr.msk.f32.vlgmr.msra.gmra.mrb[46].mxu1 %vm2292_vm11, %v6767_v35 }
0x4412   :  { %8433 = vmatpush3.bf16.msra.mxu1 %v9541_v26  ;;  %7836 = vmatprep.mubr.msk.f32.mxu1 %vm8880_vm0, %v8881_v4 }
0x4413   :  { %8434 = vmatprep.subr.bf16.mxu1 %v8879_v0 }
0x4416   :  { %8436 = vmatpush3.bf16.msra.mxu1 %v9547_v29 }
0x4417   :  { %8437 = vmatprep.subr.bf16.mxu1 %v8879_v0 }
0x441a   :  { %8439 = vmatpush3.bf16.msra.mxu1 %v9557_v31 }
0x441b   :  { %8440 = vmatprep.subr.bf16.mxu1 %v8879_v0 }
0x441e   :  { %8442 = vmatpush3.bf16.msra.mxu1 %v9567_v39 }
0x441f   :  { %8461 = vmatprep.subr.bf16.mxu1 %v8879_v0 }
0x44e4   :  { %v4886_v44 = vpop.f32.mrb[46].mxu1 }
0x44e5   :  { %v7797_v21 = vpop.f32.mrb[47].mxu1  ;;  %7807 = vmatmul.mubr.msk.f32.vlgmr.msra.gmra.mrb[46].mxu0 %vm76_vm1, %v4886_v44 }
0x44e6   :  { %8427 = vmatpush3.bf16.msra.mxu0 %v9377_v41  ;;  %7817 = vmatprep.mubr.msk.f32.mxu0 %vm8880_vm0, %v8881_v4 }
0x44e7   :  { %8428 = vmatprep.subr.bf16.mxu0 %v8879_v0 }
0x44ea   :  { %8430 = vmatpush3.bf16.msra.mxu0 %v9390_v25 }
0x44eb   :  { %8443 = vmatprep.subr.bf16.mxu0 %v8879_v0 }
0x44ed   :  { %7818 = vmatmul.mubr.msk.f32.vlgmr.msra.gmra.mrb[48].mxu0 %vm76_vm1, %v10084_v28 }
0x44ee   :  { %8445 = vmatpush3.bf16.msra.mxu0 %v9594_v15  ;;  %7847 = vmatprep.mubr.msk.f32.mxu0 %vm8880_vm0, %v8881_v4 }
0x44ef   :  { %8446 = vmatprep.subr.bf16.mxu0 %v8879_v0 }
0x44f2   :  { %8448 = vmatpush3.bf16.msra.mxu0 %v9600_v16 }
0x44f3   :  { %8449 = vmatprep.subr.bf16.mxu0 %v8879_v0 }
0x45b8   :  { %v4959_v46 = vpop.f32.mrb[46].mxu0 }
0x45b9   :  { %v7808_v52 = vpop.f32.mrb[47].mxu0  ;;  %v4960_v28 = vadd.f32 %v9887_v56, %v4959_v46 }
0x45c0   :  { %v5031_v55 = vpop.f32.mrb[48].mxu0 }
0x45c1   :  { %v5032_v42 = vadd.f32 %v9880_v59, %v5031_v55  ;;  %v7819_v3 = vpop.f32.mrb[49].mxu0 }
0x45c3   :  { %5043 = vrot.lane.b32.xlu1 %v5032_v42, %s8882_s25  ;;  %v5035_v6 = vadd.f32 %v5032_v42, %v4960_v28 }
0x45c5   :  { %v6771_v2 = vmul.f32 -1.442695, %v5035_v6 }
0x45c7   :  { %8781 = vpow2.f32 %v6771_v2 }
0x45d1   :  { %v8782_v23 = vpop.eup %8781 }
0x45d2   :  { %v5039_v58 = vadd.f32 1.0, %v8782_v23 }
0x45d4   :  { %8783 = vrcp.f32 %v5039_v58 }
0x45de   :  { %v8784_v17 = vpop.eup %8783 }
0x45df   :  { %v5053_v61 = vsub.f32 1.0, %v8784_v17  ;;  %v5059_v56 = vmul.f32 %v8784_v17, %v10073_v43 }
0x4635   :  { %v5044_v11 = vpop.permute.xlu1 %5043 }
0x4636   :  { %v5046_v10 = vmul.f32 %v8784_v17, %v5044_v11 }
0x4638   :  { %5048 = vrot.lane.b32.xlu0 %v5046_v10, %s8882_s25 }
0x46aa   :  { %v5049_v54 = vpop.permute.xlu0 %5048 }
0x46ab   :  { %v5051_v9 = vadd.f32 %v5049_v54, %v4960_v28 }
0x46ad   :  { %8785 = vtanh.f32 %v5051_v9 }
0x46b7   :  { %v8786_v59 = vpop.eup %8785 }
0x46b8   :  { %5055 = vrot.lane.b32.xlu1 %v8786_v59, %s8883_s2 }
0x472a   :  { %v5056_v62 = vpop.permute.xlu1 %5055 }
0x472b   :  { %v5058_v19 = vmul.f32 %v5056_v62, %v5053_v61 }
0x472d   :  { %v10158_v63 = vadd.f32 %v5059_v56, %v5058_v19 }
0x472f   :  { %v5064_v50 = vrot.slane %v10158_v63, %v9057_v33 }
0x4731   :  { %v5065_v24 = vmul.f32 %v5064_v50, %v9525_v27 }
0x4733   :  { %5067 = vrot.lane.b32.xlu1 %v5065_v24, %s8883_s2 }
0x4737   :  { %5099 = vrot.lane.b32.xlu1 %v10158_v63, %s8883_s2 }
0x47a5   :  { %v5068_v36 = vpop.permute.xlu1 %5067 }
0x47a6   :  { %v5070_v51 = vsel %vm76_vm1, %v5068_v36, 0.0 }
0x47a7   :  { %5071 = vadd.xlane.f32.xlu0 %v5070_v51 }
0x47a9   :  { %v10169_v24 = vpop.permute.xlu1 %5099 }
0x4834   :  { %v5072_v40 = vpop.xlane.xlu0 %5071 }
0x4835   :  { %v5073_v35 = vrot.slane %v5072_v40, 4 }
0x4837   :  { %v5074_v43 = vmax.f32 %v5072_v40, %v5073_v35 }
0x4839   :  { %v5075_v44 = vrot.slane %v5074_v43, 2 }
0x483b   :  { %v5076_v21 = vmax.f32 %v5074_v43, %v5075_v44 }
0x483d   :  { %v5077_v46 = vrot.slane %v5076_v21, 1 }
0x483f   :  { %v5078_v52 = vmax.f32 %v5076_v21, %v5077_v46 }
0x4841   :  { %v5079_v55 = vsub.f32 %v5072_v40, %v5078_v52 }
0x4843   :  { %v5080_v42 = vmul.f32 1.442695, %v5079_v55 }
0x4845   :  { %8787 = vpow2.f32 %v5080_v42 }
0x484f   :  { %v8788_v3 = vpop.eup %8787 }
0x4850   :  { %v5082_v28 = vrot.slane %v8788_v3, 4 }
0x4852   :  { %v5083_v6 = vadd.f32 %v8788_v3, %v5082_v28 }
0x4854   :  { %v5084_v2 = vrot.slane %v5083_v6, 2 }
0x4856   :  { %v5085_v23 = vadd.f32 %v5084_v2, %v5083_v6 }
0x4858   :  { %v5086_v58 = vrot.slane %v5085_v23, 1 }
0x485a   :  { %v5087_v17 = vadd.f32 %v5086_v58, %v5085_v23 }
0x485c   :  { %8789 = vrcp.f32 %v5087_v17 }
0x4866   :  { %v8790_v11 = vpop.eup %8789 }
0x4867   :  { %v5089_v10 = vmul.f32 %v8790_v11, %v8788_v3 }
0x4869   :  { %v5090_v54 = vmul.f32 %v5089_v10, %v9525_v27 }
0x486b   :  { %v5091_v9 = vsel %vm2270_vm10, %v5090_v54, 0.0 }
0x486c   :  { %v5092_v59 = vrot.slane %v5091_v9, 4 }
0x486e   :  { %v5093_v61 = vadd.f32 %v5092_v59, %v5091_v9 }
0x4870   :  { %v5094_v62 = vrot.slane %v5093_v61, 2 }
0x4872   :  { %v5095_v56 = vadd.f32 %v5094_v62, %v5093_v61 }
0x4874   :  { %v5096_v19 = vrot.slane %v5095_v56, 1 }
0x4876   :  { %v5097_v50 = vadd.f32 %v5096_v19, %v5095_v56 }
0x4878   :  { %v5102_v36 = vsel %vm76_vm1, %v10169_v24, %v5097_v50 }
0x4879   :  { %7837 = vmatmul.mubr.msk.f32.vlgmr.msra.gmra.mrb[48].mxu1 %vm2292_vm11, %v5102_v36 }
0x487a   :  { %8463 = vmatpush3.bf16.msra.mxu1 %v9366_v18  ;;  %7877 = vmatprep.mubr.msk.f32.mxu1 %vm8880_vm0, %v8881_v4 }
0x487b   :  { %8464 = vmatprep.subr.bf16.mxu1 %v8879_v0 }
0x487e   :  { %8466 = vmatpush3.bf16.msra.mxu1 %v9386_v45 }
0x487f   :  { %8467 = vmatprep.subr.bf16.mxu1 %v8879_v0 }
0x494c   :  { %v5172_v51 = vpop.f32.mrb[48].mxu1 }
0x494d   :  { %v5173_v40 = vadd.f32 %v10003_v14, %v5172_v51  ;;  %v7838_v35 = vpop.f32.mrb[49].mxu1  ;;  %v10240_v51 = vld [vmem:[%s10510_s11] sm:$0x1] }
0x494e   :  { %v10247_v35 = vld [vmem:[%s10511_s10] sm:$0x1] }
0x494f   :  { %8791 = vtanh.f32 %v5173_v40 }
0x4959   :  { %v8792_v43 = vpop.eup %8791 }
0x495a   :  { %7848 = vmatmul.mubr.msk.f32.vlgmr.msra.gmra.mrb[50].mxu0 %vm76_vm1, %v8792_v43 }
0x495b   :  { %8451 = vmatpush3.bf16.msra.mxu0 %v9642_v38  ;;  %7866 = vmatprep.mubr.msk.f32.mxu0 %vm8880_vm0, %v8881_v4 }
0x495c   :  { %8452 = vmatprep.subr.bf16.mxu0 %v8879_v0 }
0x495f   :  { %8454 = vmatpush3.bf16.msra.mxu0 %v9648_v60 }
0x4960   :  { %8455 = vmatprep.subr.bf16.mxu0 %v8879_v0 }
0x4963   :  { %8457 = vmatpush3.bf16.msra.mxu0 %v9658_v7 }
0x4964   :  { %8458 = vmatprep.subr.bf16.mxu0 %v8879_v0 }
0x4967   :  { %8460 = vmatpush3.bf16.msra.mxu0 %v9669_v32 }
0x4968   :  { %8473 = vmatprep.subr.bf16.mxu0 %v8879_v0 }
0x4a2d   :  { %v5246_v44 = vpop.f32.mrb[50].mxu0 }
0x4a2e   :  { %v10193_v21 = vadd.f32 %v10020_v20, %v5246_v44  ;;  %v7849_v46 = vpop.f32.mrb[51].mxu0 }
0x4a30   :  { %v5250_v52 = vsel %vm2445_vm12, %v10193_v21, -inf }
0x4a31   :  { %5251 = vmax.xlane.f32.xlu1 %v5250_v52 }
0x4abe   :  { %v10197_v55 = vpop.xlane.xlu1 %5251 }
0x4abf   :  { %vm5260_vm7 = vcmp.eq.f32.partialorder %v10193_v21, %v10197_v55 }
0x4ac0   :  { %v5261_v42 = vsel %vm5260_vm7, %v9625_v30, 64 }
0x4ac1   :  { %v5262_v3 = vsel %vm2445_vm12, %v5261_v42, 2147483647 }
0x4ac2   :  { %v5264_v28 = vshra.s32 %v5262_v3, 16  ;;  %v5263_v2 = vand.u32 65535, %v5262_v3 }
0x4ac4   :  { %v5266_v6 = vcvt.s32.f32 %v5264_v28  ;;  %v5265_v58 = vcvt.s32.f32 %v5263_v2 }
0x4ac6   :  { %5267 = vmin.xlane.f32.xlu0 %v5266_v6 }
0x4b53   :  { %v5268_v23 = vpop.xlane.xlu0 %5267 }
0x4b54   :  { %vm5269_vm13 = vcmp.eq.f32.partialorder %v5266_v6, %v5268_v23  ;;  %v5274_v11 = vcvt.f32.s32 %v5268_v23 }
0x4b55   :  { %v5270_v17 = vsel %vm5269_vm13, %v5265_v58, inf  ;;  %vm5743_vm13 = vcmp.eq.s32.totalorder %v9625_v30, 7 }
0x4b56   :  { %5271 = vmin.xlane.f32.xlu0 %v5270_v17  ;;  %v5275_v54 = vshll.u32 %v5274_v11, 16 }
0x4be3   :  { %v5272_v10 = vpop.xlane.xlu0 %5271 }
0x4be4   :  { %v5273_v9 = vcvt.f32.s32 %v5272_v10 }
0x4be6   :  { %v5276_v59 = vadd.s32 %v5275_v54, %v5273_v9 }
0x4be8   :  { %v10207_v61 = vsel %vm5277_vm14, %v5276_v59, %v10122_v57  ;;  %vm5280_vm15 = vcmp.eq.s32.totalorder %v9625_v30, %v5276_v59 }
0x4be9   :  { %v6774_v62 = vsel %vm5280_vm15, 1.0, %v8881_v4 }
0x4bea   :  { %7867 = vmatmul.mubr.msk.f32.vlgmr.msra.gmra.mrb[52].mxu0 %vm2292_vm11, %v6774_v62 }
0x4beb   :  { %8475 = vmatpush3.bf16.msra.mxu0 %v9541_v26  ;;  %7907 = vmatprep.mubr.msk.f32.mxu0 %vm8880_vm0, %v8881_v4 }
0x4bec   :  { %8476 = vmatprep.subr.bf16.mxu0 %v8879_v0 }
0x4bef   :  { %8478 = vmatpush3.bf16.msra.mxu0 %v9547_v29 }
0x4bf0   :  { %8479 = vmatprep.subr.bf16.mxu0 %v8879_v0 }
0x4bf3   :  { %8481 = vmatpush3.bf16.msra.mxu0 %v9557_v31 }
0x4bf4   :  { %8482 = vmatprep.subr.bf16.mxu0 %v8879_v0 }
0x4bf7   :  { %8484 = vmatpush3.bf16.msra.mxu0 %v9567_v39 }
0x4bf8   :  { %8503 = vmatprep.subr.bf16.mxu0 %v8879_v0 }
0x4cbd   :  { %v5352_v57 = vpop.f32.mrb[52].mxu0 }
0x4cbe   :  { %v7868_v56 = vpop.f32.mrb[53].mxu0  ;;  %7878 = vmatmul.mubr.msk.f32.vlgmr.msra.gmra.mrb[50].mxu1 %vm76_vm1, %v5352_v57 }
0x4cbf   :  { %8469 = vmatpush3.bf16.msra.mxu1 %v9377_v41  ;;  %7888 = vmatprep.mubr.msk.f32.mxu1 %vm8880_vm0, %v8881_v4 }
0x4cc0   :  { %8470 = vmatprep.subr.bf16.mxu1 %v8879_v0 }
0x4cc3   :  { %8472 = vmatpush3.bf16.msra.mxu1 %v9390_v25 }
0x4cc4   :  { %8485 = vmatprep.subr.bf16.mxu1 %v8879_v0 }
0x4cc6   :  { %7889 = vmatmul.mubr.msk.f32.vlgmr.msra.gmra.mrb[52].mxu1 %vm76_vm1, %v10169_v24 }
0x4cc7   :  { %8487 = vmatpush3.bf16.msra.mxu1 %v9594_v15  ;;  %7918 = vmatprep.mubr.msk.f32.mxu1 %vm8880_vm0, %v8881_v4 }
0x4cc8   :  { %8488 = vmatprep.subr.bf16.mxu1 %v8879_v0 }
0x4ccb   :  { %8490 = vmatpush3.bf16.msra.mxu1 %v9600_v16 }
0x4ccc   :  { %8491 = vmatprep.subr.bf16.mxu1 %v8879_v0 }
0x4d91   :  { %v5425_v19 = vpop.f32.mrb[50].mxu1 }
0x4d92   :  { %v7879_v50 = vpop.f32.mrb[51].mxu1  ;;  %v5426_v43 = vadd.f32 %v10247_v35, %v5425_v19 }
0x4d99   :  { %v5497_v36 = vpop.f32.mrb[52].mxu1 }
0x4d9a   :  { %v5498_v24 = vadd.f32 %v10240_v51, %v5497_v36  ;;  %v7890_v40 = vpop.f32.mrb[53].mxu1 }
0x4d9c   :  { %5509 = vrot.lane.b32.xlu0 %v5498_v24, %s8882_s25  ;;  %v5501_v44 = vadd.f32 %v5498_v24, %v5426_v43 }
0x4d9e   :  { %v6778_v46 = vmul.f32 -1.442695, %v5501_v44 }
0x4da0   :  { %8793 = vpow2.f32 %v6778_v46 }
0x4daa   :  { %v8794_v52 = vpop.eup %8793 }
0x4dab   :  { %v5505_v42 = vadd.f32 1.0, %v8794_v52 }
0x4dad   :  { %8795 = vrcp.f32 %v5505_v42 }
0x4db7   :  { %v8796_v3 = vpop.eup %8795 }
0x4db8   :  { %v5519_v17 = vsub.f32 1.0, %v8796_v3  ;;  %v5525_v10 = vmul.f32 %v8796_v3, %v10158_v63 }
0x4e0e   :  { %v5510_v28 = vpop.permute.xlu0 %5509 }
0x4e0f   :  { %v5512_v6 = vmul.f32 %v8796_v3, %v5510_v28 }
0x4e11   :  { %5514 = vrot.lane.b32.xlu1 %v5512_v6, %s8882_s25 }
0x4e83   :  { %v5515_v2 = vpop.permute.xlu1 %5514 }
0x4e84   :  { %v5517_v23 = vadd.f32 %v5515_v2, %v5426_v43 }
0x4e86   :  { %8797 = vtanh.f32 %v5517_v23 }
0x4e90   :  { %v8798_v58 = vpop.eup %8797 }
0x4e91   :  { %5521 = vrot.lane.b32.xlu1 %v8798_v58, %s8883_s2 }
0x4f03   :  { %v5522_v11 = vpop.permute.xlu1 %5521 }
0x4f04   :  { %v5524_v54 = vmul.f32 %v5522_v11, %v5519_v17 }
0x4f06   :  { %v10253_v9 = vadd.f32 %v5525_v10, %v5524_v54 }
0x4f08   :  { %v5530_v59 = vrot.slane %v10253_v9, %v9057_v33 }
0x4f0a   :  { %v5531_v62 = vmul.f32 %v5530_v59, %v9525_v27 }
0x4f0c   :  { %5533 = vrot.lane.b32.xlu0 %v5531_v62, %s8883_s2 }
0x4f10   :  { %5565 = vrot.lane.b32.xlu0 %v10253_v9, %s8883_s2 }
0x4f7e   :  { %v5534_v57 = vpop.permute.xlu0 %5533 }
0x4f7f   :  { %v5536_v56 = vsel %vm76_vm1, %v5534_v57, 0.0 }
0x4f80   :  { %5537 = vadd.xlane.f32.xlu1 %v5536_v56 }
0x500d   :  { %v5538_v19 = vpop.xlane.xlu1 %5537 }
0x500e   :  { %v5539_v50 = vrot.slane %v5538_v19, 4 }
0x5010   :  { %v5540_v63 = vmax.f32 %v5538_v19, %v5539_v50  ;;  %v10264_v50 = vpop.permute.xlu0 %5565 }
0x5012   :  { %v5541_v36 = vrot.slane %v5540_v63, 2 }
0x5014   :  { %v5542_v24 = vmax.f32 %v5540_v63, %v5541_v36 }
0x5016   :  { %v5543_v40 = vrot.slane %v5542_v24, 1 }
0x5018   :  { %v5544_v43 = vmax.f32 %v5542_v24, %v5543_v40 }
0x501a   :  { %v5545_v44 = vsub.f32 %v5538_v19, %v5544_v43 }
0x501c   :  { %v5546_v46 = vmul.f32 1.442695, %v5545_v44 }
0x501e   :  { %8799 = vpow2.f32 %v5546_v46 }
0x5028   :  { %v8800_v52 = vpop.eup %8799 }
0x5029   :  { %v5548_v42 = vrot.slane %v8800_v52, 4 }
0x502b   :  { %v5549_v3 = vadd.f32 %v8800_v52, %v5548_v42 }
0x502d   :  { %v5550_v28 = vrot.slane %v5549_v3, 2 }
0x502f   :  { %v5551_v6 = vadd.f32 %v5550_v28, %v5549_v3 }
0x5031   :  { %v5552_v2 = vrot.slane %v5551_v6, 1 }
0x5033   :  { %v5553_v23 = vadd.f32 %v5552_v2, %v5551_v6 }
0x5035   :  { %8801 = vrcp.f32 %v5553_v23 }
0x503f   :  { %v8802_v58 = vpop.eup %8801 }
0x5040   :  { %v5555_v17 = vmul.f32 %v8802_v58, %v8800_v52 }
0x5042   :  { %v5556_v11 = vmul.f32 %v5555_v17, %v9525_v27 }
0x5044   :  { %v5557_v10 = vsel %vm2270_vm10, %v5556_v11, 0.0 }
0x5045   :  { %v5558_v54 = vrot.slane %v5557_v10, 4 }
0x5047   :  { %v5559_v59 = vadd.f32 %v5558_v54, %v5557_v10 }
0x5049   :  { %v5560_v62 = vrot.slane %v5559_v59, 2 }
0x504b   :  { %v5561_v57 = vadd.f32 %v5560_v62, %v5559_v59 }
0x504d   :  { %v5562_v56 = vrot.slane %v5561_v57, 1 }
0x504f   :  { %v5563_v19 = vadd.f32 %v5562_v56, %v5561_v57 }
0x5051   :  { %v5568_v63 = vsel %vm76_vm1, %v10264_v50, %v5563_v19 }
0x5052   :  { %7908 = vmatmul.mubr.msk.f32.vlgmr.msra.gmra.mrb[54].mxu0 %vm2292_vm11, %v5568_v63 }
0x5053   :  { %8505 = vmatpush3.bf16.msra.mxu0 %v9366_v18  ;;  %7948 = vmatprep.mubr.msk.f32.mxu0 %vm8880_vm0, %v8881_v4 }
0x5054   :  { %8506 = vmatprep.subr.bf16.mxu0 %v8879_v0 }
0x5057   :  { %8508 = vmatpush3.bf16.msra.mxu0 %v9386_v45 }
0x5058   :  { %8509 = vmatprep.subr.bf16.mxu0 %v8879_v0 }
0x5125   :  { %v5638_v36 = vpop.f32.mrb[54].mxu0 }
0x5126   :  { %v5639_v24 = vadd.f32 %v10003_v14, %v5638_v36  ;;  %v7909_v40 = vpop.f32.mrb[55].mxu0 }
0x5128   :  { %8803 = vtanh.f32 %v5639_v24 }
0x5132   :  { %v8804_v43 = vpop.eup %8803 }
0x5133   :  { %7919 = vmatmul.mubr.msk.f32.vlgmr.msra.gmra.mrb[54].mxu1 %vm76_vm1, %v8804_v43 }
0x5134   :  { %8493 = vmatpush3.bf16.msra.mxu1 %v9642_v38  ;;  %7937 = vmatprep.mubr.msk.f32.mxu1 %vm8880_vm0, %v8881_v4 }
0x5135   :  { %8494 = vmatprep.subr.bf16.mxu1 %v8879_v0 }
0x5138   :  { %8496 = vmatpush3.bf16.msra.mxu1 %v9648_v60 }
0x5139   :  { %8497 = vmatprep.subr.bf16.mxu1 %v8879_v0 }
0x513c   :  { %8499 = vmatpush3.bf16.msra.mxu1 %v9658_v7 }
0x513d   :  { %8500 = vmatprep.subr.bf16.mxu1 %v8879_v0 }
0x5140   :  { %8502 = vmatpush3.bf16.msra.mxu1 %v9669_v32 }
0x5141   :  { %8515 = vmatprep.subr.bf16.mxu1 %v8879_v0 }
0x5206   :  { %v5712_v14 = vpop.f32.mrb[54].mxu1 }
0x5207   :  { %v10288_v44 = vadd.f32 %v10020_v20, %v5712_v14  ;;  %v7920_v46 = vpop.f32.mrb[55].mxu1 }
0x5209   :  { %v5716_v52 = vsel %vm2445_vm12, %v10288_v44, -inf }
0x520a   :  { %5717 = vmax.xlane.f32.xlu0 %v5716_v52 }
0x5297   :  { %v10292_v42 = vpop.xlane.xlu0 %5717 }
0x5298   :  { %vm5726_vm6 = vcmp.eq.f32.partialorder %v10288_v44, %v10292_v42 }
0x5299   :  { %v5727_v3 = vsel %vm5726_vm6, %v9625_v30, 64 }
0x529a   :  { %v5728_v28 = vsel %vm2445_vm12, %v5727_v3, 2147483647 }
0x529b   :  { %v5730_v6 = vshra.s32 %v5728_v28, 16  ;;  %v5729_v23 = vand.u32 65535, %v5728_v28 }
0x529d   :  { %v5732_v2 = vcvt.s32.f32 %v5730_v6  ;;  %v5731_v58 = vcvt.s32.f32 %v5729_v23 }
0x529f   :  { %5733 = vmin.xlane.f32.xlu1 %v5732_v2 }
0x532c   :  { %v5734_v20 = vpop.xlane.xlu1 %5733 }
0x532d   :  { %vm5735_vm7 = vcmp.eq.f32.partialorder %v5732_v2, %v5734_v20  ;;  %v5740_v11 = vcvt.f32.s32 %v5734_v20 }
0x532e   :  { %v5736_v17 = vsel %vm5735_vm7, %v5731_v58, inf }
0x532f   :  { %5737 = vmin.xlane.f32.xlu0 %v5736_v17  ;;  %v5741_v54 = vshll.u32 %v5740_v11, 16 }
0x53bc   :  { %v5738_v10 = vpop.xlane.xlu0 %5737 }
0x53bd   :  { %v5739_v59 = vcvt.f32.s32 %v5738_v10 }
0x53bf   :  { %v5742_v62 = vadd.s32 %v5741_v54, %v5739_v59 }
0x53c1   :  { %v10302_v57 = vsel %vm5743_vm13, %v5742_v62, %v10207_v61  ;;  %vm5746_vm15 = vcmp.eq.s32.totalorder %v9625_v30, %v5742_v62 }
0x53c2   :  { %v6781_v56 = vsel %vm5746_vm15, 1.0, %v8881_v4  ;;  %vm6209_vm15 = vcmp.eq.s32.totalorder %v9625_v30, 8 }
0x53c3   :  { %7938 = vmatmul.mubr.msk.f32.vlgmr.msra.gmra.mrb[56].mxu1 %vm2292_vm11, %v6781_v56 }
0x53c4   :  { %8517 = vmatpush3.bf16.msra.mxu1 %v9541_v26  ;;  %7978 = vmatprep.mubr.msk.f32.mxu1 %vm8880_vm0, %v8881_v4 }
0x53c5   :  { %8518 = vmatprep.subr.bf16.mxu1 %v8879_v0 }
0x53c8   :  { %8520 = vmatpush3.bf16.msra.mxu1 %v9547_v29 }
0x53c9   :  { %8521 = vmatprep.subr.bf16.mxu1 %v8879_v0 }
0x53cc   :  { %8523 = vmatpush3.bf16.msra.mxu1 %v9557_v31 }
0x53cd   :  { %8524 = vmatprep.subr.bf16.mxu1 %v8879_v0 }
0x53d0   :  { %8526 = vmatpush3.bf16.msra.mxu1 %v9567_v39 }
0x53d1   :  { %8545 = vmatprep.subr.bf16.mxu1 %v8879_v0 }
0x5496   :  { %v5818_v61 = vpop.f32.mrb[56].mxu1 }
0x5497   :  { %v7939_v19 = vpop.f32.mrb[57].mxu1  ;;  %7949 = vmatmul.mubr.msk.f32.vlgmr.msra.gmra.mrb[56].mxu0 %vm76_vm1, %v5818_v61 }
0x5498   :  { %8511 = vmatpush3.bf16.msra.mxu0 %v9377_v41  ;;  %7959 = vmatprep.mubr.msk.f32.mxu0 %vm8880_vm0, %v8881_v4 }
0x5499   :  { %8512 = vmatprep.subr.bf16.mxu0 %v8879_v0 }
0x549c   :  { %8514 = vmatpush3.bf16.msra.mxu0 %v9390_v25 }
0x549d   :  { %8527 = vmatprep.subr.bf16.mxu0 %v8879_v0 }
0x549f   :  { %7960 = vmatmul.mubr.msk.f32.vlgmr.msra.gmra.mrb[58].mxu0 %vm76_vm1, %v10264_v50 }
0x54a0   :  { %8529 = vmatpush3.bf16.msra.mxu0 %v9594_v15  ;;  %7989 = vmatprep.mubr.msk.f32.mxu0 %vm8880_vm0, %v8881_v4 }
0x54a1   :  { %8530 = vmatprep.subr.bf16.mxu0 %v8879_v0 }
0x54a4   :  { %8532 = vmatpush3.bf16.msra.mxu0 %v9600_v16 }
0x54a5   :  { %8533 = vmatprep.subr.bf16.mxu0 %v8879_v0 }
0x556a   :  { %v5891_v63 = vpop.f32.mrb[56].mxu0 }
0x556b   :  { %v7950_v36 = vpop.f32.mrb[57].mxu0  ;;  %v5892_v50 = vadd.f32 %v10247_v35, %v5891_v63 }
0x5572   :  { %v5963_v24 = vpop.f32.mrb[58].mxu0 }
0x5573   :  { %v5964_v40 = vadd.f32 %v10240_v51, %v5963_v24  ;;  %v7961_v43 = vpop.f32.mrb[59].mxu0 }
0x5575   :  { %5975 = vrot.lane.b32.xlu1 %v5964_v40, %s8882_s25  ;;  %v5967_v14 = vadd.f32 %v5964_v40, %v5892_v50 }
0x5577   :  { %v6785_v46 = vmul.f32 -1.442695, %v5967_v14 }
0x5579   :  { %8805 = vpow2.f32 %v6785_v46 }
0x5583   :  { %v8806_v52 = vpop.eup %8805 }
0x5584   :  { %v5971_v3 = vadd.f32 1.0, %v8806_v52 }
0x5586   :  { %8807 = vrcp.f32 %v5971_v3 }
0x5590   :  { %v8808_v28 = vpop.eup %8807 }
0x5591   :  { %v5985_v17 = vsub.f32 1.0, %v8808_v28  ;;  %v5991_v10 = vmul.f32 %v8808_v28, %v10253_v9 }
0x55e7   :  { %v5976_v6 = vpop.permute.xlu1 %5975 }
0x55e8   :  { %v5978_v2 = vmul.f32 %v8808_v28, %v5976_v6 }
0x55ea   :  { %5980 = vrot.lane.b32.xlu0 %v5978_v2, %s8882_s25 }
0x565c   :  { %v5981_v23 = vpop.permute.xlu0 %5980 }
0x565d   :  { %v5983_v20 = vadd.f32 %v5981_v23, %v5892_v50 }
0x565f   :  { %8809 = vtanh.f32 %v5983_v20 }
0x5669   :  { %v8810_v58 = vpop.eup %8809 }
0x566a   :  { %5987 = vrot.lane.b32.xlu1 %v8810_v58, %s8883_s2 }
0x56dc   :  { %v5988_v11 = vpop.permute.xlu1 %5987 }
0x56dd   :  { %v5990_v54 = vmul.f32 %v5988_v11, %v5985_v17 }
0x56df   :  { %v10338_v59 = vadd.f32 %v5991_v10, %v5990_v54 }
0x56e1   :  { %v5996_v62 = vrot.slane %v10338_v59, %v9057_v33 }
0x56e3   :  { %v5997_v56 = vmul.f32 %v5996_v62, %v9525_v27 }
0x56e5   :  { %5999 = vrot.lane.b32.xlu1 %v5997_v56, %s8883_s2 }
0x56e9   :  { %6031 = vrot.lane.b32.xlu1 %v10338_v59, %s8883_s2 }
0x5757   :  { %v6000_v61 = vpop.permute.xlu1 %5999 }
0x5758   :  { %v6002_v19 = vsel %vm76_vm1, %v6000_v61, 0.0 }
0x5759   :  { %6003 = vadd.xlane.f32.xlu0 %v6002_v19 }
0x57e6   :  { %v6004_v63 = vpop.xlane.xlu0 %6003 }
0x57e7   :  { %v6005_v36 = vrot.slane %v6004_v63, 4 }
0x57e9   :  { %v6006_v9 = vmax.f32 %v6004_v63, %v6005_v36  ;;  %v10349_v36 = vpop.permute.xlu1 %6031 }
0x57eb   :  { %v6007_v24 = vrot.slane %v6006_v9, 2 }
0x57ed   :  { %v6008_v40 = vmax.f32 %v6006_v9, %v6007_v24 }
0x57ef   :  { %v6009_v43 = vrot.slane %v6008_v40, 1 }
0x57f1   :  { %v6010_v50 = vmax.f32 %v6008_v40, %v6009_v43  ;;  %v10363_v40 = vld [vmem:[%s10514_s13] sm:$0x1] }
0x57f3   :  { %v6011_v14 = vsub.f32 %v6004_v63, %v6010_v50 }
0x57f5   :  { %v6012_v46 = vmul.f32 1.442695, %v6011_v14 }
0x57f7   :  { %8811 = vpow2.f32 %v6012_v46 }
0x5801   :  { %v8812_v52 = vpop.eup %8811 }
0x5802   :  { %v6014_v3 = vrot.slane %v8812_v52, 4 }
0x5804   :  { %v6015_v28 = vadd.f32 %v8812_v52, %v6014_v3 }
0x5806   :  { %v6016_v6 = vrot.slane %v6015_v28, 2 }
0x5808   :  { %v6017_v2 = vadd.f32 %v6016_v6, %v6015_v28 }
0x580a   :  { %v6018_v23 = vrot.slane %v6017_v2, 1 }
0x580c   :  { %v6019_v20 = vadd.f32 %v6018_v23, %v6017_v2 }
0x580e   :  { %8813 = vrcp.f32 %v6019_v20 }
0x5818   :  { %v8814_v58 = vpop.eup %8813 }
0x5819   :  { %v6021_v17 = vmul.f32 %v8814_v58, %v8812_v52 }
0x581b   :  { %v6022_v11 = vmul.f32 %v6021_v17, %v9525_v27 }
0x581d   :  { %v6023_v10 = vsel %vm2270_vm10, %v6022_v11, 0.0 }
0x581e   :  { %v6024_v54 = vrot.slane %v6023_v10, 4 }
0x5820   :  { %v6025_v62 = vadd.f32 %v6024_v54, %v6023_v10 }
0x5822   :  { %v6026_v56 = vrot.slane %v6025_v62, 2 }
0x5824   :  { %v6027_v61 = vadd.f32 %v6026_v56, %v6025_v62 }
0x5826   :  { %v6028_v19 = vrot.slane %v6027_v61, 1 }
0x5828   :  { %v6029_v63 = vadd.f32 %v6028_v19, %v6027_v61 }
0x582a   :  { %v6034_v9 = vsel %vm76_vm1, %v10349_v36, %v6029_v63 }
0x582b   :  { %7979 = vmatmul.mubr.msk.f32.vlgmr.msra.gmra.mrb[58].mxu1 %vm2292_vm11, %v6034_v9 }
0x582c   :  { %8547 = vmatpush3.bf16.msra.mxu1 %v9366_v18  ;;  %8019 = vmatprep.mubr.msk.f32.mxu1 %vm8880_vm0, %v8881_v4 }
0x582d   :  { %8548 = vmatprep.subr.bf16.mxu1 %v8879_v0 }
0x5830   :  { %8550 = vmatpush3.bf16.msra.mxu1 %v9386_v45 }
0x5831   :  { %8551 = vmatprep.subr.bf16.mxu1 %v8879_v0 }
0x58fe   :  { %v6104_v24 = vpop.f32.mrb[58].mxu1 }
0x58ff   :  { %v6105_v43 = vadd.f32 %v10363_v40, %v6104_v24  ;;  %v7980_v50 = vpop.f32.mrb[59].mxu1 }
0x5901   :  { %8815 = vtanh.f32 %v6105_v43 }
0x590b   :  { %v8816_v18 = vpop.eup %8815 }
0x590c   :  { %7990 = vmatmul.mubr.msk.f32.vlgmr.msra.gmra.mrb[60].mxu0 %vm76_vm1, %v8816_v18 }
0x590d   :  { %8535 = vmatpush3.bf16.msra.mxu0 %v9642_v38  ;;  %8008 = vmatprep.mubr.msk.f32.mxu0 %vm8880_vm0, %v8881_v4  ;;  %v10380_v38 = vld [vmem:[%s10515_s15] sm:$0x1] }
0x590e   :  { %8536 = vmatprep.subr.bf16.mxu0 %v8879_v0 }
0x5911   :  { %8538 = vmatpush3.bf16.msra.mxu0 %v9648_v60 }
0x5912   :  { %8539 = vmatprep.subr.bf16.mxu0 %v8879_v0 }
0x5915   :  { %8541 = vmatpush3.bf16.msra.mxu0 %v9658_v7 }
0x5916   :  { %8542 = vmatprep.subr.bf16.mxu0 %v8879_v0 }
0x5919   :  { %8544 = vmatpush3.bf16.msra.mxu0 %v9669_v32 }
0x591a   :  { %8557 = vmatprep.subr.bf16.mxu0 %v8879_v0 }
0x59df   :  { %v6178_v45 = vpop.f32.mrb[60].mxu0 }
0x59e0   :  { %v10383_v14 = vadd.f32 %v10380_v38, %v6178_v45  ;;  %v7991_v60 = vpop.f32.mrb[61].mxu0 }
0x59e2   :  { %v6182_v46 = vsel %vm2445_vm12, %v10383_v14, -inf }
0x59e3   :  { %6183 = vmax.xlane.f32.xlu1 %v6182_v46 }
0x5a70   :  { %v10387_v7 = vpop.xlane.xlu1 %6183 }
0x5a71   :  { %vm6192_vm6 = vcmp.eq.f32.partialorder %v10383_v14, %v10387_v7 }
0x5a72   :  { %v6193_v32 = vsel %vm6192_vm6, %v9625_v30, 64 }
0x5a73   :  { %v6194_v52 = vsel %vm2445_vm12, %v6193_v32, 2147483647 }
0x5a74   :  { %v6196_v3 = vshra.s32 %v6194_v52, 16  ;;  %v6195_v6 = vand.u32 65535, %v6194_v52 }
0x5a76   :  { %v6198_v28 = vcvt.s32.f32 %v6196_v3  ;;  %v6197_v23 = vcvt.s32.f32 %v6195_v6 }
0x5a78   :  { %6199 = vmin.xlane.f32.xlu0 %v6198_v28 }
0x5b05   :  { %v6200_v2 = vpop.xlane.xlu0 %6199 }
0x5b06   :  { %vm6201_vm7 = vcmp.eq.f32.partialorder %v6198_v28, %v6200_v2  ;;  %v6206_v58 = vcvt.f32.s32 %v6200_v2 }
0x5b07   :  { %v6202_v20 = vsel %vm6201_vm7, %v6197_v23, inf }
0x5b08   :  { %6203 = vmin.xlane.f32.xlu0 %v6202_v20  ;;  %v6207_v11 = vshll.u32 %v6206_v58, 16 }
0x5b95   :  { %v6204_v17 = vpop.xlane.xlu0 %6203 }
0x5b96   :  { %v6205_v10 = vcvt.f32.s32 %v6204_v17 }
0x5b98   :  { %v6208_v54 = vadd.s32 %v6207_v11, %v6205_v10 }
0x5b9a   :  { %v10397_v62 = vsel %vm6209_vm15, %v6208_v54, %v10302_v57  ;;  %vm6212_vm6 = vcmp.eq.s32.totalorder %v9625_v30, %v6208_v54 }
0x5b9b   :  { %v6788_v56 = vsel %vm6212_vm6, 1.0, %v8881_v4 }
0x5b9c   :  { %8009 = vmatmul.mubr.msk.f32.vlgmr.msra.gmra.mrb[62].mxu0 %vm2292_vm11, %v6788_v56 }
0x5b9d   :  { %8559 = vmatpush3.bf16.msra.mxu0 %v9541_v26  ;;  %8049 = vmatprep.mubr.msk.f32.mxu0 %vm8880_vm0, %v8881_v4 }
0x5b9e   :  { %8560 = vmatprep.subr.bf16.mxu0 %v8879_v0 }
0x5ba1   :  { %8562 = vmatpush3.bf16.msra.mxu0 %v9547_v29 }
0x5ba2   :  { %8563 = vmatprep.subr.bf16.mxu0 %v8879_v0 }
0x5ba5   :  { %8565 = vmatpush3.bf16.msra.mxu0 %v9557_v31 }
0x5ba6   :  { %8566 = vmatprep.subr.bf16.mxu0 %v8879_v0 }
0x5ba9   :  { %8568 = vmatpush3.bf16.msra.mxu0 %v9567_v39 }
0x5c6f   :  { %v6284_v57 = vpop.f32.mrb[62].mxu0 }
0x5c70   :  { %v8010_v61 = vpop.f32.mrb[63].mxu0  ;;  %8020 = vmatmul.mubr.msk.f32.vlgmr.msra.gmra.mrb[60].mxu1 %vm76_vm1, %v6284_v57 }
0x5c71   :  { %8553 = vmatpush3.bf16.msra.mxu1 %v9377_v41  ;;  %8030 = vmatprep.mubr.msk.f32.mxu1 %vm8880_vm0, %v8881_v4 }
0x5c72   :  { %8554 = vmatprep.subr.bf16.mxu1 %v8879_v0 }
0x5c75   :  { %8556 = vmatpush3.bf16.msra.mxu1 %v9390_v25 }
0x5c76   :  { %8569 = vmatprep.subr.bf16.mxu1 %v8879_v0 }
0x5c78   :  { %8031 = vmatmul.mubr.msk.f32.vlgmr.msra.gmra.mrb[62].mxu1 %vm76_vm1, %v10349_v36 }
0x5c79   :  { %8571 = vmatpush3.bf16.msra.mxu1 %v9594_v15  ;;  %8060 = vmatprep.mubr.msk.f32.mxu1 %vm8880_vm0, %v8881_v4 }
0x5c7a   :  { %8572 = vmatprep.subr.bf16.mxu1 %v8879_v0 }
0x5c7d   :  { %8574 = vmatpush3.bf16.msra.mxu1 %v9600_v16 }
0x5d43   :  { %v6357_v41 = vpop.f32.mrb[60].mxu1 }
0x5d44   :  { %v8021_v26 = vpop.f32.mrb[61].mxu1  ;;  %v6358_v39 = vadd.f32 %v10247_v35, %v6357_v41 }
0x5d4b   :  { %v6429_v29 = vpop.f32.mrb[62].mxu1 }
0x5d4c   :  { %v6430_v31 = vadd.f32 %v10240_v51, %v6429_v29  ;;  %v8032_v25 = vpop.f32.mrb[63].mxu1 }
0x5d4e   :  { %6441 = vrot.lane.b32.xlu0 %v6430_v31, %s8882_s25  ;;  %v6433_v19 = vadd.f32 %v6430_v31, %v6358_v39 }
0x5d50   :  { %v6792_v63 = vmul.f32 -1.442695, %v6433_v19 }
0x5d52   :  { %8817 = vpow2.f32 %v6792_v63 }
0x5d5c   :  { %v8818_v15 = vpop.eup %8817 }
0x5d5d   :  { %v6437_v36 = vadd.f32 1.0, %v8818_v15 }
0x5d5f   :  { %8819 = vrcp.f32 %v6437_v36 }
0x5d69   :  { %v8820_v4 = vpop.eup %8819 }
0x5d6a   :  { %v6451_v43 = vsub.f32 1.0, %v8820_v4  ;;  %v6457_v35 = vmul.f32 %v8820_v4, %v10338_v59 }
0x5dc0   :  { %v6442_v0 = vpop.permute.xlu0 %6441 }
0x5dc1   :  { %v6444_v9 = vmul.f32 %v8820_v4, %v6442_v0 }
0x5dc3   :  { %6446 = vrot.lane.b32.xlu1 %v6444_v9, %s8882_s25 }
0x5e35   :  { %v6447_v16 = vpop.permute.xlu1 %6446 }
0x5e36   :  { %v6449_v24 = vadd.f32 %v6447_v16, %v6358_v39 }
0x5e38   :  { %8821 = vtanh.f32 %v6449_v24 }
0x5e42   :  { %v8822_v51 = vpop.eup %8821 }
0x5e43   :  { %6453 = vrot.lane.b32.xlu1 %v8822_v51, %s8883_s2 }
0x5eb5   :  { %v6454_v50 = vpop.permute.xlu1 %6453 }
0x5eb6   :  { %v6456_v18 = vmul.f32 %v6454_v50, %v6451_v43  ;;  %v3389_v50 = vsub.f32 %v9833_v49, %v9837_v1 }
0x5eb8   :  { %v6458_v45 = vadd.f32 %v6457_v35, %v6456_v18  ;;  %v3390_v35 = vmul.f32 1.442695, %v3389_v50  ;;  %v4321_v18 = vsub.f32 %v10023_v5, %v10027_v34 }
0x5eba   :  { %v6462_v60 = vrot.slane %v6458_v45, %v9057_v33 }
0x5ebc   :  { %v6463_v46 = vmul.f32 %v6462_v60, %v9525_v27 }
0x5ebe   :  { %6465 = vrot.lane.b32.xlu0 %v6463_v46, %s8883_s2 }
0x5ec2   :  { %6497 = vrot.lane.b32.xlu0 %v6458_v45, %s8883_s2  ;;  %v4322_v45 = vmul.f32 1.442695, %v4321_v18 }
0x5f30   :  { %v6466_v32 = vpop.permute.xlu0 %6465 }
0x5f31   :  { %v6468_v52 = vsel %vm76_vm1, %v6466_v32, 0.0 }
0x5f32   :  { %6469 = vadd.xlane.f32.xlu1 %v6468_v52 }
0x5f34   :  { %v6498_v4 = vpop.permute.xlu0 %6497 }
0x5fbf   :  { %v6470_v3 = vpop.xlane.xlu1 %6469 }
0x5fc0   :  { %v6471_v28 = vrot.slane %v6470_v3, 4 }
0x5fc2   :  { %v6472_v6 = vmax.f32 %v6470_v3, %v6471_v28 }
0x5fc4   :  { %v6473_v2 = vrot.slane %v6472_v6, 2 }
0x5fc6   :  { %v6474_v23 = vmax.f32 %v6472_v6, %v6473_v2  ;;  %v2923_v6 = vsub.f32 %v9745_v37, %v9749_v48 }
0x5fc8   :  { %v6475_v59 = vrot.slane %v6474_v23, 1  ;;  %v2924_v2 = vmul.f32 1.442695, %v2923_v6 }
0x5fca   :  { %v6476_v20 = vmax.f32 %v6474_v23, %v6475_v59  ;;  %v3855_v23 = vsub.f32 %v9928_v12, %v9932_v53 }
0x5fcc   :  { %v6477_v58 = vsub.f32 %v6470_v3, %v6476_v20  ;;  %v3856_v59 = vmul.f32 1.442695, %v3855_v23  ;;  %v4787_v20 = vsub.f32 %v10108_v8, %v10112_v13 }
0x5fce   :  { %v6478_v17 = vmul.f32 1.442695, %v6477_v58 }
0x5fd0   :  { %8823 = vpow2.f32 %v6478_v17  ;;  %v4788_v17 = vmul.f32 1.442695, %v4787_v20 }
0x5fda   :  { %v8824_v33 = vpop.eup %8823 }
0x5fdb   :  { %v6480_v11 = vrot.slane %v8824_v33, 4 }
0x5fdd   :  { %v6481_v10 = vadd.f32 %v8824_v33, %v6480_v11 }
0x5fdf   :  { %v6482_v54 = vrot.slane %v6481_v10, 2 }
0x5fe1   :  { %v6483_v56 = vadd.f32 %v6482_v54, %v6481_v10 }
0x5fe3   :  { %v6484_v57 = vrot.slane %v6483_v56, 1 }
0x5fe5   :  { %v6485_v61 = vadd.f32 %v6484_v57, %v6483_v56 }
0x5fe7   :  { %8825 = vrcp.f32 %v6485_v61 }
0x5ff1   :  { %v8826_v41 = vpop.eup %8825 }
0x5ff2   :  { %v6487_v26 = vmul.f32 %v8826_v41, %v8824_v33  ;;  %v5719_v33 = vsub.f32 %v10288_v44, %v10292_v42 }
0x5ff4   :  { %v6488_v29 = vmul.f32 %v6487_v26, %v9525_v27  ;;  %v2449_v27 = vsub.f32 %v9620_v22, %v9627_v47  ;;  %v6185_v47 = vsub.f32 %v10383_v14, %v10387_v7  ;;  %v5720_v10 = vmul.f32 1.442695, %v5719_v33 }
0x5ff6   :  { %v6489_v31 = vsel %vm2270_vm10, %v6488_v29, 0.0  ;;  %v2450_v43 = vmul.f32 1.442695, %v2449_v27  ;;  %v6186_v5 = vmul.f32 1.442695, %v6185_v47  ;;  %vm6675_vm10 = vcmp.eq.s32.totalorder %v9625_v30, 9 }
0x5ff7   :  { %v6490_v25 = vrot.slane %v6489_v31, 4 }
0x5ff9   :  { %v6491_v39 = vadd.f32 %v6490_v25, %v6489_v31 }
0x5ffb   :  { %v6492_v19 = vrot.slane %v6491_v39, 2 }
0x5ffd   :  { %v6493_v63 = vadd.f32 %v6492_v19, %v6491_v39 }
0x5fff   :  { %v6494_v15 = vrot.slane %v6493_v63, 1 }
0x6001   :  { %v6495_v36 = vadd.f32 %v6494_v15, %v6493_v63 }
0x6003   :  { %v6500_v0 = vsel %vm76_vm1, %v6498_v4, %v6495_v36 }
0x6004   :  { %8050 = vmatmul.mubr.msk.f32.vlgmr.msra.gmra.mrb[64].mxu0 %vm2292_vm11, %v6500_v0 }
0x60d7   :  { %v6570_v9 = vpop.f32.mrb[64].mxu0 }
0x60d8   :  { %v6571_v16 = vadd.f32 %v10363_v40, %v6570_v9  ;;  %v8051_v24 = vpop.f32.mrb[65].mxu0  ;;  %v5253_v40 = vsub.f32 %v10193_v21, %v10197_v55 }
0x60da   :  { %8827 = vtanh.f32 %v6571_v16  ;;  %v5254_v22 = vmul.f32 1.442695, %v5253_v40 }
0x60db   :  { %8829 = vpow2.f32 %v2450_v43 }
0x60dc   :  { %8831 = vpow2.f32 %v3390_v35 }
0x60dd   :  { %8833 = vpow2.f32 %v4322_v45 }
0x60de   :  { %8835 = vpow2.f32 %v5254_v22 }
0x60df   :  { %8837 = vpow2.f32 %v6186_v5 }
0x60e0   :  { %8839 = vpow2.f32 %v2924_v2 }
0x60e1   :  { %8841 = vpow2.f32 %v3856_v59 }
0x60e2   :  { %8843 = vpow2.f32 %v4788_v17 }
0x60e3   :  { %8845 = vpow2.f32 %v5720_v10 }
0x60e4   :  { %v8828_v51 = vpop.eup %8827 }
0x60e5   :  { %8061 = vmatmul.mubr.msk.f32.vlgmr.msra.gmra.mrb[64].mxu1 %vm76_vm1, %v8828_v51  ;;  %v8830_v1 = vpop.eup %8829 }
0x60e6   :  { %v2452_v34 = vsel %vm2445_vm12, %v8830_v1, 0.0  ;;  %v8832_v52 = vpop.eup %8831 }
0x60e7   :  { %v3392_v21 = vsel %vm2445_vm12, %v8832_v52, 0.0  ;;  %v8834_v55 = vpop.eup %8833 }
0x60e8   :  { %v8836_v3 = vpop.eup %8835 }
0x60e9   :  { %v5256_v14 = vsel %vm2445_vm12, %v8836_v3, 0.0  ;;  %v8838_v7 = vpop.eup %8837 }
0x60ea   :  { %v6188_v28 = vsel %vm2445_vm12, %v8838_v7, 0.0  ;;  %v8840_v54 = vpop.eup %8839 }
0x60eb   :  { %v2926_v13 = vsel %vm2445_vm12, %v8840_v54, 0.0  ;;  %v8842_v56 = vpop.eup %8841 }
0x60ec   :  { %v3858_v44 = vsel %vm2445_vm12, %v8842_v56, 0.0  ;;  %v8844_v42 = vpop.eup %8843 }
0x60ed   :  { %v4790_v57 = vsel %vm2445_vm12, %v8844_v42, 0.0  ;;  %v8846_v61 = vpop.eup %8845 }
0x60ee   :  { %v5722_v41 = vsel %vm2445_vm12, %v8846_v61, 0.0 }
0x61b8   :  { %v6644_v60 = vpop.f32.mrb[64].mxu1 }
0x61b9   :  { %v6645_v46 = vadd.f32 %v10380_v38, %v6644_v60  ;;  %v8062_v32 = vpop.f32.mrb[65].mxu1  ;;  %v4324_v38 = vsel %vm2445_vm12, %v8834_v55, 0.0 }
0x61bb   :  { %v6648_v49 = vsel %vm2445_vm12, %v6645_v46, -inf }
0x61bc   :  { %6649 = vmax.xlane.f32.xlu0 %v6648_v49 }
0x61c0   :  { %2453 = vadd.xlane.f32.xlu0 %v2452_v34 }
0x61c4   :  { %3393 = vadd.xlane.f32.xlu0 %v3392_v21 }
0x61c8   :  { %4325 = vadd.xlane.f32.xlu0 %v4324_v38 }
0x61cc   :  { %5257 = vadd.xlane.f32.xlu0 %v5256_v14 }
0x61d0   :  { %6189 = vadd.xlane.f32.xlu0 %v6188_v28 }
0x6249   :  { %v6650_v58 = vpop.xlane.xlu0 %6649 }
0x624a   :  { %vm6658_vm0 = vcmp.eq.f32.partialorder %v6645_v46, %v6650_v58  ;;  %v6651_v12 = vsub.f32 %v6645_v46, %v6650_v58 }
0x624b   :  { %v6659_v11 = vsel %vm6658_vm0, %v9625_v30, 64 }
0x624c   :  { %v6660_v37 = vsel %vm2445_vm12, %v6659_v11, 2147483647  ;;  %v6652_v8 = vmul.f32 1.442695, %v6651_v12 }
0x624d   :  { %v6662_v48 = vshra.s32 %v6660_v37, 16  ;;  %v2454_v31 = vpop.xlane.xlu0 %2453  ;;  %v6661_v25 = vand.u32 65535, %v6660_v37 }
0x624e   :  { %8847 = vpow2.f32 %v6652_v8 }
0x624f   :  { %v6664_v53 = vcvt.s32.f32 %v6662_v48  ;;  %v6663_v63 = vcvt.s32.f32 %v6661_v25  ;;  %8849 = vrcp.f32 %v2454_v31 }
0x6251   :  { %6665 = vmin.xlane.f32.xlu1 %v6664_v53  ;;  %v3394_v39 = vpop.xlane.xlu0 %3393 }
0x6255   :  { %2927 = vadd.xlane.f32.xlu1 %v2926_v13  ;;  %v4326_v4 = vpop.xlane.xlu0 %4325 }
0x6258   :  { %v8848_v26 = vpop.eup %8847 }
0x6259   :  { %3859 = vadd.xlane.f32.xlu1 %v3858_v44  ;;  %v6654_v29 = vsel %vm2445_vm12, %v8848_v26, 0.0  ;;  %v5258_v9 = vpop.xlane.xlu0 %5257  ;;  %v8850_v16 = vpop.eup %8849 }
0x625a   :  { %v2475_v27 = vsel %vm2473_vm4, %v8850_v16, 0.0 }
0x625d   :  { %4791 = vadd.xlane.f32.xlu1 %v4790_v57  ;;  %v6190_v35 = vpop.xlane.xlu0 %6189 }
0x6261   :  { %5723 = vadd.xlane.f32.xlu1 %v5722_v41 }
0x6265   :  { %6655 = vadd.xlane.f32.xlu1 %v6654_v29 }
0x62de   :  { %v6666_v19 = vpop.xlane.xlu1 %6665 }
0x62df   :  { %vm6667_vm1 = vcmp.eq.f32.partialorder %v6664_v53, %v6666_v19  ;;  %v6672_v14 = vcvt.f32.s32 %v6666_v19 }
0x62e0   :  { %v6668_v15 = vsel %vm6667_vm1, %v6663_v63, inf }
0x62e1   :  { %6669 = vmin.xlane.f32.xlu0 %v6668_v15  ;;  %v6673_v28 = vshll.u32 %v6672_v14, 16 }
0x62e2   :  { %v2928_v36 = vpop.xlane.xlu1 %2927 }
0x62e3   :  { %8851 = vrcp.f32 %v2928_v36 }
0x62e4   :  { %8853 = vrcp.f32 %v3394_v39 }
0x62e6   :  { %v3860_v0 = vpop.xlane.xlu1 %3859 }
0x62e7   :  { %8855 = vrcp.f32 %v3860_v0 }
0x62e8   :  { %8857 = vrcp.f32 %v4326_v4 }
0x62ea   :  { %v4792_v24 = vpop.xlane.xlu1 %4791 }
0x62eb   :  { %8859 = vrcp.f32 %v4792_v24 }
0x62ec   :  { %8861 = vrcp.f32 %v5258_v9 }
0x62ed   :  { %v8852_v51 = vpop.eup %8851 }
0x62ee   :  { %v2949_v43 = vsel %vm2947_vm5, %v8852_v51, %v2475_v27  ;;  %v5724_v50 = vpop.xlane.xlu1 %5723  ;;  %v8854_v18 = vpop.eup %8853 }
0x62ef   :  { %8863 = vrcp.f32 %v5724_v50  ;;  %v3415_v40 = vsel %vm3413_vm9, %v8854_v18, %v2949_v43 }
0x62f0   :  { %8865 = vrcp.f32 %v6190_v35 }
0x62f1   :  { %v8856_v45 = vpop.eup %8855 }
0x62f2   :  { %v6656_v60 = vpop.xlane.xlu1 %6655  ;;  %v3881_v46 = vsel %vm3879_vm2, %v8856_v45, %v3415_v40  ;;  %v8858_v32 = vpop.eup %8857 }
0x62f3   :  { %8867 = vrcp.f32 %v6656_v60  ;;  %v4347_v47 = vsel %vm4345_vm8, %v8858_v32, %v3881_v46 }
0x62f5   :  { %v8860_v22 = vpop.eup %8859 }
0x62f6   :  { %v4813_v49 = vsel %vm4811_vm3, %v8860_v22, %v4347_v47  ;;  %v8862_v1 = vpop.eup %8861 }
0x62f7   :  { %v5279_v34 = vsel %vm5277_vm14, %v8862_v1, %v4813_v49 }
0x62f9   :  { %v8864_v5 = vpop.eup %8863 }
0x62fa   :  { %v5745_v52 = vsel %vm5743_vm13, %v8864_v5, %v5279_v34  ;;  %v8866_v21 = vpop.eup %8865 }
0x62fb   :  { %v6211_v38 = vsel %vm6209_vm15, %v8866_v21, %v5745_v52 }
0x62fd   :  { %v8868_v55 = vpop.eup %8867 }
0x62fe   :  { %v6677_v3 = vsel %vm6675_vm10, %v8868_v55, %v6211_v38 }
0x62ff   :  { %6679 = vst [vmem:[%s10516_s17] sm:$0x1] %v6677_v3 }
0x636e   :  { %v6670_v7 = vpop.xlane.xlu0 %6669 }
0x636f   :  { %v6671_v6 = vcvt.f32.s32 %v6670_v7 }
0x6371   :  { %v6674_v2 = vadd.s32 %v6673_v28, %v6671_v6 }
0x6373   :  { %v6676_v23 = vsel %vm6675_vm10, %v6674_v2, %v10397_v62 }
0x6374   :  { %6678 = vst [vmem:[%s10517_s16] sm:$0x1] %v6676_v23 }

</bundles_post_ra>
